<compile_context>
chip_gen: v5e
topology: v5e:2x2
jax: 0.10.0
libtpu: 0.0.40
codegen_flags: <defaults>
</compile_context>

<pallas_src>
import math

import jax
import jax.numpy as jnp
import numpy as np
from jax import lax
from jax.experimental import pallas as pl
from jax.experimental.pallas import tpu as pltpu

HIGH = jax.lax.Precision.HIGHEST
EPS = 1e-5


# ----------------------------------------------------------------------------
# Host-side parameter preparation (one-time, resolution dependent)
# ----------------------------------------------------------------------------
def bilinear_matrix_np(H):
  """PyTorch Upsample(scale_factor=2, mode='bilinear', align_corners=False) as a matrix."""
  out = 2 * H
  o = np.arange(out, dtype=np.float32)
  src = (o + 0.5) / 2.0 - 0.5
  i0 = np.floor(src)
  frac = (src - i0).astype(np.float32)
  i0c = np.clip(i0, 0, H - 1).astype(np.int32)
  i1c = np.clip(i0 + 1, 0, H - 1).astype(np.int32)
  U = np.zeros((out, H), np.float32)
  U[np.arange(out), i0c] += 1.0 - frac
  U[np.arange(out), i1c] += frac
  return U


def _banded_conv_weight(w, Wi, Wo, pad, stride):
  """Fold kw + width position (+ width padding + width stride) into the contraction:
     out[ho, wo*Cout+co] = xcat[ho, :] @ Wf, xcat[ho] = [rows ho..ho+KH-1], each (Wi*Cin)."""
  KH, KW, Cin, Cout = w.shape
  Wf = np.zeros((KH * Wi * Cin, Wo * Cout), np.float32)
  for kh in range(KH):
    for wo in range(Wo):
      for kw in range(KW):
        wi = stride * wo + kw - pad
        if 0 <= wi < Wi:
          r0 = kh * Wi * Cin + wi * Cin
          Wf[r0:r0 + Cin, wo * Cout:(wo + 1) * Cout] = w[kh, kw]
  return Wf


def _banded_up_weight(w, Wi, pad):
  """Compose the bilinear x2 WIDTH upsample with the 3x3/s1 banded conv weight so the
  kernel only has to row-upsample (one small matmul) before the single conv dot."""
  KH, KW, Cin, Cout = w.shape
  Wu, Wo = 2 * Wi, 2 * Wi
  Uw = bilinear_matrix_np(Wi)                                   # (Wu, Wi)
  kron = np.kron(Uw.T, np.eye(Cin, dtype=np.float32))           # (Wi*Cin, Wu*Cin)
  blocks = []
  for kh in range(KH):
    Wk = np.zeros((Wu * Cin, Wo * Cout), np.float32)
    for wo in range(Wo):
      for kw in range(KW):
        wu = wo + kw - pad
        if 0 <= wu < Wu:
          Wk[wu * Cin:(wu + 1) * Cin, wo * Cout:(wo + 1) * Cout] = w[kh, kw]
    blocks.append(kron @ Wk)
  return np.concatenate(blocks, axis=0)                         # (KH*Wi*Cin, Wo*Cout)


def _row_select_matrix(Ho, Hp, KH, stride):
  """S[kh*Ho+ho, r] = 1 iff r == stride*ho + kh (stride-2 row gather as an exact MXU op)."""
  S = np.zeros((KH * Ho, Hp), np.float32)
  for kh in range(KH):
    for ho in range(Ho):
      S[kh * Ho + ho, stride * ho + kh] = 1.0
  return S


def prepare_pallas(params, cfg, in_h, in_w):
  """Precompute kernel-ready (resolution dependent) parameter forms."""
  nmc = cfg["num_mask_channels"]
  H, W = in_h, in_w
  layers = []
  for layer in params["layers"]:
    w = np.asarray(layer["w"], np.float32)      # (KH, KW, Cin, Cout) dense (block-diag if grouped)
    KH, KW, Cin, Cout = w.shape
    stride, pad, up = layer["stride"], layer["pad"], layer["upsample_before"]
    if up:
      Ho, Wo = 2 * H, 2 * W
      Wflat = _banded_up_weight(w, W, pad)
      kind = "up"
    elif stride == 2:
      Ho = (H + 2 * pad - KH) // 2 + 1
      Wo = (W + 2 * pad - KW) // 2 + 1
      Wflat = _banded_conv_weight(w, W, Wo, pad, 2)
      kind = "s2"
    else:
      Ho, Wo = H + 2 * pad - KH + 1, W + 2 * pad - KW + 1
      Wflat = _banded_conv_weight(w, W, Wo, pad, 1)
      kind = "plain"

    Cg = Cout // nmc
    onehot = ((np.arange(Cout) // Cg)[:, None] == np.arange(nmc)[None, :]).astype(np.float32)
    Mg = np.tile(onehot, (Wo, 1))                               # (Wo*Cout, nmc)
    lp = dict(
        kind=kind, KH=KH, pad=pad, Ho=Ho, Wo=Wo, Cout=Cout, WoC=Wo * Cout,
        nelem=float(Ho * Wo * Cg),
        wflat=jnp.asarray(Wflat, jnp.bfloat16),
        bias=jnp.asarray(np.tile(np.asarray(layer["b"], np.float32), Wo)[None]),
        gamma=jnp.asarray(np.tile(np.asarray(layer["gamma"], np.float32), Wo)[None]),
        beta=jnp.asarray(np.tile(np.asarray(layer["beta"], np.float32), Wo)[None]),
        mg=jnp.asarray(Mg),
        mgt=jnp.asarray(Mg.T),
    )
    if kind == "up":
      lp["uh"] = jnp.asarray(bilinear_matrix_np(H), jnp.bfloat16)       # (2H, H) row upsample
    if kind == "s2":
      lp["ssel"] = jnp.asarray(_row_select_matrix(Ho, H + 2 * pad, KH, 2), jnp.bfloat16)
    layers.append(lp)
    H, W = Ho, Wo

  Cf = layers[-1]["Cout"]
  OutC = int(np.asarray(params["head_w"]).shape[1])
  R = np.tile(np.eye(Cf, dtype=np.float32), (W, 1))             # (Wf*Cf, Cf) lane->channel fold
  return dict(layers=layers, side=H, Cf=Cf, OutC=OutC,
              R=jnp.asarray(R),
              head_w=jnp.asarray(np.asarray(params["head_w"], np.float32)),
              head_b=jnp.asarray(np.asarray(params["head_b"], np.float32)[None]))


# ----------------------------------------------------------------------------
# Tiny host-side glue (pure indexing on small non-activation tensors)
# ----------------------------------------------------------------------------
def nearest_resize_mask(mask_nchw, side):
  B, nmc, Hm, Wm = mask_nchw.shape
  ih = (jnp.arange(side) * Hm) // side
  iw = (jnp.arange(side) * Wm) // side
  return mask_nchw[:, :, ih][:, :, :, iw].astype(jnp.float32)


def _const_idx(ndim):
  return lambda b: (0,) * ndim


def _batch_idx(ndim):
  return lambda b: (b,) + (0,) * (ndim - 1)


# ----------------------------------------------------------------------------
# One fused whole-network Pallas kernel
# ----------------------------------------------------------------------------
def eff_style_encoder_pallas(x_nchw, mask_nchw, prep, cfg, batch_tile=None):
  nmc = cfg["num_mask_channels"]
  layers = prep["layers"]
  side, Cf, OutC = prep["side"], prep["Cf"], prep["OutC"]
  B, Cin0, Hin, Win = x_nchw.shape

  if batch_tile is None:
    # Fold batch into the MXU M dimension, but keep >=2 grid steps so both v7x
    # TensorCores stay busy (dimension_semantics=("parallel",)).
    batch_tile = B // 2 if (B % 2 == 0 and B >= 4) else 1
  bt = batch_tile
  assert B % bt == 0

  # non-activation glue: input layout + mask expansion to the lane-dense layout.
  x2d = jnp.transpose(x_nchw, (0, 2, 3, 1)).astype(jnp.float32).reshape(B, Hin, Win * Cin0)
  m4 = nearest_resize_mask(mask_nchw, side)                      # (B, nmc, side, side)
  mbig = jnp.repeat(jnp.transpose(m4, (0, 2, 3, 1)), Cf // nmc, axis=-1)
  mbig = mbig.reshape(B, side, side * Cf)                        # (B, side, side*Cf)

  # ---- flat input list: batched tensors + all weights (constant index maps) ----
  inputs = [x2d, mbig]
  specs = [pl.BlockSpec((bt, Hin, Win * Cin0), _batch_idx(3)),
           pl.BlockSpec((bt, side, side * Cf), _batch_idx(3))]
  layer_refs = []
  for lp in layers:
    names = ["wflat", "bias", "gamma", "beta", "mg", "mgt"]
    if lp["kind"] == "up":
      names.append("uh")
    if lp["kind"] == "s2":
      names.append("ssel")
    layer_refs.append((len(inputs), names))
    for n in names:
      a = lp[n]
      inputs.append(a)
      specs.append(pl.BlockSpec(a.shape, _const_idx(a.ndim)))
  head_start = len(inputs)
  for a in (prep["R"], prep["head_w"], prep["head_b"]):
    inputs.append(a)
    specs.append(pl.BlockSpec(a.shape, _const_idx(a.ndim)))

  def kernel(*refs):
    o_ref = refs[-1]
    x_ref, m_ref = refs[0], refs[1]
    acts = [x_ref[i].astype(jnp.float32) for i in range(bt)]     # per-batch (Hi, Wi*Cin)

    for li, lp in enumerate(layers):
      start, names = layer_refs[li]
      lref = {n: refs[start + j] for j, n in enumerate(names)}
      Ho, WoC, KH, p = lp["Ho"], lp["WoC"], lp["KH"], lp["pad"]

      # ---- build (bt*Ho, KH*Wi*Cin) im2row block on the resident tile ----
      xcats = []
      for a in acts:
        ab = a.astype(jnp.bfloat16)
        if lp["kind"] == "up":
          # bilinear x2 row upsample (width upsample is composed into wflat)
          ab = jnp.dot(lref["uh"][...], ab,
                       preferred_element_type=jnp.float32).astype(jnp.bfloat16)
        if p:
          z = jnp.zeros((p, ab.shape[1]), jnp.bfloat16)
          ab = jnp.concatenate([z, ab, z], axis=0)               # zero row padding in VMEM
        if lp["kind"] == "s2":
          sel = lref["ssel"][...]                                # (KH*Ho, Hp) 0/1
          rows = [jnp.dot(sel[kh * Ho:(kh + 1) * Ho], ab,
                          preferred_element_type=jnp.float32).astype(jnp.bfloat16)
                  for kh in range(KH)]
          xcat = jnp.concatenate(rows, axis=1)
        else:
          xcat = jnp.concatenate([ab[kh:kh + Ho] for kh in range(KH)], axis=1)
        xcats.append(xcat)
      xall = xcats[0] if bt == 1 else jnp.concatenate(xcats, axis=0)

      # ---- conv: ONE MXU dot, f32 accumulation ----
      acc_all = jnp.dot(xall, lref["wflat"][...],
                        preferred_element_type=jnp.float32)      # (bt*Ho, Wo*Cout)

      bias = lref["bias"][...]
      gamma = lref["gamma"][...]
      beta = lref["beta"][...]
      mg = lref["mg"][...]
      mgt = lref["mgt"][...]
      inv_n = 1.0 / lp["nelem"]

      # ---- per-sample two-pass GroupNorm + ReLU (f32 epilogue) ----
      new_acts = []
      for bi in range(bt):
        acc = acc_all[bi * Ho:(bi + 1) * Ho] + bias
        s1 = jnp.sum(acc, axis=0, keepdims=True)
        mean_g = jnp.dot(s1, mg, preferred_element_type=jnp.float32) * inv_n
        mean_c = jnp.dot(mean_g, mgt, preferred_element_type=jnp.float32)
        cen = acc - mean_c
        sq = jnp.sum(cen * cen, axis=0, keepdims=True)
        var_g = jnp.dot(sq, mg, preferred_element_type=jnp.float32) * inv_n
        inv_c = jnp.dot(lax.rsqrt(var_g + EPS), mgt, preferred_element_type=jnp.float32)
        new_acts.append(jnp.maximum(cen * inv_c * gamma + beta, 0.0))
      acts = new_acts

    # ---- mask pooling + grouped 1x1 head + tanh, lane-dense layout ----
    R = refs[head_start][...]
    hw = refs[head_start + 1][...]
    hb = refs[head_start + 2][...]
    for bi in range(bt):
      h = acts[bi]                                               # (side, side*Cf) f32
      mb = m_ref[bi]                                             # (side, side*Cf) f32
      num = jnp.dot(jnp.sum(h * mb, axis=0, keepdims=True), R,
                    preferred_element_type=jnp.float32)          # (1, Cf)
      den = jnp.dot(jnp.sum(mb, axis=0, keepdims=True), R,
                    preferred_element_type=jnp.float32)
      pooled = num / (den + EPS)                                 # exact divide
      o_ref[bi] = jnp.tanh(jnp.dot(pooled, hw, preferred_element_type=jnp.float32) + hb)

  # explicit VMEM budget: every input block is double-buffered by the pipeline.
  weight_bytes = sum(int(a.size) * a.dtype.itemsize for a in inputs[2:])
  block_bytes = bt * (Hin * Win * Cin0 + side * side * Cf + OutC) * 4
  vmem_limit = int(min(max(2 * (weight_bytes + block_bytes) + (24 << 20), 32 << 20), 56 << 20))

  out = pl.pallas_call(
      kernel,
      out_shape=jax.ShapeDtypeStruct((B, 1, OutC), jnp.float32),
      grid=(B // bt,),
      in_specs=specs,
      out_specs=pl.BlockSpec((bt, 1, OutC), _batch_idx(3)),
      compiler_params=pltpu.CompilerParams(
          dimension_semantics=("parallel",),
          vmem_limit_bytes=vmem_limit),
  )(*inputs)
  return out.reshape(B, nmc, cfg["output_dim"])


# ----------------------------------------------------------------------------
# Module parameters (dense block-diagonal embedding of the grouped convs)
# ----------------------------------------------------------------------------
def build_params(key, cfg):
  nmc, nf, k = cfg["num_mask_channels"], cfg["num_feat"], cfg["kernel_dim"]
  kernels = [(nmc * nf * 2 ** i, nmc * nf * 2 ** (i + 1))
             for i in range(1, cfg["num_downsample"] + 1)]

  layer_defs = [dict(cin=cfg["input_channels"], cout=kernels[0][0], k=k,
                     stride=1, pad=0, groups=1, upsample_before=False)]
  for cin, cout in kernels:
    layer_defs.append(dict(cin=cin, cout=cout, k=3, stride=2, pad=1,
                           groups=nmc, upsample_before=False))
  for _ in range(cfg["num_upsample"]):
    c = kernels[-1][-1]
    layer_defs.append(dict(cin=c, cout=c, k=3, stride=1, pad=1,
                           groups=nmc, upsample_before=True))

  keys = jax.random.split(key, 4 * len(layer_defs) + 2)
  ki = 0
  layers = []
  for d in layer_defs:
    cin, cout, kk, g = d["cin"], d["cout"], d["k"], d["groups"]
    cin_g, cout_g = cin // g, cout // g
    fan_in = cin_g * kk * kk
    wg = jax.random.normal(keys[ki], (g, kk, kk, cin_g, cout_g), jnp.float32) / math.sqrt(fan_in)
    ki += 1
    w = jnp.zeros((kk, kk, cin, cout), jnp.float32)
    for gi in range(g):
      w = w.at[:, :, gi * cin_g:(gi + 1) * cin_g, gi * cout_g:(gi + 1) * cout_g].set(wg[gi])
    b = 0.1 * jax.random.normal(keys[ki], (cout,), jnp.float32); ki += 1
    gamma = 1.0 + 0.1 * jax.random.normal(keys[ki], (cout,), jnp.float32); ki += 1
    beta = 0.1 * jax.random.normal(keys[ki], (cout,), jnp.float32); ki += 1
    layers.append(dict(w=w, b=b, gamma=gamma, beta=beta,
                       stride=d["stride"], pad=d["pad"],
                       upsample_before=d["upsample_before"]))

  C = kernels[-1][-1]
  OutC = cfg["output_dim"] * nmc
  cin_g, cout_g = C // nmc, cfg["output_dim"]
  hw_g = jax.random.normal(keys[ki], (nmc, cin_g, cout_g), jnp.float32) / math.sqrt(cin_g)
  ki += 1
  head_w = jnp.zeros((C, OutC), jnp.float32)
  for gi in range(nmc):
    head_w = head_w.at[gi * cin_g:(gi + 1) * cin_g, gi * cout_g:(gi + 1) * cout_g].set(hw_g[gi])
  head_b = 0.1 * jax.random.normal(keys[ki], (OutC,), jnp.float32)
  return dict(layers=layers, head_w=head_w, head_b=head_b)


# ----------------------------------------------------------------------------
# Pure-JAX reference (numerical sanity check)
# ----------------------------------------------------------------------------
def _ref_groupnorm_relu(x, gamma, beta, G, eps=EPS):
  B, H, W, C = x.shape
  xg = x.reshape(B, H * W, G, C // G)
  mean = xg.mean(axis=(1, 3), keepdims=True)
  var = jnp.mean((xg - mean) ** 2, axis=(1, 3), keepdims=True)
  xn = ((xg - mean) * lax.rsqrt(var + eps)).reshape(B, H, W, C)
  return jnp.maximum(xn * gamma + beta, 0.0)


def _ref_upsample2x(x):
  B, H, W, C = x.shape
  Uh = jnp.asarray(bilinear_matrix_np(H))
  Uw = jnp.asarray(bilinear_matrix_np(W))
  y = jnp.einsum("oh,bhwc->bowc", Uh, x, precision=HIGH)
  return jnp.einsum("pw,bowc->bopc", Uw, y, precision=HIGH)


def ref_forward(x_nchw, mask_nchw, params, cfg):
  nmc = cfg["num_mask_channels"]
  x = jnp.transpose(x_nchw, (0, 2, 3, 1)).astype(jnp.float32)
  for layer in params["layers"]:
    if layer["upsample_before"]:
      x = _ref_upsample2x(x)
    x = lax.conv_general_dilated(
        x, layer["w"], (layer["stride"],) * 2,
        [(layer["pad"], layer["pad"])] * 2,
        dimension_numbers=("NHWC", "HWIO", "NHWC"),
        precision=HIGH) + layer["b"]
    x = _ref_groupnorm_relu(x, layer["gamma"], layer["beta"], nmc)
  B, side, _, C = x.shape
  m4 = nearest_resize_mask(mask_nchw, side)
  m = jnp.transpose(m4, (0, 2, 3, 1)).reshape(B, side * side, nmc)
  m_exp = jnp.repeat(m, C // nmc, axis=-1)
  h2 = x.reshape(B, side * side, C)
  pooled = jnp.sum(h2 * m_exp, axis=1) / (jnp.sum(m_exp, axis=1) + EPS)
  out = jnp.tanh(jnp.dot(pooled, params["head_w"], precision=HIGH) + params["head_b"])
  return out.reshape(B, nmc, cfg["output_dim"])


# ----------------------------------------------------------------------------
if __name__ == "__main__":
  cfg = dict(input_channels=3, num_mask_channels=4, num_downsample=2,
             num_upsample=1, num_feat=2, output_dim=8, kernel_dim=3)
  key = jax.random.PRNGKey(0)
  kp, kx, km = jax.random.split(key, 3)
  params = build_params(kp, cfg)

  B, Hin, Win = 4, 18, 18
  prep = prepare_pallas(params, cfg, Hin, Win)

  x = jax.random.normal(kx, (B, cfg["input_channels"], Hin, Win), jnp.float32)
  mask = (jax.random.uniform(km, (B, cfg["num_mask_channels"], 16, 16)) > 0.5).astype(jnp.float32)

  fwd = jax.jit(lambda xx, mm: eff_style_encoder_pallas(xx, mm, prep, cfg))
  out = jax.block_until_ready(fwd(x, mask))

  assert out.shape == (B, cfg["num_mask_channels"], cfg["output_dim"])
  assert bool(jnp.all(jnp.isfinite(out)))

  ref = ref_forward(x, mask, params, cfg)
  # Tolerance covers the intentional bf16 MXU operands (f32 accumulation) vs the f32 reference.
  np.testing.assert_allclose(np.asarray(out), np.asarray(ref), atol=5e-2, rtol=5e-2)

  print("KERNEL_OK")
</pallas_src>

<mosaic_0001>
module attributes {stable_mosaic.version = 11 : i64} {
  func.func @kernel(%arg0: i32, %arg1: memref<2x18x54xf32, #tpu.memory_space<vmem>>, %arg2: memref<2x8x512xf32, #tpu.memory_space<vmem>>, %arg3: memref<162x256xbf16, #tpu.memory_space<vmem>>, %arg4: memref<1x256xf32, #tpu.memory_space<vmem>>, %arg5: memref<1x256xf32, #tpu.memory_space<vmem>>, %arg6: memref<1x256xf32, #tpu.memory_space<vmem>>, %arg7: memref<256x4xf32, #tpu.memory_space<vmem>>, %arg8: memref<4x256xf32, #tpu.memory_space<vmem>>, %arg9: memref<768x256xbf16, #tpu.memory_space<vmem>>, %arg10: memref<1x256xf32, #tpu.memory_space<vmem>>, %arg11: memref<1x256xf32, #tpu.memory_space<vmem>>, %arg12: memref<1x256xf32, #tpu.memory_space<vmem>>, %arg13: memref<256x4xf32, #tpu.memory_space<vmem>>, %arg14: memref<4x256xf32, #tpu.memory_space<vmem>>, %arg15: memref<24x18xbf16, #tpu.memory_space<vmem>>, %arg16: memref<768x256xbf16, #tpu.memory_space<vmem>>, %arg17: memref<1x256xf32, #tpu.memory_space<vmem>>, %arg18: memref<1x256xf32, #tpu.memory_space<vmem>>, %arg19: memref<1x256xf32, #tpu.memory_space<vmem>>, %arg20: memref<256x4xf32, #tpu.memory_space<vmem>>, %arg21: memref<4x256xf32, #tpu.memory_space<vmem>>, %arg22: memref<12x10xbf16, #tpu.memory_space<vmem>>, %arg23: memref<768x512xbf16, #tpu.memory_space<vmem>>, %arg24: memref<1x512xf32, #tpu.memory_space<vmem>>, %arg25: memref<1x512xf32, #tpu.memory_space<vmem>>, %arg26: memref<1x512xf32, #tpu.memory_space<vmem>>, %arg27: memref<512x4xf32, #tpu.memory_space<vmem>>, %arg28: memref<4x512xf32, #tpu.memory_space<vmem>>, %arg29: memref<8x4xbf16, #tpu.memory_space<vmem>>, %arg30: memref<512x64xf32, #tpu.memory_space<vmem>>, %arg31: memref<64x32xf32, #tpu.memory_space<vmem>>, %arg32: memref<1x32xf32, #tpu.memory_space<vmem>>, %arg33: memref<2x1x32xf32, #tpu.memory_space<vmem>>) attributes {dimension_semantics = [#tpu.dimension_semantics<parallel>], iteration_bounds = array<i64: 2>, scalar_prefetch = 0 : i64, scratch_operands = 0 : i64, tpu.core_type = #tpu.core_type<tc>, window_params = [{transform_indices = @transform_0, window_bounds = array<i64: 2, 18, 54>}, {transform_indices = @transform_1, window_bounds = array<i64: 2, 8, 512>}, {pipeline_mode = #tpu.pipeline_mode<synchronous>, transform_indices = @transform_2, window_bounds = array<i64: 162, 256>}, {pipeline_mode = #tpu.pipeline_mode<synchronous>, transform_indices = @transform_3, window_bounds = array<i64: 1, 256>}, {pipeline_mode = #tpu.pipeline_mode<synchronous>, transform_indices = @transform_4, window_bounds = array<i64: 1, 256>}, {pipeline_mode = #tpu.pipeline_mode<synchronous>, transform_indices = @transform_5, window_bounds = array<i64: 1, 256>}, {pipeline_mode = #tpu.pipeline_mode<synchronous>, transform_indices = @transform_6, window_bounds = array<i64: 256, 4>}, {pipeline_mode = #tpu.pipeline_mode<synchronous>, transform_indices = @transform_7, window_bounds = array<i64: 4, 256>}, {pipeline_mode = #tpu.pipeline_mode<synchronous>, transform_indices = @transform_8, window_bounds = array<i64: 768, 256>}, {pipeline_mode = #tpu.pipeline_mode<synchronous>, transform_indices = @transform_9, window_bounds = array<i64: 1, 256>}, {pipeline_mode = #tpu.pipeline_mode<synchronous>, transform_indices = @transform_10, window_bounds = array<i64: 1, 256>}, {pipeline_mode = #tpu.pipeline_mode<synchronous>, transform_indices = @transform_11, window_bounds = array<i64: 1, 256>}, {pipeline_mode = #tpu.pipeline_mode<synchronous>, transform_indices = @transform_12, window_bounds = array<i64: 256, 4>}, {pipeline_mode = #tpu.pipeline_mode<synchronous>, transform_indices = @transform_13, window_bounds = array<i64: 4, 256>}, {pipeline_mode = #tpu.pipeline_mode<synchronous>, transform_indices = @transform_14, window_bounds = array<i64: 24, 18>}, {pipeline_mode = #tpu.pipeline_mode<synchronous>, transform_indices = @transform_15, window_bounds = array<i64: 768, 256>}, {pipeline_mode = #tpu.pipeline_mode<synchronous>, transform_indices = @transform_16, window_bounds = array<i64: 1, 256>}, {pipeline_mode = #tpu.pipeline_mode<synchronous>, transform_indices = @transform_17, window_bounds = array<i64: 1, 256>}, {pipeline_mode = #tpu.pipeline_mode<synchronous>, transform_indices = @transform_18, window_bounds = array<i64: 1, 256>}, {pipeline_mode = #tpu.pipeline_mode<synchronous>, transform_indices = @transform_19, window_bounds = array<i64: 256, 4>}, {pipeline_mode = #tpu.pipeline_mode<synchronous>, transform_indices = @transform_20, window_bounds = array<i64: 4, 256>}, {pipeline_mode = #tpu.pipeline_mode<synchronous>, transform_indices = @transform_21, window_bounds = array<i64: 12, 10>}, {pipeline_mode = #tpu.pipeline_mode<synchronous>, transform_indices = @transform_22, window_bounds = array<i64: 768, 512>}, {pipeline_mode = #tpu.pipeline_mode<synchronous>, transform_indices = @transform_23, window_bounds = array<i64: 1, 512>}, {pipeline_mode = #tpu.pipeline_mode<synchronous>, transform_indices = @transform_24, window_bounds = array<i64: 1, 512>}, {pipeline_mode = #tpu.pipeline_mode<synchronous>, transform_indices = @transform_25, window_bounds = array<i64: 1, 512>}, {pipeline_mode = #tpu.pipeline_mode<synchronous>, transform_indices = @transform_26, window_bounds = array<i64: 512, 4>}, {pipeline_mode = #tpu.pipeline_mode<synchronous>, transform_indices = @transform_27, window_bounds = array<i64: 4, 512>}, {pipeline_mode = #tpu.pipeline_mode<synchronous>, transform_indices = @transform_28, window_bounds = array<i64: 8, 4>}, {pipeline_mode = #tpu.pipeline_mode<synchronous>, transform_indices = @transform_29, window_bounds = array<i64: 512, 64>}, {pipeline_mode = #tpu.pipeline_mode<synchronous>, transform_indices = @transform_30, window_bounds = array<i64: 64, 32>}, {pipeline_mode = #tpu.pipeline_mode<synchronous>, transform_indices = @transform_31, window_bounds = array<i64: 1, 32>}, {transform_indices = @transform_32, window_bounds = array<i64: 2, 1, 32>}]} {
    %c0 = arith.constant 0 : index
    %c0_0 = arith.constant 0 : index
    %c0_1 = arith.constant 0 : index
    %0 = vector.load %arg1[%c0, %c0_0, %c0_1] : memref<2x18x54xf32, #tpu.memory_space<vmem>>, vector<1x18x54xf32>
    %1 = vector.shape_cast %0 : vector<1x18x54xf32> to vector<18x54xf32>
    %c1 = arith.constant 1 : index
    %c0_2 = arith.constant 0 : index
    %c0_3 = arith.constant 0 : index
    %2 = vector.load %arg1[%c1, %c0_2, %c0_3] : memref<2x18x54xf32, #tpu.memory_space<vmem>>, vector<1x18x54xf32>
    %3 = vector.shape_cast %2 : vector<1x18x54xf32> to vector<18x54xf32>
    %4 = arith.truncf %1 : vector<18x54xf32> to vector<18x54xbf16>
    %5 = vector.extract_strided_slice %4 {offsets = [0, 0], sizes = [16, 54], strides = [1, 1]} : vector<18x54xbf16> to vector<16x54xbf16>
    %6 = vector.extract_strided_slice %4 {offsets = [1, 0], sizes = [16, 54], strides = [1, 1]} : vector<18x54xbf16> to vector<16x54xbf16>
    %7 = vector.extract_strided_slice %4 {offsets = [2, 0], sizes = [16, 54], strides = [1, 1]} : vector<18x54xbf16> to vector<16x54xbf16>
    %8 = tpu.concatenate %5, %6, %7 in 1 : vector<16x54xbf16>, vector<16x54xbf16>, vector<16x54xbf16> -> vector<16x162xbf16>
    %9 = arith.truncf %3 : vector<18x54xf32> to vector<18x54xbf16>
    %10 = vector.extract_strided_slice %9 {offsets = [0, 0], sizes = [16, 54], strides = [1, 1]} : vector<18x54xbf16> to vector<16x54xbf16>
    %11 = vector.extract_strided_slice %9 {offsets = [1, 0], sizes = [16, 54], strides = [1, 1]} : vector<18x54xbf16> to vector<16x54xbf16>
    %12 = vector.extract_strided_slice %9 {offsets = [2, 0], sizes = [16, 54], strides = [1, 1]} : vector<18x54xbf16> to vector<16x54xbf16>
    %13 = tpu.concatenate %10, %11, %12 in 1 : vector<16x54xbf16>, vector<16x54xbf16>, vector<16x54xbf16> -> vector<16x162xbf16>
    %14 = tpu.concatenate %8, %13 in 0 : vector<16x162xbf16>, vector<16x162xbf16> -> vector<32x162xbf16>
    %c0_4 = arith.constant 0 : index
    %c0_5 = arith.constant 0 : index
    %15 = vector.load %arg3[%c0_4, %c0_5] : memref<162x256xbf16, #tpu.memory_space<vmem>>, vector<162x256xbf16>
    %cst = arith.constant dense<0.000000e+00> : vector<32x256xf32>
    %16 = tpu.matmul %14, %15, %cst {dimension_numbers = #tpu.dot_dimension_numbers<[1], [0], [0], [1], [0, 0, 1, 1], [], []>} : vector<32x162xbf16>, vector<162x256xbf16>, vector<32x256xf32> -> vector<32x256xf32>
    %c0_6 = arith.constant 0 : index
    %c0_7 = arith.constant 0 : index
    %17 = vector.load %arg4[%c0_6, %c0_7] : memref<1x256xf32, #tpu.memory_space<vmem>>, vector<1x256xf32>
    %c0_8 = arith.constant 0 : index
    %c0_9 = arith.constant 0 : index
    %18 = vector.load %arg5[%c0_8, %c0_9] : memref<1x256xf32, #tpu.memory_space<vmem>>, vector<1x256xf32>
    %c0_10 = arith.constant 0 : index
    %c0_11 = arith.constant 0 : index
    %19 = vector.load %arg6[%c0_10, %c0_11] : memref<1x256xf32, #tpu.memory_space<vmem>>, vector<1x256xf32>
    %c0_12 = arith.constant 0 : index
    %c0_13 = arith.constant 0 : index
    %20 = vector.load %arg7[%c0_12, %c0_13] : memref<256x4xf32, #tpu.memory_space<vmem>>, vector<256x4xf32>
    %c0_14 = arith.constant 0 : index
    %c0_15 = arith.constant 0 : index
    %21 = vector.load %arg8[%c0_14, %c0_15] : memref<4x256xf32, #tpu.memory_space<vmem>>, vector<4x256xf32>
    %22 = vector.extract_strided_slice %16 {offsets = [0, 0], sizes = [16, 256], strides = [1, 1]} : vector<32x256xf32> to vector<16x256xf32>
    %23 = vector.broadcast %17 : vector<1x256xf32> to vector<16x256xf32>
    %24 = arith.addf %22, %23 : vector<16x256xf32>
    %cst_16 = arith.constant dense<0.000000e+00> : vector<256xf32>
    %25 = vector.multi_reduction <add>, %24, %cst_16 [0] : vector<16x256xf32> to vector<256xf32>
    %26 = vector.shape_cast %25 : vector<256xf32> to vector<1x256xf32>
    %cst_17 = arith.constant dense<0.000000e+00> : vector<1x4xf32>
    %27 = tpu.matmul %26, %20, %cst_17 {dimension_numbers = #tpu.dot_dimension_numbers<[1], [0], [0], [1], [0, 0, 1, 1], [], []>} : vector<1x256xf32>, vector<256x4xf32>, vector<1x4xf32> -> vector<1x4xf32>
    %cst_18 = arith.constant 9.765625E-4 : f32
    %28 = vector.broadcast %cst_18 : f32 to vector<1x4xf32>
    %29 = arith.mulf %27, %28 : vector<1x4xf32>
    %cst_19 = arith.constant dense<0.000000e+00> : vector<1x256xf32>
    %30 = tpu.matmul %29, %21, %cst_19 {dimension_numbers = #tpu.dot_dimension_numbers<[1], [0], [0], [1], [0, 0, 1, 1], [], []>} : vector<1x4xf32>, vector<4x256xf32>, vector<1x256xf32> -> vector<1x256xf32>
    %31 = vector.broadcast %30 : vector<1x256xf32> to vector<16x256xf32>
    %32 = arith.subf %24, %31 : vector<16x256xf32>
    %33 = arith.mulf %32, %32 : vector<16x256xf32>
    %cst_20 = arith.constant dense<0.000000e+00> : vector<256xf32>
    %34 = vector.multi_reduction <add>, %33, %cst_20 [0] : vector<16x256xf32> to vector<256xf32>
    %35 = vector.shape_cast %34 : vector<256xf32> to vector<1x256xf32>
    %cst_21 = arith.constant dense<0.000000e+00> : vector<1x4xf32>
    %36 = tpu.matmul %35, %20, %cst_21 {dimension_numbers = #tpu.dot_dimension_numbers<[1], [0], [0], [1], [0, 0, 1, 1], [], []>} : vector<1x256xf32>, vector<256x4xf32>, vector<1x4xf32> -> vector<1x4xf32>
    %cst_22 = arith.constant 9.765625E-4 : f32
    %37 = vector.broadcast %cst_22 : f32 to vector<1x4xf32>
    %38 = arith.mulf %36, %37 : vector<1x4xf32>
    %cst_23 = arith.constant 9.99999974E-6 : f32
    %39 = vector.broadcast %cst_23 : f32 to vector<1x4xf32>
    %40 = arith.addf %38, %39 : vector<1x4xf32>
    %41 = math.rsqrt %40 : vector<1x4xf32>
    %cst_24 = arith.constant dense<0.000000e+00> : vector<1x256xf32>
    %42 = tpu.matmul %41, %21, %cst_24 {dimension_numbers = #tpu.dot_dimension_numbers<[1], [0], [0], [1], [0, 0, 1, 1], [], []>} : vector<1x4xf32>, vector<4x256xf32>, vector<1x256xf32> -> vector<1x256xf32>
    %43 = vector.broadcast %42 : vector<1x256xf32> to vector<16x256xf32>
    %44 = arith.mulf %32, %43 : vector<16x256xf32>
    %45 = vector.broadcast %18 : vector<1x256xf32> to vector<16x256xf32>
    %46 = arith.mulf %44, %45 : vector<16x256xf32>
    %47 = vector.broadcast %19 : vector<1x256xf32> to vector<16x256xf32>
    %48 = arith.addf %46, %47 : vector<16x256xf32>
    %cst_25 = arith.constant 0.000000e+00 : f32
    %49 = vector.broadcast %cst_25 : f32 to vector<16x256xf32>
    %50 = arith.maximumf %48, %49 : vector<16x256xf32>
    %51 = vector.extract_strided_slice %16 {offsets = [16, 0], sizes = [16, 256], strides = [1, 1]} : vector<32x256xf32> to vector<16x256xf32>
    %52 = vector.broadcast %17 : vector<1x256xf32> to vector<16x256xf32>
    %53 = arith.addf %51, %52 : vector<16x256xf32>
    %cst_26 = arith.constant dense<0.000000e+00> : vector<256xf32>
    %54 = vector.multi_reduction <add>, %53, %cst_26 [0] : vector<16x256xf32> to vector<256xf32>
    %55 = vector.shape_cast %54 : vector<256xf32> to vector<1x256xf32>
    %cst_27 = arith.constant dense<0.000000e+00> : vector<1x4xf32>
    %56 = tpu.matmul %55, %20, %cst_27 {dimension_numbers = #tpu.dot_dimension_numbers<[1], [0], [0], [1], [0, 0, 1, 1], [], []>} : vector<1x256xf32>, vector<256x4xf32>, vector<1x4xf32> -> vector<1x4xf32>
    %cst_28 = arith.constant 9.765625E-4 : f32
    %57 = vector.broadcast %cst_28 : f32 to vector<1x4xf32>
    %58 = arith.mulf %56, %57 : vector<1x4xf32>
    %cst_29 = arith.constant dense<0.000000e+00> : vector<1x256xf32>
    %59 = tpu.matmul %58, %21, %cst_29 {dimension_numbers = #tpu.dot_dimension_numbers<[1], [0], [0], [1], [0, 0, 1, 1], [], []>} : vector<1x4xf32>, vector<4x256xf32>, vector<1x256xf32> -> vector<1x256xf32>
    %60 = vector.broadcast %59 : vector<1x256xf32> to vector<16x256xf32>
    %61 = arith.subf %53, %60 : vector<16x256xf32>
    %62 = arith.mulf %61, %61 : vector<16x256xf32>
    %cst_30 = arith.constant dense<0.000000e+00> : vector<256xf32>
    %63 = vector.multi_reduction <add>, %62, %cst_30 [0] : vector<16x256xf32> to vector<256xf32>
    %64 = vector.shape_cast %63 : vector<256xf32> to vector<1x256xf32>
    %cst_31 = arith.constant dense<0.000000e+00> : vector<1x4xf32>
    %65 = tpu.matmul %64, %20, %cst_31 {dimension_numbers = #tpu.dot_dimension_numbers<[1], [0], [0], [1], [0, 0, 1, 1], [], []>} : vector<1x256xf32>, vector<256x4xf32>, vector<1x4xf32> -> vector<1x4xf32>
    %cst_32 = arith.constant 9.765625E-4 : f32
    %66 = vector.broadcast %cst_32 : f32 to vector<1x4xf32>
    %67 = arith.mulf %65, %66 : vector<1x4xf32>
    %cst_33 = arith.constant 9.99999974E-6 : f32
    %68 = vector.broadcast %cst_33 : f32 to vector<1x4xf32>
    %69 = arith.addf %67, %68 : vector<1x4xf32>
    %70 = math.rsqrt %69 : vector<1x4xf32>
    %cst_34 = arith.constant dense<0.000000e+00> : vector<1x256xf32>
    %71 = tpu.matmul %70, %21, %cst_34 {dimension_numbers = #tpu.dot_dimension_numbers<[1], [0], [0], [1], [0, 0, 1, 1], [], []>} : vector<1x4xf32>, vector<4x256xf32>, vector<1x256xf32> -> vector<1x256xf32>
    %72 = vector.broadcast %71 : vector<1x256xf32> to vector<16x256xf32>
    %73 = arith.mulf %61, %72 : vector<16x256xf32>
    %74 = vector.broadcast %18 : vector<1x256xf32> to vector<16x256xf32>
    %75 = arith.mulf %73, %74 : vector<16x256xf32>
    %76 = vector.broadcast %19 : vector<1x256xf32> to vector<16x256xf32>
    %77 = arith.addf %75, %76 : vector<16x256xf32>
    %cst_35 = arith.constant 0.000000e+00 : f32
    %78 = vector.broadcast %cst_35 : f32 to vector<16x256xf32>
    %79 = arith.maximumf %77, %78 : vector<16x256xf32>
    %80 = arith.truncf %50 : vector<16x256xf32> to vector<16x256xbf16>
    %cst_36 = arith.constant 0.000000e+00 : bf16
    %81 = vector.broadcast %cst_36 : bf16 to vector<1x256xbf16>
    %82 = tpu.concatenate %81, %80, %81 in 0 : vector<1x256xbf16>, vector<16x256xbf16>, vector<1x256xbf16> -> vector<18x256xbf16>
    %c0_37 = arith.constant 0 : index
    %c0_38 = arith.constant 0 : index
    %83 = vector.load %arg15[%c0_37, %c0_38] : memref<24x18xbf16, #tpu.memory_space<vmem>>, vector<24x18xbf16>
    %84 = vector.extract_strided_slice %83 {offsets = [0, 0], sizes = [8, 18], strides = [1, 1]} : vector<24x18xbf16> to vector<8x18xbf16>
    %cst_39 = arith.constant dense<0.000000e+00> : vector<8x256xf32>
    %85 = tpu.matmul %84, %82, %cst_39 {dimension_numbers = #tpu.dot_dimension_numbers<[1], [0], [0], [1], [0, 0, 1, 1], [], []>} : vector<8x18xbf16>, vector<18x256xbf16>, vector<8x256xf32> -> vector<8x256xf32>
    %86 = arith.truncf %85 : vector<8x256xf32> to vector<8x256xbf16>
    %87 = vector.extract_strided_slice %83 {offsets = [8, 0], sizes = [8, 18], strides = [1, 1]} : vector<24x18xbf16> to vector<8x18xbf16>
    %cst_40 = arith.constant dense<0.000000e+00> : vector<8x256xf32>
    %88 = tpu.matmul %87, %82, %cst_40 {dimension_numbers = #tpu.dot_dimension_numbers<[1], [0], [0], [1], [0, 0, 1, 1], [], []>} : vector<8x18xbf16>, vector<18x256xbf16>, vector<8x256xf32> -> vector<8x256xf32>
    %89 = arith.truncf %88 : vector<8x256xf32> to vector<8x256xbf16>
    %90 = vector.extract_strided_slice %83 {offsets = [16, 0], sizes = [8, 18], strides = [1, 1]} : vector<24x18xbf16> to vector<8x18xbf16>
    %cst_41 = arith.constant dense<0.000000e+00> : vector<8x256xf32>
    %91 = tpu.matmul %90, %82, %cst_41 {dimension_numbers = #tpu.dot_dimension_numbers<[1], [0], [0], [1], [0, 0, 1, 1], [], []>} : vector<8x18xbf16>, vector<18x256xbf16>, vector<8x256xf32> -> vector<8x256xf32>
    %92 = arith.truncf %91 : vector<8x256xf32> to vector<8x256xbf16>
    %93 = tpu.concatenate %86, %89, %92 in 1 : vector<8x256xbf16>, vector<8x256xbf16>, vector<8x256xbf16> -> vector<8x768xbf16>
    %94 = arith.truncf %79 : vector<16x256xf32> to vector<16x256xbf16>
    %cst_42 = arith.constant 0.000000e+00 : bf16
    %95 = vector.broadcast %cst_42 : bf16 to vector<1x256xbf16>
    %96 = tpu.concatenate %95, %94, %95 in 0 : vector<1x256xbf16>, vector<16x256xbf16>, vector<1x256xbf16> -> vector<18x256xbf16>
    %c0_43 = arith.constant 0 : index
    %c0_44 = arith.constant 0 : index
    %97 = vector.load %arg15[%c0_43, %c0_44] : memref<24x18xbf16, #tpu.memory_space<vmem>>, vector<24x18xbf16>
    %98 = vector.extract_strided_slice %97 {offsets = [0, 0], sizes = [8, 18], strides = [1, 1]} : vector<24x18xbf16> to vector<8x18xbf16>
    %cst_45 = arith.constant dense<0.000000e+00> : vector<8x256xf32>
    %99 = tpu.matmul %98, %96, %cst_45 {dimension_numbers = #tpu.dot_dimension_numbers<[1], [0], [0], [1], [0, 0, 1, 1], [], []>} : vector<8x18xbf16>, vector<18x256xbf16>, vector<8x256xf32> -> vector<8x256xf32>
    %100 = arith.truncf %99 : vector<8x256xf32> to vector<8x256xbf16>
    %101 = vector.extract_strided_slice %97 {offsets = [8, 0], sizes = [8, 18], strides = [1, 1]} : vector<24x18xbf16> to vector<8x18xbf16>
    %cst_46 = arith.constant dense<0.000000e+00> : vector<8x256xf32>
    %102 = tpu.matmul %101, %96, %cst_46 {dimension_numbers = #tpu.dot_dimension_numbers<[1], [0], [0], [1], [0, 0, 1, 1], [], []>} : vector<8x18xbf16>, vector<18x256xbf16>, vector<8x256xf32> -> vector<8x256xf32>
    %103 = arith.truncf %102 : vector<8x256xf32> to vector<8x256xbf16>
    %104 = vector.extract_strided_slice %97 {offsets = [16, 0], sizes = [8, 18], strides = [1, 1]} : vector<24x18xbf16> to vector<8x18xbf16>
    %cst_47 = arith.constant dense<0.000000e+00> : vector<8x256xf32>
    %105 = tpu.matmul %104, %96, %cst_47 {dimension_numbers = #tpu.dot_dimension_numbers<[1], [0], [0], [1], [0, 0, 1, 1], [], []>} : vector<8x18xbf16>, vector<18x256xbf16>, vector<8x256xf32> -> vector<8x256xf32>
    %106 = arith.truncf %105 : vector<8x256xf32> to vector<8x256xbf16>
    %107 = tpu.concatenate %100, %103, %106 in 1 : vector<8x256xbf16>, vector<8x256xbf16>, vector<8x256xbf16> -> vector<8x768xbf16>
    %108 = tpu.concatenate %93, %107 in 0 : vector<8x768xbf16>, vector<8x768xbf16> -> vector<16x768xbf16>
    %c0_48 = arith.constant 0 : index
    %c0_49 = arith.constant 0 : index
    %109 = vector.load %arg9[%c0_48, %c0_49] : memref<768x256xbf16, #tpu.memory_space<vmem>>, vector<768x256xbf16>
    %cst_50 = arith.constant dense<0.000000e+00> : vector<16x256xf32>
    %110 = tpu.matmul %108, %109, %cst_50 {dimension_numbers = #tpu.dot_dimension_numbers<[1], [0], [0], [1], [0, 0, 1, 1], [], []>} : vector<16x768xbf16>, vector<768x256xbf16>, vector<16x256xf32> -> vector<16x256xf32>
    %c0_51 = arith.constant 0 : index
    %c0_52 = arith.constant 0 : index
    %111 = vector.load %arg10[%c0_51, %c0_52] : memref<1x256xf32, #tpu.memory_space<vmem>>, vector<1x256xf32>
    %c0_53 = arith.constant 0 : index
    %c0_54 = arith.constant 0 : index
    %112 = vector.load %arg11[%c0_53, %c0_54] : memref<1x256xf32, #tpu.memory_space<vmem>>, vector<1x256xf32>
    %c0_55 = arith.constant 0 : index
    %c0_56 = arith.constant 0 : index
    %113 = vector.load %arg12[%c0_55, %c0_56] : memref<1x256xf32, #tpu.memory_space<vmem>>, vector<1x256xf32>
    %c0_57 = arith.constant 0 : index
    %c0_58 = arith.constant 0 : index
    %114 = vector.load %arg13[%c0_57, %c0_58] : memref<256x4xf32, #tpu.memory_space<vmem>>, vector<256x4xf32>
    %c0_59 = arith.constant 0 : index
    %c0_60 = arith.constant 0 : index
    %115 = vector.load %arg14[%c0_59, %c0_60] : memref<4x256xf32, #tpu.memory_space<vmem>>, vector<4x256xf32>
    %116 = vector.extract_strided_slice %110 {offsets = [0, 0], sizes = [8, 256], strides = [1, 1]} : vector<16x256xf32> to vector<8x256xf32>
    %117 = vector.broadcast %111 : vector<1x256xf32> to vector<8x256xf32>
    %118 = arith.addf %116, %117 : vector<8x256xf32>
    %cst_61 = arith.constant dense<0.000000e+00> : vector<256xf32>
    %119 = vector.multi_reduction <add>, %118, %cst_61 [0] : vector<8x256xf32> to vector<256xf32>
    %120 = vector.shape_cast %119 : vector<256xf32> to vector<1x256xf32>
    %cst_62 = arith.constant dense<0.000000e+00> : vector<1x4xf32>
    %121 = tpu.matmul %120, %114, %cst_62 {dimension_numbers = #tpu.dot_dimension_numbers<[1], [0], [0], [1], [0, 0, 1, 1], [], []>} : vector<1x256xf32>, vector<256x4xf32>, vector<1x4xf32> -> vector<1x4xf32>
    %cst_63 = arith.constant 0.001953125 : f32
    %122 = vector.broadcast %cst_63 : f32 to vector<1x4xf32>
    %123 = arith.mulf %121, %122 : vector<1x4xf32>
    %cst_64 = arith.constant dense<0.000000e+00> : vector<1x256xf32>
    %124 = tpu.matmul %123, %115, %cst_64 {dimension_numbers = #tpu.dot_dimension_numbers<[1], [0], [0], [1], [0, 0, 1, 1], [], []>} : vector<1x4xf32>, vector<4x256xf32>, vector<1x256xf32> -> vector<1x256xf32>
    %125 = vector.broadcast %124 : vector<1x256xf32> to vector<8x256xf32>
    %126 = arith.subf %118, %125 : vector<8x256xf32>
    %127 = arith.mulf %126, %126 : vector<8x256xf32>
    %cst_65 = arith.constant dense<0.000000e+00> : vector<256xf32>
    %128 = vector.multi_reduction <add>, %127, %cst_65 [0] : vector<8x256xf32> to vector<256xf32>
    %129 = vector.shape_cast %128 : vector<256xf32> to vector<1x256xf32>
    %cst_66 = arith.constant dense<0.000000e+00> : vector<1x4xf32>
    %130 = tpu.matmul %129, %114, %cst_66 {dimension_numbers = #tpu.dot_dimension_numbers<[1], [0], [0], [1], [0, 0, 1, 1], [], []>} : vector<1x256xf32>, vector<256x4xf32>, vector<1x4xf32> -> vector<1x4xf32>
    %cst_67 = arith.constant 0.001953125 : f32
    %131 = vector.broadcast %cst_67 : f32 to vector<1x4xf32>
    %132 = arith.mulf %130, %131 : vector<1x4xf32>
    %cst_68 = arith.constant 9.99999974E-6 : f32
    %133 = vector.broadcast %cst_68 : f32 to vector<1x4xf32>
    %134 = arith.addf %132, %133 : vector<1x4xf32>
    %135 = math.rsqrt %134 : vector<1x4xf32>
    %cst_69 = arith.constant dense<0.000000e+00> : vector<1x256xf32>
    %136 = tpu.matmul %135, %115, %cst_69 {dimension_numbers = #tpu.dot_dimension_numbers<[1], [0], [0], [1], [0, 0, 1, 1], [], []>} : vector<1x4xf32>, vector<4x256xf32>, vector<1x256xf32> -> vector<1x256xf32>
    %137 = vector.broadcast %136 : vector<1x256xf32> to vector<8x256xf32>
    %138 = arith.mulf %126, %137 : vector<8x256xf32>
    %139 = vector.broadcast %112 : vector<1x256xf32> to vector<8x256xf32>
    %140 = arith.mulf %138, %139 : vector<8x256xf32>
    %141 = vector.broadcast %113 : vector<1x256xf32> to vector<8x256xf32>
    %142 = arith.addf %140, %141 : vector<8x256xf32>
    %cst_70 = arith.constant 0.000000e+00 : f32
    %143 = vector.broadcast %cst_70 : f32 to vector<8x256xf32>
    %144 = arith.maximumf %142, %143 : vector<8x256xf32>
    %145 = vector.extract_strided_slice %110 {offsets = [8, 0], sizes = [8, 256], strides = [1, 1]} : vector<16x256xf32> to vector<8x256xf32>
    %146 = vector.broadcast %111 : vector<1x256xf32> to vector<8x256xf32>
    %147 = arith.addf %145, %146 : vector<8x256xf32>
    %cst_71 = arith.constant dense<0.000000e+00> : vector<256xf32>
    %148 = vector.multi_reduction <add>, %147, %cst_71 [0] : vector<8x256xf32> to vector<256xf32>
    %149 = vector.shape_cast %148 : vector<256xf32> to vector<1x256xf32>
    %cst_72 = arith.constant dense<0.000000e+00> : vector<1x4xf32>
    %150 = tpu.matmul %149, %114, %cst_72 {dimension_numbers = #tpu.dot_dimension_numbers<[1], [0], [0], [1], [0, 0, 1, 1], [], []>} : vector<1x256xf32>, vector<256x4xf32>, vector<1x4xf32> -> vector<1x4xf32>
    %cst_73 = arith.constant 0.001953125 : f32
    %151 = vector.broadcast %cst_73 : f32 to vector<1x4xf32>
    %152 = arith.mulf %150, %151 : vector<1x4xf32>
    %cst_74 = arith.constant dense<0.000000e+00> : vector<1x256xf32>
    %153 = tpu.matmul %152, %115, %cst_74 {dimension_numbers = #tpu.dot_dimension_numbers<[1], [0], [0], [1], [0, 0, 1, 1], [], []>} : vector<1x4xf32>, vector<4x256xf32>, vector<1x256xf32> -> vector<1x256xf32>
    %154 = vector.broadcast %153 : vector<1x256xf32> to vector<8x256xf32>
    %155 = arith.subf %147, %154 : vector<8x256xf32>
    %156 = arith.mulf %155, %155 : vector<8x256xf32>
    %cst_75 = arith.constant dense<0.000000e+00> : vector<256xf32>
    %157 = vector.multi_reduction <add>, %156, %cst_75 [0] : vector<8x256xf32> to vector<256xf32>
    %158 = vector.shape_cast %157 : vector<256xf32> to vector<1x256xf32>
    %cst_76 = arith.constant dense<0.000000e+00> : vector<1x4xf32>
    %159 = tpu.matmul %158, %114, %cst_76 {dimension_numbers = #tpu.dot_dimension_numbers<[1], [0], [0], [1], [0, 0, 1, 1], [], []>} : vector<1x256xf32>, vector<256x4xf32>, vector<1x4xf32> -> vector<1x4xf32>
    %cst_77 = arith.constant 0.001953125 : f32
    %160 = vector.broadcast %cst_77 : f32 to vector<1x4xf32>
    %161 = arith.mulf %159, %160 : vector<1x4xf32>
    %cst_78 = arith.constant 9.99999974E-6 : f32
    %162 = vector.broadcast %cst_78 : f32 to vector<1x4xf32>
    %163 = arith.addf %161, %162 : vector<1x4xf32>
    %164 = math.rsqrt %163 : vector<1x4xf32>
    %cst_79 = arith.constant dense<0.000000e+00> : vector<1x256xf32>
    %165 = tpu.matmul %164, %115, %cst_79 {dimension_numbers = #tpu.dot_dimension_numbers<[1], [0], [0], [1], [0, 0, 1, 1], [], []>} : vector<1x4xf32>, vector<4x256xf32>, vector<1x256xf32> -> vector<1x256xf32>
    %166 = vector.broadcast %165 : vector<1x256xf32> to vector<8x256xf32>
    %167 = arith.mulf %155, %166 : vector<8x256xf32>
    %168 = vector.broadcast %112 : vector<1x256xf32> to vector<8x256xf32>
    %169 = arith.mulf %167, %168 : vector<8x256xf32>
    %170 = vector.broadcast %113 : vector<1x256xf32> to vector<8x256xf32>
    %171 = arith.addf %169, %170 : vector<8x256xf32>
    %cst_80 = arith.constant 0.000000e+00 : f32
    %172 = vector.broadcast %cst_80 : f32 to vector<8x256xf32>
    %173 = arith.maximumf %171, %172 : vector<8x256xf32>
    %174 = arith.truncf %144 : vector<8x256xf32> to vector<8x256xbf16>
    %cst_81 = arith.constant 0.000000e+00 : bf16
    %175 = vector.broadcast %cst_81 : bf16 to vector<1x256xbf16>
    %176 = tpu.concatenate %175, %174, %175 in 0 : vector<1x256xbf16>, vector<8x256xbf16>, vector<1x256xbf16> -> vector<10x256xbf16>
    %c0_82 = arith.constant 0 : index
    %c0_83 = arith.constant 0 : index
    %177 = vector.load %arg22[%c0_82, %c0_83] : memref<12x10xbf16, #tpu.memory_space<vmem>>, vector<12x10xbf16>
    %178 = vector.extract_strided_slice %177 {offsets = [0, 0], sizes = [4, 10], strides = [1, 1]} : vector<12x10xbf16> to vector<4x10xbf16>
    %cst_84 = arith.constant dense<0.000000e+00> : vector<4x256xf32>
    %179 = tpu.matmul %178, %176, %cst_84 {dimension_numbers = #tpu.dot_dimension_numbers<[1], [0], [0], [1], [0, 0, 1, 1], [], []>} : vector<4x10xbf16>, vector<10x256xbf16>, vector<4x256xf32> -> vector<4x256xf32>
    %180 = arith.truncf %179 : vector<4x256xf32> to vector<4x256xbf16>
    %181 = vector.extract_strided_slice %177 {offsets = [4, 0], sizes = [4, 10], strides = [1, 1]} : vector<12x10xbf16> to vector<4x10xbf16>
    %cst_85 = arith.constant dense<0.000000e+00> : vector<4x256xf32>
    %182 = tpu.matmul %181, %176, %cst_85 {dimension_numbers = #tpu.dot_dimension_numbers<[1], [0], [0], [1], [0, 0, 1, 1], [], []>} : vector<4x10xbf16>, vector<10x256xbf16>, vector<4x256xf32> -> vector<4x256xf32>
    %183 = arith.truncf %182 : vector<4x256xf32> to vector<4x256xbf16>
    %184 = vector.extract_strided_slice %177 {offsets = [8, 0], sizes = [4, 10], strides = [1, 1]} : vector<12x10xbf16> to vector<4x10xbf16>
    %cst_86 = arith.constant dense<0.000000e+00> : vector<4x256xf32>
    %185 = tpu.matmul %184, %176, %cst_86 {dimension_numbers = #tpu.dot_dimension_numbers<[1], [0], [0], [1], [0, 0, 1, 1], [], []>} : vector<4x10xbf16>, vector<10x256xbf16>, vector<4x256xf32> -> vector<4x256xf32>
    %186 = arith.truncf %185 : vector<4x256xf32> to vector<4x256xbf16>
    %187 = tpu.concatenate %180, %183, %186 in 1 : vector<4x256xbf16>, vector<4x256xbf16>, vector<4x256xbf16> -> vector<4x768xbf16>
    %188 = arith.truncf %173 : vector<8x256xf32> to vector<8x256xbf16>
    %cst_87 = arith.constant 0.000000e+00 : bf16
    %189 = vector.broadcast %cst_87 : bf16 to vector<1x256xbf16>
    %190 = tpu.concatenate %189, %188, %189 in 0 : vector<1x256xbf16>, vector<8x256xbf16>, vector<1x256xbf16> -> vector<10x256xbf16>
    %c0_88 = arith.constant 0 : index
    %c0_89 = arith.constant 0 : index
    %191 = vector.load %arg22[%c0_88, %c0_89] : memref<12x10xbf16, #tpu.memory_space<vmem>>, vector<12x10xbf16>
    %192 = vector.extract_strided_slice %191 {offsets = [0, 0], sizes = [4, 10], strides = [1, 1]} : vector<12x10xbf16> to vector<4x10xbf16>
    %cst_90 = arith.constant dense<0.000000e+00> : vector<4x256xf32>
    %193 = tpu.matmul %192, %190, %cst_90 {dimension_numbers = #tpu.dot_dimension_numbers<[1], [0], [0], [1], [0, 0, 1, 1], [], []>} : vector<4x10xbf16>, vector<10x256xbf16>, vector<4x256xf32> -> vector<4x256xf32>
    %194 = arith.truncf %193 : vector<4x256xf32> to vector<4x256xbf16>
    %195 = vector.extract_strided_slice %191 {offsets = [4, 0], sizes = [4, 10], strides = [1, 1]} : vector<12x10xbf16> to vector<4x10xbf16>
    %cst_91 = arith.constant dense<0.000000e+00> : vector<4x256xf32>
    %196 = tpu.matmul %195, %190, %cst_91 {dimension_numbers = #tpu.dot_dimension_numbers<[1], [0], [0], [1], [0, 0, 1, 1], [], []>} : vector<4x10xbf16>, vector<10x256xbf16>, vector<4x256xf32> -> vector<4x256xf32>
    %197 = arith.truncf %196 : vector<4x256xf32> to vector<4x256xbf16>
    %198 = vector.extract_strided_slice %191 {offsets = [8, 0], sizes = [4, 10], strides = [1, 1]} : vector<12x10xbf16> to vector<4x10xbf16>
    %cst_92 = arith.constant dense<0.000000e+00> : vector<4x256xf32>
    %199 = tpu.matmul %198, %190, %cst_92 {dimension_numbers = #tpu.dot_dimension_numbers<[1], [0], [0], [1], [0, 0, 1, 1], [], []>} : vector<4x10xbf16>, vector<10x256xbf16>, vector<4x256xf32> -> vector<4x256xf32>
    %200 = arith.truncf %199 : vector<4x256xf32> to vector<4x256xbf16>
    %201 = tpu.concatenate %194, %197, %200 in 1 : vector<4x256xbf16>, vector<4x256xbf16>, vector<4x256xbf16> -> vector<4x768xbf16>
    %202 = tpu.concatenate %187, %201 in 0 : vector<4x768xbf16>, vector<4x768xbf16> -> vector<8x768xbf16>
    %c0_93 = arith.constant 0 : index
    %c0_94 = arith.constant 0 : index
    %203 = vector.load %arg16[%c0_93, %c0_94] : memref<768x256xbf16, #tpu.memory_space<vmem>>, vector<768x256xbf16>
    %cst_95 = arith.constant dense<0.000000e+00> : vector<8x256xf32>
    %204 = tpu.matmul %202, %203, %cst_95 {dimension_numbers = #tpu.dot_dimension_numbers<[1], [0], [0], [1], [0, 0, 1, 1], [], []>} : vector<8x768xbf16>, vector<768x256xbf16>, vector<8x256xf32> -> vector<8x256xf32>
    %c0_96 = arith.constant 0 : index
    %c0_97 = arith.constant 0 : index
    %205 = vector.load %arg17[%c0_96, %c0_97] : memref<1x256xf32, #tpu.memory_space<vmem>>, vector<1x256xf32>
    %c0_98 = arith.constant 0 : index
    %c0_99 = arith.constant 0 : index
    %206 = vector.load %arg18[%c0_98, %c0_99] : memref<1x256xf32, #tpu.memory_space<vmem>>, vector<1x256xf32>
    %c0_100 = arith.constant 0 : index
    %c0_101 = arith.constant 0 : index
    %207 = vector.load %arg19[%c0_100, %c0_101] : memref<1x256xf32, #tpu.memory_space<vmem>>, vector<1x256xf32>
    %c0_102 = arith.constant 0 : index
    %c0_103 = arith.constant 0 : index
    %208 = vector.load %arg20[%c0_102, %c0_103] : memref<256x4xf32, #tpu.memory_space<vmem>>, vector<256x4xf32>
    %c0_104 = arith.constant 0 : index
    %c0_105 = arith.constant 0 : index
    %209 = vector.load %arg21[%c0_104, %c0_105] : memref<4x256xf32, #tpu.memory_space<vmem>>, vector<4x256xf32>
    %210 = vector.extract_strided_slice %204 {offsets = [0, 0], sizes = [4, 256], strides = [1, 1]} : vector<8x256xf32> to vector<4x256xf32>
    %211 = vector.broadcast %205 : vector<1x256xf32> to vector<4x256xf32>
    %212 = arith.addf %210, %211 : vector<4x256xf32>
    %cst_106 = arith.constant dense<0.000000e+00> : vector<256xf32>
    %213 = vector.multi_reduction <add>, %212, %cst_106 [0] : vector<4x256xf32> to vector<256xf32>
    %214 = vector.shape_cast %213 : vector<256xf32> to vector<1x256xf32>
    %cst_107 = arith.constant dense<0.000000e+00> : vector<1x4xf32>
    %215 = tpu.matmul %214, %208, %cst_107 {dimension_numbers = #tpu.dot_dimension_numbers<[1], [0], [0], [1], [0, 0, 1, 1], [], []>} : vector<1x256xf32>, vector<256x4xf32>, vector<1x4xf32> -> vector<1x4xf32>
    %cst_108 = arith.constant 3.906250e-03 : f32
    %216 = vector.broadcast %cst_108 : f32 to vector<1x4xf32>
    %217 = arith.mulf %215, %216 : vector<1x4xf32>
    %cst_109 = arith.constant dense<0.000000e+00> : vector<1x256xf32>
    %218 = tpu.matmul %217, %209, %cst_109 {dimension_numbers = #tpu.dot_dimension_numbers<[1], [0], [0], [1], [0, 0, 1, 1], [], []>} : vector<1x4xf32>, vector<4x256xf32>, vector<1x256xf32> -> vector<1x256xf32>
    %219 = vector.broadcast %218 : vector<1x256xf32> to vector<4x256xf32>
    %220 = arith.subf %212, %219 : vector<4x256xf32>
    %221 = arith.mulf %220, %220 : vector<4x256xf32>
    %cst_110 = arith.constant dense<0.000000e+00> : vector<256xf32>
    %222 = vector.multi_reduction <add>, %221, %cst_110 [0] : vector<4x256xf32> to vector<256xf32>
    %223 = vector.shape_cast %222 : vector<256xf32> to vector<1x256xf32>
    %cst_111 = arith.constant dense<0.000000e+00> : vector<1x4xf32>
    %224 = tpu.matmul %223, %208, %cst_111 {dimension_numbers = #tpu.dot_dimension_numbers<[1], [0], [0], [1], [0, 0, 1, 1], [], []>} : vector<1x256xf32>, vector<256x4xf32>, vector<1x4xf32> -> vector<1x4xf32>
    %cst_112 = arith.constant 3.906250e-03 : f32
    %225 = vector.broadcast %cst_112 : f32 to vector<1x4xf32>
    %226 = arith.mulf %224, %225 : vector<1x4xf32>
    %cst_113 = arith.constant 9.99999974E-6 : f32
    %227 = vector.broadcast %cst_113 : f32 to vector<1x4xf32>
    %228 = arith.addf %226, %227 : vector<1x4xf32>
    %229 = math.rsqrt %228 : vector<1x4xf32>
    %cst_114 = arith.constant dense<0.000000e+00> : vector<1x256xf32>
    %230 = tpu.matmul %229, %209, %cst_114 {dimension_numbers = #tpu.dot_dimension_numbers<[1], [0], [0], [1], [0, 0, 1, 1], [], []>} : vector<1x4xf32>, vector<4x256xf32>, vector<1x256xf32> -> vector<1x256xf32>
    %231 = vector.broadcast %230 : vector<1x256xf32> to vector<4x256xf32>
    %232 = arith.mulf %220, %231 : vector<4x256xf32>
    %233 = vector.broadcast %206 : vector<1x256xf32> to vector<4x256xf32>
    %234 = arith.mulf %232, %233 : vector<4x256xf32>
    %235 = vector.broadcast %207 : vector<1x256xf32> to vector<4x256xf32>
    %236 = arith.addf %234, %235 : vector<4x256xf32>
    %cst_115 = arith.constant 0.000000e+00 : f32
    %237 = vector.broadcast %cst_115 : f32 to vector<4x256xf32>
    %238 = arith.maximumf %236, %237 : vector<4x256xf32>
    %239 = vector.extract_strided_slice %204 {offsets = [4, 0], sizes = [4, 256], strides = [1, 1]} : vector<8x256xf32> to vector<4x256xf32>
    %240 = vector.broadcast %205 : vector<1x256xf32> to vector<4x256xf32>
    %241 = arith.addf %239, %240 : vector<4x256xf32>
    %cst_116 = arith.constant dense<0.000000e+00> : vector<256xf32>
    %242 = vector.multi_reduction <add>, %241, %cst_116 [0] : vector<4x256xf32> to vector<256xf32>
    %243 = vector.shape_cast %242 : vector<256xf32> to vector<1x256xf32>
    %cst_117 = arith.constant dense<0.000000e+00> : vector<1x4xf32>
    %244 = tpu.matmul %243, %208, %cst_117 {dimension_numbers = #tpu.dot_dimension_numbers<[1], [0], [0], [1], [0, 0, 1, 1], [], []>} : vector<1x256xf32>, vector<256x4xf32>, vector<1x4xf32> -> vector<1x4xf32>
    %cst_118 = arith.constant 3.906250e-03 : f32
    %245 = vector.broadcast %cst_118 : f32 to vector<1x4xf32>
    %246 = arith.mulf %244, %245 : vector<1x4xf32>
    %cst_119 = arith.constant dense<0.000000e+00> : vector<1x256xf32>
    %247 = tpu.matmul %246, %209, %cst_119 {dimension_numbers = #tpu.dot_dimension_numbers<[1], [0], [0], [1], [0, 0, 1, 1], [], []>} : vector<1x4xf32>, vector<4x256xf32>, vector<1x256xf32> -> vector<1x256xf32>
    %248 = vector.broadcast %247 : vector<1x256xf32> to vector<4x256xf32>
    %249 = arith.subf %241, %248 : vector<4x256xf32>
    %250 = arith.mulf %249, %249 : vector<4x256xf32>
    %cst_120 = arith.constant dense<0.000000e+00> : vector<256xf32>
    %251 = vector.multi_reduction <add>, %250, %cst_120 [0] : vector<4x256xf32> to vector<256xf32>
    %252 = vector.shape_cast %251 : vector<256xf32> to vector<1x256xf32>
    %cst_121 = arith.constant dense<0.000000e+00> : vector<1x4xf32>
    %253 = tpu.matmul %252, %208, %cst_121 {dimension_numbers = #tpu.dot_dimension_numbers<[1], [0], [0], [1], [0, 0, 1, 1], [], []>} : vector<1x256xf32>, vector<256x4xf32>, vector<1x4xf32> -> vector<1x4xf32>
    %cst_122 = arith.constant 3.906250e-03 : f32
    %254 = vector.broadcast %cst_122 : f32 to vector<1x4xf32>
    %255 = arith.mulf %253, %254 : vector<1x4xf32>
    %cst_123 = arith.constant 9.99999974E-6 : f32
    %256 = vector.broadcast %cst_123 : f32 to vector<1x4xf32>
    %257 = arith.addf %255, %256 : vector<1x4xf32>
    %258 = math.rsqrt %257 : vector<1x4xf32>
    %cst_124 = arith.constant dense<0.000000e+00> : vector<1x256xf32>
    %259 = tpu.matmul %258, %209, %cst_124 {dimension_numbers = #tpu.dot_dimension_numbers<[1], [0], [0], [1], [0, 0, 1, 1], [], []>} : vector<1x4xf32>, vector<4x256xf32>, vector<1x256xf32> -> vector<1x256xf32>
    %260 = vector.broadcast %259 : vector<1x256xf32> to vector<4x256xf32>
    %261 = arith.mulf %249, %260 : vector<4x256xf32>
    %262 = vector.broadcast %206 : vector<1x256xf32> to vector<4x256xf32>
    %263 = arith.mulf %261, %262 : vector<4x256xf32>
    %264 = vector.broadcast %207 : vector<1x256xf32> to vector<4x256xf32>
    %265 = arith.addf %263, %264 : vector<4x256xf32>
    %cst_125 = arith.constant 0.000000e+00 : f32
    %266 = vector.broadcast %cst_125 : f32 to vector<4x256xf32>
    %267 = arith.maximumf %265, %266 : vector<4x256xf32>
    %268 = arith.truncf %238 : vector<4x256xf32> to vector<4x256xbf16>
    %c0_126 = arith.constant 0 : index
    %c0_127 = arith.constant 0 : index
    %269 = vector.load %arg29[%c0_126, %c0_127] : memref<8x4xbf16, #tpu.memory_space<vmem>>, vector<8x4xbf16>
    %cst_128 = arith.constant dense<0.000000e+00> : vector<8x256xf32>
    %270 = tpu.matmul %269, %268, %cst_128 {dimension_numbers = #tpu.dot_dimension_numbers<[1], [0], [0], [1], [0, 0, 1, 1], [], []>} : vector<8x4xbf16>, vector<4x256xbf16>, vector<8x256xf32> -> vector<8x256xf32>
    %271 = arith.truncf %270 : vector<8x256xf32> to vector<8x256xbf16>
    %cst_129 = arith.constant 0.000000e+00 : bf16
    %272 = vector.broadcast %cst_129 : bf16 to vector<1x256xbf16>
    %273 = tpu.concatenate %272, %271, %272 in 0 : vector<1x256xbf16>, vector<8x256xbf16>, vector<1x256xbf16> -> vector<10x256xbf16>
    %274 = vector.extract_strided_slice %273 {offsets = [0, 0], sizes = [8, 256], strides = [1, 1]} : vector<10x256xbf16> to vector<8x256xbf16>
    %275 = vector.extract_strided_slice %273 {offsets = [1, 0], sizes = [8, 256], strides = [1, 1]} : vector<10x256xbf16> to vector<8x256xbf16>
    %276 = vector.extract_strided_slice %273 {offsets = [2, 0], sizes = [8, 256], strides = [1, 1]} : vector<10x256xbf16> to vector<8x256xbf16>
    %277 = tpu.concatenate %274, %275, %276 in 1 : vector<8x256xbf16>, vector<8x256xbf16>, vector<8x256xbf16> -> vector<8x768xbf16>
    %278 = arith.truncf %267 : vector<4x256xf32> to vector<4x256xbf16>
    %c0_130 = arith.constant 0 : index
    %c0_131 = arith.constant 0 : index
    %279 = vector.load %arg29[%c0_130, %c0_131] : memref<8x4xbf16, #tpu.memory_space<vmem>>, vector<8x4xbf16>
    %cst_132 = arith.constant dense<0.000000e+00> : vector<8x256xf32>
    %280 = tpu.matmul %279, %278, %cst_132 {dimension_numbers = #tpu.dot_dimension_numbers<[1], [0], [0], [1], [0, 0, 1, 1], [], []>} : vector<8x4xbf16>, vector<4x256xbf16>, vector<8x256xf32> -> vector<8x256xf32>
    %281 = arith.truncf %280 : vector<8x256xf32> to vector<8x256xbf16>
    %cst_133 = arith.constant 0.000000e+00 : bf16
    %282 = vector.broadcast %cst_133 : bf16 to vector<1x256xbf16>
    %283 = tpu.concatenate %282, %281, %282 in 0 : vector<1x256xbf16>, vector<8x256xbf16>, vector<1x256xbf16> -> vector<10x256xbf16>
    %284 = vector.extract_strided_slice %283 {offsets = [0, 0], sizes = [8, 256], strides = [1, 1]} : vector<10x256xbf16> to vector<8x256xbf16>
    %285 = vector.extract_strided_slice %283 {offsets = [1, 0], sizes = [8, 256], strides = [1, 1]} : vector<10x256xbf16> to vector<8x256xbf16>
    %286 = vector.extract_strided_slice %283 {offsets = [2, 0], sizes = [8, 256], strides = [1, 1]} : vector<10x256xbf16> to vector<8x256xbf16>
    %287 = tpu.concatenate %284, %285, %286 in 1 : vector<8x256xbf16>, vector<8x256xbf16>, vector<8x256xbf16> -> vector<8x768xbf16>
    %288 = tpu.concatenate %277, %287 in 0 : vector<8x768xbf16>, vector<8x768xbf16> -> vector<16x768xbf16>
    %c0_134 = arith.constant 0 : index
    %c0_135 = arith.constant 0 : index
    %289 = vector.load %arg23[%c0_134, %c0_135] : memref<768x512xbf16, #tpu.memory_space<vmem>>, vector<768x512xbf16>
    %cst_136 = arith.constant dense<0.000000e+00> : vector<16x512xf32>
    %290 = tpu.matmul %288, %289, %cst_136 {dimension_numbers = #tpu.dot_dimension_numbers<[1], [0], [0], [1], [0, 0, 1, 1], [], []>} : vector<16x768xbf16>, vector<768x512xbf16>, vector<16x512xf32> -> vector<16x512xf32>
    %c0_137 = arith.constant 0 : index
    %c0_138 = arith.constant 0 : index
    %291 = vector.load %arg24[%c0_137, %c0_138] : memref<1x512xf32, #tpu.memory_space<vmem>>, vector<1x512xf32>
    %c0_139 = arith.constant 0 : index
    %c0_140 = arith.constant 0 : index
    %292 = vector.load %arg25[%c0_139, %c0_140] : memref<1x512xf32, #tpu.memory_space<vmem>>, vector<1x512xf32>
    %c0_141 = arith.constant 0 : index
    %c0_142 = arith.constant 0 : index
    %293 = vector.load %arg26[%c0_141, %c0_142] : memref<1x512xf32, #tpu.memory_space<vmem>>, vector<1x512xf32>
    %c0_143 = arith.constant 0 : index
    %c0_144 = arith.constant 0 : index
    %294 = vector.load %arg27[%c0_143, %c0_144] : memref<512x4xf32, #tpu.memory_space<vmem>>, vector<512x4xf32>
    %c0_145 = arith.constant 0 : index
    %c0_146 = arith.constant 0 : index
    %295 = vector.load %arg28[%c0_145, %c0_146] : memref<4x512xf32, #tpu.memory_space<vmem>>, vector<4x512xf32>
    %296 = vector.extract_strided_slice %290 {offsets = [0, 0], sizes = [8, 512], strides = [1, 1]} : vector<16x512xf32> to vector<8x512xf32>
    %297 = vector.broadcast %291 : vector<1x512xf32> to vector<8x512xf32>
    %298 = arith.addf %296, %297 : vector<8x512xf32>
    %cst_147 = arith.constant dense<0.000000e+00> : vector<512xf32>
    %299 = vector.multi_reduction <add>, %298, %cst_147 [0] : vector<8x512xf32> to vector<512xf32>
    %300 = vector.shape_cast %299 : vector<512xf32> to vector<1x512xf32>
    %cst_148 = arith.constant dense<0.000000e+00> : vector<1x4xf32>
    %301 = tpu.matmul %300, %294, %cst_148 {dimension_numbers = #tpu.dot_dimension_numbers<[1], [0], [0], [1], [0, 0, 1, 1], [], []>} : vector<1x512xf32>, vector<512x4xf32>, vector<1x4xf32> -> vector<1x4xf32>
    %cst_149 = arith.constant 9.765625E-4 : f32
    %302 = vector.broadcast %cst_149 : f32 to vector<1x4xf32>
    %303 = arith.mulf %301, %302 : vector<1x4xf32>
    %cst_150 = arith.constant dense<0.000000e+00> : vector<1x512xf32>
    %304 = tpu.matmul %303, %295, %cst_150 {dimension_numbers = #tpu.dot_dimension_numbers<[1], [0], [0], [1], [0, 0, 1, 1], [], []>} : vector<1x4xf32>, vector<4x512xf32>, vector<1x512xf32> -> vector<1x512xf32>
    %305 = vector.broadcast %304 : vector<1x512xf32> to vector<8x512xf32>
    %306 = arith.subf %298, %305 : vector<8x512xf32>
    %307 = arith.mulf %306, %306 : vector<8x512xf32>
    %cst_151 = arith.constant dense<0.000000e+00> : vector<512xf32>
    %308 = vector.multi_reduction <add>, %307, %cst_151 [0] : vector<8x512xf32> to vector<512xf32>
    %309 = vector.shape_cast %308 : vector<512xf32> to vector<1x512xf32>
    %cst_152 = arith.constant dense<0.000000e+00> : vector<1x4xf32>
    %310 = tpu.matmul %309, %294, %cst_152 {dimension_numbers = #tpu.dot_dimension_numbers<[1], [0], [0], [1], [0, 0, 1, 1], [], []>} : vector<1x512xf32>, vector<512x4xf32>, vector<1x4xf32> -> vector<1x4xf32>
    %cst_153 = arith.constant 9.765625E-4 : f32
    %311 = vector.broadcast %cst_153 : f32 to vector<1x4xf32>
    %312 = arith.mulf %310, %311 : vector<1x4xf32>
    %cst_154 = arith.constant 9.99999974E-6 : f32
    %313 = vector.broadcast %cst_154 : f32 to vector<1x4xf32>
    %314 = arith.addf %312, %313 : vector<1x4xf32>
    %315 = math.rsqrt %314 : vector<1x4xf32>
    %cst_155 = arith.constant dense<0.000000e+00> : vector<1x512xf32>
    %316 = tpu.matmul %315, %295, %cst_155 {dimension_numbers = #tpu.dot_dimension_numbers<[1], [0], [0], [1], [0, 0, 1, 1], [], []>} : vector<1x4xf32>, vector<4x512xf32>, vector<1x512xf32> -> vector<1x512xf32>
    %317 = vector.broadcast %316 : vector<1x512xf32> to vector<8x512xf32>
    %318 = arith.mulf %306, %317 : vector<8x512xf32>
    %319 = vector.broadcast %292 : vector<1x512xf32> to vector<8x512xf32>
    %320 = arith.mulf %318, %319 : vector<8x512xf32>
    %321 = vector.broadcast %293 : vector<1x512xf32> to vector<8x512xf32>
    %322 = arith.addf %320, %321 : vector<8x512xf32>
    %cst_156 = arith.constant 0.000000e+00 : f32
    %323 = vector.broadcast %cst_156 : f32 to vector<8x512xf32>
    %324 = arith.maximumf %322, %323 : vector<8x512xf32>
    %325 = vector.extract_strided_slice %290 {offsets = [8, 0], sizes = [8, 512], strides = [1, 1]} : vector<16x512xf32> to vector<8x512xf32>
    %326 = vector.broadcast %291 : vector<1x512xf32> to vector<8x512xf32>
    %327 = arith.addf %325, %326 : vector<8x512xf32>
    %cst_157 = arith.constant dense<0.000000e+00> : vector<512xf32>
    %328 = vector.multi_reduction <add>, %327, %cst_157 [0] : vector<8x512xf32> to vector<512xf32>
    %329 = vector.shape_cast %328 : vector<512xf32> to vector<1x512xf32>
    %cst_158 = arith.constant dense<0.000000e+00> : vector<1x4xf32>
    %330 = tpu.matmul %329, %294, %cst_158 {dimension_numbers = #tpu.dot_dimension_numbers<[1], [0], [0], [1], [0, 0, 1, 1], [], []>} : vector<1x512xf32>, vector<512x4xf32>, vector<1x4xf32> -> vector<1x4xf32>
    %cst_159 = arith.constant 9.765625E-4 : f32
    %331 = vector.broadcast %cst_159 : f32 to vector<1x4xf32>
    %332 = arith.mulf %330, %331 : vector<1x4xf32>
    %cst_160 = arith.constant dense<0.000000e+00> : vector<1x512xf32>
    %333 = tpu.matmul %332, %295, %cst_160 {dimension_numbers = #tpu.dot_dimension_numbers<[1], [0], [0], [1], [0, 0, 1, 1], [], []>} : vector<1x4xf32>, vector<4x512xf32>, vector<1x512xf32> -> vector<1x512xf32>
    %334 = vector.broadcast %333 : vector<1x512xf32> to vector<8x512xf32>
    %335 = arith.subf %327, %334 : vector<8x512xf32>
    %336 = arith.mulf %335, %335 : vector<8x512xf32>
    %cst_161 = arith.constant dense<0.000000e+00> : vector<512xf32>
    %337 = vector.multi_reduction <add>, %336, %cst_161 [0] : vector<8x512xf32> to vector<512xf32>
    %338 = vector.shape_cast %337 : vector<512xf32> to vector<1x512xf32>
    %cst_162 = arith.constant dense<0.000000e+00> : vector<1x4xf32>
    %339 = tpu.matmul %338, %294, %cst_162 {dimension_numbers = #tpu.dot_dimension_numbers<[1], [0], [0], [1], [0, 0, 1, 1], [], []>} : vector<1x512xf32>, vector<512x4xf32>, vector<1x4xf32> -> vector<1x4xf32>
    %cst_163 = arith.constant 9.765625E-4 : f32
    %340 = vector.broadcast %cst_163 : f32 to vector<1x4xf32>
    %341 = arith.mulf %339, %340 : vector<1x4xf32>
    %cst_164 = arith.constant 9.99999974E-6 : f32
    %342 = vector.broadcast %cst_164 : f32 to vector<1x4xf32>
    %343 = arith.addf %341, %342 : vector<1x4xf32>
    %344 = math.rsqrt %343 : vector<1x4xf32>
    %cst_165 = arith.constant dense<0.000000e+00> : vector<1x512xf32>
    %345 = tpu.matmul %344, %295, %cst_165 {dimension_numbers = #tpu.dot_dimension_numbers<[1], [0], [0], [1], [0, 0, 1, 1], [], []>} : vector<1x4xf32>, vector<4x512xf32>, vector<1x512xf32> -> vector<1x512xf32>
    %346 = vector.broadcast %345 : vector<1x512xf32> to vector<8x512xf32>
    %347 = arith.mulf %335, %346 : vector<8x512xf32>
    %348 = vector.broadcast %292 : vector<1x512xf32> to vector<8x512xf32>
    %349 = arith.mulf %347, %348 : vector<8x512xf32>
    %350 = vector.broadcast %293 : vector<1x512xf32> to vector<8x512xf32>
    %351 = arith.addf %349, %350 : vector<8x512xf32>
    %cst_166 = arith.constant 0.000000e+00 : f32
    %352 = vector.broadcast %cst_166 : f32 to vector<8x512xf32>
    %353 = arith.maximumf %351, %352 : vector<8x512xf32>
    %c0_167 = arith.constant 0 : index
    %c0_168 = arith.constant 0 : index
    %354 = vector.load %arg30[%c0_167, %c0_168] : memref<512x64xf32, #tpu.memory_space<vmem>>, vector<512x64xf32>
    %c0_169 = arith.constant 0 : index
    %c0_170 = arith.constant 0 : index
    %355 = vector.load %arg31[%c0_169, %c0_170] : memref<64x32xf32, #tpu.memory_space<vmem>>, vector<64x32xf32>
    %c0_171 = arith.constant 0 : index
    %c0_172 = arith.constant 0 : index
    %356 = vector.load %arg32[%c0_171, %c0_172] : memref<1x32xf32, #tpu.memory_space<vmem>>, vector<1x32xf32>
    %c0_173 = arith.constant 0 : index
    %c0_174 = arith.constant 0 : index
    %c0_175 = arith.constant 0 : index
    %357 = vector.load %arg2[%c0_173, %c0_174, %c0_175] : memref<2x8x512xf32, #tpu.memory_space<vmem>>, vector<1x8x512xf32>
    %358 = vector.shape_cast %357 : vector<1x8x512xf32> to vector<8x512xf32>
    %359 = arith.mulf %324, %358 : vector<8x512xf32>
    %cst_176 = arith.constant dense<0.000000e+00> : vector<512xf32>
    %360 = vector.multi_reduction <add>, %359, %cst_176 [0] : vector<8x512xf32> to vector<512xf32>
    %361 = vector.shape_cast %360 : vector<512xf32> to vector<1x512xf32>
    %cst_177 = arith.constant dense<0.000000e+00> : vector<1x64xf32>
    %362 = tpu.matmul %361, %354, %cst_177 {dimension_numbers = #tpu.dot_dimension_numbers<[1], [0], [0], [1], [0, 0, 1, 1], [], []>} : vector<1x512xf32>, vector<512x64xf32>, vector<1x64xf32> -> vector<1x64xf32>
    %cst_178 = arith.constant dense<0.000000e+00> : vector<512xf32>
    %363 = vector.multi_reduction <add>, %358, %cst_178 [0] : vector<8x512xf32> to vector<512xf32>
    %364 = vector.shape_cast %363 : vector<512xf32> to vector<1x512xf32>
    %cst_179 = arith.constant dense<0.000000e+00> : vector<1x64xf32>
    %365 = tpu.matmul %364, %354, %cst_179 {dimension_numbers = #tpu.dot_dimension_numbers<[1], [0], [0], [1], [0, 0, 1, 1], [], []>} : vector<1x512xf32>, vector<512x64xf32>, vector<1x64xf32> -> vector<1x64xf32>
    %cst_180 = arith.constant 9.99999974E-6 : f32
    %366 = vector.broadcast %cst_180 : f32 to vector<1x64xf32>
    %367 = arith.addf %365, %366 : vector<1x64xf32>
    %368 = arith.divf %362, %367 : vector<1x64xf32>
    %cst_181 = arith.constant dense<0.000000e+00> : vector<1x32xf32>
    %369 = tpu.matmul %368, %355, %cst_181 {dimension_numbers = #tpu.dot_dimension_numbers<[1], [0], [0], [1], [0, 0, 1, 1], [], []>} : vector<1x64xf32>, vector<64x32xf32>, vector<1x32xf32> -> vector<1x32xf32>
    %370 = arith.addf %369, %356 : vector<1x32xf32>
    %371 = math.tanh %370 : vector<1x32xf32>
    %c0_182 = arith.constant 0 : index
    %c0_183 = arith.constant 0 : index
    %c0_184 = arith.constant 0 : index
    %372 = vector.load %arg33[%c0_182, %c0_183, %c0_184] : memref<2x1x32xf32, #tpu.memory_space<vmem>>, vector<1x1x32xf32>
    %373 = vector.shape_cast %372 : vector<1x1x32xf32> to vector<1x32xf32>
    %374 = vector.shape_cast %371 : vector<1x32xf32> to vector<1x1x32xf32>
    tpu.vector_store %arg33[%c0_182, %c0_183, %c0_184], %374 {strides = array<i32>} : memref<2x1x32xf32, #tpu.memory_space<vmem>>, vector<1x1x32xf32>,
    %c1_185 = arith.constant 1 : index
    %c0_186 = arith.constant 0 : index
    %c0_187 = arith.constant 0 : index
    %375 = vector.load %arg2[%c1_185, %c0_186, %c0_187] : memref<2x8x512xf32, #tpu.memory_space<vmem>>, vector<1x8x512xf32>
    %376 = vector.shape_cast %375 : vector<1x8x512xf32> to vector<8x512xf32>
    %377 = arith.mulf %353, %376 : vector<8x512xf32>
    %cst_188 = arith.constant dense<0.000000e+00> : vector<512xf32>
    %378 = vector.multi_reduction <add>, %377, %cst_188 [0] : vector<8x512xf32> to vector<512xf32>
    %379 = vector.shape_cast %378 : vector<512xf32> to vector<1x512xf32>
    %cst_189 = arith.constant dense<0.000000e+00> : vector<1x64xf32>
    %380 = tpu.matmul %379, %354, %cst_189 {dimension_numbers = #tpu.dot_dimension_numbers<[1], [0], [0], [1], [0, 0, 1, 1], [], []>} : vector<1x512xf32>, vector<512x64xf32>, vector<1x64xf32> -> vector<1x64xf32>
    %cst_190 = arith.constant dense<0.000000e+00> : vector<512xf32>
    %381 = vector.multi_reduction <add>, %376, %cst_190 [0] : vector<8x512xf32> to vector<512xf32>
    %382 = vector.shape_cast %381 : vector<512xf32> to vector<1x512xf32>
    %cst_191 = arith.constant dense<0.000000e+00> : vector<1x64xf32>
    %383 = tpu.matmul %382, %354, %cst_191 {dimension_numbers = #tpu.dot_dimension_numbers<[1], [0], [0], [1], [0, 0, 1, 1], [], []>} : vector<1x512xf32>, vector<512x64xf32>, vector<1x64xf32> -> vector<1x64xf32>
    %cst_192 = arith.constant 9.99999974E-6 : f32
    %384 = vector.broadcast %cst_192 : f32 to vector<1x64xf32>
    %385 = arith.addf %383, %384 : vector<1x64xf32>
    %386 = arith.divf %380, %385 : vector<1x64xf32>
    %cst_193 = arith.constant dense<0.000000e+00> : vector<1x32xf32>
    %387 = tpu.matmul %386, %355, %cst_193 {dimension_numbers = #tpu.dot_dimension_numbers<[1], [0], [0], [1], [0, 0, 1, 1], [], []>} : vector<1x64xf32>, vector<64x32xf32>, vector<1x32xf32> -> vector<1x32xf32>
    %388 = arith.addf %387, %356 : vector<1x32xf32>
    %389 = math.tanh %388 : vector<1x32xf32>
    %c1_194 = arith.constant 1 : index
    %c0_195 = arith.constant 0 : index
    %c0_196 = arith.constant 0 : index
    %390 = vector.load %arg33[%c1_194, %c0_195, %c0_196] : memref<2x1x32xf32, #tpu.memory_space<vmem>>, vector<1x1x32xf32>
    %391 = vector.shape_cast %390 : vector<1x1x32xf32> to vector<1x32xf32>
    %392 = vector.shape_cast %389 : vector<1x32xf32> to vector<1x1x32xf32>
    tpu.vector_store %arg33[%c1_194, %c0_195, %c0_196], %392 {strides = array<i32>} : memref<2x1x32xf32, #tpu.memory_space<vmem>>, vector<1x1x32xf32>,
    return
  }
  func.func @transform_0(%arg0: i32) -> (i32, i32, i32) {
    %c0_i32 = arith.constant 0 : i32
    %c0_i32_0 = arith.constant 0 : i32
    %c0_i32_1 = arith.constant 0 : i32
    return %arg0, %c0_i32, %c0_i32_0 : i32, i32, i32
  }
  func.func @transform_1(%arg0: i32) -> (i32, i32, i32) {
    %c0_i32 = arith.constant 0 : i32
    %c0_i32_0 = arith.constant 0 : i32
    %c0_i32_1 = arith.constant 0 : i32
    return %arg0, %c0_i32, %c0_i32_0 : i32, i32, i32
  }
  func.func @transform_2(%arg0: i32) -> (i32, i32) {
    %c0_i32 = arith.constant 0 : i32
    %c0_i32_0 = arith.constant 0 : i32
    %c0_i32_1 = arith.constant 0 : i32
    return %c0_i32, %c0_i32_0 : i32, i32
  }
  func.func @transform_3(%arg0: i32) -> (i32, i32) {
    %c0_i32 = arith.constant 0 : i32
    %c0_i32_0 = arith.constant 0 : i32
    %c0_i32_1 = arith.constant 0 : i32
    return %c0_i32, %c0_i32_0 : i32, i32
  }
  func.func @transform_4(%arg0: i32) -> (i32, i32) {
    %c0_i32 = arith.constant 0 : i32
    %c0_i32_0 = arith.constant 0 : i32
    %c0_i32_1 = arith.constant 0 : i32
    return %c0_i32, %c0_i32_0 : i32, i32
  }
  func.func @transform_5(%arg0: i32) -> (i32, i32) {
    %c0_i32 = arith.constant 0 : i32
    %c0_i32_0 = arith.constant 0 : i32
    %c0_i32_1 = arith.constant 0 : i32
    return %c0_i32, %c0_i32_0 : i32, i32
  }
  func.func @transform_6(%arg0: i32) -> (i32, i32) {
    %c0_i32 = arith.constant 0 : i32
    %c0_i32_0 = arith.constant 0 : i32
    %c0_i32_1 = arith.constant 0 : i32
    return %c0_i32, %c0_i32_0 : i32, i32
  }
  func.func @transform_7(%arg0: i32) -> (i32, i32) {
    %c0_i32 = arith.constant 0 : i32
    %c0_i32_0 = arith.constant 0 : i32
    %c0_i32_1 = arith.constant 0 : i32
    return %c0_i32, %c0_i32_0 : i32, i32
  }
  func.func @transform_8(%arg0: i32) -> (i32, i32) {
    %c0_i32 = arith.constant 0 : i32
    %c0_i32_0 = arith.constant 0 : i32
    %c0_i32_1 = arith.constant 0 : i32
    return %c0_i32, %c0_i32_0 : i32, i32
  }
  func.func @transform_9(%arg0: i32) -> (i32, i32) {
    %c0_i32 = arith.constant 0 : i32
    %c0_i32_0 = arith.constant 0 : i32
    %c0_i32_1 = arith.constant 0 : i32
    return %c0_i32, %c0_i32_0 : i32, i32
  }
  func.func @transform_10(%arg0: i32) -> (i32, i32) {
    %c0_i32 = arith.constant 0 : i32
    %c0_i32_0 = arith.constant 0 : i32
    %c0_i32_1 = arith.constant 0 : i32
    return %c0_i32, %c0_i32_0 : i32, i32
  }
  func.func @transform_11(%arg0: i32) -> (i32, i32) {
    %c0_i32 = arith.constant 0 : i32
    %c0_i32_0 = arith.constant 0 : i32
    %c0_i32_1 = arith.constant 0 : i32
    return %c0_i32, %c0_i32_0 : i32, i32
  }
  func.func @transform_12(%arg0: i32) -> (i32, i32) {
    %c0_i32 = arith.constant 0 : i32
    %c0_i32_0 = arith.constant 0 : i32
    %c0_i32_1 = arith.constant 0 : i32
    return %c0_i32, %c0_i32_0 : i32, i32
  }
  func.func @transform_13(%arg0: i32) -> (i32, i32) {
    %c0_i32 = arith.constant 0 : i32
    %c0_i32_0 = arith.constant 0 : i32
    %c0_i32_1 = arith.constant 0 : i32
    return %c0_i32, %c0_i32_0 : i32, i32
  }
  func.func @transform_14(%arg0: i32) -> (i32, i32) {
    %c0_i32 = arith.constant 0 : i32
    %c0_i32_0 = arith.constant 0 : i32
    %c0_i32_1 = arith.constant 0 : i32
    return %c0_i32, %c0_i32_0 : i32, i32
  }
  func.func @transform_15(%arg0: i32) -> (i32, i32) {
    %c0_i32 = arith.constant 0 : i32
    %c0_i32_0 = arith.constant 0 : i32
    %c0_i32_1 = arith.constant 0 : i32
    return %c0_i32, %c0_i32_0 : i32, i32
  }
  func.func @transform_16(%arg0: i32) -> (i32, i32) {
    %c0_i32 = arith.constant 0 : i32
    %c0_i32_0 = arith.constant 0 : i32
    %c0_i32_1 = arith.constant 0 : i32
    return %c0_i32, %c0_i32_0 : i32, i32
  }
  func.func @transform_17(%arg0: i32) -> (i32, i32) {
    %c0_i32 = arith.constant 0 : i32
    %c0_i32_0 = arith.constant 0 : i32
    %c0_i32_1 = arith.constant 0 : i32
    return %c0_i32, %c0_i32_0 : i32, i32
  }
  func.func @transform_18(%arg0: i32) -> (i32, i32) {
    %c0_i32 = arith.constant 0 : i32
    %c0_i32_0 = arith.constant 0 : i32
    %c0_i32_1 = arith.constant 0 : i32
    return %c0_i32, %c0_i32_0 : i32, i32
  }
  func.func @transform_19(%arg0: i32) -> (i32, i32) {
    %c0_i32 = arith.constant 0 : i32
    %c0_i32_0 = arith.constant 0 : i32
    %c0_i32_1 = arith.constant 0 : i32
    return %c0_i32, %c0_i32_0 : i32, i32
  }
  func.func @transform_20(%arg0: i32) -> (i32, i32) {
    %c0_i32 = arith.constant 0 : i32
    %c0_i32_0 = arith.constant 0 : i32
    %c0_i32_1 = arith.constant 0 : i32
    return %c0_i32, %c0_i32_0 : i32, i32
  }
  func.func @transform_21(%arg0: i32) -> (i32, i32) {
    %c0_i32 = arith.constant 0 : i32
    %c0_i32_0 = arith.constant 0 : i32
    %c0_i32_1 = arith.constant 0 : i32
    return %c0_i32, %c0_i32_0 : i32, i32
  }
  func.func @transform_22(%arg0: i32) -> (i32, i32) {
    %c0_i32 = arith.constant 0 : i32
    %c0_i32_0 = arith.constant 0 : i32
    %c0_i32_1 = arith.constant 0 : i32
    return %c0_i32, %c0_i32_0 : i32, i32
  }
  func.func @transform_23(%arg0: i32) -> (i32, i32) {
    %c0_i32 = arith.constant 0 : i32
    %c0_i32_0 = arith.constant 0 : i32
    %c0_i32_1 = arith.constant 0 : i32
    return %c0_i32, %c0_i32_0 : i32, i32
  }
  func.func @transform_24(%arg0: i32) -> (i32, i32) {
    %c0_i32 = arith.constant 0 : i32
    %c0_i32_0 = arith.constant 0 : i32
    %c0_i32_1 = arith.constant 0 : i32
    return %c0_i32, %c0_i32_0 : i32, i32
  }
  func.func @transform_25(%arg0: i32) -> (i32, i32) {
    %c0_i32 = arith.constant 0 : i32
    %c0_i32_0 = arith.constant 0 : i32
    %c0_i32_1 = arith.constant 0 : i32
    return %c0_i32, %c0_i32_0 : i32, i32
  }
  func.func @transform_26(%arg0: i32) -> (i32, i32) {
    %c0_i32 = arith.constant 0 : i32
    %c0_i32_0 = arith.constant 0 : i32
    %c0_i32_1 = arith.constant 0 : i32
    return %c0_i32, %c0_i32_0 : i32, i32
  }
  func.func @transform_27(%arg0: i32) -> (i32, i32) {
    %c0_i32 = arith.constant 0 : i32
    %c0_i32_0 = arith.constant 0 : i32
    %c0_i32_1 = arith.constant 0 : i32
    return %c0_i32, %c0_i32_0 : i32, i32
  }
  func.func @transform_28(%arg0: i32) -> (i32, i32) {
    %c0_i32 = arith.constant 0 : i32
    %c0_i32_0 = arith.constant 0 : i32
    %c0_i32_1 = arith.constant 0 : i32
    return %c0_i32, %c0_i32_0 : i32, i32
  }
  func.func @transform_29(%arg0: i32) -> (i32, i32) {
    %c0_i32 = arith.constant 0 : i32
    %c0_i32_0 = arith.constant 0 : i32
    %c0_i32_1 = arith.constant 0 : i32
    return %c0_i32, %c0_i32_0 : i32, i32
  }
  func.func @transform_30(%arg0: i32) -> (i32, i32) {
    %c0_i32 = arith.constant 0 : i32
    %c0_i32_0 = arith.constant 0 : i32
    %c0_i32_1 = arith.constant 0 : i32
    return %c0_i32, %c0_i32_0 : i32, i32
  }
  func.func @transform_31(%arg0: i32) -> (i32, i32) {
    %c0_i32 = arith.constant 0 : i32
    %c0_i32_0 = arith.constant 0 : i32
    %c0_i32_1 = arith.constant 0 : i32
    return %c0_i32, %c0_i32_0 : i32, i32
  }
  func.func @transform_32(%arg0: i32) -> (i32, i32, i32) {
    %c0_i32 = arith.constant 0 : i32
    %c0_i32_0 = arith.constant 0 : i32
    %c0_i32_1 = arith.constant 0 : i32
    return %arg0, %c0_i32, %c0_i32_0 : i32, i32, i32
  }
}

</mosaic_0001>

<bundles_post_ra>
// kernel: _lambda_.1
= control target key start
LH: loop header
LB: loop body
LE: loop exit
PB: predicated region body
PF: predicated region fallthrough
CT: control target
= control target key end

     0   :  { %s11154_s6 = smov 1   ;;  %s11155_s10 = smov 2   ;;  %s14755_s0 = inlined_call_operand.smem [shape: u32[33], index: -1, kind: input, shape index: {}] }
   0x1   :  { %s11205_s5 = sld [smem:[%s14755_s0]]   ;;  %s11156_s14 = smov 3  }
   0x2   :  { %s11210_s9 = sld [smem:[%s14755_s0 + %s11154_s6]]   ;;  %s11157_s18 = smov 4  }
   0x3   :  { %s11215_s13 = sld [smem:[%s14755_s0 + %s11155_s10]]   ;;  %s11158_s22 = smov 5  }
   0x4   :  { %s11220_s17 = sld [smem:[%s14755_s0 + %s11156_s14]]   ;;  %s11159_s26 = smov 6  }
   0x5   :  { %s11225_s21 = sld [smem:[%s14755_s0 + %s11157_s18]]   ;;  %s11160_s30 = smov 7  }
   0x6   :  { %s11230_s25 = sld [smem:[%s14755_s0 + %s11158_s22]]   ;;  %s11161_s4 = smov 8  }
   0x7   :  { %s11235_s29 = sld [smem:[%s14755_s0 + %s11159_s26]]   ;;  %s11162_s10 = smov 9  }
   0x8   :  { %14913 = sst [smem:[#allocation17_spill]] %s11210_s9  ;;  %s11163_s15 = smov 10  }
   0x9   :  { %s11240_s3 = sld [smem:[%s14755_s0 + %s11160_s30]]   ;;  %s11164_s20 = smov 11  }
   0xa   :  { %s11245_s8 = sld [smem:[%s14755_s0 + %s11161_s4]]   ;;  %s11165_s26 = smov 12  }
   0xb   :  { %s11250_s14 = sld [smem:[%s14755_s0 + %s11162_s10]]   ;;  %s11166_s1 = smov 13  }
   0xc   :  { %s11255_s19 = sld [smem:[%s14755_s0 + %s11163_s15]]   ;;  %s11167_s7 = smov 14  }
   0xd   :  { %s11260_s24 = sld [smem:[%s14755_s0 + %s11164_s20]]   ;;  %s11168_s15 = smov 15  }
   0xe   :  { %s11265_s30 = sld [smem:[%s14755_s0 + %s11165_s26]]   ;;  %s11169_s22 = smov 16  }
   0xf   :  { %s11270_s6 = sld [smem:[%s14755_s0 + %s11166_s1]]   ;;  %s11170_s28 = smov 17  }
  0x10   :  { %14914 = sst [smem:[#allocation18_spill]] %s11245_s8 }
  0x11   :  { %14915 = sst [smem:[#allocation19_spill]] %s11250_s14 }
  0x12   :  { %s11275_s12 = sld [smem:[%s14755_s0 + %s11167_s7]]   ;;  %s11171_s7 = smov 18  }
  0x13   :  { %s11280_s20 = sld [smem:[%s14755_s0 + %s11168_s15]]   ;;  %s11172_s15 = smov 19  }
  0x14   :  { %14916 = sst [smem:[#allocation20_spill]] %s11265_s30 }
  0x15   :  { %14917 = sst [smem:[#allocation21_spill]] %s11270_s6 }
  0x16   :  { %s11285_s27 = sld [smem:[%s14755_s0 + %s11169_s22]]   ;;  %s11173_s22 = smov 20  }
  0x17   :  { %s11290_s4 = sld [smem:[%s14755_s0 + %s11170_s28]]   ;;  %s11174_s28 = smov 21  }
  0x18   :  { %s11295_s9 = sld [smem:[%s14755_s0 + %s11171_s7]]   ;;  %s11175_s7 = smov 22  }
  0x19   :  { %14918 = sst [smem:[#allocation22_spill]] %s11280_s20 }
  0x1a   :  { %s11300_s20 = sld [smem:[%s14755_s0 + %s11172_s15]]   ;;  %s11176_s15 = smov 23  }
  0x1b   :  { %s11305_s6 = sld [smem:[%s14755_s0 + %s11173_s22]]   ;;  %s11177_s22 = smov 24  }
  0x1c   :  { %s11310_s14 = sld [smem:[%s14755_s0 + %s11174_s28]]   ;;  %s11178_s28 = smov 25  }
  0x1d   :  { %s11315_s30 = sld [smem:[%s14755_s0 + %s11175_s7]]   ;;  %s11179_s7 = smov 26  }
  0x1e   :  { %14919 = sst [smem:[#allocation23_spill]] %s11295_s9 }
  0x1f   :  { %s11320_s8 = sld [smem:[%s14755_s0 + %s11176_s15]]   ;;  %s11180_s15 = smov 27  }
  0x21   :  { %14920 = sst [smem:[#allocation24_spill]] %s11305_s6 }
  0x22   :  { %14921 = sst [smem:[#allocation25_spill]] %s11310_s14 }
  0x23   :  { %14922 = sst [smem:[#allocation26_spill]] %s11315_s30 }
  0x24   :  { %s11325_s6 = sld [smem:[%s14755_s0 + %s11177_s22]]   ;;  %s11181_s22 = smov 28  }
  0x25   :  { %14923 = sst [smem:[#allocation27_spill]] %s11320_s8 }
  0x26   :  { %s11330_s14 = sld [smem:[%s14755_s0 + %s11178_s28]]   ;;  %s11182_s28 = smov 29  }
  0x27   :  { %s11335_s30 = sld [smem:[%s14755_s0 + %s11179_s7]]   ;;  %s11183_s7 = smov 30  }
  0x28   :  { %s11340_s8 = sld [smem:[%s14755_s0 + %s11180_s15]]   ;;  %s11184_s15 = smov 31  }
  0x2a   :  { %14924 = sst [smem:[#allocation28_spill]] %s11325_s6 }
  0x2b   :  { %s11345_s6 = sld [smem:[%s14755_s0 + %s11181_s22]]   ;;  %s11185_s22 = smov 32  }
  0x2c   :  { %14925 = sst [smem:[#allocation29_spill]] %s11330_s14 }
  0x2d   :  { %14926 = sst [smem:[#allocation30_spill]] %s11335_s30 }
  0x2e   :  { %14927 = sst [smem:[#allocation31_spill]] %s11340_s8 }
  0x2f   :  { %s11350_s14 = sld [smem:[%s14755_s0 + %s11182_s28]]  }
  0x30   :  { %s11355_s30 = sld [smem:[%s14755_s0 + %s11183_s7]]  }
  0x31   :  { %14928 = sst [smem:[#allocation32_spill]] %s11345_s6 }
  0x32   :  { %s11360_s8 = sld [smem:[%s14755_s0 + %s11184_s15]]  }
  0x33   :  { %s11365_s6 = sld [smem:[%s14755_s0 + %s11185_s22]]  }
  0x38   :  { %14929 = sst [smem:[#allocation33_spill]] %s11360_s8 }
  0x39   :  { %14930 = sst [smem:[#allocation34_spill]] %s11365_s6 }
  0x3a   :  { %70 = vsyncpa [#allocation3], 0 }
  0x3b   :  { %71 = vsyncpa [#allocation5], 0 }
  0x3c   :  { %72 = vsyncpa [#allocation8], 0 }
  0x3d   :  { %73 = vsyncpa [#allocation11], 0  ;;  %s11367_s28 = smov 0  }
  0x3e LB: > { %s14931_s9 = sld [smem:[#allocation23_spill]]  ;;  %s839_s0 = sshll.u32 %s11255_s19, 4  ;;  %s11152_s28 = sphi %s11367_s28, %s79_s28   ;;  %s11373_s0 = int_to_ptr.hbm [resolvable:$true] %s839_s0 }
  0x3f   : > { %s14763_s1 = sadd.s32 4294967295, %s11152_s28   ;;  %p8575_p0 = scmp.ge.s32.totalorder %s11152_s28, 1 }
  0x40   : > { %p792_p1 = scmp.lt.s32.totalorder %s11152_s28, 3  ;;  %p11380_p2 = scmp.eq.s32.totalorder %s14763_s1, 0 }
  0x41   : > { %s11186_s10 = smov [#allocation4]   ;;  %s875_s15 = sshll.u32 %s11285_s27, 4  ;;  %s11391_s15 = int_to_ptr.hbm [resolvable:$true] %s875_s15 }
  0x42   : > { %p11384_p3 = pnand %p8575_p0, %p792_p1  ;;  %s841_s11 = sshll.u32 %s11186_s10, 4  ;;  %s842_s11 = int_to_ptr.vmem [resolvable:$true] %s841_s11 }
  0x43   : > { %s11187_s22 = smov [#allocation7]   ;;  %s10920_s26 = sshra.s32 %s11373_s0, 4  ;;  %s10921_s26 = int_to_ptr.hbm [resolvable:$true] %s10920_s26 }
  0x44   : > { %p10774_p4 = pneg %p11384_p3  ;;  %s899_s16 = sshll.u32 %s14931_s9, 4  ;;  %s11403_s16 = int_to_ptr.hbm [resolvable:$true] %s899_s16 }
  0x45   : > { %s11400_s23 = sshll.u32 %s11187_s22, 4  ;;  %s10922_s10 = scalar_lea.hbm %s10921_s26, 2  ;;  %s878_s23 = int_to_ptr.vmem [resolvable:$true] %s11400_s23 }
  0x46   : > { %p11396_p5 = pnand %p11380_p2, %p10774_p4  ;;  %p10923_p6 = scmp.ne.s32.totalorder %s10921_s26, %s10922_s10 }
  0x47   : > { %s10927_s6 = scalar_lea.hbm %s11255_s19, 2  ;;  %p10928_p10 = scmp.lt.s32.totalorder %s10921_s26, %s11255_s19 }
  0x48   : > { %p11408_p7 = pneg %p11396_p5  ;;  %p10929_p11 = scmp.lt.s32.totalorder %s10927_s6, %s10922_s10 }
  0x4a   : > { %p10925_p8 = pnand %p11408_p7, %p10923_p6  ;;  %p10930_p12 = por %p10929_p11, %p10928_p10 }
  0x4c   : > { %p10926_p9 = pneg %p10925_p8 }
  0x4e   : > { %p10931_p13 = pnand %p10930_p12, %p10926_p9 }
  0x50   : > { %10934 = shalt.err (!%p10931_p13)
}
  0x51   : > { %10780 = dma.hbm_to_vmem [thread:$0]  (!%p11396_p5), %s11373_s0, 32, %s842_s11, [#allocation5]  }
  0x52   : > { %s10950_s22 = sshra.s32 %s11391_s15, 4  ;;  %s10957_s26 = scalar_lea.hbm %s11285_s27, 2  ;;  %s10951_s22 = int_to_ptr.hbm [resolvable:$true] %s10950_s22 }
  0x53   : > { %s10952_s8 = scalar_lea.hbm %s10951_s22, 2  ;;  %p10958_p6 = scmp.lt.s32.totalorder %s10951_s22, %s11285_s27 }
  0x54   : > { %p10953_p0 = scmp.ne.s32.totalorder %s10951_s22, %s10952_s8  ;;  %p10959_p8 = scmp.lt.s32.totalorder %s10957_s26, %s10952_s8 }
  0x56   : > { %p10955_p1 = pnand %p10953_p0, %p11408_p7  ;;  %p10960_p9 = por %p10959_p8, %p10958_p6 }
  0x58   : > { %p10956_p4 = pneg %p10955_p1 }
  0x5a   : > { %p10961_p10 = pnand %p10960_p9, %p10956_p4 }
  0x5c   : > { %10964 = shalt.err (!%p10961_p10)
}
  0x5d   : > { %10786 = dma.hbm_to_vmem [thread:$0]  (!%p11396_p5), %s11391_s15, 32, %s878_s23, [#allocation8]  }
  0x5e   : > { %s11188_s6 = smov [#allocation10]   ;;  %s803_s11 = sshll.u32 %s11215_s13, 4  ;;  %s11428_s11 = int_to_ptr.hbm [resolvable:$true] %s803_s11 }
  0x5f   : > { %s901_s0 = sshll.u32 %s11188_s6, 4  ;;  %s10980_s10 = sshra.s32 %s11403_s16, 4  ;;  %s902_s0 = int_to_ptr.vmem [resolvable:$true] %s901_s0  ;;  %s10981_s10 = int_to_ptr.hbm [resolvable:$true] %s10980_s10 }
  0x60   : > { %s10982_s8 = scalar_lea.hbm %s10981_s10, 2  ;;  %s10987_s22 = scalar_lea.hbm %s14931_s9, 2 }
  0x61   : > { %p10983_p11 = scmp.ne.s32.totalorder %s10981_s10, %s10982_s8  ;;  %p10988_p0 = scmp.lt.s32.totalorder %s10981_s10, %s14931_s9 }
  0x62   : > { %p10989_p1 = scmp.lt.s32.totalorder %s10987_s22, %s10982_s8 }
  0x63   : > { %p10985_p12 = pnand %p10983_p11, %p11408_p7 }
  0x64   : > { %p10990_p4 = por %p10989_p1, %p10988_p0 }
  0x65   : > { %p10986_p13 = pneg %p10985_p12 }
  0x67   : > { %p10991_p6 = pnand %p10990_p4, %p10986_p13 }
  0x69   : > { %10994 = shalt.err (!%p10991_p6)
}
  0x6a   : > { %10792 = dma.hbm_to_vmem [thread:$0]  (!%p11396_p5), %s11403_s16, 32, %s902_s0, [#allocation11]  }
  0x6b   : > { %s11189_s15 = smov [#allocation2]   ;;  %s851_s26 = sshll.u32 %s11260_s24, 4  ;;  %s852_s26 = int_to_ptr.hbm [resolvable:$true] %s851_s26 }
  0x6c   : > { %s805_s23 = sshll.u32 %s11189_s15, 4  ;;  %s11010_s6 = sshra.s32 %s11428_s11, 4  ;;  %s806_s23 = int_to_ptr.vmem [resolvable:$true] %s805_s23  ;;  %s11011_s6 = int_to_ptr.hbm [resolvable:$true] %s11010_s6 }
  0x6d   : > { %s11012_s10 = scalar_lea.hbm %s11011_s6, 168  ;;  %s11017_s8 = scalar_lea.hbm %s11215_s13, 168 }
  0x6e   : > { %p11013_p8 = scmp.ne.s32.totalorder %s11011_s6, %s11012_s10  ;;  %p11018_p11 = scmp.lt.s32.totalorder %s11011_s6, %s11215_s13 }
  0x6f   : > { %p11019_p12 = scmp.lt.s32.totalorder %s11017_s8, %s11012_s10 }
  0x70   : > { %p11015_p9 = pnand %p11013_p8, %p11408_p7 }
  0x71   : > { %p11020_p13 = por %p11019_p12, %p11018_p11 }
  0x72   : > { %p11016_p10 = pneg %p11015_p9 }
  0x74   : > { %p11021_p0 = pnand %p11020_p13, %p11016_p10 }
  0x76   : > { %11024 = shalt.err (!%p11021_p0)
}
  0x77   : > { %s14765_s22 = smov 128   ;;  %s11191_s16 = smov 8  }
  0x78   : > { %10777 = dma.hbm_to_vmem [thread:$0]  (!%p11396_p5), %s11428_s11, 2688, %s806_s23, [#allocation3], %s14765_s22, %s14765_s22, %s11191_s16  }
  0x79   : > { %s11192_s0 = smov [#allocation6]   ;;  %s887_s6 = sshll.u32 %s11290_s4, 4  ;;  %s11451_s6 = int_to_ptr.hbm [resolvable:$true] %s887_s6 }
  0x7a   : > { %s853_s15 = sshll.u32 %s11192_s0, 4  ;;  %s11040_s10 = sshra.s32 %s852_s26, 4  ;;  %s854_s15 = int_to_ptr.vmem [resolvable:$true] %s853_s15  ;;  %s11041_s10 = int_to_ptr.hbm [resolvable:$true] %s11040_s10 }
  0x7b   : > { %s11042_s8 = scalar_lea.hbm %s11041_s10, 2  ;;  %s11047_s9 = scalar_lea.hbm %s11260_s24, 2 }
  0x7c   : > { %p11043_p1 = scmp.ne.s32.totalorder %s11041_s10, %s11042_s8  ;;  %p11048_p8 = scmp.lt.s32.totalorder %s11041_s10, %s11260_s24 }
  0x7d   : > { %p11049_p9 = scmp.lt.s32.totalorder %s11047_s9, %s11042_s8 }
  0x7e   : > { %p11045_p4 = pnand %p11043_p1, %p11408_p7 }
  0x7f   : > { %p11050_p10 = por %p11049_p9, %p11048_p8 }
  0x80   : > { %p11046_p6 = pneg %p11045_p4 }
  0x82   : > { %p11051_p11 = pnand %p11050_p10, %p11046_p6 }
  0x84   : > { %11054 = shalt.err (!%p11051_p11)
}
  0x85   : > { %10783 = dma.hbm_to_vmem [thread:$0]  (!%p11396_p5), %s852_s26, 32, %s854_s15, [#allocation5]  }
  0x86   : > { %s910_s11 = sshll.u32 %s11300_s20, 4  ;;  %s11193_s23 = smov [#allocation9]   ;;  %s11460_s11 = int_to_ptr.hbm [resolvable:$true] %s910_s11 }
  0x87   : > { %s889_s0 = sshll.u32 %s11193_s23, 4  ;;  %s11070_s22 = sshra.s32 %s11451_s6, 4  ;;  %s890_s0 = int_to_ptr.vmem [resolvable:$true] %s889_s0  ;;  %s11071_s22 = int_to_ptr.hbm [resolvable:$true] %s11070_s22 }
  0x88   : > { %s11072_s9 = scalar_lea.hbm %s11071_s22, 2  ;;  %s11077_s10 = scalar_lea.hbm %s11290_s4, 2 }
  0x89   : > { %p11073_p12 = scmp.ne.s32.totalorder %s11071_s22, %s11072_s9  ;;  %p11078_p1 = scmp.lt.s32.totalorder %s11071_s22, %s11290_s4 }
  0x8a   : > { %p11079_p4 = scmp.lt.s32.totalorder %s11077_s10, %s11072_s9 }
  0x8b   : > { %p11075_p13 = pnand %p11073_p12, %p11408_p7 }
  0x8c   : > { %p11080_p6 = por %p11079_p4, %p11078_p1 }
  0x8d   : > { %p11076_p0 = pneg %p11075_p13 }
  0x8f   : > { %p11081_p8 = pnand %p11080_p6, %p11076_p0 }
  0x91   : > { %11084 = shalt.err (!%p11081_p8)
}
  0x92   : > { %10789 = dma.hbm_to_vmem [thread:$0]  (!%p11396_p5), %s11451_s6, 32, %s890_s0, [#allocation8]  }
  0x93   : > { %s11194_s26 = smov [#allocation12]   ;;  %s11100_s8 = sshra.s32 %s11460_s11, 4  ;;  %s11101_s8 = int_to_ptr.hbm [resolvable:$true] %s11100_s8 }
  0x94   : > { %s912_s15 = sshll.u32 %s11194_s26, 4  ;;  %s11102_s23 = scalar_lea.hbm %s11101_s8, 256  ;;  %s913_s15 = int_to_ptr.vmem [resolvable:$true] %s912_s15 }
  0x95   : > { %p11103_p9 = scmp.ne.s32.totalorder %s11101_s8, %s11102_s23  ;;  %s11107_s22 = scalar_lea.hbm %s11300_s20, 256 }
  0x96   : > { %p11108_p12 = scmp.lt.s32.totalorder %s11101_s8, %s11300_s20  ;;  %p11109_p13 = scmp.lt.s32.totalorder %s11107_s22, %s11102_s23 }
  0x97   : > { %p11105_p10 = pnand %p11103_p9, %p11408_p7 }
  0x98   : > { %p11110_p0 = por %p11109_p13, %p11108_p12 }
  0x99   : > { %p11106_p11 = pneg %p11105_p10 }
  0x9b   : > { %p11111_p1 = pnand %p11110_p0, %p11106_p11 }
  0x9d   : > { %11114 = shalt.err (!%p11111_p1)
}
  0x9e   : > { %s14936_s6 = smov 128   ;;  %984 = sbr.rel (%p11384_p3) target bundleno = 6127 (0x17ef), region = 148 }
  0x9f   : > { %10795 = dma.hbm_to_vmem [thread:$0]  (!%p11396_p5), %s11460_s11, 4096, %s913_s15, [#allocation11], %s14936_s6, %s14936_s6, %s11191_s16  }
  0xa3   : > { %11135 = dma.done.wait (%p11380_p2), [#allocation3], 2688  }
  0xa4   : > { %11137 = vsyncadd (%p11380_p2), [#allocation3], 4294964608 }
  0xa5   : > { %11139 = dma.done.wait (%p11380_p2), [#allocation5], 64  }
  0xa6   : > { %11141 = vsyncadd (%p11380_p2), [#allocation5], 4294967232 }
  0xa7   : > { %11143 = dma.done.wait (%p11380_p2), [#allocation8], 64  }
  0xa8   : > { %11145 = vsyncadd (%p11380_p2), [#allocation8], 4294967232 }
  0xa9   : > { %11147 = dma.done.wait (%p11380_p2), [#allocation11], 4128  }
  0xaa   : > { %11149 = vsyncadd (%p11380_p2), [#allocation11], 4294963168  ;;  %s14937_s1 = sadd.s32 4294967295, %s11152_s28   ;;  %v8659_v0 = vld [vmem:[#allocation2 + $0x70] sm:$0xf]  ;;  %vm1335_vm0 = vcmask 1040384  }
  0xab   : > { %s8592_s7 = sshll.u32 %s14937_s1, 1  ;;  %v10356_v1 = vld [vmem:[#allocation2 + $0x74] sm:$0xf0]  ;;  %v10355_v2 = vld [vmem:[#allocation2 + $0x74] sm:$0xf]  ;;  %s11195_s2 = smov 54  }
  0xac   : > { %p1104_p3 = scmp.lt.s32.totalorder %s8592_s7, 3  ;;  %v8660_v6 = vor.u32 %v10356_v1, %v8659_v0  ;;  %v8661_v10 = vld [vmem:[#allocation2 + $0x78] sm:$0xf0]  ;;  %v8651_v11 = vld [vmem:[#allocation2 + $0x60] sm:$0xf]  ;;  %vm1156_vm2 = vcmask 1046528  }
  0xad   : > { %v10354_v12 = vld [vmem:[#allocation2 + $0x64] sm:$0xf0]  ;;  %v8664_v13 = vor.u32 %v10355_v2, %v8661_v10  ;;  %v10353_v15 = vld [vmem:[#allocation2 + $0x64] sm:$0xf]  ;;  %v8653_v16 = vld [vmem:[#allocation2 + $0x68] sm:$0xf0] }
  0xae   : > { %s15166_s7 = smov (!%p1104_p3, %s8592_s7), 3  ;;  %1342 = vmatpush.bf16.msra.mxu0 %v8660_v6  ;;  %v8652_v14 = vor.u32 %v10354_v12, %v8651_v11  ;;  %v8643_v20 = vld [vmem:[#allocation2 + $0x50] sm:$0xf]  ;;  %v10352_v21 = vld [vmem:[#allocation2 + $0x54] sm:$0xf0]  ;;  %v8656_v22 = vor.u32 %v10353_v15, %v8653_v16  ;;  %s11196_s11 = smov 108  }
  0xaf   : > { %s10745_s18 = smul.u32 24, %s15166_s7  ;;  %1380 = vmatpush.bf16.msra.mxu2 %v8664_v13  ;;  %v10351_v25 = vld [vmem:[#allocation2 + $0x54] sm:$0xf]  ;;  %v8645_v26 = vld [vmem:[#allocation2 + $0x58] sm:$0xf0]  ;;  %v8644_v27 = vor.u32 %v10352_v21, %v8643_v20  ;;  %vm1162_vm3 = vcmask 441344  }
  0xb0   : > { %v8635_v28 = vld [vmem:[#allocation2 + $0x40] sm:$0xf]  ;;  %v10350_v33 = vld [vmem:[#allocation2 + $0x44] sm:$0xf0]  ;;  %v8648_v34 = vor.u32 %v10351_v25, %v8645_v26  ;;  %v10349_v39 = vld [vmem:[#allocation2 + $0x44] sm:$0xf] }
  0xb1   : > { %s11505_s16 = scalar_lea.vmem %s11205_s5, %s10745_s18  ;;  %v1224_v29 = vld [vmem:[#allocation2 + $0xa0] sm:$0x11]  ;;  %v8637_v40 = vld [vmem:[#allocation2 + $0x48] sm:$0xf0]  ;;  %vm1141_vm1 = vsmask.f32 7424  ;;  %v8636_v41 = vor.u32 %v10350_v33, %v8635_v28 }
  0xb2   : > { %v1123_v3 = vld [vmem:[%s11505_s16] sm:$0xff]  ;;  %v1124_v4 = vld [vmem:[%s11505_s16 + $0x8] sm:$0xff]  ;;  %v1125_v5 = vld [vmem:[%s11505_s16 + $0x10] sm:$0x3]  ;;  %1343 = vmatpush.bf16.msra.mxu0 %v8652_v14  ;;  %v1286_v35 = vunpack.c.l.b16 %v1224_v29  ;;  %v1287_v36 = vunpack.c.h.b16 %v1224_v29  ;;  %v8640_v47 = vor.u32 %v10349_v39, %v8637_v40  ;;  %vm1330_vm4 = vcmask 277504   ;;  %s14941_s0 = sld [smem:[#allocation18_spill]] }
  0xb3   : > { %v1130_v7 = vpack.c.bf16 %v1123_v3, %v1123_v3  ;;  %v1131_v8 = vpack.c.bf16 %v1124_v4, %v1124_v4  ;;  %v1132_v9 = vpack.c.bf16 %v1125_v5, %v1125_v5  ;;  %1381 = vmatpush.bf16.msra.mxu2 %v8656_v22  ;;  %v8627_v45 = vld [vmem:[#allocation2 + $0x30] sm:$0xf]  ;;  %v10348_v46 = vld [vmem:[#allocation2 + $0x34] sm:$0xf0]  ;;  %v10347_v51 = vld [vmem:[#allocation2 + $0x34] sm:$0xf] }
  0xb4   : > { %v1308_v42 = vpack.c.b16 %v1286_v35, %v1286_v35  ;;  %v1309_v43 = vpack.c.b16 %v1287_v36, %v1287_v36  ;;  %v8629_v52 = vld [vmem:[#allocation2 + $0x38] sm:$0xf0]  ;;  %v8628_v53 = vor.u32 %v10348_v46, %v8627_v45  ;;  %v8619_v56 = vld [vmem:[#allocation2 + $0x20] sm:$0xf]  ;;  %v10346_v57 = vld [vmem:[#allocation2 + $0x24] sm:$0xf0] }
  0xb5   : > { %v1135_v17 = vunpack.c.l.b16 %v1130_v7  ;;  %v1136_v18 = vunpack.c.l.b16 %v1131_v8  ;;  %v1139_v19 = vunpack.c.l.b16 %v1132_v9  ;;  %v8632_v58 = vor.u32 %v10347_v51, %v8629_v52  ;;  %v10345_v59 = vld [vmem:[#allocation2 + $0x24] sm:$0xf]  ;;  %v8621_v60 = vld [vmem:[#allocation2 + $0x28] sm:$0xf0]  ;;  %v8675_v0 = vld [vmem:[#allocation2 + $0x90] sm:$0xf] }
  0xb6   : > { %1344 = vmatpush.bf16.msra.mxu0 %v8644_v27  ;;  %v1337_v48 = vsel %vm1335_vm0, %v1308_v42, 0  ;;  %v1340_v49 = vsel %vm1335_vm0, %v1309_v43, 0  ;;  %v8620_v61 = vor.u32 %v10346_v57, %v8619_v56  ;;  %v8624_v63 = vor.u32 %v10345_v59, %v8621_v60  ;;  %v10360_v1 = vld [vmem:[#allocation2 + $0x94] sm:$0xf0]  ;;  %v10359_v2 = vld [vmem:[#allocation2 + $0x94] sm:$0xf] }
  0xb7   : > { %v11510_v23 = vpack.c.b16 %v1136_v18, %v1135_v17  ;;  %v1140_v24 = vpack.c.b16 %v1139_v19, %v1139_v19  ;;  %1382 = vmatpush.bf16.msra.mxu2 %v8648_v34  ;;  %1366 = vmatpush.bf16.msra.mxu1 %v1337_v48  ;;  %v8676_v3 = vor.u32 %v10360_v1, %v8675_v0  ;;  %v8677_v4 = vld [vmem:[#allocation2 + $0x98] sm:$0xf0]  ;;  %v8611_v5 = vld [vmem:[#allocation2 + $0x10] sm:$0xf]  ;;  %v10344_v6 = vld [vmem:[#allocation2 + $0x14] sm:$0xf0] }
  0xb8   : > { %1404 = vmatpush.bf16.msra.mxu3 %v1340_v49  ;;  %v8680_v7 = vor.u32 %v10359_v2, %v8677_v4  ;;  %v8612_v8 = vor.u32 %v10344_v6, %v8611_v5  ;;  %v10343_v9 = vld [vmem:[#allocation2 + $0x14] sm:$0xf]  ;;  %v8613_v10 = vld [vmem:[#allocation2 + $0x18] sm:$0xf0]  ;;  %v8667_v11 = vld [vmem:[#allocation2 + $0x80] sm:$0xf] }
  0xb9   : > { %v1143_v30 = vshrl.u32 %v11510_v23, 16  ;;  %v1145_v31 = vshll.u32 %v11510_v23, 16  ;;  %v1150_v32 = vshll.u32 %v1140_v24, 16  ;;  %v1157_v54 = vrot.slane %v11510_v23, 1  ;;  %v10358_v13 = vld [vmem:[#allocation2 + $0x84] sm:$0xf0] }
  0xba   : > { %1345 = vmatpush.bf16.msra.mxu0 %v8636_v41  ;;  %v1158_v55 = vrot.slane %v1140_v24, 1  ;;  %v8616_v12 = vor.u32 %v10343_v9, %v8613_v10  ;;  %v10357_v14 = vld [vmem:[#allocation2 + $0x84] sm:$0xf]  ;;  %v8669_v15 = vld [vmem:[#allocation2 + $0x88] sm:$0xf0]  ;;  %v8668_v16 = vor.u32 %v10358_v13, %v8667_v11  ;;  %v8598_v24 = vld [vmem:[%s11505_s16 + $0x18] sm:$0xff] }
  0xbb   : > { %v1147_v37 = vrot.slane %v1145_v31, 1  ;;  %v1152_v38 = vrot.slane %v1150_v32, 1  ;;  %1383 = vmatpush.bf16.msra.mxu2 %v8640_v47  ;;  %1367 = vmatpush.bf16.msra.mxu1 %v8676_v3  ;;  %v8672_v17 = vor.u32 %v10357_v14, %v8669_v15  ;;  %v8603_v18 = vld [vmem:[#allocation2] sm:$0xf]  ;;  %v10342_v19 = vld [vmem:[#allocation2 + $0x4] sm:$0xf0]  ;;  %v1169_v28 = vpack.c.bf16 %v8598_v24, %v8598_v24 }
  0xbc   : > { %v1159_v62 = vsel %vm1156_vm2, %v1157_v54, %v1158_v55  ;;  %1405 = vmatpush.bf16.msra.mxu3 %v8680_v7  ;;  %v10341_v20 = vld [vmem:[#allocation2 + $0x4] sm:$0xf]  ;;  %v8604_v21 = vor.u32 %v10342_v19, %v8603_v18  ;;  %v8605_v22 = vld [vmem:[#allocation2 + $0x8] sm:$0xf0]  ;;  %v8599_v25 = vld [vmem:[%s11505_s16 + $0x20] sm:$0xff]  ;;  %vm1165_vm5 = vcmask 883712  }
  0xbd   : > { %v1148_v44 = vor.u32 %v1147_v37, %v1143_v30  ;;  %v8608_v26 = vor.u32 %v10341_v20, %v8605_v22  ;;  %v8600_v27 = vld [vmem:[%s11505_s16 + $0x28] sm:$0x3]  ;;  %v1170_v29 = vpack.c.bf16 %v8599_v25, %v8599_v25  ;;  %v1174_v31 = vunpack.c.l.b16 %v1169_v28  ;;  %v11537_v51 = vld [vmem:[%s11235_s29 + $0x70] sm:$0xff]  ;;  %v11554_v54 = vld [vmem:[%s11235_s29 + $0xf8] sm:$0xff]  ;;  %s14942_s9 = sld [smem:[#allocation20_spill]] }
  0xbe   : > { %1346 = vmatpush.bf16.msra.mxu0 %v8628_v53  ;;  %v1171_v30 = vpack.c.bf16 %v8600_v27, %v8600_v27  ;;  %v11546_v52 = vld [vmem:[%s11235_s29 + $0x68] sm:$0xff]  ;;  %v11551_v53 = vld [vmem:[%s11235_s29 + $0x60] sm:$0xff]  ;;  %v11560_v57 = vld [vmem:[%s11235_s29 + $0x58] sm:$0xff]  ;;  %vm1526_vm6 = vcmask 1043456   ;;  %vm1522_vm7 = vcmask 31744   ;;  %s14943_s10 = sld [smem:[#allocation19_spill]] }
  0xbf   : > { %v1153_v50 = vsel %vm1141_vm1, %v1148_v44, %v1152_v38  ;;  %1384 = vmatpush.bf16.msra.mxu2 %v8632_v58  ;;  %1368 = vmatpush.bf16.msra.mxu1 %v8668_v16  ;;  %v1175_v32 = vunpack.c.l.b16 %v1170_v29  ;;  %v11563_v58 = vld [vmem:[%s11235_s29 + $0xf0] sm:$0xff]  ;;  %v11589_v0 = vld [vmem:[%s11235_s29 + $0x40] sm:$0xff]  ;;  %v11592_v1 = vld [vmem:[%s11235_s29 + $0xd8] sm:$0xff]  ;;  %vm2007_vm11 = vsmask.f32 256  ;;  %s14944_s26 = sld [smem:[#allocation21_spill]] }
  0xc0   : > { %1154 = vrot.lane.b32.xlu0 %v1153_v50, %s11195_s2  ;;  %1406 = vmatpush.bf16.msra.mxu3 %v8672_v17  ;;  %v1178_v33 = vunpack.c.l.b16 %v1171_v30  ;;  %v11534_v50 = vld [vmem:[%s11235_s29 + $0x78] sm:$0xff]  ;;  %v11571_v60 = vld [vmem:[%s11235_s29 + $0x50] sm:$0xff]  ;;  %v11612_v5 = vld [vmem:[%s11235_s29 + $0xc8] sm:$0xff]  ;;  %s14952_s15 = sld [smem:[#allocation25_spill]] }
  0xc1   : > { %v1176_v34 = vpack.c.b16 %v1175_v32, %v1174_v31  ;;  %v11599_v2 = vld [vmem:[%s11235_s29 + $0x38] sm:$0xff]  ;;  %v11602_v3 = vld [vmem:[%s11235_s29 + $0xd0] sm:$0xff]  ;;  %v11619_v6 = vld [vmem:[%s11235_s29 + $0x28] sm:$0xff]  ;;  %s14953_s8 = sld [smem:[#allocation22_spill]] }
  0xc2   : > { %1347 = vmatpush.bf16.msra.mxu0 %v8620_v61  ;;  %v1179_v35 = vpack.c.b16 %v1178_v33, %v1178_v33  ;;  %v11574_v61 = vld [vmem:[%s11235_s29 + $0xe8] sm:$0xff]  ;;  %v11609_v4 = vld [vmem:[%s11235_s29 + $0x30] sm:$0xff]  ;;  %v11622_v7 = vld [vmem:[%s11235_s29 + $0xc0] sm:$0xff]  ;;  %s14954_s23 = sld [smem:[#allocation24_spill]] }
  0xc3   : > { %1385 = vmatpush.bf16.msra.mxu2 %v8624_v63  ;;  %v1194_v36 = vrot.slane %v1176_v34, 1  ;;  %v1183_v37 = vshll.u32 %v1176_v34, 16  ;;  %v1181_v39 = vshrl.u32 %v1176_v34, 16  ;;  %1477 = vmatpush.msrb.mxu1 %v11534_v50  ;;  %v11582_v63 = vld [vmem:[%s11235_s29 + $0xe0] sm:$0xff]  ;;  %v11632_v9 = vld [vmem:[%s11235_s29 + $0xb8] sm:$0xff]  ;;  %v11642_v11 = vld [vmem:[%s11235_s29 + $0xb0] sm:$0xff] }
  0xc4   : > { %v1195_v38 = vrot.slane %v1179_v35, 1  ;;  %v1188_v40 = vshll.u32 %v1179_v35, 16  ;;  %1497 = vmatpush.msrb.mxu3 %v11554_v54  ;;  %v11639_v10 = vld [vmem:[%s11235_s29 + $0x18] sm:$0xff]  ;;  %v11652_v13 = vld [vmem:[%s11235_s29 + $0xa8] sm:$0xff]  ;;  %v11662_v15 = vld [vmem:[%s11235_s29 + $0xa0] sm:$0xff]  ;;  %s14955_s22 = sld [smem:[#allocation32_spill]] }
  0xc5   : > { %v1185_v41 = vrot.slane %v1183_v37, 1  ;;  %1478 = vmatpush.msrb.mxu1 %v11537_v51  ;;  %v11659_v14 = vld [vmem:[%s11235_s29 + $0x8] sm:$0xff]  ;;  %v11665_v16 = vld [vmem:[%s11235_s29] sm:$0xff]  ;;  %v11672_v17 = vld [vmem:[%s11235_s29 + $0x98] sm:$0xff]  ;;  %s14956_s6 = sld [smem:[#allocation26_spill]] }
  0xc6   : > { %1348 = vmatpush.bf16.msra.mxu0 %v8612_v8  ;;  %v1196_v42 = vsel %vm1156_vm2, %v1194_v36, %v1195_v38  ;;  %v1190_v44 = vrot.slane %v1188_v40, 1  ;;  %1498 = vmatpush.msrb.mxu3 %v11563_v58  ;;  %v11629_v8 = vld [vmem:[%s11235_s29 + $0x20] sm:$0xff]  ;;  %v11679_v18 = vld [vmem:[%s11235_s29 + $0x90] sm:$0xff]  ;;  %v11682_v19 = vld [vmem:[%s11235_s29 + $0x88] sm:$0xff]  ;;  %s14957_s1 = sld [smem:[#allocation30_spill]] }
  0xc7   : > { %1386 = vmatpush.bf16.msra.mxu2 %v8616_v12  ;;  %1197 = vrot.lane.b32.xlu1 %v1196_v42, %s11196_s11  ;;  %v1186_v43 = vor.u32 %v1185_v41, %v1181_v39  ;;  %v11649_v12 = vld [vmem:[%s11235_s29 + $0x10] sm:$0xff]  ;;  %v11688_v20 = vld [vmem:[%s11235_s29 + $0x80] sm:$0xff]  ;;  %vm11866_vm12 = vmand %vm1335_vm0, %vm2007_vm11  ;;  %s14961_s18 = sld [smem:[#allocation27_spill]] }
  0xc8   : > { %1160 = vrot.lane.b32.xlu0 %v1159_v62, %s11196_s11  ;;  %1479 = vmatpush.msrb.mxu1 %v11546_v52  ;;  %v11579_v62 = vld [vmem:[%s11235_s29 + $0x48] sm:$0xff]  ;;  %v1418_v24 = vld [vmem:[%s11220_s17] sm:$0x3]  ;;  %s14992_s16 = sld [smem:[#allocation31_spill]] }
  0xc9   : > { %v1191_v45 = vsel %vm1141_vm1, %v1186_v43, %v1190_v44  ;;  %1499 = vmatpush.msrb.mxu3 %v11574_v61  ;;  %v11705_v28 = vperm.slane %v1418_v24, 0  ;;  %v11719_v35 = vperm.slane %v1418_v24, 1  ;;  %vm2016_vm1 = vcmask 146432   ;;  %s15077_s11 = sld [smem:[#allocation29_spill]] }
  0xca   : > { %1349 = vmatpush.bf16.msra.mxu0 %v8604_v21  ;;  %1480 = vmatpush.msrb.mxu1 %v11551_v53 }
  0xcb   : > { %1387 = vmatpush.bf16.msra.mxu2 %v8608_v26  ;;  %1500 = vmatpush.msrb.mxu3 %v11582_v63 }
  0xcc   : > { %1481 = vmatpush.msrb.mxu1 %v11560_v57 }
  0xcd   : > { %1501 = vmatpush.msrb.mxu3 %v11592_v1 }
  0xce   : > { %1595 = vmatpush.msrb.mxu0 %v11534_v50  ;;  %1482 = vmatpush.msrb.mxu1 %v11571_v60 }
  0xcf   : > { %1192 = vrot.lane.b32.xlu1 %v1191_v45, %s11195_s2  ;;  %1615 = vmatpush.msrb.mxu2 %v11554_v54  ;;  %s15063_s2 = sld [smem:[#allocation28_spill]] }
  0xd0   : > { %1596 = vmatpush.msrb.mxu0 %v11537_v51  ;;  %1483 = vmatpush.msrb.mxu1 %v11579_v62 }
  0xd1   : > { %1616 = vmatpush.msrb.mxu2 %v11563_v58  ;;  %1502 = vmatpush.msrb.mxu3 %v11602_v3 }
  0xd2   : > { %1597 = vmatpush.msrb.mxu0 %v11546_v52  ;;  %1484 = vmatpush.msrb.mxu1 %v11589_v0 }
  0xd3   : > { %1617 = vmatpush.msrb.mxu2 %v11574_v61  ;;  %1503 = vmatpush.msrb.mxu3 %v11612_v5 }
  0xd4   : > { %1598 = vmatpush.msrb.mxu0 %v11551_v53  ;;  %1485 = vmatpush.msrb.mxu1 %v11599_v2 }
  0xd5   : > { %1618 = vmatpush.msrb.mxu2 %v11582_v63  ;;  %1504 = vmatpush.msrb.mxu3 %v11622_v7 }
  0xd6   : > { %1599 = vmatpush.msrb.mxu0 %v11560_v57  ;;  %1486 = vmatpush.msrb.mxu1 %v11609_v4 }
  0xd7   : > { %1619 = vmatpush.msrb.mxu2 %v11592_v1  ;;  %1505 = vmatpush.msrb.mxu3 %v11632_v9 }
  0xd8   : > { %1600 = vmatpush.msrb.mxu0 %v11571_v60  ;;  %1487 = vmatpush.msrb.mxu1 %v11619_v6 }
  0xd9   : > { %1620 = vmatpush.msrb.mxu2 %v11602_v3  ;;  %1506 = vmatpush.msrb.mxu3 %v11642_v11 }
  0xda   : > { %1601 = vmatpush.msrb.mxu0 %v11579_v62  ;;  %1488 = vmatpush.msrb.mxu1 %v11629_v8 }
  0xdb   : > { %1621 = vmatpush.msrb.mxu2 %v11612_v5  ;;  %1507 = vmatpush.msrb.mxu3 %v11652_v13 }
  0xdc   : > { %1602 = vmatpush.msrb.mxu0 %v11589_v0  ;;  %1489 = vmatpush.msrb.mxu1 %v11639_v10 }
  0xdd   : > { %1622 = vmatpush.msrb.mxu2 %v11622_v7  ;;  %1508 = vmatpush.msrb.mxu3 %v11662_v15 }
  0xde   : > { %1603 = vmatpush.msrb.mxu0 %v11599_v2  ;;  %1490 = vmatpush.msrb.mxu1 %v11649_v12 }
  0xdf   : > { %1623 = vmatpush.msrb.mxu2 %v11632_v9  ;;  %1509 = vmatpush.msrb.mxu3 %v11672_v17 }
  0xe0   : > { %1604 = vmatpush.msrb.mxu0 %v11609_v4  ;;  %1491 = vmatpush.msrb.mxu1 %v11659_v14 }
  0xe1   : > { %1624 = vmatpush.msrb.mxu2 %v11642_v11  ;;  %1510 = vmatpush.msrb.mxu3 %v11679_v18 }
  0xe2   : > { %1605 = vmatpush.msrb.mxu0 %v11619_v6  ;;  %1492 = vmatpush.msrb.mxu1 %v11665_v16 }
  0xe3   : > { %1625 = vmatpush.msrb.mxu2 %v11652_v13  ;;  %1511 = vmatpush.msrb.mxu3 %v11682_v19 }
  0xe4   : > { %1606 = vmatpush.msrb.mxu0 %v11629_v8 }
  0xe5   : > { %1626 = vmatpush.msrb.mxu2 %v11662_v15  ;;  %1512 = vmatpush.msrb.mxu3 %v11688_v20 }
  0xe6   : > { %1607 = vmatpush.msrb.mxu0 %v11639_v10 }
  0xe7   : > { %1627 = vmatpush.msrb.mxu2 %v11672_v17 }
  0xe8   : > { %1608 = vmatpush.msrb.mxu0 %v11649_v12 }
  0xe9   : > { %1628 = vmatpush.msrb.mxu2 %v11679_v18 }
  0xea   : > { %1609 = vmatpush.msrb.mxu0 %v11659_v14 }
  0xeb   : > { %1629 = vmatpush.msrb.mxu2 %v11682_v19 }
  0xec   : > { %1610 = vmatpush.msrb.mxu0 %v11665_v16 }
  0xed   : > { %1630 = vmatpush.msrb.mxu2 %v11688_v20 }
 0x132   : > { %v1155_v46 = vpop.permute.xlu0 %1154 }
 0x133   : > { %v1164_v47 = vsel %vm1162_vm3, %v11510_v23, %v1155_v46 }
 0x139   : > { %v1198_v23 = vpop.permute.xlu1 %1197 }
 0x13a   : > { %v1161_v48 = vpop.permute.xlu0 %1160 }
 0x13b   : > { %8681 = vmatmul.msk.bf16.vlgmr.msra.gmra.mxu1 %vm1330_vm4, %v1161_v48  ;;  %8683 = vmatmul.msk.bf16.vlgmr.msra.gmra.mxu3 %vm1330_vm4, %v1161_v48  ;;  %v1167_v49 = vsel %vm1165_vm5, %v1164_v47, %v1161_v48 }
 0x13c   : > { %1350 = vmatmul.bf16.vlgmr.msra.gmra.mxu0 %v1167_v49  ;;  %1388 = vmatmul.bf16.vlgmr.msra.gmra.mxu2 %v1167_v49 }
 0x13d   : > { %1858 = vmatpush.msra.mxu0 %v11534_v50  ;;  %1878 = vmatpush.msra.mxu2 %v11554_v54 }
 0x13f   : > { %1859 = vmatpush.msra.mxu0 %v11537_v51  ;;  %1879 = vmatpush.msra.mxu2 %v11563_v58 }
 0x141   : > { %v1193_v55 = vpop.permute.xlu1 %1192  ;;  %1860 = vmatpush.msra.mxu0 %v11546_v52  ;;  %1880 = vmatpush.msra.mxu2 %v11574_v61 }
 0x142   : > { %v1200_v56 = vsel %vm1162_vm3, %v1176_v34, %v1193_v55 }
 0x143   : > { %v1202_v59 = vsel %vm1165_vm5, %v1200_v56, %v1198_v23  ;;  %1861 = vmatpush.msra.mxu0 %v11551_v53  ;;  %1881 = vmatpush.msra.mxu2 %v11582_v63  ;;  %vm3583_vm5 = vsmask.f32 4352 }
 0x145   : > { %1862 = vmatpush.msra.mxu0 %v11560_v57  ;;  %1882 = vmatpush.msra.mxu2 %v11592_v1 }
 0x147   : > { %1863 = vmatpush.msra.mxu0 %v11571_v60  ;;  %1883 = vmatpush.msra.mxu2 %v11602_v3 }
 0x149   : > { %1864 = vmatpush.msra.mxu0 %v11579_v62  ;;  %1884 = vmatpush.msra.mxu2 %v11612_v5 }
 0x14b   : > { %8682 = vmatmul.msk.bf16.gmra.mxu1 %vm1330_vm4, %v1198_v23  ;;  %8684 = vmatmul.msk.bf16.gmra.mxu3 %vm1330_vm4, %v1198_v23  ;;  %vm3582_vm4 = vcmask 1044480  }
 0x14c   : > { %1355 = vmatmul.bf16.gmra.mxu0 %v1202_v59  ;;  %1393 = vmatmul.bf16.gmra.mxu2 %v1202_v59 }
 0x14d   : > { %1865 = vmatpush.msra.mxu0 %v11589_v0  ;;  %1885 = vmatpush.msra.mxu2 %v11622_v7 }
 0x14f   : > { %1866 = vmatpush.msra.mxu0 %v11599_v2  ;;  %1886 = vmatpush.msra.mxu2 %v11632_v9 }
 0x151   : > { %1867 = vmatpush.msra.mxu0 %v11609_v4  ;;  %1887 = vmatpush.msra.mxu2 %v11642_v11 }
 0x153   : > { %1868 = vmatpush.msra.mxu0 %v11619_v6  ;;  %1888 = vmatpush.msra.mxu2 %v11652_v13 }
 0x155   : > { %1869 = vmatpush.msra.mxu0 %v11629_v8  ;;  %1889 = vmatpush.msra.mxu2 %v11662_v15 }
 0x157   : > { %1870 = vmatpush.msra.mxu0 %v11639_v10  ;;  %1890 = vmatpush.msra.mxu2 %v11672_v17 }
 0x159   : > { %1871 = vmatpush.msra.mxu0 %v11649_v12  ;;  %1891 = vmatpush.msra.mxu2 %v11679_v18 }
 0x15b   : > { %1872 = vmatpush.msra.mxu0 %v11659_v14  ;;  %1892 = vmatpush.msra.mxu2 %v11682_v19 }
 0x15d   : > { %1873 = vmatpush.msra.mxu0 %v11665_v16  ;;  %1893 = vmatpush.msra.mxu2 %v11688_v20 }
 0x1b8   : > { %v1370_v21 = vpop.f32.mrf.mxu1 }
 0x1b9   : > { %v1351_v22 = vpop.f32.mrf.mxu0 }
 0x1ba   : > { %v1371_v27 = vadd.f32 %v1370_v21, %v1351_v22  ;;  %v11745_v22 = vld [vmem:[%s11240_s3] sm:$0xff] }
 0x1bb   : > { %1519 = vst [vmem:[#allocation1] ss:$2 sm:$0xff] %v11745_v22 }
 0x1bc   : > { %v11712_v32 = vadd.f32 %v11705_v28, %v1371_v27 }
 0x1be   : > { %v1408_v25 = vpop.f32.mrf.mxu3 }
 0x1bf   : > { %v1389_v26 = vpop.f32.mrf.mxu2 }
 0x1c0   : > { %v1372_v29 = vpop.f32.mrf.mxu1  ;;  %v1409_v34 = vadd.f32 %v1408_v25, %v1389_v26 }
 0x1c1   : > { %v1353_v30 = vpop.f32.mrf.mxu0 }
 0x1c2   : > { %v1373_v31 = vadd.f32 %v1372_v29, %v1353_v30  ;;  %v1460_v41 = vadd.f32 %v11719_v35, %v1409_v34  ;;  %v1520_v24 = vld.sshfl [vmem:[#allocation1] sm:$0xff pattern:$0x75316420]  ;;  %v1521_v25 = vld.sshfl [vmem:[#allocation1 + $0x8] sm:$0xff pattern:$0x75316420] }
 0x1c3   : > { %8685 = vmatpush.msk.msra.mxu1 %vm1526_vm6, %v1520_v24  ;;  %8687 = vmatpush.msk.msra.mxu3 %vm1526_vm6, %v1521_v25  ;;  %1647 = vst [vmem:[#allocation1] ss:$2 sm:$0xff] %v11745_v22 }
 0x1c4   : > { %v11715_v33 = vadd.f32 %v11705_v28, %v1373_v31 }
 0x1c6   : > { %v1463_v36 = vadd.f32 %v11715_v33, %v11712_v32  ;;  %v1410_v37 = vpop.f32.mrf.mxu3 }
 0x1c7   : > { %v1391_v38 = vpop.f32.mrf.mxu2 }
 0x1c8   : > { %v1464_v39 = vrot.slane %v1463_v36, 4  ;;  %v1411_v40 = vadd.f32 %v1410_v37, %v1391_v38  ;;  %v11751_v26 = vpop.f32.mrf.mxu1 }
 0x1ca   : > { %v1465_v42 = vadd.f32 %v1464_v39, %v1463_v36  ;;  %v1462_v43 = vadd.f32 %v11719_v35, %v1411_v40 }
 0x1cc   : > { %v1470_v44 = vadd.f32 %v1462_v43, %v1460_v41  ;;  %v1466_v45 = vrot.slane %v1465_v42, 2 }
 0x1ce   : > { %v1471_v46 = vrot.slane %v1470_v44, 4  ;;  %v1467_v47 = vadd.f32 %v1466_v45, %v1465_v42  ;;  %v11753_v27 = vpop.f32.mrf.mxu3 }
 0x1d0   : > { %v1472_v48 = vadd.f32 %v1471_v46, %v1470_v44  ;;  %v1468_v49 = vrot.slane %v1467_v47, 1  ;;  %v11755_v29 = vpop.f32.mrf.mxu1 }
 0x1d2   : > { %v1469_v23 = vadd.f32 %v1468_v49, %v1467_v47  ;;  %v1473_v55 = vrot.slane %v1472_v48, 2 }
 0x1d4   : > { %1493 = vmatmul.f32.vlgmr.msrb.gmra.mxu1 %v1469_v23  ;;  %v1474_v56 = vadd.f32 %v1473_v55, %v1472_v48 }
 0x1d6   : > { %v1475_v59 = vrot.slane %v1474_v56, 1  ;;  %v11757_v30 = vpop.f32.mrf.mxu3 }
 0x1d8   : > { %v1476_v21 = vadd.f32 %v1475_v59, %v1474_v56 }
 0x1da   : > { %1513 = vmatmul.f32.vlgmr.msrb.gmra.mxu3 %v1476_v21 }
 0x251   : > { %v1494_v31 = vpop.f32.mrf.mxu1 }
 0x25d   : > { %v1514_v34 = vpop.f32.mrf.mxu3 }
 0x25e   : > { %v1515_v36 = vadd.f32 %v1514_v34, %v1494_v31 }
 0x260   : > { %v1517_v37 = vmul.f32 0.0009765625, %v1515_v36 }
 0x262   : > { %8686 = vmatmul.msk.f32.vlgmr.msra.gmra.mxu1 %vm1522_vm7, %v1517_v37  ;;  %8688 = vmatmul.msk.f32.vlgmr.msra.gmra.mxu3 %vm1522_vm7, %v1517_v37 }
 0x2df   : > { %v1548_v38 = vpop.f32.mrf.mxu1 }
 0x2e0   : > { %v1571_v39 = vperm.slane %v1548_v38, 0 }
 0x2e2   : > { %v11762_v40 = vsub.f32 %v11712_v32, %v1571_v39  ;;  %v11765_v42 = vsub.f32 %v11715_v33, %v1571_v39  ;;  %v1648_v39 = vld.sshfl [vmem:[#allocation1] sm:$0xff pattern:$0x75316420] }
 0x2e3   : > { %8689 = vmatpush.msk.msrb.mxu1 %vm1526_vm6, %v1648_v39 }
 0x2e4   : > { %v1577_v44 = vmul.f32 %v11762_v40, %v11762_v40  ;;  %v1579_v45 = vmul.f32 %v11765_v42, %v11765_v42 }
 0x2e5   : > { %v1568_v46 = vpop.f32.mrf.mxu3  ;;  %1743 = vmatpush.msra.mxu1 %v11534_v50  ;;  %v1356_v50 = vpop.f32.mrf.mxu0 }
 0x2e6   : > { %v1581_v47 = vadd.f32 %v1579_v45, %v1577_v44  ;;  %v1572_v48 = vperm.slane %v1568_v46, 0  ;;  %v1649_v44 = vld.sshfl [vmem:[#allocation1 + $0x8] sm:$0xff pattern:$0x75316420] }
 0x2e7   : > { %8691 = vmatpush.msk.msrb.mxu3 %vm1526_vm6, %v1649_v44  ;;  %1784 = vst [vmem:[#allocation1] ss:$2 sm:$0xff] %v11745_v22  ;;  %1744 = vmatpush.msra.mxu1 %v11537_v51  ;;  %v1394_v51 = vpop.f32.mrf.mxu2 }
 0x2e8   : > { %v1582_v49 = vrot.slane %v1581_v47, 4  ;;  %v11771_v23 = vsub.f32 %v1460_v41, %v1572_v48  ;;  %v11773_v55 = vsub.f32 %v1462_v43, %v1572_v48 }
 0x2e9   : > { %1763 = vmatpush.msra.mxu3 %v11554_v54  ;;  %1745 = vmatpush.msra.mxu1 %v11546_v52  ;;  %v1376_v54 = vadd.f32 %v11751_v26, %v1356_v50 }
 0x2ea   : > { %v1578_v32 = vmul.f32 %v11771_v23, %v11771_v23  ;;  %v1580_v33 = vmul.f32 %v11773_v55, %v11773_v55  ;;  %v1583_v56 = vadd.f32 %v1582_v49, %v1581_v47  ;;  %v1419_v49 = vld [vmem:[%s11225_s21] sm:$0x3] }
 0x2eb   : > { %1764 = vmatpush.msra.mxu3 %v11563_v58  ;;  %1746 = vmatpush.msra.mxu1 %v11551_v53 }
 0x2ec   : > { %v1588_v59 = vadd.f32 %v1580_v33, %v1578_v32  ;;  %v1584_v21 = vrot.slane %v1583_v56, 2 }
 0x2ed   : > { %1765 = vmatpush.msra.mxu3 %v11574_v61  ;;  %1747 = vmatpush.msra.mxu1 %v11560_v57  ;;  %v1358_v52 = vpop.f32.mrf.mxu0  ;;  %v1414_v57 = vadd.f32 %v11753_v27, %v1394_v51 }
 0x2ee   : > { %v1589_v24 = vrot.slane %v1588_v59, 4  ;;  %v1585_v25 = vadd.f32 %v1584_v21, %v1583_v56  ;;  %v1378_v58 = vadd.f32 %v11755_v29, %v1358_v52  ;;  %v1785_v45 = vld.sshfl [vmem:[#allocation1] sm:$0xff pattern:$0x75316420]  ;;  %v11842_v56 = vperm.slane %v1419_v49, 0 }
 0x2ef   : > { %1766 = vmatpush.msra.mxu3 %v11582_v63  ;;  %1748 = vmatpush.msra.mxu1 %v11571_v60  ;;  %v1396_v53 = vpop.f32.mrf.mxu2  ;;  %v1786_v46 = vld.sshfl [vmem:[#allocation1 + $0x8] sm:$0xff pattern:$0x75316420] }
 0x2f0   : > { %v1586_v31 = vrot.slane %v1585_v25, 1  ;;  %v1590_v34 = vadd.f32 %v1589_v24, %v1588_v59  ;;  %v1416_v60 = vadd.f32 %v11757_v30, %v1396_v53  ;;  %1910 = vst [vmem:[#allocation1] ss:$2 sm:$0xff] %v11745_v22  ;;  %v1420_v59 = vld [vmem:[%s11230_s25] sm:$0x3] }
 0x2f1   : > { %1767 = vmatpush.msra.mxu3 %v11592_v1  ;;  %1749 = vmatpush.msra.mxu1 %v11579_v62  ;;  %v11822_v1 = vadd.f32 %v11719_v35, %v1414_v57 }
 0x2f2   : > { %v1587_v36 = vadd.f32 %v1586_v31, %v1585_v25  ;;  %v1591_v37 = vrot.slane %v1590_v34, 2  ;;  %v11848_v31 = vperm.slane %v1420_v59, 0 }
 0x2f3   : > { %1768 = vmatpush.msra.mxu3 %v11602_v3  ;;  %1750 = vmatpush.msra.mxu1 %v11589_v0  ;;  %v11819_v0 = vadd.f32 %v11705_v28, %v1376_v54  ;;  %v11828_v3 = vadd.f32 %v11719_v35, %v1416_v60 }
 0x2f4   : > { %1611 = vmatmul.f32.vlgmr.msrb.gmra.mxu0 %v1587_v36  ;;  %v1592_v41 = vadd.f32 %v1591_v37, %v1590_v34  ;;  %v11851_v37 = vperm.slane %v1419_v49, 1 }
 0x2f5   : > { %1769 = vmatpush.msra.mxu3 %v11612_v5  ;;  %1751 = vmatpush.msra.mxu1 %v11599_v2  ;;  %v11825_v2 = vadd.f32 %v11705_v28, %v1378_v58 }
 0x2f6   : > { %v1593_v38 = vrot.slane %v1592_v41, 1 }
 0x2f7   : > { %1770 = vmatpush.msra.mxu3 %v11622_v7  ;;  %1752 = vmatpush.msra.mxu1 %v11609_v4  ;;  %v1736_v7 = vadd.f32 %v11828_v3, %v11822_v1  ;;  %v1911_v47 = vld.sshfl [vmem:[#allocation1] sm:$0xff pattern:$0x75316420]  ;;  %v1912_v48 = vld.sshfl [vmem:[#allocation1 + $0x8] sm:$0xff pattern:$0x75316420] }
 0x2f8   : > { %v1594_v43 = vadd.f32 %v1593_v38, %v1592_v41 }
 0x2f9   : > { %1771 = vmatpush.msra.mxu3 %v11632_v9  ;;  %1753 = vmatpush.msra.mxu1 %v11619_v6  ;;  %v1729_v6 = vadd.f32 %v11825_v2, %v11819_v0  ;;  %v1737_v9 = vrot.slane %v1736_v7, 4 }
 0x2fa   : > { %1631 = vmatmul.f32.vlgmr.msrb.gmra.mxu2 %v1594_v43  ;;  %v11855_v43 = vperm.slane %v1420_v59, 1 }
 0x2fb   : > { %1772 = vmatpush.msra.mxu3 %v11642_v11  ;;  %1754 = vmatpush.msra.mxu1 %v11629_v8  ;;  %v1730_v8 = vrot.slane %v1729_v6, 4 }
 0x2fd   : > { %1773 = vmatpush.msra.mxu3 %v11652_v13  ;;  %1755 = vmatpush.msra.mxu1 %v11639_v10  ;;  %v1738_v13 = vadd.f32 %v1737_v9, %v1736_v7 }
 0x2ff   : > { %1774 = vmatpush.msra.mxu3 %v11662_v15  ;;  %1756 = vmatpush.msra.mxu1 %v11649_v12  ;;  %v1731_v12 = vadd.f32 %v1730_v8, %v1729_v6 }
 0x301   : > { %1775 = vmatpush.msra.mxu3 %v11672_v17  ;;  %1757 = vmatpush.msra.mxu1 %v11659_v14  ;;  %v1739_v17 = vrot.slane %v1738_v13, 2 }
 0x303   : > { %1776 = vmatpush.msra.mxu3 %v11679_v18  ;;  %1758 = vmatpush.msra.mxu1 %v11665_v16  ;;  %v1732_v16 = vrot.slane %v1731_v12, 2  ;;  %v1740_v28 = vadd.f32 %v1739_v17, %v1738_v13 }
 0x305   : > { %1777 = vmatpush.msra.mxu3 %v11682_v19  ;;  %v1741_v27 = vrot.slane %v1740_v28, 1 }
 0x307   : > { %1778 = vmatpush.msra.mxu3 %v11688_v20  ;;  %v1733_v20 = vadd.f32 %v1732_v16, %v1731_v12  ;;  %v1742_v30 = vadd.f32 %v1741_v27, %v1740_v28 }
 0x309   : > { %v1734_v26 = vrot.slane %v1733_v20, 1 }
 0x30b   : > { %v1735_v29 = vadd.f32 %v1734_v26, %v1733_v20 }
 0x371   : > { %v1612_v61 = vpop.f32.mrf.mxu0 }
 0x37d   : > { %v1632_v62 = vpop.f32.mrf.mxu2 }
 0x37e   : > { %v1633_v63 = vadd.f32 %v1632_v62, %v1612_v61 }
 0x380   : > { %v1635_v4 = vmul.f32 0.0009765625, %v1633_v63 }
 0x382   : > { %v1636_v5 = vadd.f32 1e-05, %v1635_v4 }
 0x384   : > { %10861 = vrsqrt.f32 %v1636_v5  ;;  %vm1643_vm9 = vweird.f32 %v1636_v5 }
 0x38a   : > { %v10862_v10 = vpop.eup %10861 }
 0x38b   : > { %v1638_v11 = vmul.f32 %v10862_v10, %v1636_v5  ;;  %vm1644_vm8 = vweird.f32 %v10862_v10 }
 0x38c   : > { %vm1645_vm10 = vmor %vm1643_vm9, %vm1644_vm8 }
 0x38d   : > { %v1639_v14 = vmul.f32 %v10862_v10, %v1638_v11  ;;  %v14938_v11 = vmov 0  ;;  %vm12504_vm8 = vmand %vm3582_vm4, %vm3583_vm5 }
 0x38e   : > { %v14939_v11 = vsel %vm11866_vm12, 4294967295, %v14938_v11 }
 0x38f   : > { %v1640_v15 = vmul.f32 0.5, %v1639_v14  ;;  %14940 = vst [vmem:[#allocation35_spill] sm:$0xff] %v14939_v11 }
 0x391   : > { %v1641_v18 = vsub.f32 1.5, %v1640_v15 }
 0x393   : > { %v1642_v19 = vmul.f32 %v10862_v10, %v1641_v18 }
 0x395   : > { %v1646_v35 = vsel %vm1645_vm10, %v10862_v10, %v1642_v19 }
 0x396   : > { %8690 = vmatmul.msk.f32.vlgmr.msrb.gmra.mxu1 %vm1522_vm7, %v1646_v35  ;;  %8692 = vmatmul.msk.f32.vlgmr.msrb.gmra.mxu3 %vm1522_vm7, %v1646_v35 }
 0x397   : > { %8693 = vmatpush.msk.msrb.mxu1 %vm1526_vm6, %v1785_v45  ;;  %8695 = vmatpush.msk.msrb.mxu3 %vm1526_vm6, %v1786_v46 }
 0x39e   : > { %1759 = vmatmul.f32.vlgmr.msra.gmra.mxu1 %v1735_v29  ;;  %1779 = vmatmul.f32.vlgmr.msra.gmra.mxu3 %v1742_v30 }
 0x39f   : > { %8697 = vmatpush.msk.msra.mxu1 %vm1526_vm6, %v1911_v47  ;;  %8699 = vmatpush.msk.msra.mxu3 %vm1526_vm6, %v1912_v48 }
 0x413   : > { %v1674_v32 = vpop.f32.mrf.mxu1 }
 0x414   : > { %v1697_v33 = vperm.slane %v1674_v32, 0 }
 0x416   : > { %v1699_v21 = vmul.f32 %v1697_v33, %v11762_v40  ;;  %v1701_v24 = vmul.f32 %v1697_v33, %v11765_v42 }
 0x418   : > { %v1708_v25 = vmul.f32 %v11842_v56, %v1699_v21  ;;  %v1710_v34 = vmul.f32 %v11842_v56, %v1701_v24 }
 0x419   : > { %v1694_v22 = vpop.f32.mrf.mxu3 }
 0x41a   : > { %v1698_v36 = vperm.slane %v1694_v22, 0  ;;  %v1717_v40 = vadd.f32 %v11848_v31, %v1708_v25  ;;  %v1719_v42 = vadd.f32 %v11848_v31, %v1710_v34 }
 0x41b   : > { %v1760_v53 = vpop.f32.mrf.mxu1 }
 0x41c   : > { %v1700_v41 = vmul.f32 %v1698_v36, %v11771_v23  ;;  %v1702_v38 = vmul.f32 %v1698_v36, %v11773_v55  ;;  %v1721_v52 = vmax.f32 %v1717_v40, 0.0  ;;  %v1723_v23 = vmax.f32 %v1719_v42, 0.0 }
 0x41e   : > { %v1709_v39 = vmul.f32 %v11851_v37, %v1700_v41  ;;  %v1711_v44 = vmul.f32 %v11851_v37, %v1702_v38 }
 0x420   : > { %v1718_v50 = vadd.f32 %v11855_v43, %v1709_v39  ;;  %v1720_v51 = vadd.f32 %v11855_v43, %v1711_v44 }
 0x421   : > { %v1780_v54 = vpop.f32.mrf.mxu3 }
 0x422   : > { %v1722_v57 = vmax.f32 %v1718_v50, 0.0  ;;  %v1724_v55 = vmax.f32 %v1720_v51, 0.0  ;;  %v1781_v58 = vadd.f32 %v1780_v54, %v1760_v53 }
 0x424   : > { %v1978_v60 = vpack.c.bf16 %v1722_v57, %v1721_v52  ;;  %v1979_v61 = vpack.c.bf16 %v1724_v55, %v1723_v23  ;;  %v1783_v62 = vmul.f32 0.0009765625, %v1781_v58 }
 0x426   : > { %8694 = vmatmul.msk.f32.vlgmr.msrb.gmra.mxu1 %vm1522_vm7, %v1783_v62  ;;  %8696 = vmatmul.msk.f32.vlgmr.msrb.gmra.mxu3 %vm1522_vm7, %v1783_v62  ;;  %v1982_v63 = vunpack.c.l.b16 %v1978_v60  ;;  %v1984_v4 = vunpack.c.l.b16 %v1979_v61  ;;  %v1983_v5 = vunpack.c.h.b16 %v1978_v60  ;;  %v1985_v6 = vunpack.c.h.b16 %v1979_v61  ;;  %v11887_v62 = vld [vmem:[%s11275_s12] sm:$0xf] }
 0x428   : > { %v1986_v7 = vpack.c.b16 %v1984_v4, %v1982_v63  ;;  %v1987_v8 = vpack.c.b16 %v1985_v6, %v1983_v5  ;;  %v11894_v63 = vld [vmem:[%s11275_s12 + $0x4] sm:$0xf]  ;;  %v11901_v4 = vld [vmem:[%s11275_s12 + $0x8] sm:$0xf] }
 0x42a   : > { %v1989_v9 = vshrl.u32 %v1986_v7, 16  ;;  %v1996_v10 = vshrl.u32 %v1987_v8, 16  ;;  %v1992_v14 = vshll.u32 %v1986_v7, 16  ;;  %v1999_v15 = vshll.u32 %v1987_v8, 16 }
 0x42c   : > { %v1991_v12 = vrot.slane %v1989_v9, 7  ;;  %v1998_v13 = vrot.slane %v1996_v10, 7 }
 0x42e   : > { %v2011_v16 = vsel %vm11866_vm12, %v1991_v12, 0  ;;  %v2012_v17 = vsel %vm11866_vm12, %v1998_v13, 0  ;;  %v1994_v20 = vor.u32 %v1992_v14, %v1991_v12  ;;  %v2001_v28 = vor.u32 %v1999_v15, %v1998_v13 }
 0x42f   : > { %v2021_v18 = vsel %vm1335_vm0, %v2011_v16, 0  ;;  %v2024_v19 = vsel %vm1335_vm0, %v2012_v17, 0 }
 0x430   : > { %2032 = vmatpush.bf16.msrb.mxu1 %v2021_v18  ;;  %2045 = vmatpush.bf16.msrb.mxu3 %v2024_v19  ;;  %v2009_v35 = vsel %vm11866_vm12, 0, %v1994_v20  ;;  %v2010_v26 = vsel %vm11866_vm12, 0, %v2001_v28 }
 0x431   : > { %2062 = vmatpush.bf16.msrb.mxu0 %v2021_v18  ;;  %2075 = vmatpush.bf16.msrb.mxu2 %v2024_v19 }
 0x434   : > { %2033 = vmatpush.bf16.msrb.mxu1 %v2009_v35  ;;  %2046 = vmatpush.bf16.msrb.mxu3 %v2010_v26 }
 0x435   : > { %2063 = vmatpush.bf16.msrb.mxu0 %v2009_v35  ;;  %2076 = vmatpush.bf16.msrb.mxu2 %v2010_v26 }
 0x4a3   : > { %v1811_v27 = vpop.f32.mrf.mxu1 }
 0x4a4   : > { %v1834_v29 = vperm.slane %v1811_v27, 0 }
 0x4a6   : > { %v1836_v30 = vsub.f32 %v11819_v0, %v1834_v29  ;;  %v1838_v45 = vsub.f32 %v11825_v2, %v1834_v29 }
 0x4a8   : > { %v1840_v46 = vmul.f32 %v1836_v30, %v1836_v30  ;;  %v1842_v47 = vmul.f32 %v1838_v45, %v1838_v45 }
 0x4a9   : > { %v1831_v48 = vpop.f32.mrf.mxu3 }
 0x4aa   : > { %v1844_v49 = vadd.f32 %v1842_v47, %v1840_v46  ;;  %v1835_v32 = vperm.slane %v1831_v48, 0 }
 0x4ac   : > { %v1845_v33 = vrot.slane %v1844_v49, 4  ;;  %v1837_v59 = vsub.f32 %v11822_v1, %v1835_v32  ;;  %v1839_v21 = vsub.f32 %v11828_v3, %v1835_v32 }
 0x4ae   : > { %v1846_v24 = vadd.f32 %v1845_v33, %v1844_v49  ;;  %v1841_v25 = vmul.f32 %v1837_v59, %v1837_v59  ;;  %v1843_v22 = vmul.f32 %v1839_v21, %v1839_v21 }
 0x4b0   : > { %v1847_v34 = vrot.slane %v1846_v24, 2  ;;  %v1851_v36 = vadd.f32 %v1843_v22, %v1841_v25 }
 0x4b2   : > { %v1852_v41 = vrot.slane %v1851_v36, 4  ;;  %v1848_v38 = vadd.f32 %v1847_v34, %v1846_v24 }
 0x4b4   : > { %v1853_v0 = vadd.f32 %v1852_v41, %v1851_v36  ;;  %v1849_v40 = vrot.slane %v1848_v38, 1 }
 0x4b6   : > { %v1854_v2 = vrot.slane %v1853_v0, 2  ;;  %v1850_v42 = vadd.f32 %v1849_v40, %v1848_v38  ;;  %v8771_v38 = vld [vmem:[%s14941_s0 + $0x70] sm:$0xf] }
 0x4b7   : > { %v8835_v40 = vld [vmem:[%s14941_s0 + $0xf0] sm:$0xf] }
 0x4b8   : > { %1874 = vmatmul.f32.vlgmr.msra.gmra.mxu0 %v1850_v42  ;;  %v1855_v39 = vadd.f32 %v1854_v2, %v1853_v0  ;;  %v10376_v0 = vld [vmem:[%s14941_s0 + $0x74] sm:$0xf0] }
 0x4b9   : > { %v10392_v2 = vld [vmem:[%s14941_s0 + $0xf4] sm:$0xf0] }
 0x4ba   : > { %v1856_v44 = vrot.slane %v1855_v39, 1 }
 0x4bc   : > { %v1857_v50 = vadd.f32 %v1856_v44, %v1855_v39  ;;  %v8899_v44 = vld [vmem:[%s14941_s0 + $0x170] sm:$0xf] }
 0x4be   : > { %1894 = vmatmul.f32.vlgmr.msra.gmra.mxu2 %v1857_v50  ;;  %v10408_v50 = vld [vmem:[%s14941_s0 + $0x174] sm:$0xf0] }
 0x4c0   : > { %8703 = vmatmul.msk.bf16.vlgmr.msrb.gmra.mxu0 %vm2016_vm1, %v11894_v63 }
 0x4c6   : > { %8704 = vmatmul.msk.bf16.vlgmr.msrb.gmra.mxu2 %vm2016_vm1, %v11894_v63 }
 0x535   : > { %v1875_v51 = vpop.f32.mrf.mxu0 }
 0x541   : > { %v1895_v1 = vpop.f32.mrf.mxu2 }
 0x542   : > { %v1896_v52 = vadd.f32 %v1895_v1, %v1875_v51  ;;  %v8963_v51 = vld [vmem:[%s14941_s0 + $0x1f0] sm:$0xf]  ;;  %v10424_v1 = vld [vmem:[%s14941_s0 + $0x1f4] sm:$0xf0] }
 0x544   : > { %v1898_v3 = vmul.f32 0.0009765625, %v1896_v52  ;;  %v8772_v52 = vor.u32 %v10376_v0, %v8771_v38  ;;  %v8795_v0 = vld [vmem:[%s14941_s0 + $0xa0] sm:$0xf] }
 0x546   : > { %v1899_v53 = vadd.f32 1e-05, %v1898_v3  ;;  %v8836_v3 = vor.u32 %v10392_v2, %v8835_v40  ;;  %v10382_v40 = vld [vmem:[%s14941_s0 + $0xa4] sm:$0xf0]  ;;  %v8859_v2 = vld [vmem:[%s14941_s0 + $0x120] sm:$0xf] }
 0x548   : > { %10863 = vrsqrt.f32 %v1899_v53  ;;  %vm1906_vm14 = vweird.f32 %v1899_v53 }
 0x54e   : > { %v10864_v54 = vpop.eup %10863 }
 0x54f   : > { %v1901_v23 = vmul.f32 %v10864_v54, %v1899_v53  ;;  %vm1907_vm13 = vweird.f32 %v10864_v54  ;;  %v8763_v53 = vld [vmem:[%s14941_s0 + $0x60] sm:$0xf] }
 0x550   : > { %vm1908_vm15 = vmor %vm1906_vm14, %vm1907_vm13  ;;  %vm3589_vm13 = vcmask 80896   ;;  %vm3840_vm14 = vcmask 1041408  }
 0x551   : > { %v1902_v57 = vmul.f32 %v10864_v54, %v1901_v23  ;;  %v8827_v23 = vld [vmem:[%s14941_s0 + $0xe0] sm:$0xf] }
 0x553   : > { %v1903_v55 = vmul.f32 0.5, %v1902_v57  ;;  %v10390_v57 = vld [vmem:[%s14941_s0 + $0xe4] sm:$0xf0] }
 0x555   : > { %v1904_v58 = vsub.f32 1.5, %v1903_v55  ;;  %v8900_v55 = vor.u32 %v10408_v50, %v8899_v44  ;;  %v8923_v44 = vld [vmem:[%s14941_s0 + $0x1a0] sm:$0xf]  ;;  %v10414_v50 = vld [vmem:[%s14941_s0 + $0x1a4] sm:$0xf0] }
 0x557   : > { %v1905_v60 = vmul.f32 %v10864_v54, %v1904_v58  ;;  %v8964_v58 = vor.u32 %v10424_v1, %v8963_v51  ;;  %v8796_v51 = vor.u32 %v10382_v40, %v8795_v0  ;;  %v10371_v0 = vld [vmem:[%s14941_s0 + $0x54] sm:$0xf]  ;;  %v8757_v40 = vld [vmem:[%s14941_s0 + $0x58] sm:$0xf0] }
 0x559   : > { %v1909_v61 = vsel %vm1908_vm15, %v10864_v54, %v1905_v60  ;;  %v10374_v54 = vld [vmem:[%s14941_s0 + $0x64] sm:$0xf0]  ;;  %v8891_v60 = vld [vmem:[%s14941_s0 + $0x160] sm:$0xf] }
 0x55a   : > { %8698 = vmatmul.msk.f32.vlgmr.msra.gmra.mxu1 %vm1522_vm7, %v1909_v61  ;;  %8700 = vmatmul.msk.f32.vlgmr.msra.gmra.mxu3 %vm1522_vm7, %v1909_v61  ;;  %v10406_v61 = vld [vmem:[%s14941_s0 + $0x164] sm:$0xf0] }
 0x55b   : > { %2092 = vmatpush.bf16.msra.mxu1 %v2021_v18  ;;  %2105 = vmatpush.bf16.msra.mxu3 %v2024_v19 }
 0x55f   : > { %2093 = vmatpush.bf16.msra.mxu1 %v2009_v35  ;;  %2106 = vmatpush.bf16.msra.mxu3 %v2010_v26 }
 0x562   : > { %8702 = vmatmul.msk.bf16.vlgmr.msrb.gmra.mxu3 %vm2016_vm1, %v11887_v62  ;;  %8701 = vmatmul.msk.bf16.vlgmr.msrb.gmra.mxu1 %vm2016_vm1, %v11887_v62 }
 0x572   : > { %8706 = vmatmul.msk.bf16.vlgmr.msra.gmra.mxu3 %vm2016_vm1, %v11901_v4  ;;  %8705 = vmatmul.msk.bf16.vlgmr.msra.gmra.mxu1 %vm2016_vm1, %v11901_v4 }
 0x5d7   : > { %v1937_v5 = vpop.f32.mrf.mxu1 }
 0x5d8   : > { %v1960_v6 = vperm.slane %v1937_v5, 0  ;;  %v8955_v5 = vld [vmem:[%s14941_s0 + $0x1e0] sm:$0xf] }
 0x5da   : > { %v1962_v7 = vmul.f32 %v1960_v6, %v1836_v30  ;;  %v1964_v8 = vmul.f32 %v1960_v6, %v1838_v45  ;;  %v10422_v6 = vld [vmem:[%s14941_s0 + $0x1e4] sm:$0xf0] }
 0x5dc   : > { %v1966_v10 = vmul.f32 %v1962_v7, %v11842_v56  ;;  %v1968_v12 = vmul.f32 %v1964_v8, %v11842_v56  ;;  %v8828_v7 = vor.u32 %v10390_v57, %v8827_v23  ;;  %v8755_v8 = vld [vmem:[%s14941_s0 + $0x50] sm:$0xf]  ;;  %v10380_v57 = vld [vmem:[%s14941_s0 + $0x94] sm:$0xf0] }
 0x5dd   : > { %v1957_v9 = vpop.f32.mrf.mxu3 }
 0x5de   : > { %v1961_v13 = vperm.slane %v1957_v9, 0  ;;  %v1970_v16 = vadd.f32 %v1966_v10, %v11848_v31  ;;  %v1972_v17 = vadd.f32 %v1968_v12, %v11848_v31  ;;  %v10372_v9 = vld [vmem:[%s14941_s0 + $0x54] sm:$0xf0]  ;;  %v8819_v10 = vld [vmem:[%s14941_s0 + $0xd0] sm:$0xf] }
 0x5df   : > { %v10388_v12 = vld [vmem:[%s14941_s0 + $0xd4] sm:$0xf0] }
 0x5e0   : > { %v1963_v14 = vmul.f32 %v1961_v13, %v1837_v59  ;;  %v1965_v15 = vmul.f32 %v1961_v13, %v1839_v21  ;;  %v1974_v35 = vmax.f32 %v1970_v16, 0.0  ;;  %v1976_v26 = vmax.f32 %v1972_v17, 0.0  ;;  %v8947_v16 = vld [vmem:[%s14941_s0 + $0x1d0] sm:$0xf]  ;;  %v10420_v17 = vld [vmem:[%s14941_s0 + $0x1d4] sm:$0xf0] }
 0x5e1   : > { %v8956_v13 = vor.u32 %v10422_v6, %v8955_v5  ;;  %v8915_v5 = vld [vmem:[%s14941_s0 + $0x190] sm:$0xf]  ;;  %v10412_v6 = vld [vmem:[%s14941_s0 + $0x194] sm:$0xf0] }
 0x5e2   : > { %v1967_v18 = vmul.f32 %v1963_v14, %v11851_v37  ;;  %v1969_v19 = vmul.f32 %v1965_v15, %v11851_v37  ;;  %v8883_v14 = vld [vmem:[%s14941_s0 + $0x150] sm:$0xf]  ;;  %v10404_v15 = vld [vmem:[%s14941_s0 + $0x154] sm:$0xf0] }
 0x5e4   : > { %v1971_v20 = vadd.f32 %v1967_v18, %v11855_v43  ;;  %v1973_v28 = vadd.f32 %v1969_v19, %v11855_v43  ;;  %v8756_v18 = vor.u32 %v10372_v9, %v8755_v8  ;;  %v8820_v19 = vor.u32 %v10388_v12, %v8819_v10  ;;  %v10362_v8 = vld [vmem:[%s14941_s0 + $0x4] sm:$0xf0]  ;;  %v8779_v9 = vld [vmem:[%s14941_s0 + $0x80] sm:$0xf] }
 0x5e5   : > { %v10378_v12 = vld [vmem:[%s14941_s0 + $0x84] sm:$0xf0] }
 0x5e6   : > { %v1975_v27 = vmax.f32 %v1971_v20, 0.0  ;;  %v1977_v29 = vmax.f32 %v1973_v28, 0.0  ;;  %v8884_v20 = vor.u32 %v10404_v15, %v8883_v14  ;;  %v8948_v28 = vor.u32 %v10420_v17, %v8947_v16  ;;  %v8907_v16 = vld [vmem:[%s14941_s0 + $0x180] sm:$0xf]  ;;  %v10410_v17 = vld [vmem:[%s14941_s0 + $0x184] sm:$0xf0] }
 0x5e7   : > { %v8780_v14 = vor.u32 %v10378_v12, %v8779_v9  ;;  %v10369_v12 = vld [vmem:[%s14941_s0 + $0x44] sm:$0xf] }
 0x5e8   : > { %v2128_v56 = vpack.c.bf16 %v1975_v27, %v1974_v35  ;;  %v2129_v30 = vpack.c.bf16 %v1977_v29, %v1976_v26  ;;  %v8747_v35 = vld [vmem:[%s14941_s0 + $0x40] sm:$0xf]  ;;  %v10370_v26 = vld [vmem:[%s14941_s0 + $0x44] sm:$0xf0] }
 0x5e9   : > { %v8811_v27 = vld [vmem:[%s14941_s0 + $0xc0] sm:$0xf]  ;;  %v8748_v29 = vor.u32 %v10370_v26, %v8747_v35  ;;  %v10456_v35 = vld [vmem:[%s14941_s0 + $0x2f4] sm:$0xf0] }
 0x5ea   : > { %v2132_v45 = vunpack.c.l.b16 %v2128_v56  ;;  %v2134_v46 = vunpack.c.l.b16 %v2129_v30  ;;  %v2133_v47 = vunpack.c.h.b16 %v2128_v56  ;;  %v2135_v48 = vunpack.c.h.b16 %v2129_v30  ;;  %v10386_v56 = vld [vmem:[%s14941_s0 + $0xc4] sm:$0xf0]  ;;  %v8875_v30 = vld [vmem:[%s14941_s0 + $0x140] sm:$0xf] }
 0x5ec   : > { %v2136_v49 = vpack.c.b16 %v2134_v46, %v2132_v45  ;;  %v2137_v31 = vpack.c.b16 %v2135_v48, %v2133_v47  ;;  %v10402_v45 = vld [vmem:[%s14941_s0 + $0x144] sm:$0xf0]  ;;  %v8812_v46 = vor.u32 %v10386_v56, %v8811_v27  ;;  %v8939_v48 = vld [vmem:[%s14941_s0 + $0x1c0] sm:$0xf]  ;;  %v8773_v56 = vld [vmem:[%s14941_s0 + $0x78] sm:$0xf0] }
 0x5ed   : > { %v8876_v47 = vor.u32 %v10402_v45, %v8875_v30  ;;  %v10391_v30 = vld [vmem:[%s14941_s0 + $0xf4] sm:$0xf]  ;;  %v2035_v45 = vpop.f32.mrf.mxu1 }
 0x5ee   : > { %v2139_v32 = vshrl.u32 %v2136_v49, 16  ;;  %v2146_v33 = vshrl.u32 %v2137_v31, 16  ;;  %v2142_v43 = vshll.u32 %v2136_v49, 16  ;;  %v2149_v21 = vshll.u32 %v2137_v31, 16  ;;  %v10418_v49 = vld [vmem:[%s14941_s0 + $0x1c4] sm:$0xf0] }
 0x5ef   : > { %v8739_v31 = vld [vmem:[%s14941_s0 + $0x30] sm:$0xf] }
 0x5f0   : > { %v2141_v37 = vrot.slane %v2139_v32, 7  ;;  %v2148_v59 = vrot.slane %v2146_v33, 7  ;;  %v10368_v32 = vld [vmem:[%s14941_s0 + $0x34] sm:$0xf0]  ;;  %v8803_v33 = vld [vmem:[%s14941_s0 + $0xb0] sm:$0xf] }
 0x5f2   : > { %v2158_v24 = vsel %vm11866_vm12, %v2141_v37, 0  ;;  %v2159_v25 = vsel %vm11866_vm12, %v2148_v59, 0  ;;  %v2144_v36 = vor.u32 %v2142_v43, %v2141_v37  ;;  %v2151_v41 = vor.u32 %v2149_v21, %v2148_v59  ;;  %v10384_v37 = vld [vmem:[%s14941_s0 + $0xb4] sm:$0xf0]  ;;  %v8867_v21 = vld [vmem:[%s14941_s0 + $0x130] sm:$0xf] }
 0x5f3   : > { %v2161_v22 = vsel %vm1335_vm0, %v2158_v24, 0  ;;  %v2164_v34 = vsel %vm1335_vm0, %v2159_v25, 0  ;;  %v8740_v59 = vor.u32 %v10368_v32, %v8739_v31  ;;  %v8804_v43 = vor.u32 %v10384_v37, %v8803_v33  ;;  %v10400_v24 = vld [vmem:[%s14941_s0 + $0x134] sm:$0xf0]  ;;  %v8931_v25 = vld [vmem:[%s14941_s0 + $0x1b0] sm:$0xf] }
 0x5f4   : > { %2172 = vmatpush.bf16.msra.mxu0 %v2161_v22  ;;  %2185 = vmatpush.bf16.msra.mxu2 %v2164_v34  ;;  %v2156_v42 = vsel %vm11866_vm12, 0, %v2144_v36  ;;  %v2157_v39 = vsel %vm11866_vm12, 0, %v2151_v41  ;;  %v8731_v36 = vld [vmem:[%s14941_s0 + $0x20] sm:$0xf]  ;;  %v10366_v41 = vld [vmem:[%s14941_s0 + $0x24] sm:$0xf0] }
 0x5f5   : > { %2199 = vmatpush.bf16.msrb.mxu1 %v2161_v22  ;;  %2212 = vmatpush.bf16.msrb.mxu3 %v2164_v34  ;;  %v9083_v32 = vld [vmem:[%s14941_s0 + $0x2e0] sm:$0xf]  ;;  %v10454_v33 = vld [vmem:[%s14941_s0 + $0x2e4] sm:$0xf0]  ;;  %v10373_v37 = vld [vmem:[%s14941_s0 + $0x64] sm:$0xf] }
 0x5f8   : > { %2173 = vmatpush.bf16.msra.mxu0 %v2156_v42  ;;  %2186 = vmatpush.bf16.msra.mxu2 %v2157_v39 }
 0x5f9   : > { %2200 = vmatpush.bf16.msrb.mxu1 %v2156_v42  ;;  %2213 = vmatpush.bf16.msrb.mxu3 %v2157_v39 }
 0x5fb   : > { %8707 = vmatmul.msk.bf16.vlgmr.msra.gmra.mxu0 %vm2016_vm1, %v11887_v62  ;;  %8708 = vmatmul.msk.bf16.vlgmr.msra.gmra.mxu2 %vm2016_vm1, %v11887_v62  ;;  %v8764_v62 = vor.u32 %v10374_v54, %v8763_v53  ;;  %v10364_v53 = vld [vmem:[%s14941_s0 + $0x14] sm:$0xf0]  ;;  %v8787_v54 = vld [vmem:[%s14941_s0 + $0x90] sm:$0xf] }
 0x5fc   : > { %2226 = vmatpush.bf16.msrb.mxu0 %v2161_v22  ;;  %2239 = vmatpush.bf16.msrb.mxu2 %v2164_v34  ;;  %v8868_v22 = vor.u32 %v10400_v24, %v8867_v21  ;;  %v10416_v34 = vld [vmem:[%s14941_s0 + $0x1b4] sm:$0xf0]  ;;  %v10389_v21 = vld [vmem:[%s14941_s0 + $0xe4] sm:$0xf]  ;;  %v8829_v24 = vld [vmem:[%s14941_s0 + $0xe8] sm:$0xf0] }
 0x5fd   : > { %8710 = vmatmul.msk.bf16.vlgmr.msrb.gmra.mxu3 %vm2016_vm1, %v11894_v63  ;;  %8709 = vmatmul.msk.bf16.vlgmr.msrb.gmra.mxu1 %vm2016_vm1, %v11894_v63  ;;  %v8892_v63 = vor.u32 %v10406_v61, %v8891_v60  ;;  %v8932_v38 = vor.u32 %v10416_v34, %v8931_v25  ;;  %v8788_v60 = vor.u32 %v10380_v57, %v8787_v54  ;;  %v9011_v34 = vld [vmem:[%s14941_s0 + $0x250] sm:$0xf]  ;;  %v12029_v57 = vpop.f32.mrf.mxu2 }
 0x5fe   : > { %2868 = vmatpush.bf16.msra.mxu1 %v8772_v52  ;;  %2882 = vmatpush.bf16.msra.mxu3 %v8836_v3  ;;  %v8924_v52 = vor.u32 %v10414_v50, %v8923_v44  ;;  %v8723_v3 = vld [vmem:[%s14941_s0 + $0x10] sm:$0xf]  ;;  %v8821_v44 = vld [vmem:[%s14941_s0 + $0xd8] sm:$0xf0]  ;;  %v2048_v50 = vpop.f32.mrf.mxu3 }
 0x5ff   : > { %v8724_v23 = vor.u32 %v10364_v53, %v8723_v3  ;;  %v2037_v3 = vpop.f32.mrf.mxu1  ;;  %v12027_v53 = vpop.f32.mrf.mxu0 }
 0x600   : > { %2227 = vmatpush.bf16.msrb.mxu0 %v2156_v42  ;;  %2240 = vmatpush.bf16.msrb.mxu2 %v2157_v39  ;;  %v8732_v42 = vor.u32 %v10366_v41, %v8731_v36  ;;  %v10398_v39 = vld [vmem:[%s14941_s0 + $0x124] sm:$0xf0]  ;;  %v10436_v36 = vld [vmem:[%s14941_s0 + $0x254] sm:$0xf0]  ;;  %v9075_v41 = vld [vmem:[%s14941_s0 + $0x2d0] sm:$0xf] }
 0x601   : > { %v8860_v1 = vor.u32 %v10398_v39, %v8859_v2  ;;  %v9012_v2 = vor.u32 %v10436_v36, %v9011_v34  ;;  %v10387_v39 = vld [vmem:[%s14941_s0 + $0xd4] sm:$0xf]  ;;  %v9043_v34 = vld [vmem:[%s14941_s0 + $0x290] sm:$0xf] }
 0x602   : > { %2869 = vmatpush.bf16.msra.mxu1 %v8764_v62  ;;  %2883 = vmatpush.bf16.msra.mxu3 %v8828_v7  ;;  %v8916_v62 = vor.u32 %v10412_v6, %v8915_v5  ;;  %v8715_v7 = vld [vmem:[%s14941_s0] sm:$0xf] }
 0x603   : > { %v8716_v10 = vor.u32 %v10362_v8, %v8715_v7  ;;  %v10434_v7 = vld [vmem:[%s14941_s0 + $0x244] sm:$0xf0]  ;;  %v9067_v8 = vld [vmem:[%s14941_s0 + $0x2c0] sm:$0xf] }
 0x604   : > { %2896 = vmatpush.bf16.msra.mxu0 %v8900_v55  ;;  %2910 = vmatpush.bf16.msra.mxu2 %v8964_v58  ;;  %v8851_v55 = vld [vmem:[%s14941_s0 + $0x110] sm:$0xf]  ;;  %v10396_v58 = vld [vmem:[%s14941_s0 + $0x114] sm:$0xf0] }
 0x605   : > { %v8852_v61 = vor.u32 %v10396_v58, %v8851_v55  ;;  %v2080_v5 = vpop.f32.mrf.mxu2 }
 0x606   : > { %2870 = vmatpush.bf16.msra.mxu1 %v8756_v18  ;;  %2884 = vmatpush.bf16.msra.mxu3 %v8820_v19  ;;  %v9027_v18 = vld [vmem:[%s14941_s0 + $0x270] sm:$0xf]  ;;  %v8908_v19 = vor.u32 %v10410_v17, %v8907_v16  ;;  %v2050_v54 = vpop.f32.mrf.mxu3  ;;  %v8813_v16 = vld [vmem:[%s14941_s0 + $0xc8] sm:$0xf0]  ;;  %v10377_v5 = vld [vmem:[%s14941_s0 + $0x84] sm:$0xf] }
 0x607   : > { %v2067_v55 = vpop.f32.mrf.mxu0  ;;  %v10442_v54 = vld [vmem:[%s14941_s0 + $0x284] sm:$0xf0] }
 0x608   : > { %2897 = vmatpush.bf16.msra.mxu0 %v8892_v63  ;;  %2911 = vmatpush.bf16.msra.mxu2 %v8956_v13  ;;  %v8843_v63 = vld [vmem:[%s14941_s0 + $0x100] sm:$0xf]  ;;  %v10394_v13 = vld [vmem:[%s14941_s0 + $0x104] sm:$0xf0]  ;;  %v8717_v55 = vld [vmem:[%s14941_s0 + $0x8] sm:$0xf0] }
 0x609   : > { %v8844_v15 = vor.u32 %v10394_v13, %v8843_v63  ;;  %v8749_v63 = vld [vmem:[%s14941_s0 + $0x48] sm:$0xf0] }
 0x60a   : > { %2871 = vmatpush.bf16.msra.mxu1 %v8748_v29  ;;  %2885 = vmatpush.bf16.msra.mxu3 %v8812_v46  ;;  %v10375_v29 = vld [vmem:[%s14941_s0 + $0x74] sm:$0xf] }
 0x60b   : > { %8711 = vmatmul.msk.bf16.vlgmr.msrb.gmra.mxu0 %vm2016_vm1, %v11901_v4  ;;  %8712 = vmatmul.msk.bf16.vlgmr.msrb.gmra.mxu2 %vm2016_vm1, %v11901_v4  ;;  %v8940_v4 = vor.u32 %v10418_v49, %v8939_v48  ;;  %v8776_v46 = vor.u32 %v10375_v29, %v8773_v56  ;;  %v9019_v48 = vld [vmem:[%s14941_s0 + $0x260] sm:$0xf]  ;;  %v10438_v49 = vld [vmem:[%s14941_s0 + $0x264] sm:$0xf0] }
 0x60c   : > { %2898 = vmatpush.bf16.msra.mxu0 %v8884_v20  ;;  %2912 = vmatpush.bf16.msra.mxu2 %v8948_v28  ;;  %v10440_v20 = vld [vmem:[%s14941_s0 + $0x274] sm:$0xf0]  ;;  %v9091_v28 = vld [vmem:[%s14941_s0 + $0x2f0] sm:$0xf] }
 0x60d   : > { %v9028_v26 = vor.u32 %v10440_v20, %v9027_v18  ;;  %v9092_v27 = vor.u32 %v10456_v35, %v9091_v28  ;;  %v8995_v18 = vld [vmem:[%s14941_s0 + $0x230] sm:$0xf]  ;;  %v10448_v35 = vld [vmem:[%s14941_s0 + $0x2b4] sm:$0xf0] }
 0x60e   : > { %2872 = vmatpush.bf16.msra.mxu1 %v8740_v59  ;;  %2886 = vmatpush.bf16.msra.mxu3 %v8804_v43  ;;  %v9084_v59 = vor.u32 %v10454_v33, %v9083_v32  ;;  %v8765_v43 = vld [vmem:[%s14941_s0 + $0x68] sm:$0xf0]  ;;  %v2108_v58 = vpop.f32.mrf.mxu3  ;;  %v9059_v20 = vld [vmem:[%s14941_s0 + $0x2b0] sm:$0xf]  ;;  %v10365_v32 = vld [vmem:[%s14941_s0 + $0x24] sm:$0xf] }
 0x60f   : > { %v8768_v25 = vor.u32 %v10373_v37, %v8765_v43  ;;  %v9060_v29 = vor.u32 %v10448_v35, %v9059_v20  ;;  %v8733_v33 = vld [vmem:[%s14941_s0 + $0x28] sm:$0xf0]  ;;  %v10381_v43 = vld [vmem:[%s14941_s0 + $0xa4] sm:$0xf]  ;;  %v10407_v35 = vld [vmem:[%s14941_s0 + $0x174] sm:$0xf] }
 0x610   : > { %2899 = vmatpush.bf16.msra.mxu0 %v8876_v47  ;;  %2913 = vmatpush.bf16.msra.mxu2 %v8940_v4  ;;  %v8837_v47 = vld [vmem:[%s14941_s0 + $0xf8] sm:$0xf0]  ;;  %v9020_v4 = vor.u32 %v10438_v49, %v9019_v48  ;;  %v10430_v48 = vld [vmem:[%s14941_s0 + $0x224] sm:$0xf0]  ;;  %v9051_v49 = vld [vmem:[%s14941_s0 + $0x2a0] sm:$0xf] }
 0x611   : > { %v8840_v31 = vor.u32 %v10391_v30, %v8837_v47  ;;  %v10383_v30 = vld [vmem:[%s14941_s0 + $0xb4] sm:$0xf]  ;;  %v8987_v47 = vld [vmem:[%s14941_s0 + $0x220] sm:$0xf] }
 0x612   : > { %2873 = vmatpush.bf16.msra.mxu1 %v8732_v42  ;;  %2887 = vmatpush.bf16.msra.mxu3 %v8796_v51  ;;  %v8760_v51 = vor.u32 %v10371_v0, %v8757_v40  ;;  %v8725_v0 = vld [vmem:[%s14941_s0 + $0x18] sm:$0xf0] }
 0x614   : > { %2900 = vmatpush.bf16.msra.mxu0 %v8868_v22  ;;  %2914 = vmatpush.bf16.msra.mxu2 %v8932_v38  ;;  %v8832_v22 = vor.u32 %v10389_v21, %v8829_v24  ;;  %v10452_v38 = vld [vmem:[%s14941_s0 + $0x2d4] sm:$0xf0]  ;;  %v8797_v21 = vld [vmem:[%s14941_s0 + $0xa8] sm:$0xf0] }
 0x615   : > { %v9076_v42 = vor.u32 %v10452_v38, %v9075_v41  ;;  %v8800_v24 = vor.u32 %v10381_v43, %v8797_v21  ;;  %v10444_v41 = vld [vmem:[%s14941_s0 + $0x294] sm:$0xf0]  ;;  %v10363_v38 = vld [vmem:[%s14941_s0 + $0x14] sm:$0xf] }
 0x616   : > { %2874 = vmatpush.bf16.msra.mxu1 %v8724_v23  ;;  %2888 = vmatpush.bf16.msra.mxu3 %v8788_v60  ;;  %v2095_v23 = vpop.f32.mrf.mxu1  ;;  %v2110_v6 = vpop.f32.mrf.mxu3  ;;  %v9044_v40 = vor.u32 %v10444_v41, %v9043_v34  ;;  %v10405_v34 = vld [vmem:[%s14941_s0 + $0x164] sm:$0xf] }
 0x617   : > { %v12031_v60 = vpack.c.bf16 %v2108_v58, %v2095_v23  ;;  %v10361_v23 = vld [vmem:[%s14941_s0 + $0x4] sm:$0xf]  ;;  %v8781_v6 = vld [vmem:[%s14941_s0 + $0x88] sm:$0xf0] }
 0x618   : > { %2901 = vmatpush.bf16.msra.mxu0 %v8860_v1  ;;  %2915 = vmatpush.bf16.msra.mxu2 %v8924_v52  ;;  %v12025_v1 = vpack.c.bf16 %v2048_v50, %v2035_v45  ;;  %v8824_v52 = vor.u32 %v10387_v39, %v8821_v44  ;;  %v8805_v45 = vld [vmem:[%s14941_s0 + $0xb8] sm:$0xf0]  ;;  %v8971_v50 = vld [vmem:[%s14941_s0 + $0x200] sm:$0xf] }
 0x619   : > { %v8789_v39 = vld [vmem:[%s14941_s0 + $0x98] sm:$0xf0] }
 0x61a   : > { %2875 = vmatpush.bf16.msra.mxu1 %v8716_v10  ;;  %2889 = vmatpush.bf16.msra.mxu3 %v8780_v14  ;;  %v10450_v10 = vld [vmem:[%s14941_s0 + $0x2c4] sm:$0xf0]  ;;  %v8752_v14 = vor.u32 %v10369_v12, %v8749_v63 }
 0x61b   : > { %v9068_v13 = vor.u32 %v10450_v10, %v9067_v8 }
 0x61c   : > { %2902 = vmatpush.bf16.msra.mxu0 %v8852_v61  ;;  %2916 = vmatpush.bf16.msra.mxu2 %v8916_v62  ;;  %v9003_v62 = vld [vmem:[%s14941_s0 + $0x240] sm:$0xf] }
 0x61d   : > { %v9004_v9 = vor.u32 %v10434_v7, %v9003_v62  ;;  %v8784_v62 = vor.u32 %v10377_v5, %v8781_v6  ;;  %v8885_v5 = vld [vmem:[%s14941_s0 + $0x158] sm:$0xf0] }
 0x61e   : > { %2924 = vmatpush.bf16.msrb.mxu1 %v9028_v26  ;;  %2938 = vmatpush.bf16.msrb.mxu3 %v9092_v27  ;;  %v2097_v61 = vpop.f32.mrf.mxu1  ;;  %v10367_v26 = vld [vmem:[%s14941_s0 + $0x34] sm:$0xf]  ;;  %v8741_v27 = vld [vmem:[%s14941_s0 + $0x38] sm:$0xf0] }
 0x61f   : > { %v8744_v56 = vor.u32 %v10367_v26, %v8741_v27  ;;  %v8720_v61 = vor.u32 %v10361_v23, %v8717_v55  ;;  %v8901_v26 = vld [vmem:[%s14941_s0 + $0x178] sm:$0xf0]  ;;  %v9085_v23 = vld [vmem:[%s14941_s0 + $0x2e8] sm:$0xf0] }
 0x620   : > { %2903 = vmatpush.bf16.msra.mxu0 %v8844_v15  ;;  %2917 = vmatpush.bf16.msra.mxu2 %v8908_v19  ;;  %v10385_v15 = vld [vmem:[%s14941_s0 + $0xc4] sm:$0xf]  ;;  %v10432_v19 = vld [vmem:[%s14941_s0 + $0x234] sm:$0xf0] }
 0x621   : > { %v8816_v17 = vor.u32 %v10385_v15, %v8813_v16  ;;  %v8996_v28 = vor.u32 %v10432_v19, %v8995_v18 }
 0x622   : > { %2925 = vmatpush.bf16.msrb.mxu1 %v9020_v4  ;;  %2939 = vmatpush.bf16.msrb.mxu3 %v9084_v59  ;;  %v10446_v4 = vld [vmem:[%s14941_s0 + $0x2a4] sm:$0xf0]  ;;  %v8736_v59 = vor.u32 %v10365_v32, %v8733_v33 }
 0x623   : > { %v9052_v37 = vor.u32 %v10446_v4, %v9051_v49  ;;  %v9029_v49 = vld [vmem:[%s14941_s0 + $0x278] sm:$0xf0] }
 0x624   : > { %2952 = vmatpush.bf16.msrb.mxu0 %v8776_v46  ;;  %2966 = vmatpush.bf16.msrb.mxu2 %v8840_v31  ;;  %v8808_v46 = vor.u32 %v10383_v30, %v8805_v45  ;;  %v8988_v31 = vor.u32 %v10430_v48, %v8987_v47  ;;  %v8965_v30 = vld [vmem:[%s14941_s0 + $0x1f8] sm:$0xf0] }
 0x625   : > { %v9093_v4 = vld [vmem:[%s14941_s0 + $0x2f8] sm:$0xf0] }
 0x626   : > { %2926 = vmatpush.bf16.msrb.mxu1 %v9012_v2  ;;  %2940 = vmatpush.bf16.msrb.mxu3 %v9076_v42  ;;  %v8728_v2 = vor.u32 %v10363_v38, %v8725_v0  ;;  %v10379_v42 = vld [vmem:[%s14941_s0 + $0x94] sm:$0xf] }
 0x627   : > { %v8792_v44 = vor.u32 %v10379_v42, %v8789_v39  ;;  %v10421_v42 = vld [vmem:[%s14941_s0 + $0x1e4] sm:$0xf]  ;;  %v8957_v39 = vld [vmem:[%s14941_s0 + $0x1e8] sm:$0xf0] }
 0x628   : > { %2953 = vmatpush.bf16.msrb.mxu0 %v8768_v25  ;;  %2967 = vmatpush.bf16.msrb.mxu2 %v8832_v22  ;;  %v8979_v25 = vld [vmem:[%s14941_s0 + $0x210] sm:$0xf]  ;;  %v10428_v22 = vld [vmem:[%s14941_s0 + $0x214] sm:$0xf0] }
 0x629   : > { %v8980_v36 = vor.u32 %v10428_v22, %v8979_v25  ;;  %v8904_v25 = vor.u32 %v10407_v35, %v8901_v26  ;;  %v9005_v35 = vld [vmem:[%s14941_s0 + $0x248] sm:$0xf0] }
 0x62a   : > { %2927 = vmatpush.bf16.msrb.mxu1 %v9004_v9  ;;  %2941 = vmatpush.bf16.msrb.mxu3 %v9068_v13  ;;  %v2082_v9 = vpack.c.bf16 %v12029_v57, %v12027_v53  ;;  %v2114_v13 = vunpack.c.l.b16 %v12025_v1 }
 0x62c   : > { %2954 = vmatpush.bf16.msrb.mxu0 %v8760_v51  ;;  %2968 = vmatpush.bf16.msrb.mxu2 %v8824_v52  ;;  %v10426_v51 = vld [vmem:[%s14941_s0 + $0x204] sm:$0xf0]  ;;  %v9035_v52 = vld [vmem:[%s14941_s0 + $0x280] sm:$0xf]  ;;  %v2120_v18 = vunpack.c.h.b16 %v2082_v9  ;;  %v2116_v45 = vpack.c.b16 %v2114_v13, %v2114_v13 }
 0x62d   : > { %v8972_v3 = vor.u32 %v10426_v51, %v8971_v50  ;;  %v9036_v58 = vor.u32 %v10442_v54, %v9035_v52  ;;  %v10453_v54 = vld [vmem:[%s14941_s0 + $0x2e4] sm:$0xf] }
 0x62e   : > { %2928 = vmatpush.bf16.msrb.mxu1 %v8996_v28  ;;  %2942 = vmatpush.bf16.msrb.mxu3 %v9060_v29  ;;  %v2122_v33 = vpack.c.b16 %v2120_v18, %v2120_v18  ;;  %v10417_v18 = vld [vmem:[%s14941_s0 + $0x1c4] sm:$0xf] }
 0x630   : > { %2955 = vmatpush.bf16.msrb.mxu0 %v8752_v14  ;;  %2969 = vmatpush.bf16.msrb.mxu2 %v8816_v17  ;;  %v2115_v14 = vunpack.c.h.b16 %v12025_v1  ;;  %v2119_v17 = vunpack.c.l.b16 %v2082_v9  ;;  %v10439_v1 = vld [vmem:[%s14941_s0 + $0x274] sm:$0xf] }
 0x631   : > { %v10435_v9 = vld [vmem:[%s14941_s0 + $0x254] sm:$0xf] }
 0x632   : > { %2929 = vmatpush.bf16.msrb.mxu1 %v8988_v31  ;;  %2943 = vmatpush.bf16.msrb.mxu3 %v9052_v37  ;;  %v10455_v31 = vld [vmem:[%s14941_s0 + $0x2f4] sm:$0xf]  ;;  %v2121_v32 = vpack.c.b16 %v2119_v17, %v2119_v17  ;;  %v8877_v17 = vld [vmem:[%s14941_s0 + $0x148] sm:$0xf0] }
 0x634   : > { %2956 = vmatpush.bf16.msrb.mxu0 %v8744_v56  ;;  %2970 = vmatpush.bf16.msrb.mxu2 %v8808_v46  ;;  %v10423_v56 = vld [vmem:[%s14941_s0 + $0x1f4] sm:$0xf]  ;;  %v2117_v46 = vpack.c.b16 %v2115_v14, %v2115_v14 }
 0x635   : > { %v8968_v22 = vor.u32 %v10423_v56, %v8965_v30  ;;  %v2124_v56 = vunpack.c.l.b16 %v12031_v60  ;;  %v2125_v30 = vunpack.c.h.b16 %v12031_v60 }
 0x636   : > { %2930 = vmatpush.bf16.msrb.mxu1 %v8980_v36  ;;  %2944 = vmatpush.bf16.msrb.mxu3 %v9044_v40  ;;  %v8893_v36 = vld [vmem:[%s14941_s0 + $0x168] sm:$0xf0]  ;;  %v9032_v40 = vor.u32 %v10439_v1, %v9029_v49  ;;  %v10399_v49 = vld [vmem:[%s14941_s0 + $0x134] sm:$0xf] }
 0x637   : > { %v8896_v55 = vor.u32 %v10405_v34, %v8893_v36 }
 0x638   : > { %2957 = vmatpush.bf16.msrb.mxu0 %v8736_v59  ;;  %2971 = vmatpush.bf16.msrb.mxu2 %v8800_v24 }
 0x63a   : > { %2931 = vmatpush.bf16.msrb.mxu1 %v8972_v3  ;;  %2945 = vmatpush.bf16.msrb.mxu3 %v9036_v58  ;;  %v9021_v3 = vld [vmem:[%s14941_s0 + $0x268] sm:$0xf0]  ;;  %v8960_v58 = vor.u32 %v10421_v42, %v8957_v39  ;;  %v10397_v39 = vld [vmem:[%s14941_s0 + $0x124] sm:$0xf] }
 0x63c   : > { %2958 = vmatpush.bf16.msrb.mxu0 %v8728_v2  ;;  %2972 = vmatpush.bf16.msrb.mxu2 %v8792_v44  ;;  %v9096_v2 = vor.u32 %v10455_v31, %v9093_v4  ;;  %v10437_v44 = vld [vmem:[%s14941_s0 + $0x264] sm:$0xf]  ;;  %v8869_v31 = vld [vmem:[%s14941_s0 + $0x138] sm:$0xf0]  ;;  %v10415_v4 = vld [vmem:[%s14941_s0 + $0x1b4] sm:$0xf] }
 0x63d   : > { %v9024_v6 = vor.u32 %v10437_v44, %v9021_v3  ;;  %v8861_v44 = vld [vmem:[%s14941_s0 + $0x128] sm:$0xf0] }
 0x640   : > { %2959 = vmatpush.bf16.msrb.mxu0 %v8720_v61  ;;  %2973 = vmatpush.bf16.msrb.mxu2 %v8784_v62  ;;  %v10403_v61 = vld [vmem:[%s14941_s0 + $0x154] sm:$0xf]  ;;  %v9088_v62 = vor.u32 %v10453_v54, %v9085_v23  ;;  %v10413_v23 = vld [vmem:[%s14941_s0 + $0x1a4] sm:$0xf] }
 0x641   : > { %v8888_v14 = vor.u32 %v10403_v61, %v8885_v5  ;;  %v8989_v61 = vld [vmem:[%s14941_s0 + $0x228] sm:$0xf0]  ;;  %v10445_v5 = vld [vmem:[%s14941_s0 + $0x2a4] sm:$0xf] }
 0x678   : > { %v2175_v7 = vpop.f32.mrf.mxu0 }
 0x67a   : > { %v2202_v8 = vpop.f32.mrf.mxu1 }
 0x67e   : > { %v2188_v10 = vpop.f32.mrf.mxu2 }
 0x67f   : > { %v2192_v12 = vpack.c.bf16 %v2188_v10, %v2175_v7  ;;  %v10419_v7 = vld [vmem:[%s14941_s0 + $0x1d4] sm:$0xf]  ;;  %v9013_v10 = vld [vmem:[%s14941_s0 + $0x258] sm:$0xf0] }
 0x680   : > { %v2215_v63 = vpop.f32.mrf.mxu3  ;;  %v2177_v16 = vpop.f32.mrf.mxu0 }
 0x681   : > { %v2219_v15 = vpack.c.bf16 %v2215_v63, %v2202_v8  ;;  %v2248_v19 = vunpack.c.l.b16 %v2192_v12  ;;  %v2249_v20 = vunpack.c.h.b16 %v2192_v12  ;;  %v8949_v8 = vld [vmem:[%s14941_s0 + $0x1d8] sm:$0xf0]  ;;  %v10451_v12 = vld [vmem:[%s14941_s0 + $0x2d4] sm:$0xf]  ;;  %v10401_v16 = vld [vmem:[%s14941_s0 + $0x144] sm:$0xf] }
 0x682   : > { %v2204_v53 = vpop.f32.mrf.mxu1  ;;  %v9077_v63 = vld [vmem:[%s14941_s0 + $0x2d8] sm:$0xf0] }
 0x683   : > { %v2253_v57 = vunpack.c.l.b16 %v2219_v15  ;;  %v2254_v28 = vunpack.c.h.b16 %v2219_v15  ;;  %v2250_v27 = vpack.c.b16 %v2248_v19, %v2248_v19  ;;  %v2251_v29 = vpack.c.b16 %v2249_v20, %v2249_v20 }
 0x684   : > { %v8952_v15 = vor.u32 %v10419_v7, %v8949_v8  ;;  %v9016_v20 = vor.u32 %v10435_v9, %v9013_v10  ;;  %v9080_v53 = vor.u32 %v10451_v12, %v9077_v63  ;;  %v10395_v8 = vld [vmem:[%s14941_s0 + $0x114] sm:$0xf]  ;;  %v8853_v9 = vld [vmem:[%s14941_s0 + $0x118] sm:$0xf0] }
 0x685   : > { %v2255_v47 = vpack.c.b16 %v2253_v57, %v2253_v57  ;;  %v2256_v48 = vpack.c.b16 %v2254_v28, %v2254_v28  ;;  %v2262_v37 = vrot.slane %v2250_v27, 4  ;;  %v2263_v59 = vrot.slane %v2251_v29, 4  ;;  %v8941_v57 = vld [vmem:[%s14941_s0 + $0x1c8] sm:$0xf0]  ;;  %v10433_v28 = vld [vmem:[%s14941_s0 + $0x244] sm:$0xf] }
 0x686   : > { %v2190_v24 = vpop.f32.mrf.mxu2  ;;  %v10449_v27 = vld [vmem:[%s14941_s0 + $0x2c4] sm:$0xf]  ;;  %v9069_v29 = vld [vmem:[%s14941_s0 + $0x2c8] sm:$0xf0]  ;;  %v10411_v63 = vld [vmem:[%s14941_s0 + $0x194] sm:$0xf] }
 0x687   : > { %v2264_v43 = vrot.slane %v2255_v47, 4  ;;  %v2265_v21 = vrot.slane %v2256_v48, 4  ;;  %v12088_v38 = vsel %vm1526_vm6, %v2116_v45, %v2262_v37  ;;  %v12091_v0 = vsel %vm1526_vm6, %v2117_v46, %v2263_v59  ;;  %v8933_v37 = vld [vmem:[%s14941_s0 + $0x1b8] sm:$0xf0]  ;;  %v10431_v59 = vld [vmem:[%s14941_s0 + $0x234] sm:$0xf] }
 0x688   : > { %v2217_v41 = vpop.f32.mrf.mxu3  ;;  %v2229_v50 = vpop.f32.mrf.mxu0  ;;  %2876 = vmatmul.bf16.vlgmr.msra.gmra.mxu1 %v12088_v38  ;;  %2890 = vmatmul.bf16.vlgmr.msra.gmra.mxu3 %v12091_v0  ;;  %v8880_v46 = vor.u32 %v10401_v16, %v8877_v17  ;;  %v8944_v47 = vor.u32 %v10417_v18, %v8941_v57  ;;  %v9008_v48 = vor.u32 %v10433_v28, %v9005_v35  ;;  %v9061_v24 = vld [vmem:[%s14941_s0 + $0x2b8] sm:$0xf0]  ;;  %v10393_v18 = vld [vmem:[%s14941_s0 + $0x104] sm:$0xf]  ;;  %v8909_v28 = vld [vmem:[%s14941_s0 + $0x188] sm:$0xf0] }
 0x689   : > { %v12099_v51 = vsel %vm1526_vm6, %v2121_v32, %v2264_v43  ;;  %v12102_v52 = vsel %vm1526_vm6, %v2122_v33, %v2265_v21  ;;  %2980 = vmatpush.bf16.msra.mxu1 %v8904_v25  ;;  %2994 = vmatpush.bf16.msra.mxu3 %v8968_v22  ;;  %v9072_v60 = vor.u32 %v10449_v27, %v9069_v29  ;;  %v8997_v43 = vld [vmem:[%s14941_s0 + $0x238] sm:$0xf0]  ;;  %v10447_v21 = vld [vmem:[%s14941_s0 + $0x2b4] sm:$0xf]  ;;  %v10409_v57 = vld [vmem:[%s14941_s0 + $0x184] sm:$0xf] }
 0x68a   : > { %2904 = vmatmul.bf16.vlgmr.msra.gmra.mxu0 %v12099_v51  ;;  %2918 = vmatmul.bf16.vlgmr.msra.gmra.mxu2 %v12102_v52  ;;  %v2126_v25 = vpack.c.b16 %v2124_v56, %v2124_v56  ;;  %v2127_v22 = vpack.c.b16 %v2125_v30, %v2125_v30  ;;  %v9000_v42 = vor.u32 %v10431_v59, %v8997_v43  ;;  %v10425_v35 = vld [vmem:[%s14941_s0 + $0x204] sm:$0xf]  ;;  %v9037_v29 = vld [vmem:[%s14941_s0 + $0x288] sm:$0xf0]  ;;  %v12217_v43 = vld [vmem:[%s14942_s9 + $0xf0] sm:$0xff] }
 0x68b   : > { %3008 = vmatpush.bf16.msra.mxu0 %v9032_v40  ;;  %3022 = vmatpush.bf16.msra.mxu2 %v9096_v2  ;;  %v8872_v40 = vor.u32 %v10399_v49, %v8869_v31  ;;  %v8936_v2 = vor.u32 %v10415_v4, %v8933_v37  ;;  %v9064_v54 = vor.u32 %v10447_v21, %v9061_v24  ;;  %v10441_v27 = vld [vmem:[%s14941_s0 + $0x284] sm:$0xf]  ;;  %v12186_v49 = vld [vmem:[%s14942_s9 + $0x50] sm:$0xff]  ;;  %v12189_v31 = vld [vmem:[%s14942_s9 + $0x48] sm:$0xff] }
 0x68c   : > { %v8856_v16 = vor.u32 %v10395_v8, %v8853_v9  ;;  %v8912_v30 = vor.u32 %v10409_v57, %v8909_v28  ;;  %v12194_v4 = vld [vmem:[%s14942_s9 + $0x40] sm:$0xff]  ;;  %v12209_v37 = vld [vmem:[%s14942_s9 + $0xf8] sm:$0xff]  ;;  %v12278_v8 = vld [vmem:[%s14942_s9 + $0xa8] sm:$0xff] }
 0x68d   : > { %2981 = vmatpush.bf16.msra.mxu1 %v8896_v55  ;;  %2995 = vmatpush.bf16.msra.mxu3 %v8960_v58  ;;  %v8925_v55 = vld [vmem:[%s14941_s0 + $0x1a8] sm:$0xf0]  ;;  %v10429_v58 = vld [vmem:[%s14941_s0 + $0x224] sm:$0xf]  ;;  %v12281_v9 = vld [vmem:[%s14943_s10] sm:$0x3] }
 0x68e   : > { %v2242_v13 = vpop.f32.mrf.mxu2  ;;  %v8928_v7 = vor.u32 %v10413_v23, %v8925_v55  ;;  %v8992_v10 = vor.u32 %v10429_v58, %v8989_v61  ;;  %v12214_v59 = vld [vmem:[%s14942_s9 + $0x20] sm:$0xff]  ;;  %v12266_v58 = vld [vmem:[%s14942_s9 + $0xb8] sm:$0xff]  ;;  %s15098_s10 = sld [smem:[#allocation17_spill]] }
 0x68f   : > { %3009 = vmatpush.bf16.msra.mxu0 %v9024_v6  ;;  %3023 = vmatpush.bf16.msra.mxu2 %v9088_v62  ;;  %v2246_v19 = vpack.c.bf16 %v2242_v13, %v2229_v50  ;;  %v9053_v6 = vld [vmem:[%s14941_s0 + $0x2a8] sm:$0xf0]  ;;  %v8864_v62 = vor.u32 %v10397_v39, %v8861_v44  ;;  %v8917_v13 = vld [vmem:[%s14941_s0 + $0x198] sm:$0xf0]  ;;  %v12246_v39 = vld [vmem:[%s14942_s9] sm:$0xff] }
 0x690   : > { %v2231_v26 = vpop.f32.mrf.mxu0  ;;  %v9056_v12 = vor.u32 %v10445_v5, %v9053_v6  ;;  %v8920_v17 = vor.u32 %v10411_v63, %v8917_v13  ;;  %v12249_v44 = vld [vmem:[%s14942_s9 + $0xd0] sm:$0xff]  ;;  %v12262_v55 = vld [vmem:[%s14942_s9 + $0xc0] sm:$0xff] }
 0x691   : > { %v2258_v1 = vunpack.c.l.b16 %v2246_v19  ;;  %v2259_v45 = vunpack.c.h.b16 %v2246_v19  ;;  %2982 = vmatpush.bf16.msra.mxu1 %v8888_v14  ;;  %2996 = vmatpush.bf16.msra.mxu3 %v8952_v15  ;;  %v10443_v14 = vld [vmem:[%s14941_s0 + $0x294] sm:$0xf]  ;;  %v9045_v15 = vld [vmem:[%s14941_s0 + $0x298] sm:$0xf0]  ;;  %v8845_v19 = vld [vmem:[%s14941_s0 + $0x108] sm:$0xf0] }
 0x692   : > { %v8973_v26 = vld [vmem:[%s14941_s0 + $0x208] sm:$0xf0]  ;;  %v8848_v56 = vor.u32 %v10393_v18, %v8845_v19  ;;  %v12309_v57 = vld [vmem:[%s14942_s9 + $0x80] sm:$0xff] }
 0x693   : > { %v2260_v32 = vpack.c.b16 %v2258_v1, %v2258_v1  ;;  %v2261_v33 = vpack.c.b16 %v2259_v45, %v2259_v45  ;;  %3010 = vmatpush.bf16.msra.mxu0 %v9016_v20  ;;  %3024 = vmatpush.bf16.msra.mxu2 %v9080_v53  ;;  %v9048_v53 = vor.u32 %v10443_v14, %v9045_v15 }
 0x694   : > { %v8976_v1 = vor.u32 %v10425_v35, %v8973_v26  ;;  %v9040_v45 = vor.u32 %v10441_v27, %v9037_v29 }
 0x695   : > { %v2266_v34 = vrot.slane %v2260_v32, 4  ;;  %v2267_v36 = vrot.slane %v2261_v33, 4  ;;  %2983 = vmatpush.bf16.msra.mxu1 %v8880_v46  ;;  %2997 = vmatpush.bf16.msra.mxu3 %v8944_v47  ;;  %v12166_v46 = vld [vmem:[%s14942_s9 + $0x78] sm:$0xff]  ;;  %v12170_v47 = vld [vmem:[%s14942_s9 + $0x70] sm:$0xff] }
 0x696   : > { %v2244_v41 = vpop.f32.mrf.mxu2  ;;  %v12198_v32 = vld [vmem:[%s14942_s9 + $0x38] sm:$0xff]  ;;  %v12202_v33 = vld [vmem:[%s14942_s9 + $0x30] sm:$0xff] }
 0x697   : > { %3011 = vmatpush.bf16.msra.mxu0 %v9008_v48  ;;  %3025 = vmatpush.bf16.msra.mxu2 %v9072_v60  ;;  %v2286_v50 = vsel %vm1526_vm6, %v2126_v25, %v2266_v34  ;;  %v2290_v3 = vsel %vm1526_vm6, %v2127_v22, %v2267_v36  ;;  %v12173_v48 = vld [vmem:[%s14942_s9 + $0x68] sm:$0xff]  ;;  %v12222_v25 = vld [vmem:[%s14942_s9 + $0x18] sm:$0xff]  ;;  %v12230_v34 = vld [vmem:[%s14942_s9 + $0x10] sm:$0xff] }
 0x698   : > { %2932 = vmatmul.bf16.vlgmr.msrb.gmra.mxu1 %v2286_v50  ;;  %2946 = vmatmul.bf16.vlgmr.msrb.gmra.mxu3 %v2290_v3  ;;  %v12206_v60 = vld [vmem:[%s14942_s9 + $0x28] sm:$0xff]  ;;  %v12233_v36 = vld [vmem:[%s14942_s9 + $0xe0] sm:$0xff] }
 0x699   : > { %2984 = vmatpush.bf16.msra.mxu1 %v8872_v40  ;;  %2998 = vmatpush.bf16.msra.mxu3 %v8936_v2  ;;  %v12225_v22 = vld [vmem:[%s14942_s9 + $0xe8] sm:$0xff]  ;;  %v12241_v40 = vld [vmem:[%s14942_s9 + $0xd8] sm:$0xff] }
 0x69a   : > { %2960 = vmatmul.bf16.vlgmr.msrb.gmra.mxu0 %v12088_v38  ;;  %2974 = vmatmul.bf16.vlgmr.msrb.gmra.mxu2 %v12091_v0  ;;  %v10427_v38 = vld [vmem:[%s14941_s0 + $0x214] sm:$0xf]  ;;  %v8981_v0 = vld [vmem:[%s14941_s0 + $0x218] sm:$0xf0]  ;;  %v12238_v41 = vld [vmem:[%s14942_s9 + $0x8] sm:$0xff] }
 0x69b   : > { %3012 = vmatpush.bf16.msra.mxu0 %v9000_v42  ;;  %3026 = vmatpush.bf16.msra.mxu2 %v9064_v54  ;;  %v8984_v20 = vor.u32 %v10427_v38, %v8981_v0  ;;  %v14767_v38 = vperm.slane %v12281_v9, 0  ;;  %v12290_v0 = vld [vmem:[%s14942_s9 + $0x98] sm:$0xff] }
 0x69d   : > { %2985 = vmatpush.bf16.msra.mxu1 %v8864_v62  ;;  %2999 = vmatpush.bf16.msra.mxu3 %v8928_v7  ;;  %v12274_v62 = vld [vmem:[%s14942_s9 + $0xb0] sm:$0xff] }
 0x69f   : > { %3013 = vmatpush.bf16.msra.mxu0 %v8992_v10  ;;  %3027 = vmatpush.bf16.msra.mxu2 %v9056_v12  ;;  %v12285_v12 = vld [vmem:[%s14942_s9 + $0xa0] sm:$0xff] }
 0x6a1   : > { %2986 = vmatpush.bf16.msra.mxu1 %v8856_v16  ;;  %3000 = vmatpush.bf16.msra.mxu3 %v8920_v17  ;;  %v12294_v17 = vld [vmem:[%s14942_s9 + $0x90] sm:$0xff] }
 0x6a3   : > { %3014 = vmatpush.bf16.msra.mxu0 %v8984_v20  ;;  %3028 = vmatpush.bf16.msra.mxu2 %v9048_v53  ;;  %v12304_v20 = vld [vmem:[%s14942_s9 + $0x88] sm:$0xff] }
 0x6a5   : > { %2987 = vmatpush.bf16.msra.mxu1 %v8848_v56  ;;  %3001 = vmatpush.bf16.msra.mxu3 %v8912_v30 }
 0x6a7   : > { %3015 = vmatpush.bf16.msra.mxu0 %v8976_v1  ;;  %3029 = vmatpush.bf16.msra.mxu2 %v9040_v45 }
 0x6a8   : > { %2988 = vmatmul.bf16.vlgmr.msra.gmra.mxu1 %v12099_v51  ;;  %3002 = vmatmul.bf16.vlgmr.msra.gmra.mxu3 %v12102_v52  ;;  %v12178_v51 = vld [vmem:[%s14942_s9 + $0x60] sm:$0xff]  ;;  %v12182_v52 = vld [vmem:[%s14942_s9 + $0x58] sm:$0xff] }
 0x6a9   : > { %3091 = vmatpush.msrb.mxu1 %v12166_v46  ;;  %3111 = vmatpush.msrb.mxu3 %v12209_v37 }
 0x6aa   : > { %3016 = vmatmul.bf16.vlgmr.msra.gmra.mxu0 %v2286_v50  ;;  %3030 = vmatmul.bf16.vlgmr.msra.gmra.mxu2 %v2290_v3  ;;  %v12256_v3 = vld [vmem:[%s14942_s9 + $0xc8] sm:$0xff] }
 0x6ab   : > { %3092 = vmatpush.msrb.mxu1 %v12170_v47  ;;  %3112 = vmatpush.msrb.mxu3 %v12217_v43 }
 0x6ad   : > { %3093 = vmatpush.msrb.mxu1 %v12173_v48  ;;  %3113 = vmatpush.msrb.mxu3 %v12225_v22 }
 0x6af   : > { %3094 = vmatpush.msrb.mxu1 %v12178_v51  ;;  %3114 = vmatpush.msrb.mxu3 %v12233_v36 }
 0x6b1   : > { %3095 = vmatpush.msrb.mxu1 %v12182_v52  ;;  %3115 = vmatpush.msrb.mxu3 %v12241_v40 }
 0x6b3   : > { %3096 = vmatpush.msrb.mxu1 %v12186_v49  ;;  %3116 = vmatpush.msrb.mxu3 %v12249_v44 }
 0x6b5   : > { %3097 = vmatpush.msrb.mxu1 %v12189_v31  ;;  %3117 = vmatpush.msrb.mxu3 %v12256_v3 }
 0x6b7   : > { %3098 = vmatpush.msrb.mxu1 %v12194_v4  ;;  %3118 = vmatpush.msrb.mxu3 %v12262_v55 }
 0x6b9   : > { %3099 = vmatpush.msrb.mxu1 %v12198_v32  ;;  %3119 = vmatpush.msrb.mxu3 %v12266_v58 }
 0x6bb   : > { %3100 = vmatpush.msrb.mxu1 %v12202_v33  ;;  %3120 = vmatpush.msrb.mxu3 %v12274_v62 }
 0x6bd   : > { %3101 = vmatpush.msrb.mxu1 %v12206_v60  ;;  %3121 = vmatpush.msrb.mxu3 %v12278_v8 }
 0x6bf   : > { %3102 = vmatpush.msrb.mxu1 %v12214_v59  ;;  %3122 = vmatpush.msrb.mxu3 %v12285_v12 }
 0x6c1   : > { %3103 = vmatpush.msrb.mxu1 %v12222_v25  ;;  %3123 = vmatpush.msrb.mxu3 %v12290_v0 }
 0x6c3   : > { %3104 = vmatpush.msrb.mxu1 %v12230_v34  ;;  %3124 = vmatpush.msrb.mxu3 %v12294_v17 }
 0x6c5   : > { %3105 = vmatpush.msrb.mxu1 %v12238_v41  ;;  %3125 = vmatpush.msrb.mxu3 %v12304_v20 }
 0x6c7   : > { %3106 = vmatpush.msrb.mxu1 %v12246_v39  ;;  %3126 = vmatpush.msrb.mxu3 %v12309_v57 }
 0x705   : > { %v2877_v21 = vpop.f32.mrf.mxu1 }
 0x707   : > { %v2905_v24 = vpop.f32.mrf.mxu0 }
 0x70b   : > { %v2891_v2 = vpop.f32.mrf.mxu3 }
 0x70c   : > { %v2892_v54 = vadd.f32 %v2891_v2, %v2877_v21 }
 0x70d   : > { %v2919_v42 = vpop.f32.mrf.mxu2  ;;  %v12251_v50 = vpop.f32.mrf.mxu1 }
 0x70e   : > { %v2906_v5 = vadd.f32 %v2905_v24, %v2892_v54 }
 0x70f   : > { %v12259_v23 = vpop.f32.mrf.mxu0 }
 0x710   : > { %v2920_v10 = vadd.f32 %v2919_v42, %v2906_v5 }
 0x713   : > { %v12268_v61 = vpop.f32.mrf.mxu3 }
 0x715   : > { %v12271_v6 = vpop.f32.mrf.mxu2  ;;  %v2933_v7 = vpop.f32.mrf.mxu1 }
 0x716   : > { %v2934_v63 = vadd.f32 %v2933_v7, %v2920_v10  ;;  %v14766_v7 = vperm.slane %v12281_v9, 1 }
 0x717   : > { %v2961_v13 = vpop.f32.mrf.mxu0 }
 0x71b   : > { %v2947_v14 = vpop.f32.mrf.mxu3 }
 0x71c   : > { %v2948_v15 = vadd.f32 %v2947_v14, %v2934_v63 }
 0x71d   : > { %v2975_v16 = vpop.f32.mrf.mxu2  ;;  %v12301_v19 = vpop.f32.mrf.mxu1 }
 0x71e   : > { %v12299_v18 = vadd.f32 %v14767_v38, %v2948_v15  ;;  %v2976_v45 = vadd.f32 %v2975_v16, %v2961_v13 }
 0x71f   : > { %v12315_v27 = vpop.f32.mrf.mxu0 }
 0x720   : > { %v3079_v53 = vrot.slane %v12299_v18, 4 }
 0x722   : > { %v3080_v28 = vadd.f32 %v3079_v53, %v12299_v18 }
 0x723   : > { %v12313_v35 = vpop.f32.mrf.mxu3 }
 0x724   : > { %v3081_v26 = vrot.slane %v3080_v28, 2 }
 0x725   : > { %v12317_v56 = vpop.f32.mrf.mxu2  ;;  %v2989_v30 = vpop.f32.mrf.mxu1 }
 0x726   : > { %v3082_v29 = vadd.f32 %v3081_v26, %v3080_v28  ;;  %v2990_v24 = vadd.f32 %v2989_v30, %v2976_v45 }
 0x727   : > { %v3017_v54 = vpop.f32.mrf.mxu0 }
 0x728   : > { %v3083_v1 = vrot.slane %v3082_v29, 1 }
 0x72a   : > { %v3084_v21 = vadd.f32 %v3083_v1, %v3082_v29  ;;  %v12327_v29 = vld [vmem:[%s14944_s26] sm:$0xff]  ;;  %s10340_s26 = sshll.u32 %s15166_s7, 5 }
 0x72b   : > { %v3003_v2 = vpop.f32.mrf.mxu3  ;;  %3133 = vst [vmem:[#allocation1] ss:$2 sm:$0xff] %v12327_v29 }
 0x72c   : > { %3107 = vmatmul.f32.vlgmr.msrb.gmra.mxu1 %v3084_v21  ;;  %v3004_v42 = vadd.f32 %v3003_v2, %v2990_v24 }
 0x72d   : > { %v3031_v10 = vpop.f32.mrf.mxu2  ;;  %v12351_v45 = vpop.f32.mrf.mxu1 }
 0x72e   : > { %v3018_v5 = vadd.f32 %v3017_v54, %v3004_v42 }
 0x730   : > { %v3032_v63 = vadd.f32 %v3031_v10, %v3018_v5  ;;  %v12371_v5 = vpop.f32.mrf.mxu0 }
 0x732   : > { %v12322_v14 = vadd.f32 %v14766_v7, %v3032_v63  ;;  %v3134_v30 = vld.sshfl [vmem:[#allocation1] sm:$0xff pattern:$0x75316420]  ;;  %v3135_v1 = vld.sshfl [vmem:[#allocation1 + $0x8] sm:$0xff pattern:$0x75316420] }
 0x733   : > { %9097 = vmatpush.msk.msrb.mxu0 %vm1526_vm6, %v3134_v30  ;;  %9099 = vmatpush.msk.msrb.mxu2 %vm1526_vm6, %v3135_v1  ;;  %3253 = vst [vmem:[#allocation1] ss:$2 sm:$0xff] %v12327_v29  ;;  %v12353_v21 = vpop.f32.mrf.mxu3 }
 0x734   : > { %v3085_v15 = vrot.slane %v12322_v14, 4 }
 0x735   : > { %3201 = vmatpush.msra.mxu0 %v12166_v46  ;;  %3221 = vmatpush.msra.mxu2 %v12209_v37  ;;  %v12373_v10 = vpop.f32.mrf.mxu2 }
 0x736   : > { %v3086_v13 = vadd.f32 %v3085_v15, %v12322_v14 }
 0x737   : > { %3202 = vmatpush.msra.mxu0 %v12170_v47  ;;  %3222 = vmatpush.msra.mxu2 %v12217_v43 }
 0x738   : > { %v3087_v16 = vrot.slane %v3086_v13, 2 }
 0x739   : > { %3203 = vmatpush.msra.mxu0 %v12173_v48  ;;  %3223 = vmatpush.msra.mxu2 %v12225_v22 }
 0x73a   : > { %v3088_v53 = vadd.f32 %v3087_v16, %v3086_v13 }
 0x73b   : > { %3204 = vmatpush.msra.mxu0 %v12178_v51  ;;  %3224 = vmatpush.msra.mxu2 %v12233_v36 }
 0x73c   : > { %v3089_v28 = vrot.slane %v3088_v53, 1 }
 0x73d   : > { %3205 = vmatpush.msra.mxu0 %v12182_v52  ;;  %3225 = vmatpush.msra.mxu2 %v12241_v40 }
 0x73e   : > { %v3090_v26 = vadd.f32 %v3089_v28, %v3088_v53 }
 0x73f   : > { %3206 = vmatpush.msra.mxu0 %v12186_v49  ;;  %3226 = vmatpush.msra.mxu2 %v12249_v44 }
 0x740   : > { %3127 = vmatmul.f32.vlgmr.msrb.gmra.mxu3 %v3090_v26 }
 0x741   : > { %3207 = vmatpush.msra.mxu0 %v12189_v31  ;;  %3227 = vmatpush.msra.mxu2 %v12256_v3 }
 0x743   : > { %3208 = vmatpush.msra.mxu0 %v12194_v4  ;;  %3228 = vmatpush.msra.mxu2 %v12262_v55 }
 0x745   : > { %3209 = vmatpush.msra.mxu0 %v12198_v32  ;;  %3229 = vmatpush.msra.mxu2 %v12266_v58 }
 0x747   : > { %3210 = vmatpush.msra.mxu0 %v12202_v33  ;;  %3230 = vmatpush.msra.mxu2 %v12274_v62 }
 0x749   : > { %3211 = vmatpush.msra.mxu0 %v12206_v60  ;;  %3231 = vmatpush.msra.mxu2 %v12278_v8 }
 0x74b   : > { %3212 = vmatpush.msra.mxu0 %v12214_v59  ;;  %3232 = vmatpush.msra.mxu2 %v12285_v12 }
 0x74d   : > { %3213 = vmatpush.msra.mxu0 %v12222_v25  ;;  %3233 = vmatpush.msra.mxu2 %v12290_v0 }
 0x74f   : > { %3214 = vmatpush.msra.mxu0 %v12230_v34  ;;  %3234 = vmatpush.msra.mxu2 %v12294_v17 }
 0x751   : > { %3215 = vmatpush.msra.mxu0 %v12238_v41  ;;  %3235 = vmatpush.msra.mxu2 %v12304_v20 }
 0x753   : > { %3216 = vmatpush.msra.mxu0 %v12246_v39  ;;  %3236 = vmatpush.msra.mxu2 %v12309_v57 }
 0x7a9   : > { %v3108_v24 = vpop.f32.mrf.mxu1 }
 0x7c3   : > { %v3128_v2 = vpop.f32.mrf.mxu3 }
 0x7c4   : > { %v3129_v42 = vadd.f32 %v3128_v2, %v3108_v24 }
 0x7c6   : > { %v3131_v54 = vmul.f32 0.001953125, %v3129_v42 }
 0x7c8   : > { %9098 = vmatmul.msk.f32.vlgmr.msrb.gmra.mxu0 %vm1522_vm7, %v3131_v54  ;;  %9100 = vmatmul.msk.f32.vlgmr.msrb.gmra.mxu2 %vm1522_vm7, %v3131_v54 }
 0x845   : > { %v3160_v63 = vpop.f32.mrf.mxu0 }
 0x846   : > { %v3183_v15 = vperm.slane %v3160_v63, 0 }
 0x848   : > { %v12376_v13 = vsub.f32 %v12299_v18, %v3183_v15 }
 0x84a   : > { %14945 = vst [vmem:[#allocation36_spill] sm:$0xff] %v12376_v13  ;;  %v3187_v16 = vmul.f32 %v12376_v13, %v12376_v13 }
 0x84b   : > { %v3180_v53 = vpop.f32.mrf.mxu2 }
 0x84c   : > { %v3189_v28 = vrot.slane %v3187_v16, 4  ;;  %v3184_v26 = vperm.slane %v3180_v53, 0  ;;  %v3254_v53 = vld.sshfl [vmem:[#allocation1] sm:$0xff pattern:$0x75316420] }
 0x84d   : > { %9101 = vmatpush.msk.msra.mxu1 %vm1526_vm6, %v3254_v53 }
 0x84e   : > { %v3190_v30 = vadd.f32 %v3189_v28, %v3187_v16  ;;  %v12381_v1 = vsub.f32 %v12322_v14, %v3184_v26  ;;  %v3255_v16 = vld.sshfl [vmem:[#allocation1 + $0x8] sm:$0xff pattern:$0x75316420] }
 0x84f   : > { %9103 = vmatpush.msk.msra.mxu3 %vm1526_vm6, %v3255_v16  ;;  %3378 = vst [vmem:[#allocation1] ss:$2 sm:$0xff] %v12327_v29  ;;  %3337 = vmatpush.msrb.mxu1 %v12166_v46 }
 0x850   : > { %v3191_v24 = vrot.slane %v3190_v30, 2  ;;  %v3188_v2 = vmul.f32 %v12381_v1, %v12381_v1 }
 0x851   : > { %3357 = vmatpush.msrb.mxu3 %v12209_v37  ;;  %3338 = vmatpush.msrb.mxu1 %v12170_v47 }
 0x852   : > { %v3192_v42 = vadd.f32 %v3191_v24, %v3190_v30  ;;  %v3195_v54 = vrot.slane %v3188_v2, 4  ;;  %v14947_v24 = vperm.slane %v12281_v9, 1 }
 0x853   : > { %3358 = vmatpush.msrb.mxu3 %v12217_v43  ;;  %3339 = vmatpush.msrb.mxu1 %v12173_v48 }
 0x854   : > { %v3196_v63 = vadd.f32 %v3195_v54, %v3188_v2  ;;  %v3193_v7 = vrot.slane %v3192_v42, 1 }
 0x855   : > { %3359 = vmatpush.msrb.mxu3 %v12225_v22  ;;  %3340 = vmatpush.msrb.mxu1 %v12178_v51 }
 0x856   : > { %v3197_v18 = vrot.slane %v3196_v63, 2  ;;  %v3194_v15 = vadd.f32 %v3193_v7, %v3192_v42 }
 0x857   : > { %3360 = vmatpush.msrb.mxu3 %v12233_v36  ;;  %3341 = vmatpush.msrb.mxu1 %v12182_v52 }
 0x858   : > { %v3198_v38 = vadd.f32 %v3197_v18, %v3196_v63  ;;  %3217 = vmatmul.f32.vlgmr.msra.gmra.mxu0 %v3194_v15 }
 0x859   : > { %3361 = vmatpush.msrb.mxu3 %v12241_v40  ;;  %3342 = vmatpush.msrb.mxu1 %v12186_v49 }
 0x85a   : > { %v3199_v11 = vrot.slane %v3198_v38, 1 }
 0x85b   : > { %3362 = vmatpush.msrb.mxu3 %v12249_v44  ;;  %3343 = vmatpush.msrb.mxu1 %v12189_v31 }
 0x85c   : > { %v3200_v13 = vadd.f32 %v3199_v11, %v3198_v38  ;;  %v2894_v11 = vadd.f32 %v12268_v61, %v12251_v50  ;;  %v2978_v38 = vadd.f32 %v12317_v56, %v12315_v27 }
 0x85d   : > { %3363 = vmatpush.msrb.mxu3 %v12256_v3  ;;  %3344 = vmatpush.msrb.mxu1 %v12194_v4 }
 0x85e   : > { %3237 = vmatmul.f32.vlgmr.msra.gmra.mxu2 %v3200_v13  ;;  %v2992_v7 = vadd.f32 %v12351_v45, %v2978_v38  ;;  %v2908_v14 = vadd.f32 %v12259_v23, %v2894_v11 }
 0x85f   : > { %3364 = vmatpush.msrb.mxu3 %v12262_v55  ;;  %3345 = vmatpush.msrb.mxu1 %v12198_v32 }
 0x860   : > { %v3006_v13 = vadd.f32 %v12353_v21, %v2992_v7  ;;  %v2922_v50 = vadd.f32 %v12271_v6, %v2908_v14 }
 0x861   : > { %3365 = vmatpush.msrb.mxu3 %v12266_v58  ;;  %3346 = vmatpush.msrb.mxu1 %v12202_v33 }
 0x862   : > { %v3020_v61 = vadd.f32 %v12371_v5, %v3006_v13  ;;  %v2936_v56 = vadd.f32 %v12301_v19, %v2922_v50  ;;  %v14946_v5 = vperm.slane %v12281_v9, 0 }
 0x863   : > { %3366 = vmatpush.msrb.mxu3 %v12274_v62  ;;  %3347 = vmatpush.msrb.mxu1 %v12206_v60 }
 0x864   : > { %v2950_v21 = vadd.f32 %v12313_v35, %v2936_v56  ;;  %v3034_v28 = vadd.f32 %v12373_v10, %v3020_v61  ;;  %v3380_v56 = vld.sshfl [vmem:[#allocation1 + $0x8] sm:$0xff pattern:$0x75316420] }
 0x865   : > { %3367 = vmatpush.msrb.mxu3 %v12278_v8  ;;  %3348 = vmatpush.msrb.mxu1 %v12214_v59 }
 0x866   : > { %v12434_v30 = vadd.f32 %v14946_v5, %v2950_v21  ;;  %v12438_v2 = vadd.f32 %v14947_v24, %v3034_v28  ;;  %9107 = vmatpush.msk.msrb.mxu2 %vm1526_vm6, %v3380_v56 }
 0x867   : > { %3368 = vmatpush.msrb.mxu3 %v12285_v12  ;;  %3349 = vmatpush.msrb.mxu1 %v12222_v25 }
 0x868   : > { %v3325_v19 = vrot.slane %v12434_v30, 4  ;;  %v3331_v42 = vrot.slane %v12438_v2, 4  ;;  %3466 = vmatpush.msra.mxu2 %v12209_v37 }
 0x869   : > { %3369 = vmatpush.msrb.mxu3 %v12290_v0  ;;  %3350 = vmatpush.msrb.mxu1 %v12230_v34 }
 0x86a   : > { %v3326_v35 = vadd.f32 %v3325_v19, %v12434_v30  ;;  %v3332_v10 = vadd.f32 %v3331_v42, %v12438_v2  ;;  %3467 = vmatpush.msra.mxu2 %v12217_v43 }
 0x86b   : > { %3370 = vmatpush.msrb.mxu3 %v12294_v17  ;;  %3351 = vmatpush.msrb.mxu1 %v12238_v41 }
 0x86c   : > { %v3327_v53 = vrot.slane %v3326_v35, 2  ;;  %v3333_v16 = vrot.slane %v3332_v10, 2  ;;  %3468 = vmatpush.msra.mxu2 %v12225_v22 }
 0x86d   : > { %3371 = vmatpush.msrb.mxu3 %v12304_v20  ;;  %3352 = vmatpush.msrb.mxu1 %v12246_v39 }
 0x86e   : > { %v3328_v38 = vadd.f32 %v3327_v53, %v3326_v35  ;;  %v3334_v7 = vadd.f32 %v3333_v16, %v3332_v10  ;;  %3469 = vmatpush.msra.mxu2 %v12233_v36 }
 0x86f   : > { %3372 = vmatpush.msrb.mxu3 %v12309_v57 }
 0x870   : > { %v3329_v13 = vrot.slane %v3328_v38, 1  ;;  %v3335_v50 = vrot.slane %v3334_v7, 1  ;;  %3470 = vmatpush.msra.mxu2 %v12241_v40 }
 0x872   : > { %v3330_v61 = vadd.f32 %v3329_v13, %v3328_v38  ;;  %3471 = vmatpush.msra.mxu2 %v12249_v44 }
 0x874   : > { %3472 = vmatpush.msra.mxu2 %v12256_v3 }
 0x876   : > { %3473 = vmatpush.msra.mxu2 %v12262_v55 }
 0x878   : > { %3474 = vmatpush.msra.mxu2 %v12266_v58 }
 0x87a   : > { %3475 = vmatpush.msra.mxu2 %v12274_v62 }
 0x87c   : > { %3476 = vmatpush.msra.mxu2 %v12278_v8 }
 0x87e   : > { %3477 = vmatpush.msra.mxu2 %v12285_v12 }
 0x880   : > { %3478 = vmatpush.msra.mxu2 %v12290_v0 }
 0x882   : > { %3479 = vmatpush.msra.mxu2 %v12294_v17 }
 0x884   : > { %3480 = vmatpush.msra.mxu2 %v12304_v20 }
 0x886   : > { %3481 = vmatpush.msra.mxu2 %v12309_v57 }
 0x8d5   : > { %v3218_v27 = vpop.f32.mrf.mxu0 }
 0x8e1   : > { %v3238_v23 = vpop.f32.mrf.mxu2 }
 0x8e2   : > { %v3239_v45 = vadd.f32 %v3238_v23, %v3218_v27  ;;  %v3336_v27 = vadd.f32 %v3335_v50, %v3334_v7  ;;  %v3379_v23 = vld.sshfl [vmem:[#allocation1] sm:$0xff pattern:$0x75316420] }
 0x8e3   : > { %9105 = vmatpush.msk.msrb.mxu0 %vm1526_vm6, %v3379_v23  ;;  %3498 = vst [vmem:[#allocation1] ss:$2 sm:$0xff] %v12327_v29 }
 0x8e4   : > { %v3241_v6 = vmul.f32 0.001953125, %v3239_v45 }
 0x8e5   : > { %3446 = vmatpush.msra.mxu0 %v12166_v46 }
 0x8e6   : > { %v3242_v26 = vadd.f32 1e-05, %v3241_v6 }
 0x8e7   : > { %3447 = vmatpush.msra.mxu0 %v12170_v47 }
 0x8e8   : > { %10865 = vrsqrt.f32 %v3242_v26  ;;  %vm3249_vm2 = vweird.f32 %v3242_v26 }
 0x8e9   : > { %3448 = vmatpush.msra.mxu0 %v12173_v48  ;;  %v12481_v48 = vld [vmem:[#allocation4] sm:$0x3] }
 0x8ea   : > { %v3499_v46 = vld.sshfl [vmem:[#allocation1] sm:$0xff pattern:$0x75316420]  ;;  %v3500_v47 = vld.sshfl [vmem:[#allocation1 + $0x8] sm:$0xff pattern:$0x75316420] }
 0x8eb   : > { %3449 = vmatpush.msra.mxu0 %v12178_v51  ;;  %v3309_v43 = vperm.slane %v12481_v48, 1 }
 0x8ed   : > { %3450 = vmatpush.msra.mxu0 %v12182_v52 }
 0x8ee   : > { %v10866_v54 = vpop.eup %10865 }
 0x8ef   : > { %v3244_v63 = vmul.f32 %v10866_v54, %v3242_v26  ;;  %vm3250_vm0 = vweird.f32 %v10866_v54  ;;  %3451 = vmatpush.msra.mxu0 %v12186_v49  ;;  %v14948_v49 = vld [vmem:[#allocation36_spill] sm:$0xff] }
 0x8f0   : > { %vm3251_vm3 = vmor %vm3249_vm2, %vm3250_vm0 }
 0x8f1   : > { %v3245_v18 = vmul.f32 %v10866_v54, %v3244_v63  ;;  %3452 = vmatpush.msra.mxu0 %v12189_v31 }
 0x8f3   : > { %v3246_v15 = vmul.f32 0.5, %v3245_v18  ;;  %3453 = vmatpush.msra.mxu0 %v12194_v4  ;;  %v3308_v4 = vperm.slane %v12481_v48, 0 }
 0x8f5   : > { %v3247_v11 = vsub.f32 1.5, %v3246_v15  ;;  %3454 = vmatpush.msra.mxu0 %v12198_v32  ;;  %v12487_v32 = vld [vmem:[#allocation6] sm:$0x3] }
 0x8f6   : > { %v3315_v37 = vperm.slane %v12487_v32, 0  ;;  %v3316_v22 = vperm.slane %v12487_v32, 1 }
 0x8f7   : > { %v3248_v9 = vmul.f32 %v10866_v54, %v3247_v11  ;;  %3455 = vmatpush.msra.mxu0 %v12202_v33 }
 0x8f9   : > { %v3252_v14 = vsel %vm3251_vm3, %v10866_v54, %v3248_v9  ;;  %3456 = vmatpush.msra.mxu0 %v12206_v60 }
 0x8fa   : > { %9102 = vmatmul.msk.f32.vlgmr.msra.gmra.mxu1 %vm1522_vm7, %v3252_v14  ;;  %9104 = vmatmul.msk.f32.vlgmr.msra.gmra.mxu3 %vm1522_vm7, %v3252_v14 }
 0x8fb   : > { %9109 = vmatpush.msk.msra.mxu1 %vm1526_vm6, %v3499_v46  ;;  %9111 = vmatpush.msk.msra.mxu3 %vm1526_vm6, %v3500_v47 }
 0x8fc   : > { %3457 = vmatpush.msra.mxu0 %v12214_v59 }
 0x8fe   : > { %3458 = vmatpush.msra.mxu0 %v12222_v25 }
 0x900   : > { %3459 = vmatpush.msra.mxu0 %v12230_v34 }
 0x902   : > { %3353 = vmatmul.f32.vlgmr.msrb.gmra.mxu1 %v3330_v61  ;;  %3373 = vmatmul.f32.vlgmr.msrb.gmra.mxu3 %v3336_v27 }
 0x903   : > { %3460 = vmatpush.msra.mxu0 %v12238_v41 }
 0x905   : > { %3461 = vmatpush.msra.mxu0 %v12246_v39 }
 0x977   : > { %v3280_v51 = vpop.f32.mrf.mxu1 }
 0x978   : > { %v3303_v52 = vperm.slane %v3280_v51, 0 }
 0x97a   : > { %v3305_v31 = vmul.f32 %v3303_v52, %v14948_v49 }
 0x97c   : > { %v3312_v60 = vmul.f32 %v3308_v4, %v3305_v31 }
 0x97d   : > { %v3300_v33 = vpop.f32.mrf.mxu3 }
 0x97e   : > { %v3304_v59 = vperm.slane %v3300_v33, 0  ;;  %v3319_v34 = vadd.f32 %v3315_v37, %v3312_v60 }
 0x97f   : > { %v3354_v40 = vpop.f32.mrf.mxu1 }
 0x980   : > { %v3306_v25 = vmul.f32 %v3304_v59, %v12381_v1  ;;  %v3321_v44 = vmax.f32 %v3319_v34, 0.0 }
 0x982   : > { %v3313_v36 = vmul.f32 %v3309_v43, %v3306_v25 }
 0x984   : > { %v3320_v41 = vadd.f32 %v3316_v22, %v3313_v36 }
 0x985   : > { %v3374_v39 = vpop.f32.mrf.mxu3 }
 0x986   : > { %v3322_v3 = vmax.f32 %v3320_v41, 0.0  ;;  %v3375_v55 = vadd.f32 %v3374_v39, %v3354_v40  ;;  %v12523_v39 = vld [vmem:[%s14952_s15] sm:$0xf] }
 0x988   : > { %v3558_v58 = vpack.c.bf16 %v3322_v3, %v3321_v44  ;;  %v3377_v62 = vmul.f32 0.001953125, %v3375_v55  ;;  %v3628_v44 = vunpack.c.l.b16 %v12523_v39 }
 0x98a   : > { %9106 = vmatmul.msk.f32.vlgmr.msrb.gmra.mxu0 %vm1522_vm7, %v3377_v62  ;;  %9108 = vmatmul.msk.f32.vlgmr.msrb.gmra.mxu2 %vm1522_vm7, %v3377_v62  ;;  %v3560_v8 = vunpack.c.l.b16 %v3558_v58  ;;  %v3561_v12 = vunpack.c.h.b16 %v3558_v58  ;;  %v3629_v3 = vpack.c.b16 %v3628_v44, %v3628_v44  ;;  %v12537_v58 = vld [vmem:[%s14952_s15 + $0x4] sm:$0x3] }
 0x98c   : > { %v3562_v0 = vpack.c.b16 %v3560_v8, %v3560_v8  ;;  %v3563_v17 = vpack.c.b16 %v3561_v12, %v3561_v12  ;;  %v12530_v55 = vrot.slane %v3629_v3, 2  ;;  %v10468_v3 = vld [vmem:[%s14953_s8 + $0x54] sm:$0xf0] }
 0x98e   : > { %v3565_v20 = vshrl.u32 %v3562_v0, 16  ;;  %v3572_v57 = vshrl.u32 %v3563_v17, 16  ;;  %v3568_v1 = vshll.u32 %v3562_v0, 16  ;;  %v3575_v21 = vshll.u32 %v3563_v17, 16 }
 0x990   : > { %v3567_v29 = vrot.slane %v3565_v20, 7  ;;  %v3574_v45 = vrot.slane %v3572_v57, 7 }
 0x992   : > { %v3570_v28 = vor.u32 %v3568_v1, %v3567_v29  ;;  %v3577_v26 = vor.u32 %v3575_v21, %v3574_v45 }
 0x994   : > { %v3580_v24 = vsel %vm11866_vm12, 0, %v3570_v28  ;;  %v3581_v19 = vsel %vm11866_vm12, 0, %v3577_v26 }
 0x995   : > { %v3585_v42 = vsel %vm12504_vm8, %v3580_v24, 0  ;;  %v3586_v54 = vsel %vm12504_vm8, %v3581_v19, 0 }
 0x996   : > { %v3595_v63 = vsel %vm3582_vm4, %v3585_v42, 0  ;;  %v3598_v35 = vsel %vm3582_vm4, %v3586_v54, 0 }
 0x997   : > { %3607 = vmatpush.bf16.msrb.mxu1 %v3595_v63  ;;  %3620 = vmatpush.bf16.msrb.mxu3 %v3598_v35 }
 0x998   : > { %3641 = vmatpush.bf16.msrb.mxu0 %v3595_v63  ;;  %3654 = vmatpush.bf16.msrb.mxu2 %v3598_v35 }
 0xa07   : > { %v3405_v10 = vpop.f32.mrf.mxu0 }
 0xa08   : > { %v3428_v18 = vperm.slane %v3405_v10, 0 }
 0xa0a   : > { %v3430_v15 = vsub.f32 %v12434_v30, %v3428_v18 }
 0xa0c   : > { %v3432_v53 = vmul.f32 %v3430_v15, %v3430_v15 }
 0xa0d   : > { %v3425_v16 = vpop.f32.mrf.mxu2 }
 0xa0e   : > { %v3434_v11 = vrot.slane %v3432_v53, 4  ;;  %v3429_v9 = vperm.slane %v3425_v16, 0 }
 0xa10   : > { %v3435_v38 = vadd.f32 %v3434_v11, %v3432_v53  ;;  %v3431_v7 = vsub.f32 %v12438_v2, %v3429_v9  ;;  %v9183_v11 = vld [vmem:[%s14953_s8 + $0x70] sm:$0xf]  ;;  %v10472_v9 = vld [vmem:[%s14953_s8 + $0x74] sm:$0xf0] }
 0xa12   : > { %v3436_v14 = vrot.slane %v3435_v38, 2  ;;  %v3433_v13 = vmul.f32 %v3431_v7, %v3431_v7 }
 0xa14   : > { %v3437_v50 = vadd.f32 %v3436_v14, %v3435_v38  ;;  %v3440_v61 = vrot.slane %v3433_v13, 4  ;;  %v9247_v14 = vld [vmem:[%s14953_s8 + $0xf0] sm:$0xf] }
 0xa16   : > { %v3441_v27 = vadd.f32 %v3440_v61, %v3433_v13  ;;  %v3438_v23 = vrot.slane %v3437_v50, 1  ;;  %v10488_v13 = vld [vmem:[%s14953_s8 + $0xf4] sm:$0xf0] }
 0xa18   : > { %v3442_v56 = vrot.slane %v3441_v27, 2  ;;  %v3439_v46 = vadd.f32 %v3438_v23, %v3437_v50  ;;  %v10504_v23 = vld [vmem:[%s14953_s8 + $0x174] sm:$0xf0] }
 0xa1a   : > { %v3443_v47 = vadd.f32 %v3442_v56, %v3441_v27  ;;  %3462 = vmatmul.f32.vlgmr.msra.gmra.mxu0 %v3439_v46  ;;  %v9311_v27 = vld [vmem:[%s14953_s8 + $0x170] sm:$0xf] }
 0xa1c   : > { %v3444_v51 = vrot.slane %v3443_v47, 1 }
 0xa1e   : > { %v3445_v52 = vadd.f32 %v3444_v51, %v3443_v47  ;;  %v9375_v47 = vld [vmem:[%s14953_s8 + $0x1f0] sm:$0xf]  ;;  %v10520_v51 = vld [vmem:[%s14953_s8 + $0x1f4] sm:$0xf0] }
 0xa20   : > { %3482 = vmatmul.f32.vlgmr.msra.gmra.mxu2 %v3445_v52  ;;  %v9184_v52 = vor.u32 %v10472_v9, %v9183_v11  ;;  %v9343_v11 = vld [vmem:[%s14953_s8 + $0x1b0] sm:$0xf]  ;;  %v10512_v9 = vld [vmem:[%s14953_s8 + $0x1b4] sm:$0xf0] }
 0xa22   : > { %9115 = vmatmul.msk.bf16.vlgmr.msrb.gmra.mxu0 %vm3589_vm13, %v12530_v55 }
 0xa28   : > { %9116 = vmatmul.msk.bf16.vlgmr.msrb.gmra.mxu2 %vm3589_vm13, %v12530_v55 }
 0xa97   : > { %v3463_v30 = vpop.f32.mrf.mxu0 }
 0xaa3   : > { %v3483_v49 = vpop.f32.mrf.mxu2 }
 0xaa4   : > { %v3484_v31 = vadd.f32 %v3483_v49, %v3463_v30  ;;  %v9248_v30 = vor.u32 %v10488_v13, %v9247_v14  ;;  %v9175_v49 = vld [vmem:[%s14953_s8 + $0x60] sm:$0xf]  ;;  %v10462_v13 = vld [vmem:[%s14953_s8 + $0x24] sm:$0xf0] }
 0xaa5   : > { %v9143_v14 = vld [vmem:[%s14953_s8 + $0x20] sm:$0xf] }
 0xaa6   : > { %v3486_v33 = vmul.f32 0.001953125, %v3484_v31  ;;  %v10470_v31 = vld [vmem:[%s14953_s8 + $0x64] sm:$0xf0] }
 0xaa8   : > { %v3487_v60 = vadd.f32 1e-05, %v3486_v33  ;;  %v9312_v33 = vor.u32 %v10504_v23, %v9311_v27  ;;  %v9207_v27 = vld [vmem:[%s14953_s8 + $0xa0] sm:$0xf]  ;;  %v10478_v23 = vld [vmem:[%s14953_s8 + $0xa4] sm:$0xf0] }
 0xaaa   : > { %10867 = vrsqrt.f32 %v3487_v60  ;;  %vm3494_vm10 = vweird.f32 %v3487_v60 }
 0xab0   : > { %v10868_v2 = vpop.eup %10867 }
 0xab1   : > { %v3489_v59 = vmul.f32 %v10868_v2, %v3487_v60  ;;  %vm3495_vm9 = vweird.f32 %v10868_v2  ;;  %v9376_v60 = vor.u32 %v10520_v51, %v9375_v47  ;;  %v9335_v47 = vld [vmem:[%s14953_s8 + $0x1a0] sm:$0xf]  ;;  %v10510_v51 = vld [vmem:[%s14953_s8 + $0x1a4] sm:$0xf0] }
 0xab2   : > { %vm3496_vm11 = vmor %vm3494_vm10, %vm3495_vm9 }
 0xab3   : > { %v3490_v25 = vmul.f32 %v10868_v2, %v3489_v59  ;;  %v10486_v59 = vld [vmem:[%s14953_s8 + $0xe4] sm:$0xf0] }
 0xab5   : > { %v3491_v34 = vmul.f32 0.5, %v3490_v25  ;;  %v9303_v25 = vld [vmem:[%s14953_s8 + $0x160] sm:$0xf] }
 0xab7   : > { %v3492_v36 = vsub.f32 1.5, %v3491_v34  ;;  %v10502_v34 = vld [vmem:[%s14953_s8 + $0x164] sm:$0xf0] }
 0xab9   : > { %v3493_v41 = vmul.f32 %v10868_v2, %v3492_v36  ;;  %v9367_v36 = vld [vmem:[%s14953_s8 + $0x1e0] sm:$0xf] }
 0xabb   : > { %v3497_v40 = vsel %vm3496_vm11, %v10868_v2, %v3493_v41  ;;  %v9239_v2 = vld [vmem:[%s14953_s8 + $0xe0] sm:$0xf]  ;;  %v10518_v41 = vld [vmem:[%s14953_s8 + $0x1e4] sm:$0xf0] }
 0xabc   : > { %9110 = vmatmul.msk.f32.vlgmr.msra.gmra.mxu1 %vm1522_vm7, %v3497_v40  ;;  %9112 = vmatmul.msk.f32.vlgmr.msra.gmra.mxu3 %vm1522_vm7, %v3497_v40  ;;  %v9176_v40 = vor.u32 %v10470_v31, %v9175_v49  ;;  %v9240_v44 = vor.u32 %v10486_v59, %v9239_v2  ;;  %v9336_v31 = vor.u32 %v10510_v51, %v9335_v47  ;;  %v10476_v59 = vld [vmem:[%s14953_s8 + $0x94] sm:$0xf0]  ;;  %v10483_v51 = vld [vmem:[%s14953_s8 + $0xd4] sm:$0xf] }
 0xabd   : > { %3671 = vmatpush.bf16.msra.mxu1 %v3595_v63  ;;  %3684 = vmatpush.bf16.msra.mxu3 %v3598_v35 }
 0xac4   : > { %9114 = vmatmul.msk.bf16.vlgmr.msrb.gmra.mxu3 %vm3589_vm13, %v12523_v39  ;;  %9113 = vmatmul.msk.bf16.vlgmr.msrb.gmra.mxu1 %vm3589_vm13, %v12523_v39 }
 0xad4   : > { %9118 = vmatmul.msk.bf16.vlgmr.msra.gmra.mxu3 %vm3589_vm13, %v12537_v58  ;;  %9117 = vmatmul.msk.bf16.vlgmr.msra.gmra.mxu1 %vm3589_vm13, %v12537_v58 }
 0xb39   : > { %v3525_v62 = vpop.f32.mrf.mxu1 }
 0xb3a   : > { %v3548_v8 = vperm.slane %v3525_v62, 0  ;;  %v9304_v62 = vor.u32 %v10502_v34, %v9303_v25  ;;  %v9263_v25 = vld [vmem:[%s14953_s8 + $0x110] sm:$0xf]  ;;  %v10492_v34 = vld [vmem:[%s14953_s8 + $0x114] sm:$0xf0] }
 0xb3c   : > { %v3550_v12 = vmul.f32 %v3548_v8, %v3430_v15  ;;  %v9368_v8 = vor.u32 %v10518_v41, %v9367_v36  ;;  %v9264_v41 = vor.u32 %v10492_v34, %v9263_v25 }
 0xb3e   : > { %v3552_v17 = vmul.f32 %v3550_v12, %v3308_v4  ;;  %v9231_v12 = vld [vmem:[%s14953_s8 + $0xd0] sm:$0xf] }
 0xb3f   : > { %v3545_v0 = vpop.f32.mrf.mxu3 }
 0xb40   : > { %v3549_v20 = vperm.slane %v3545_v0, 0  ;;  %v3554_v29 = vadd.f32 %v3552_v17, %v3315_v37  ;;  %v10484_v0 = vld [vmem:[%s14953_s8 + $0xd4] sm:$0xf0]  ;;  %v9295_v17 = vld [vmem:[%s14953_s8 + $0x150] sm:$0xf] }
 0xb41   : > { %v3609_v42 = vpop.f32.mrf.mxu1 }
 0xb42   : > { %v3551_v57 = vmul.f32 %v3549_v20, %v3431_v7  ;;  %v3556_v21 = vmax.f32 %v3554_v29, 0.0  ;;  %v9359_v20 = vld [vmem:[%s14953_s8 + $0x1d0] sm:$0xf] }
 0xb44   : > { %v3553_v1 = vmul.f32 %v3551_v57, %v3309_v43  ;;  %v10516_v57 = vld [vmem:[%s14953_s8 + $0x1d4] sm:$0xf0] }
 0xb46   : > { %v3555_v45 = vadd.f32 %v3553_v1, %v3316_v22  ;;  %v9232_v1 = vor.u32 %v10484_v0, %v9231_v12  ;;  %v10474_v0 = vld [vmem:[%s14953_s8 + $0x84] sm:$0xf0] }
 0xb47   : > { %v3622_v4 = vpop.f32.mrf.mxu3 }
 0xb48   : > { %v3557_v28 = vmax.f32 %v3555_v45, 0.0  ;;  %v12551_v54 = vpack.c.bf16 %v3622_v4, %v3609_v42  ;;  %v9159_v45 = vld [vmem:[%s14953_s8 + $0x40] sm:$0xf]  ;;  %v10498_v4 = vld [vmem:[%s14953_s8 + $0x144] sm:$0xf0] }
 0xb49   : > { %v3611_v53 = vpop.f32.mrf.mxu1  ;;  %v9287_v42 = vld [vmem:[%s14953_s8 + $0x140] sm:$0xf] }
 0xb4a   : > { %v3706_v26 = vpack.c.bf16 %v3557_v28, %v3556_v21  ;;  %v10466_v21 = vld [vmem:[%s14953_s8 + $0x44] sm:$0xf0]  ;;  %v9279_v53 = vld [vmem:[%s14953_s8 + $0x130] sm:$0xf] }
 0xb4c   : > { %v3708_v24 = vunpack.c.l.b16 %v3706_v26  ;;  %v3709_v19 = vunpack.c.h.b16 %v3706_v26  ;;  %v9360_v26 = vor.u32 %v10516_v57, %v9359_v20 }
 0xb4e   : > { %v3710_v63 = vpack.c.b16 %v3708_v24, %v3708_v24  ;;  %v3711_v37 = vpack.c.b16 %v3709_v19, %v3709_v19  ;;  %v9223_v24 = vld [vmem:[%s14953_s8 + $0xc0] sm:$0xf]  ;;  %v10482_v19 = vld [vmem:[%s14953_s8 + $0xc4] sm:$0xf0] }
 0xb4f   : > { %v3624_v16 = vpop.f32.mrf.mxu3 }
 0xb50   : > { %v3713_v48 = vshrl.u32 %v3710_v63, 16  ;;  %v3720_v43 = vshrl.u32 %v3711_v37, 16  ;;  %v3716_v32 = vshll.u32 %v3710_v63, 16  ;;  %v3723_v10 = vshll.u32 %v3711_v37, 16  ;;  %v9351_v63 = vld [vmem:[%s14953_s8 + $0x1c0] sm:$0xf] }
 0xb51   : > { %v10514_v37 = vld [vmem:[%s14953_s8 + $0x1c4] sm:$0xf0]  ;;  %v10496_v16 = vld [vmem:[%s14953_s8 + $0x134] sm:$0xf0] }
 0xb52   : > { %v3715_v35 = vrot.slane %v3713_v48, 7  ;;  %v3722_v22 = vrot.slane %v3720_v43, 7  ;;  %v9160_v48 = vor.u32 %v10466_v21, %v9159_v45  ;;  %v9224_v43 = vor.u32 %v10482_v19, %v9223_v24  ;;  %v9439_v45 = vld [vmem:[%s14953_s8 + $0x270] sm:$0xf]  ;;  %v10552_v24 = vld [vmem:[%s14953_s8 + $0x2f4] sm:$0xf0] }
 0xb54   : > { %v3718_v18 = vor.u32 %v3716_v32, %v3715_v35  ;;  %v3725_v15 = vor.u32 %v3723_v10, %v3722_v22  ;;  %v9151_v35 = vld [vmem:[%s14953_s8 + $0x30] sm:$0xf]  ;;  %v10464_v32 = vld [vmem:[%s14953_s8 + $0x34] sm:$0xf0]  ;;  %v9288_v22 = vor.u32 %v10498_v4, %v9287_v42  ;;  %v9352_v10 = vor.u32 %v10514_v37, %v9351_v63  ;;  %v10471_v4 = vld [vmem:[%s14953_s8 + $0x74] sm:$0xf] }
 0xb55   : > { %v9185_v63 = vld [vmem:[%s14953_s8 + $0x78] sm:$0xf0]  ;;  %v10487_v37 = vld [vmem:[%s14953_s8 + $0xf4] sm:$0xf] }
 0xb56   : > { %v3728_v38 = vsel %vm11866_vm12, 0, %v3718_v18  ;;  %v3729_v7 = vsel %vm11866_vm12, 0, %v3725_v15  ;;  %v9215_v18 = vld [vmem:[%s14953_s8 + $0xb0] sm:$0xf]  ;;  %v10480_v15 = vld [vmem:[%s14953_s8 + $0xb4] sm:$0xf0] }
 0xb57   : > { %v3730_v50 = vsel %vm12504_vm8, %v3728_v38, 0  ;;  %v3731_v61 = vsel %vm12504_vm8, %v3729_v7, 0  ;;  %v9152_v38 = vor.u32 %v10464_v32, %v9151_v35  ;;  %v9216_v7 = vor.u32 %v10480_v15, %v9215_v18  ;;  %v9431_v35 = vld [vmem:[%s14953_s8 + $0x260] sm:$0xf]  ;;  %v10534_v32 = vld [vmem:[%s14953_s8 + $0x264] sm:$0xf0] }
 0xb58   : > { %v3733_v56 = vsel %vm3582_vm4, %v3730_v50, 0  ;;  %v3736_v46 = vsel %vm3582_vm4, %v3731_v61, 0  ;;  %v9280_v50 = vor.u32 %v10496_v16, %v9279_v53  ;;  %v9344_v61 = vor.u32 %v10512_v9, %v9343_v11  ;;  %v9495_v18 = vld [vmem:[%s14953_s8 + $0x2e0] sm:$0xf]  ;;  %v10550_v15 = vld [vmem:[%s14953_s8 + $0x2e4] sm:$0xf0] }
 0xb59   : > { %3745 = vmatpush.bf16.msra.mxu0 %v3733_v56  ;;  %3758 = vmatpush.bf16.msra.mxu2 %v3736_v46  ;;  %v10469_v53 = vld [vmem:[%s14953_s8 + $0x64] sm:$0xf]  ;;  %v9496_v16 = vor.u32 %v10550_v15, %v9495_v18  ;;  %v9177_v11 = vld [vmem:[%s14953_s8 + $0x68] sm:$0xf0] }
 0xb5a   : > { %3772 = vmatpush.bf16.msrb.mxu1 %v3733_v56  ;;  %3785 = vmatpush.bf16.msrb.mxu3 %v3736_v46  ;;  %v10485_v9 = vld [vmem:[%s14953_s8 + $0xe4] sm:$0xf] }
 0xb5c   : > { %9119 = vmatmul.msk.bf16.vlgmr.msra.gmra.mxu0 %vm3589_vm13, %v12523_v39  ;;  %9120 = vmatmul.msk.bf16.vlgmr.msra.gmra.mxu2 %vm3589_vm13, %v12523_v39  ;;  %v9167_v39 = vld [vmem:[%s14953_s8 + $0x50] sm:$0xf] }
 0xb5d   : > { %3799 = vmatpush.bf16.msrb.mxu0 %v3733_v56  ;;  %3812 = vmatpush.bf16.msrb.mxu2 %v3736_v46  ;;  %v9168_v29 = vor.u32 %v10468_v3, %v9167_v39  ;;  %v9271_v56 = vld [vmem:[%s14953_s8 + $0x120] sm:$0xf]  ;;  %v10494_v46 = vld [vmem:[%s14953_s8 + $0x124] sm:$0xf0] }
 0xb5e   : > { %9122 = vmatmul.msk.bf16.vlgmr.msrb.gmra.mxu3 %vm3589_vm13, %v12530_v55  ;;  %9121 = vmatmul.msk.bf16.vlgmr.msrb.gmra.mxu1 %vm3589_vm13, %v12530_v55  ;;  %v10500_v55 = vld [vmem:[%s14953_s8 + $0x154] sm:$0xf0]  ;;  %v9272_v49 = vor.u32 %v10494_v46, %v9271_v56  ;;  %v9127_v3 = vld [vmem:[%s14953_s8] sm:$0xf]  ;;  %v9169_v56 = vld [vmem:[%s14953_s8 + $0x58] sm:$0xf0] }
 0xb5f   : > { %4441 = vmatpush.bf16.msra.mxu1 %v9184_v52  ;;  %4454 = vmatpush.bf16.msra.mxu3 %v9248_v30  ;;  %v9296_v28 = vor.u32 %v10500_v55, %v9295_v17  ;;  %v9144_v52 = vor.u32 %v10462_v13, %v9143_v14  ;;  %v9208_v30 = vor.u32 %v10478_v23, %v9207_v27  ;;  %v9255_v17 = vld [vmem:[%s14953_s8 + $0x100] sm:$0xf]  ;;  %v10490_v55 = vld [vmem:[%s14953_s8 + $0x104] sm:$0xf0]  ;;  %v9423_v13 = vld [vmem:[%s14953_s8 + $0x250] sm:$0xf] }
 0xb60   : > { %v9256_v57 = vor.u32 %v10490_v55, %v9255_v17  ;;  %v10548_v27 = vld [vmem:[%s14953_s8 + $0x2d4] sm:$0xf0]  ;;  %v10467_v23 = vld [vmem:[%s14953_s8 + $0x54] sm:$0xf]  ;;  %v10481_v17 = vld [vmem:[%s14953_s8 + $0xc4] sm:$0xf] }
 0xb61   : > { %4467 = vmatpush.bf16.msra.mxu0 %v9312_v33  ;;  %4480 = vmatpush.bf16.msra.mxu2 %v9376_v60  ;;  %v10460_v33 = vld [vmem:[%s14953_s8 + $0x14] sm:$0xf0]  ;;  %v9199_v60 = vld [vmem:[%s14953_s8 + $0x90] sm:$0xf]  ;;  %v9225_v55 = vld [vmem:[%s14953_s8 + $0xc8] sm:$0xf0] }
 0xb62   : > { %v9200_v36 = vor.u32 %v10476_v59, %v9199_v60 }
 0xb63   : > { %4442 = vmatpush.bf16.msra.mxu1 %v9176_v40  ;;  %4455 = vmatpush.bf16.msra.mxu3 %v9240_v44  ;;  %v9327_v40 = vld [vmem:[%s14953_s8 + $0x190] sm:$0xf]  ;;  %v10508_v44 = vld [vmem:[%s14953_s8 + $0x194] sm:$0xf0] }
 0xb64   : > { %v9328_v39 = vor.u32 %v10508_v44, %v9327_v40  ;;  %v10530_v40 = vld [vmem:[%s14953_s8 + $0x244] sm:$0xf0]  ;;  %v9479_v44 = vld [vmem:[%s14953_s8 + $0x2c0] sm:$0xf] }
 0xb65   : > { %4468 = vmatpush.bf16.msra.mxu0 %v9304_v62  ;;  %4481 = vmatpush.bf16.msra.mxu2 %v9368_v8  ;;  %v10458_v62 = vld [vmem:[%s14953_s8 + $0x4] sm:$0xf0]  ;;  %v9191_v8 = vld [vmem:[%s14953_s8 + $0x80] sm:$0xf] }
 0xb66   : > { %v9128_v12 = vor.u32 %v10458_v62, %v9127_v3  ;;  %v9192_v20 = vor.u32 %v10474_v0, %v9191_v8  ;;  %v10546_v3 = vld [vmem:[%s14953_s8 + $0x2c4] sm:$0xf0]  ;;  %v10465_v62 = vld [vmem:[%s14953_s8 + $0x44] sm:$0xf]  ;;  %v9161_v8 = vld [vmem:[%s14953_s8 + $0x48] sm:$0xf0] }
 0xb67   : > { %4443 = vmatpush.bf16.msra.mxu1 %v9168_v29  ;;  %4456 = vmatpush.bf16.msra.mxu3 %v9232_v1  ;;  %v9319_v29 = vld [vmem:[%s14953_s8 + $0x180] sm:$0xf]  ;;  %v10506_v1 = vld [vmem:[%s14953_s8 + $0x184] sm:$0xf0]  ;;  %v9164_v0 = vor.u32 %v10465_v62, %v9161_v8 }
 0xb68   : > { %v9320_v21 = vor.u32 %v10506_v1, %v9319_v29  ;;  %v10528_v29 = vld [vmem:[%s14953_s8 + $0x234] sm:$0xf0]  ;;  %v9471_v1 = vld [vmem:[%s14953_s8 + $0x2b0] sm:$0xf] }
 0xb69   : > { %4469 = vmatpush.bf16.msra.mxu0 %v9296_v28  ;;  %4482 = vmatpush.bf16.msra.mxu2 %v9360_v26  ;;  %v10536_v28 = vld [vmem:[%s14953_s8 + $0x274] sm:$0xf0]  ;;  %v9503_v26 = vld [vmem:[%s14953_s8 + $0x2f0] sm:$0xf] }
 0xb6a   : > { %v9440_v19 = vor.u32 %v10536_v28, %v9439_v45  ;;  %v9504_v42 = vor.u32 %v10552_v24, %v9503_v26  ;;  %v10463_v28 = vld [vmem:[%s14953_s8 + $0x34] sm:$0xf]  ;;  %v9153_v26 = vld [vmem:[%s14953_s8 + $0x38] sm:$0xf0] }
 0xb6b   : > { %4444 = vmatpush.bf16.msra.mxu1 %v9160_v48  ;;  %4457 = vmatpush.bf16.msra.mxu3 %v9224_v43  ;;  %v9188_v48 = vor.u32 %v10471_v4, %v9185_v63  ;;  %v9249_v43 = vld [vmem:[%s14953_s8 + $0xf8] sm:$0xf0] }
 0xb6c   : > { %9123 = vmatmul.msk.bf16.vlgmr.msrb.gmra.mxu0 %vm3589_vm13, %v12537_v58  ;;  %9124 = vmatmul.msk.bf16.vlgmr.msrb.gmra.mxu2 %vm3589_vm13, %v12537_v58  ;;  %v9135_v58 = vld [vmem:[%s14953_s8 + $0x10] sm:$0xf]  ;;  %v9217_v4 = vld [vmem:[%s14953_s8 + $0xb8] sm:$0xf0] }
 0xb6d   : > { %4470 = vmatpush.bf16.msra.mxu0 %v9288_v22  ;;  %4483 = vmatpush.bf16.msra.mxu2 %v9352_v10  ;;  %v9136_v2 = vor.u32 %v10460_v33, %v9135_v58  ;;  %v9252_v22 = vor.u32 %v10487_v37, %v9249_v43  ;;  %v9432_v10 = vor.u32 %v10534_v32, %v9431_v35  ;;  %v3673_v58 = vpop.f32.mrf.mxu1  ;;  %v12665_v33 = vpop.f32.mrf.mxu2  ;;  %v9399_v37 = vld [vmem:[%s14953_s8 + $0x220] sm:$0xf]  ;;  %v10542_v32 = vld [vmem:[%s14953_s8 + $0x2a4] sm:$0xf0] }
 0xb6e   : > { %v9463_v43 = vld [vmem:[%s14953_s8 + $0x2a0] sm:$0xf] }
 0xb6f   : > { %4445 = vmatpush.bf16.msra.mxu1 %v9152_v38  ;;  %4458 = vmatpush.bf16.msra.mxu3 %v9216_v7  ;;  %v9241_v38 = vld [vmem:[%s14953_s8 + $0xe8] sm:$0xf0]  ;;  %v9180_v7 = vor.u32 %v10469_v53, %v9177_v11  ;;  %v9464_v18 = vor.u32 %v10542_v32, %v9463_v43  ;;  %v10477_v53 = vld [vmem:[%s14953_s8 + $0xa4] sm:$0xf]  ;;  %v10551_v32 = vld [vmem:[%s14953_s8 + $0x2f4] sm:$0xf] }
 0xb70   : > { %v9244_v14 = vor.u32 %v10485_v9, %v9241_v38  ;;  %v9391_v9 = vld [vmem:[%s14953_s8 + $0x210] sm:$0xf]  ;;  %v10524_v38 = vld [vmem:[%s14953_s8 + $0x214] sm:$0xf0] }
 0xb71   : > { %4471 = vmatpush.bf16.msra.mxu0 %v9280_v50  ;;  %4484 = vmatpush.bf16.msra.mxu2 %v9344_v61  ;;  %v10532_v50 = vld [vmem:[%s14953_s8 + $0x254] sm:$0xf0]  ;;  %v9487_v61 = vld [vmem:[%s14953_s8 + $0x2d0] sm:$0xf] }
 0xb72   : > { %v9424_v46 = vor.u32 %v10532_v50, %v9423_v13  ;;  %v9488_v47 = vor.u32 %v10548_v27, %v9487_v61  ;;  %v10540_v13 = vld [vmem:[%s14953_s8 + $0x294] sm:$0xf0]  ;;  %v10459_v50 = vld [vmem:[%s14953_s8 + $0x14] sm:$0xf]  ;;  %v9137_v61 = vld [vmem:[%s14953_s8 + $0x18] sm:$0xf0] }
 0xb73   : > { %4446 = vmatpush.bf16.msra.mxu1 %v9144_v52  ;;  %4459 = vmatpush.bf16.msra.mxu3 %v9208_v30  ;;  %v9233_v52 = vld [vmem:[%s14953_s8 + $0xd8] sm:$0xf0]  ;;  %v9172_v30 = vor.u32 %v10467_v23, %v9169_v56  ;;  %v9140_v23 = vor.u32 %v10459_v50, %v9137_v61  ;;  %v10475_v56 = vld [vmem:[%s14953_s8 + $0x94] sm:$0xf] }
 0xb75   : > { %4472 = vmatpush.bf16.msra.mxu0 %v9272_v49  ;;  %4485 = vmatpush.bf16.msra.mxu2 %v9336_v31  ;;  %v9236_v49 = vor.u32 %v10483_v51, %v9233_v52  ;;  %v12663_v31 = vpop.f32.mrf.mxu0  ;;  %v3675_v25 = vpop.f32.mrf.mxu1  ;;  %v9383_v51 = vld [vmem:[%s14953_s8 + $0x200] sm:$0xf]  ;;  %v10522_v52 = vld [vmem:[%s14953_s8 + $0x204] sm:$0xf0] }
 0xb76   : > { %v3658_v34 = vpop.f32.mrf.mxu2  ;;  %v9129_v25 = vld [vmem:[%s14953_s8 + $0x8] sm:$0xf0] }
 0xb77   : > { %4447 = vmatpush.bf16.msra.mxu1 %v9136_v2  ;;  %4460 = vmatpush.bf16.msra.mxu3 %v9200_v36  ;;  %v3686_v2 = vpop.f32.mrf.mxu3  ;;  %v10473_v34 = vld [vmem:[%s14953_s8 + $0x84] sm:$0xf] }
 0xb78   : > { %v12667_v59 = vpack.c.bf16 %v3686_v2, %v3673_v58  ;;  %v10538_v58 = vld [vmem:[%s14953_s8 + $0x284] sm:$0xf0] }
 0xb79   : > { %4473 = vmatpush.bf16.msra.mxu0 %v9264_v41  ;;  %4486 = vmatpush.bf16.msra.mxu2 %v9328_v39  ;;  %v9415_v41 = vld [vmem:[%s14953_s8 + $0x240] sm:$0xf] }
 0xb7a   : > { %v9416_v39 = vor.u32 %v10530_v40, %v9415_v41 }
 0xb7b   : > { %4448 = vmatpush.bf16.msra.mxu1 %v9128_v12  ;;  %4461 = vmatpush.bf16.msra.mxu3 %v9192_v20  ;;  %v9480_v12 = vor.u32 %v10546_v3, %v9479_v44  ;;  %v9228_v20 = vor.u32 %v10481_v17, %v9225_v55  ;;  %v3660_v3 = vpack.c.bf16 %v12665_v33, %v12663_v31  ;;  %v3693_v17 = vunpack.c.h.b16 %v12551_v54 }
 0xb7d   : > { %4474 = vmatpush.bf16.msra.mxu0 %v9256_v57  ;;  %4487 = vmatpush.bf16.msra.mxu2 %v9320_v21  ;;  %v3645_v60 = vpop.f32.mrf.mxu0  ;;  %v9407_v57 = vld [vmem:[%s14953_s8 + $0x230] sm:$0xf]  ;;  %v10544_v21 = vld [vmem:[%s14953_s8 + $0x2b4] sm:$0xf0] }
 0xb7e   : > { %v9408_v45 = vor.u32 %v10528_v29, %v9407_v57  ;;  %v9472_v24 = vor.u32 %v10544_v21, %v9471_v1  ;;  %v10457_v60 = vld [vmem:[%s14953_s8 + $0x4] sm:$0xf]  ;;  %v3697_v57 = vunpack.c.l.b16 %v3660_v3  ;;  %v3698_v29 = vunpack.c.h.b16 %v3660_v3  ;;  %v9361_v3 = vld [vmem:[%s14953_s8 + $0x1d8] sm:$0xf0] }
 0xb7f   : > { %4493 = vmatpush.bf16.msrb.mxu1 %v9440_v19  ;;  %4506 = vmatpush.bf16.msrb.mxu3 %v9504_v42  ;;  %v3688_v36 = vpop.f32.mrf.mxu3  ;;  %v9156_v19 = vor.u32 %v10463_v28, %v9153_v26  ;;  %v10479_v42 = vld [vmem:[%s14953_s8 + $0xb4] sm:$0xf]  ;;  %v9132_v41 = vor.u32 %v10457_v60, %v9129_v25  ;;  %v9313_v26 = vld [vmem:[%s14953_s8 + $0x178] sm:$0xf0]  ;;  %v10549_v60 = vld [vmem:[%s14953_s8 + $0x2e4] sm:$0xf] }
 0xb80   : > { %v9220_v63 = vor.u32 %v10479_v42, %v9217_v4  ;;  %v9193_v36 = vld [vmem:[%s14953_s8 + $0x88] sm:$0xf0]  ;;  %v10503_v28 = vld [vmem:[%s14953_s8 + $0x174] sm:$0xf]  ;;  %v9377_v42 = vld [vmem:[%s14953_s8 + $0x1f8] sm:$0xf0] }
 0xb81   : > { %4519 = vmatpush.bf16.msrb.mxu0 %v9188_v48  ;;  %4532 = vmatpush.bf16.msrb.mxu2 %v9252_v22  ;;  %v10526_v48 = vld [vmem:[%s14953_s8 + $0x224] sm:$0xf0]  ;;  %v10461_v22 = vld [vmem:[%s14953_s8 + $0x24] sm:$0xf]  ;;  %v9196_v40 = vor.u32 %v10473_v34, %v9193_v36  ;;  %v10535_v4 = vld [vmem:[%s14953_s8 + $0x274] sm:$0xf] }
 0xb82   : > { %v9400_v35 = vor.u32 %v10526_v48, %v9399_v37  ;;  %v3695_v37 = vpack.c.b16 %v3693_v17, %v3693_v17  ;;  %v10499_v36 = vld [vmem:[%s14953_s8 + $0x154] sm:$0xf] }
 0xb83   : > { %4494 = vmatpush.bf16.msrb.mxu1 %v9432_v10  ;;  %4507 = vmatpush.bf16.msrb.mxu3 %v9496_v16  ;;  %v9145_v10 = vld [vmem:[%s14953_s8 + $0x28] sm:$0xf0] }
 0xb84   : > { %v9148_v15 = vor.u32 %v10461_v22, %v9145_v10  ;;  %v9209_v16 = vld [vmem:[%s14953_s8 + $0xa8] sm:$0xf0]  ;;  %v9505_v22 = vld [vmem:[%s14953_s8 + $0x2f8] sm:$0xf0]  ;;  %v3699_v10 = vpack.c.b16 %v3697_v57, %v3697_v57  ;;  %v10497_v57 = vld [vmem:[%s14953_s8 + $0x144] sm:$0xf] }
 0xb85   : > { %4520 = vmatpush.bf16.msrb.mxu0 %v9180_v7  ;;  %4533 = vmatpush.bf16.msrb.mxu2 %v9244_v14  ;;  %v9212_v11 = vor.u32 %v10477_v53, %v9209_v16  ;;  %v9455_v7 = vld [vmem:[%s14953_s8 + $0x290] sm:$0xf]  ;;  %v9392_v14 = vor.u32 %v10524_v38, %v9391_v9  ;;  %v9316_v38 = vor.u32 %v10503_v28, %v9313_v26  ;;  %v10529_v28 = vld [vmem:[%s14953_s8 + $0x244] sm:$0xf]  ;;  %v9417_v26 = vld [vmem:[%s14953_s8 + $0x248] sm:$0xf0] }
 0xb86   : > { %v9456_v27 = vor.u32 %v10540_v13, %v9455_v7  ;;  %v9305_v13 = vld [vmem:[%s14953_s8 + $0x168] sm:$0xf0] }
 0xb87   : > { %4495 = vmatpush.bf16.msrb.mxu1 %v9424_v46  ;;  %4508 = vmatpush.bf16.msrb.mxu3 %v9488_v47  ;;  %v9201_v46 = vld [vmem:[%s14953_s8 + $0x98] sm:$0xf0] }
 0xb88   : > { %v9204_v47 = vor.u32 %v10475_v56, %v9201_v46  ;;  %v9508_v56 = vor.u32 %v10551_v32, %v9505_v22  ;;  %v10517_v46 = vld [vmem:[%s14953_s8 + $0x1e4] sm:$0xf]  ;;  %v10495_v32 = vld [vmem:[%s14953_s8 + $0x134] sm:$0xf]  ;;  %v9281_v22 = vld [vmem:[%s14953_s8 + $0x138] sm:$0xf0] }
 0xb89   : > { %4521 = vmatpush.bf16.msrb.mxu0 %v9172_v30  ;;  %4534 = vmatpush.bf16.msrb.mxu2 %v9236_v49  ;;  %v9447_v30 = vld [vmem:[%s14953_s8 + $0x280] sm:$0xf]  ;;  %v9384_v49 = vor.u32 %v10522_v52, %v9383_v51  ;;  %v10533_v51 = vld [vmem:[%s14953_s8 + $0x264] sm:$0xf] }
 0xb8a   : > { %v9448_v2 = vor.u32 %v10538_v58, %v9447_v30  ;;  %v9433_v58 = vld [vmem:[%s14953_s8 + $0x268] sm:$0xf0] }
 0xb8b   : > { %4496 = vmatpush.bf16.msrb.mxu1 %v9416_v39  ;;  %4509 = vmatpush.bf16.msrb.mxu3 %v9480_v12 }
 0xb8d   : > { %4522 = vmatpush.bf16.msrb.mxu0 %v9164_v0  ;;  %4535 = vmatpush.bf16.msrb.mxu2 %v9228_v20  ;;  %v3692_v0 = vunpack.c.l.b16 %v12551_v54  ;;  %v10519_v54 = vld [vmem:[%s14953_s8 + $0x1f4] sm:$0xf] }
 0xb8e   : > { %v9380_v7 = vor.u32 %v10519_v54, %v9377_v42  ;;  %v9481_v54 = vld [vmem:[%s14953_s8 + $0x2c8] sm:$0xf0]  ;;  %v3702_v42 = vunpack.c.l.b16 %v12667_v59 }
 0xb8f   : > { %4497 = vmatpush.bf16.msrb.mxu1 %v9408_v45  ;;  %4510 = vmatpush.bf16.msrb.mxu3 %v9472_v24 }
 0xb91   : > { %4523 = vmatpush.bf16.msrb.mxu0 %v9156_v19  ;;  %4536 = vmatpush.bf16.msrb.mxu2 %v9220_v63  ;;  %v3694_v63 = vpack.c.b16 %v3692_v0, %v3692_v0  ;;  %v9489_v0 = vld [vmem:[%s14953_s8 + $0x2d8] sm:$0xf0] }
 0xb93   : > { %4498 = vmatpush.bf16.msrb.mxu1 %v9400_v35  ;;  %4511 = vmatpush.bf16.msrb.mxu3 %v9464_v18  ;;  %v9441_v35 = vld [vmem:[%s14953_s8 + $0x278] sm:$0xf0]  ;;  %v3700_v18 = vpack.c.b16 %v3698_v29, %v3698_v29  ;;  %v9289_v29 = vld [vmem:[%s14953_s8 + $0x148] sm:$0xf0] }
 0xb95   : > { %4524 = vmatpush.bf16.msrb.mxu0 %v9148_v15  ;;  %4537 = vmatpush.bf16.msrb.mxu2 %v9212_v11 }
 0xb97   : > { %4499 = vmatpush.bf16.msrb.mxu1 %v9392_v14  ;;  %4512 = vmatpush.bf16.msrb.mxu3 %v9456_v27  ;;  %v10501_v14 = vld [vmem:[%s14953_s8 + $0x164] sm:$0xf] }
 0xb98   : > { %v9308_v25 = vor.u32 %v10501_v14, %v9305_v13 }
 0xb99   : > { %4525 = vmatpush.bf16.msrb.mxu0 %v9140_v23  ;;  %4538 = vmatpush.bf16.msrb.mxu2 %v9204_v47  ;;  %v9444_v23 = vor.u32 %v10535_v4, %v9441_v35  ;;  %v9369_v47 = vld [vmem:[%s14953_s8 + $0x1e8] sm:$0xf0]  ;;  %v3703_v4 = vunpack.c.h.b16 %v12667_v59  ;;  %v9420_v35 = vor.u32 %v10529_v28, %v9417_v26  ;;  %v10505_v28 = vld [vmem:[%s14953_s8 + $0x184] sm:$0xf] }
 0xb9a   : > { %v9372_v34 = vor.u32 %v10517_v46, %v9369_v47  ;;  %v9321_v26 = vld [vmem:[%s14953_s8 + $0x188] sm:$0xf0] }
 0xb9b   : > { %4500 = vmatpush.bf16.msrb.mxu1 %v9384_v49  ;;  %4513 = vmatpush.bf16.msrb.mxu3 %v9448_v2  ;;  %v9497_v2 = vld [vmem:[%s14953_s8 + $0x2e8] sm:$0xf0]  ;;  %v3705_v14 = vpack.c.b16 %v3703_v4, %v3703_v4 }
 0xb9d   : > { %4526 = vmatpush.bf16.msrb.mxu0 %v9132_v41  ;;  %4539 = vmatpush.bf16.msrb.mxu2 %v9196_v40  ;;  %v9297_v41 = vld [vmem:[%s14953_s8 + $0x158] sm:$0xf0]  ;;  %v9436_v40 = vor.u32 %v10533_v51, %v9433_v58  ;;  %v10493_v51 = vld [vmem:[%s14953_s8 + $0x124] sm:$0xf] }
 0xbd9   : > { %v3747_v44 = vpop.f32.mrf.mxu0 }
 0xbdb   : > { %v3774_v39 = vpop.f32.mrf.mxu1 }
 0xbdf   : > { %v3760_v62 = vpop.f32.mrf.mxu2 }
 0xbe0   : > { %v3764_v8 = vpack.c.bf16 %v3760_v62, %v3747_v44  ;;  %v9500_v44 = vor.u32 %v10549_v60, %v9497_v2  ;;  %v10531_v62 = vld [vmem:[%s14953_s8 + $0x254] sm:$0xf] }
 0xbe1   : > { %v3787_v12 = vpop.f32.mrf.mxu3  ;;  %v3749_v20 = vpop.f32.mrf.mxu0 }
 0xbe2   : > { %v3791_v55 = vpack.c.bf16 %v3787_v12, %v3774_v39  ;;  %v3820_v1 = vunpack.c.l.b16 %v3764_v8  ;;  %v3821_v45 = vunpack.c.h.b16 %v3764_v8  ;;  %v10515_v39 = vld [vmem:[%s14953_s8 + $0x1d4] sm:$0xf]  ;;  %v9425_v8 = vld [vmem:[%s14953_s8 + $0x258] sm:$0xf0] }
 0xbe3   : > { %v3776_v31 = vpop.f32.mrf.mxu1  ;;  %v10547_v12 = vld [vmem:[%s14953_s8 + $0x2d4] sm:$0xf]  ;;  %v9364_v20 = vor.u32 %v10515_v39, %v9361_v3 }
 0xbe4   : > { %v3825_v33 = vunpack.c.l.b16 %v3791_v55  ;;  %v3826_v21 = vunpack.c.h.b16 %v3791_v55  ;;  %v3822_v24 = vpack.c.b16 %v3820_v1, %v3820_v1  ;;  %v3823_v19 = vpack.c.b16 %v3821_v45, %v3821_v45  ;;  %v10513_v1 = vld [vmem:[%s14953_s8 + $0x1c4] sm:$0xf] }
 0xbe5   : > { %v9300_v55 = vor.u32 %v10499_v36, %v9297_v41  ;;  %v9428_v31 = vor.u32 %v10531_v62, %v9425_v8  ;;  %v10525_v36 = vld [vmem:[%s14953_s8 + $0x224] sm:$0xf]  ;;  %v9401_v41 = vld [vmem:[%s14953_s8 + $0x228] sm:$0xf0]  ;;  %v10491_v62 = vld [vmem:[%s14953_s8 + $0x114] sm:$0xf] }
 0xbe6   : > { %v3827_v48 = vpack.c.b16 %v3825_v33, %v3825_v33  ;;  %v3828_v43 = vpack.c.b16 %v3826_v21, %v3826_v21  ;;  %v3834_v15 = vrot.slane %v3822_v24, 6  ;;  %v3835_v53 = vrot.slane %v3823_v19, 6  ;;  %v9353_v21 = vld [vmem:[%s14953_s8 + $0x1c8] sm:$0xf0]  ;;  %v10545_v19 = vld [vmem:[%s14953_s8 + $0x2c4] sm:$0xf] }
 0xbe7   : > { %v3762_v9 = vpop.f32.mrf.mxu2  ;;  %v9492_v33 = vor.u32 %v10547_v12, %v9489_v0  ;;  %v9484_v59 = vor.u32 %v10545_v19, %v9481_v54  ;;  %v9265_v8 = vld [vmem:[%s14953_s8 + $0x118] sm:$0xf0]  ;;  %v9404_v12 = vor.u32 %v10525_v36, %v9401_v41  ;;  %v9385_v19 = vld [vmem:[%s14953_s8 + $0x208] sm:$0xf0]  ;;  %v10537_v54 = vld [vmem:[%s14953_s8 + $0x284] sm:$0xf] }
 0xbe8   : > { %v3836_v16 = vrot.slane %v3827_v48, 6  ;;  %v3837_v11 = vrot.slane %v3828_v43, 6  ;;  %v12724_v61 = vsel %vm3840_vm14, %v3694_v63, %v3834_v15  ;;  %v12727_v27 = vsel %vm3840_vm14, %v3695_v37, %v3835_v53  ;;  %v9345_v53 = vld [vmem:[%s14953_s8 + $0x1b8] sm:$0xf0]  ;;  %v10543_v9 = vld [vmem:[%s14953_s8 + $0x2b4] sm:$0xf] }
 0xbe9   : > { %v3789_v50 = vpop.f32.mrf.mxu3  ;;  %v3801_v52 = vpop.f32.mrf.mxu0  ;;  %4449 = vmatmul.bf16.vlgmr.msra.gmra.mxu1 %v12724_v61  ;;  %4462 = vmatmul.bf16.vlgmr.msra.gmra.mxu3 %v12727_v27  ;;  %v9292_v48 = vor.u32 %v10497_v57, %v9289_v29  ;;  %v9356_v43 = vor.u32 %v10513_v1, %v9353_v21  ;;  %v9457_v57 = vld [vmem:[%s14953_s8 + $0x298] sm:$0xf0]  ;;  %v9268_v29 = vor.u32 %v10491_v62, %v9265_v8  ;;  %v12876_v62 = vld [vmem:[#allocation12 + $0xb0] sm:$0xff] }
 0xbea   : > { %v12735_v30 = vsel %vm3840_vm14, %v3699_v10, %v3836_v16  ;;  %v12738_v49 = vsel %vm3840_vm14, %v3700_v18, %v3837_v11  ;;  %4545 = vmatpush.bf16.msra.mxu1 %v9316_v38  ;;  %4558 = vmatpush.bf16.msra.mxu3 %v9380_v7  ;;  %v10511_v10 = vld [vmem:[%s14953_s8 + $0x1b4] sm:$0xf]  ;;  %v9409_v11 = vld [vmem:[%s14953_s8 + $0x238] sm:$0xf0]  ;;  %v3704_v7 = vpack.c.b16 %v3702_v42, %v3702_v42  ;;  %v9449_v42 = vld [vmem:[%s14953_s8 + $0x288] sm:$0xf0] }
 0xbeb   : > { %4475 = vmatmul.bf16.vlgmr.msra.gmra.mxu0 %v12735_v30  ;;  %4488 = vmatmul.bf16.vlgmr.msra.gmra.mxu2 %v12738_v49  ;;  %v10527_v16 = vld [vmem:[%s14953_s8 + $0x234] sm:$0xf]  ;;  %v9473_v38 = vld [vmem:[%s14953_s8 + $0x2b8] sm:$0xf0]  ;;  %v9348_v46 = vor.u32 %v10511_v10, %v9345_v53  ;;  %v12818_v10 = vld [vmem:[#allocation12 + $0x48] sm:$0xff] }
 0xbec   : > { %4571 = vmatpush.bf16.msra.mxu0 %v9444_v23  ;;  %4584 = vmatpush.bf16.msra.mxu2 %v9508_v56  ;;  %v9284_v56 = vor.u32 %v10495_v32, %v9281_v22  ;;  %v9412_v47 = vor.u32 %v10527_v16, %v9409_v11  ;;  %v9476_v2 = vor.u32 %v10543_v9, %v9473_v38  ;;  %v12806_v32 = vld [vmem:[#allocation12 + $0x68] sm:$0xff]  ;;  %v12810_v22 = vld [vmem:[#allocation12 + $0x60] sm:$0xff]  ;;  %v12833_v16 = vld [vmem:[#allocation12 + $0xf8] sm:$0xff] }
 0xbed   : > { %v12831_v53 = vld [vmem:[#allocation12 + $0x28] sm:$0xff]  ;;  %v12837_v9 = vld [vmem:[#allocation12 + $0x20] sm:$0xff]  ;;  %v12839_v38 = vld [vmem:[#allocation12 + $0xf0] sm:$0xff] }
 0xbee   : > { %4546 = vmatpush.bf16.msra.mxu1 %v9308_v25  ;;  %4559 = vmatpush.bf16.msra.mxu3 %v9372_v34  ;;  %v10509_v25 = vld [vmem:[%s14953_s8 + $0x1a4] sm:$0xf]  ;;  %v9337_v34 = vld [vmem:[%s14953_s8 + $0x1a8] sm:$0xf0]  ;;  %v12870_v36 = vld [vmem:[#allocation12 + $0xc0] sm:$0xff] }
 0xbef   : > { %v3814_v17 = vpop.f32.mrf.mxu2  ;;  %v9340_v3 = vor.u32 %v10509_v25, %v9337_v34  ;;  %v12867_v25 = vld [vmem:[#allocation12 + $0xc8] sm:$0xff] }
 0xbf0   : > { %4572 = vmatpush.bf16.msra.mxu0 %v9436_v40  ;;  %4585 = vmatpush.bf16.msra.mxu2 %v9500_v44  ;;  %v3818_v45 = vpack.c.bf16 %v3814_v17, %v3801_v52  ;;  %v9273_v52 = vld [vmem:[%s14953_s8 + $0x128] sm:$0xf0]  ;;  %v10541_v40 = vld [vmem:[%s14953_s8 + $0x2a4] sm:$0xf]  ;;  %v10507_v17 = vld [vmem:[%s14953_s8 + $0x194] sm:$0xf] }
 0xbf1   : > { %v3803_v24 = vpop.f32.mrf.mxu0  ;;  %v9465_v44 = vld [vmem:[%s14953_s8 + $0x2a8] sm:$0xf0]  ;;  %v9276_v39 = vor.u32 %v10493_v51, %v9273_v52 }
 0xbf2   : > { %v3830_v63 = vunpack.c.l.b16 %v3818_v45  ;;  %v3831_v37 = vunpack.c.h.b16 %v3818_v45  ;;  %4547 = vmatpush.bf16.msra.mxu1 %v9300_v55  ;;  %4560 = vmatpush.bf16.msra.mxu3 %v9364_v20  ;;  %v9468_v0 = vor.u32 %v10541_v40, %v9465_v44  ;;  %v9329_v55 = vld [vmem:[%s14953_s8 + $0x198] sm:$0xf0]  ;;  %v10539_v20 = vld [vmem:[%s14953_s8 + $0x294] sm:$0xf]  ;;  %v10489_v45 = vld [vmem:[%s14953_s8 + $0x104] sm:$0xf] }
 0xbf3   : > { %v9332_v1 = vor.u32 %v10507_v17, %v9329_v55  ;;  %v9460_v21 = vor.u32 %v10539_v20, %v9457_v57  ;;  %v10521_v24 = vld [vmem:[%s14953_s8 + $0x204] sm:$0xf]  ;;  %v12873_v40 = vld [vmem:[#allocation12 + $0xb8] sm:$0xff]  ;;  %v12882_v55 = vld [vmem:[#allocation12 + $0xa0] sm:$0xff] }
 0xbf4   : > { %v3832_v18 = vpack.c.b16 %v3830_v63, %v3830_v63  ;;  %v3833_v15 = vpack.c.b16 %v3831_v37, %v3831_v37  ;;  %4573 = vmatpush.bf16.msra.mxu0 %v9428_v31  ;;  %4586 = vmatpush.bf16.msra.mxu2 %v9492_v33  ;;  %v9257_v31 = vld [vmem:[%s14953_s8 + $0x108] sm:$0xf0]  ;;  %v9324_v63 = vor.u32 %v10505_v28, %v9321_v26  ;;  %v12885_v20 = vld [vmem:[#allocation12 + $0x98] sm:$0xff]  ;;  %v12895_v26 = vld [vmem:[#allocation12 + $0x80] sm:$0xff] }
 0xbf5   : > { %v9260_v4 = vor.u32 %v10489_v45, %v9257_v31  ;;  %v9388_v37 = vor.u32 %v10521_v24, %v9385_v19 }
 0xbf6   : > { %v3838_v13 = vrot.slane %v3832_v18, 6  ;;  %v3839_v50 = vrot.slane %v3833_v15, 6  ;;  %4548 = vmatpush.bf16.msra.mxu1 %v9292_v48  ;;  %4561 = vmatpush.bf16.msra.mxu3 %v9356_v43  ;;  %v9452_v48 = vor.u32 %v10537_v54, %v9449_v42  ;;  %v12801_v43 = vld [vmem:[#allocation12 + $0x78] sm:$0xff]  ;;  %v12822_v18 = vld [vmem:[#allocation12 + $0x40] sm:$0xff] }
 0xbf7   : > { %v3816_v23 = vpop.f32.mrf.mxu2  ;;  %v12825_v15 = vld [vmem:[#allocation12 + $0x38] sm:$0xff] }
 0xbf8   : > { %4574 = vmatpush.bf16.msra.mxu0 %v9420_v35  ;;  %4587 = vmatpush.bf16.msra.mxu2 %v9484_v59  ;;  %v3859_v58 = vsel %vm3840_vm14, %v3704_v7, %v3838_v13  ;;  %v3863_v60 = vsel %vm3840_vm14, %v3705_v14, %v3839_v50  ;;  %v12804_v35 = vld [vmem:[#allocation12 + $0x70] sm:$0xff]  ;;  %v12843_v14 = vld [vmem:[#allocation12 + $0x18] sm:$0xff]  ;;  %v12845_v13 = vld [vmem:[#allocation12 + $0xe8] sm:$0xff] }
 0xbf9   : > { %4501 = vmatmul.bf16.vlgmr.msrb.gmra.mxu1 %v3859_v58  ;;  %4514 = vmatmul.bf16.vlgmr.msrb.gmra.mxu3 %v3863_v60  ;;  %v12828_v59 = vld [vmem:[#allocation12 + $0x30] sm:$0xff]  ;;  %v12851_v23 = vld [vmem:[#allocation12 + $0xe0] sm:$0xff] }
 0xbfa   : > { %4549 = vmatpush.bf16.msra.mxu1 %v9284_v56  ;;  %4562 = vmatpush.bf16.msra.mxu3 %v9348_v46  ;;  %v12847_v50 = vld [vmem:[#allocation12 + $0x10] sm:$0xff]  ;;  %v12853_v56 = vld [vmem:[#allocation12 + $0x8] sm:$0xff]  ;;  %v12855_v46 = vld [vmem:[#allocation12 + $0xd8] sm:$0xff] }
 0xbfb   : > { %4527 = vmatmul.bf16.vlgmr.msrb.gmra.mxu0 %v12724_v61  ;;  %4540 = vmatmul.bf16.vlgmr.msrb.gmra.mxu2 %v12727_v27  ;;  %v10523_v61 = vld [vmem:[%s14953_s8 + $0x214] sm:$0xf]  ;;  %v9393_v27 = vld [vmem:[%s14953_s8 + $0x218] sm:$0xf0] }
 0xbfc   : > { %4575 = vmatpush.bf16.msra.mxu0 %v9412_v47  ;;  %4588 = vmatpush.bf16.msra.mxu2 %v9476_v2  ;;  %v9396_v33 = vor.u32 %v10523_v61, %v9393_v27 }
 0xbfe   : > { %4550 = vmatpush.bf16.msra.mxu1 %v9276_v39  ;;  %4563 = vmatpush.bf16.msra.mxu3 %v9340_v3 }
 0xc00   : > { %4576 = vmatpush.bf16.msra.mxu0 %v9404_v12  ;;  %4589 = vmatpush.bf16.msra.mxu2 %v9468_v0  ;;  %v4597_v12 = vld [vmem:[#allocation7] sm:$0x3]  ;;  %v12879_v0 = vld [vmem:[#allocation12 + $0xa8] sm:$0xff] }
 0xc01   : > { %v4634_v27 = vperm.slane %v4597_v12, 0 }
 0xc02   : > { %4551 = vmatpush.bf16.msra.mxu1 %v9268_v29  ;;  %4564 = vmatpush.bf16.msra.mxu3 %v9332_v1  ;;  %v12887_v29 = vld [vmem:[#allocation12 + $0x90] sm:$0xff] }
 0xc04   : > { %4577 = vmatpush.bf16.msra.mxu0 %v9396_v33  ;;  %4590 = vmatpush.bf16.msra.mxu2 %v9460_v21  ;;  %v12890_v33 = vld [vmem:[#allocation12 + $0x88] sm:$0xff] }
 0xc06   : > { %4552 = vmatpush.bf16.msra.mxu1 %v9260_v4  ;;  %4565 = vmatpush.bf16.msra.mxu3 %v9324_v63 }
 0xc08   : > { %4578 = vmatpush.bf16.msra.mxu0 %v9388_v37  ;;  %4591 = vmatpush.bf16.msra.mxu2 %v9452_v48 }
 0xc09   : > { %4553 = vmatmul.bf16.vlgmr.msra.gmra.mxu1 %v12735_v30  ;;  %4566 = vmatmul.bf16.vlgmr.msra.gmra.mxu3 %v12738_v49  ;;  %v12813_v30 = vld [vmem:[#allocation12 + $0x58] sm:$0xff]  ;;  %v12815_v49 = vld [vmem:[#allocation12 + $0x50] sm:$0xff] }
 0xc0a   : > { %4654 = vmatpush.msrb.mxu1 %v12801_v43  ;;  %4674 = vmatpush.msrb.mxu3 %v12833_v16 }
 0xc0b   : > { %4579 = vmatmul.bf16.vlgmr.msra.gmra.mxu0 %v3859_v58  ;;  %4592 = vmatmul.bf16.vlgmr.msra.gmra.mxu2 %v3863_v60  ;;  %v12861_v58 = vld [vmem:[#allocation12] sm:$0xff]  ;;  %v12863_v60 = vld [vmem:[#allocation12 + $0xd0] sm:$0xff] }
 0xc0c   : > { %4655 = vmatpush.msrb.mxu1 %v12804_v35  ;;  %4675 = vmatpush.msrb.mxu3 %v12839_v38 }
 0xc0e   : > { %4656 = vmatpush.msrb.mxu1 %v12806_v32  ;;  %4676 = vmatpush.msrb.mxu3 %v12845_v13 }
 0xc10   : > { %4657 = vmatpush.msrb.mxu1 %v12810_v22  ;;  %4677 = vmatpush.msrb.mxu3 %v12851_v23 }
 0xc12   : > { %4658 = vmatpush.msrb.mxu1 %v12813_v30  ;;  %4678 = vmatpush.msrb.mxu3 %v12855_v46 }
 0xc14   : > { %4659 = vmatpush.msrb.mxu1 %v12815_v49  ;;  %4679 = vmatpush.msrb.mxu3 %v12863_v60 }
 0xc16   : > { %4660 = vmatpush.msrb.mxu1 %v12818_v10  ;;  %4680 = vmatpush.msrb.mxu3 %v12867_v25 }
 0xc18   : > { %4661 = vmatpush.msrb.mxu1 %v12822_v18  ;;  %4681 = vmatpush.msrb.mxu3 %v12870_v36 }
 0xc1a   : > { %4662 = vmatpush.msrb.mxu1 %v12825_v15  ;;  %4682 = vmatpush.msrb.mxu3 %v12873_v40 }
 0xc1c   : > { %4663 = vmatpush.msrb.mxu1 %v12828_v59  ;;  %4683 = vmatpush.msrb.mxu3 %v12876_v62 }
 0xc1e   : > { %4664 = vmatpush.msrb.mxu1 %v12831_v53  ;;  %4684 = vmatpush.msrb.mxu3 %v12879_v0 }
 0xc20   : > { %4665 = vmatpush.msrb.mxu1 %v12837_v9  ;;  %4685 = vmatpush.msrb.mxu3 %v12882_v55 }
 0xc22   : > { %4666 = vmatpush.msrb.mxu1 %v12843_v14  ;;  %4686 = vmatpush.msrb.mxu3 %v12885_v20 }
 0xc24   : > { %4667 = vmatpush.msrb.mxu1 %v12847_v50  ;;  %4687 = vmatpush.msrb.mxu3 %v12887_v29 }
 0xc26   : > { %4668 = vmatpush.msrb.mxu1 %v12853_v56  ;;  %4688 = vmatpush.msrb.mxu3 %v12890_v33 }
 0xc28   : > { %4669 = vmatpush.msrb.mxu1 %v12861_v58  ;;  %4689 = vmatpush.msrb.mxu3 %v12895_v26 }
 0xc66   : > { %v4450_v11 = vpop.f32.mrf.mxu1 }
 0xc68   : > { %v4476_v7 = vpop.f32.mrf.mxu0 }
 0xc6c   : > { %v4463_v47 = vpop.f32.mrf.mxu3 }
 0xc6d   : > { %v4464_v34 = vadd.f32 %v4463_v47, %v4450_v11 }
 0xc6e   : > { %v4489_v51 = vpop.f32.mrf.mxu2  ;;  %v4452_v52 = vpop.f32.mrf.mxu1 }
 0xc6f   : > { %v4477_v44 = vadd.f32 %v4476_v7, %v4464_v34 }
 0xc70   : > { %v4478_v2 = vpop.f32.mrf.mxu0 }
 0xc71   : > { %v4490_v17 = vadd.f32 %v4489_v51, %v4477_v44 }
 0xc74   : > { %v4465_v41 = vpop.f32.mrf.mxu3 }
 0xc76   : > { %v4491_v39 = vpop.f32.mrf.mxu2  ;;  %v4502_v3 = vpop.f32.mrf.mxu1 }
 0xc77   : > { %v4503_v61 = vadd.f32 %v4502_v3, %v4490_v17  ;;  %v4635_v3 = vperm.slane %v4597_v12, 1 }
 0xc78   : > { %v4528_v8 = vpop.f32.mrf.mxu0 }
 0xc7c   : > { %v4515_v57 = vpop.f32.mrf.mxu3 }
 0xc7d   : > { %v4516_v1 = vadd.f32 %v4515_v57, %v4503_v61 }
 0xc7e   : > { %v4541_v45 = vpop.f32.mrf.mxu2  ;;  %v4504_v31 = vpop.f32.mrf.mxu1 }
 0xc7f   : > { %v12892_v21 = vadd.f32 %v4634_v27, %v4516_v1  ;;  %v4542_v7 = vadd.f32 %v4541_v45, %v4528_v8 }
 0xc80   : > { %v4530_v28 = vpop.f32.mrf.mxu0 }
 0xc81   : > { %v4640_v24 = vsel %vm1526_vm6, %v12892_v21, 0.0 }
 0xc82   : > { %v4641_v19 = vrot.slane %v4640_v24, 4 }
 0xc84   : > { %v4642_v54 = vadd.f32 %v4641_v19, %v4640_v24  ;;  %v4517_v42 = vpop.f32.mrf.mxu3 }
 0xc85   : > { %v12906_v42 = vld [vmem:[%s14954_s23] sm:$0xff]  ;;  %s14434_s23 = scalar_lea.vmem %s15098_s10, %s10340_s26 }
 0xc86   : > { %v4543_v4 = vpop.f32.mrf.mxu2  ;;  %v4643_v63 = vrot.slane %v4642_v54, 2  ;;  %v4554_v37 = vpop.f32.mrf.mxu1  ;;  %4696 = vst [vmem:[#allocation1] ss:$2 sm:$0xff] %v12906_v42 }
 0xc87   : > { %v4555_v51 = vadd.f32 %v4554_v37, %v4542_v7 }
 0xc88   : > { %v4580_v48 = vpop.f32.mrf.mxu0  ;;  %v4644_v11 = vadd.f32 %v4643_v63, %v4642_v54 }
 0xc8a   : > { %v4645_v47 = vrot.slane %v4644_v11, 1 }
 0xc8c   : > { %v4646_v52 = vadd.f32 %v4645_v47, %v4644_v11  ;;  %v4567_v2 = vpop.f32.mrf.mxu3 }
 0xc8d   : > { %v4568_v34 = vadd.f32 %v4567_v2, %v4555_v51  ;;  %v4697_v12 = vld.sshfl [vmem:[#allocation1] sm:$0xff pattern:$0x75316420]  ;;  %v4698_v4 = vld.sshfl [vmem:[#allocation1 + $0x8] sm:$0xff pattern:$0x75316420] }
 0xc8e   : > { %v4593_v41 = vpop.f32.mrf.mxu2  ;;  %4670 = vmatmul.f32.vlgmr.msrb.gmra.mxu1 %v4646_v52  ;;  %v4556_v44 = vpop.f32.mrf.mxu1  ;;  %9509 = vmatpush.msk.msrb.mxu0 %vm1526_vm6, %v4697_v12  ;;  %4818 = vst [vmem:[#allocation1] ss:$2 sm:$0xff] %v12906_v42 }
 0xc8f   : > { %v4581_v39 = vadd.f32 %v4580_v48, %v4568_v34  ;;  %9511 = vmatpush.msk.msrb.mxu2 %vm1526_vm6, %v4698_v4 }
 0xc90   : > { %v4582_v17 = vpop.f32.mrf.mxu0  ;;  %4766 = vmatpush.msra.mxu0 %v12801_v43 }
 0xc91   : > { %v4594_v61 = vadd.f32 %v4593_v41, %v4581_v39  ;;  %4786 = vmatpush.msra.mxu2 %v12833_v16 }
 0xc92   : > { %4767 = vmatpush.msra.mxu0 %v12804_v35 }
 0xc93   : > { %v12901_v27 = vadd.f32 %v4635_v3, %v4594_v61  ;;  %4787 = vmatpush.msra.mxu2 %v12839_v38 }
 0xc94   : > { %v4569_v57 = vpop.f32.mrf.mxu3  ;;  %4768 = vmatpush.msra.mxu0 %v12806_v32 }
 0xc95   : > { %v4647_v1 = vsel %vm1526_vm6, %v12901_v27, 0.0  ;;  %4788 = vmatpush.msra.mxu2 %v12845_v13  ;;  %v4819_v4 = vld.sshfl [vmem:[#allocation1] sm:$0xff pattern:$0x75316420] }
 0xc96   : > { %v4595_v8 = vpop.f32.mrf.mxu2  ;;  %v4648_v45 = vrot.slane %v4647_v1, 4  ;;  %4769 = vmatpush.msra.mxu0 %v12810_v22  ;;  %9513 = vmatpush.msk.msra.mxu1 %vm1526_vm6, %v4819_v4 }
 0xc97   : > { %4789 = vmatpush.msra.mxu2 %v12851_v23 }
 0xc98   : > { %v4649_v31 = vadd.f32 %v4648_v45, %v4647_v1  ;;  %4770 = vmatpush.msra.mxu0 %v12813_v30  ;;  %4908 = vmatpush.msrb.mxu1 %v12801_v43 }
 0xc99   : > { %4790 = vmatpush.msra.mxu2 %v12855_v46 }
 0xc9a   : > { %v4650_v28 = vrot.slane %v4649_v31, 2  ;;  %4771 = vmatpush.msra.mxu0 %v12815_v49  ;;  %4909 = vmatpush.msrb.mxu1 %v12804_v35 }
 0xc9b   : > { %4791 = vmatpush.msra.mxu2 %v12863_v60 }
 0xc9c   : > { %v4651_v24 = vadd.f32 %v4650_v28, %v4649_v31  ;;  %4772 = vmatpush.msra.mxu0 %v12818_v10  ;;  %4910 = vmatpush.msrb.mxu1 %v12806_v32 }
 0xc9d   : > { %4792 = vmatpush.msra.mxu2 %v12867_v25 }
 0xc9e   : > { %v4652_v19 = vrot.slane %v4651_v24, 1  ;;  %4773 = vmatpush.msra.mxu0 %v12822_v18  ;;  %4911 = vmatpush.msrb.mxu1 %v12810_v22 }
 0xc9f   : > { %4793 = vmatpush.msra.mxu2 %v12870_v36 }
 0xca0   : > { %v4653_v54 = vadd.f32 %v4652_v19, %v4651_v24  ;;  %4774 = vmatpush.msra.mxu0 %v12825_v15  ;;  %4912 = vmatpush.msrb.mxu1 %v12813_v30 }
 0xca1   : > { %4794 = vmatpush.msra.mxu2 %v12873_v40 }
 0xca2   : > { %4690 = vmatmul.f32.vlgmr.msrb.gmra.mxu3 %v4653_v54  ;;  %4775 = vmatpush.msra.mxu0 %v12828_v59 }
 0xca3   : > { %4795 = vmatpush.msra.mxu2 %v12876_v62  ;;  %4913 = vmatpush.msrb.mxu1 %v12815_v49 }
 0xca4   : > { %4776 = vmatpush.msra.mxu0 %v12831_v53 }
 0xca5   : > { %4796 = vmatpush.msra.mxu2 %v12879_v0  ;;  %4914 = vmatpush.msrb.mxu1 %v12818_v10 }
 0xca6   : > { %4777 = vmatpush.msra.mxu0 %v12837_v9 }
 0xca7   : > { %4797 = vmatpush.msra.mxu2 %v12882_v55  ;;  %4915 = vmatpush.msrb.mxu1 %v12822_v18 }
 0xca8   : > { %4778 = vmatpush.msra.mxu0 %v12843_v14 }
 0xca9   : > { %4798 = vmatpush.msra.mxu2 %v12885_v20  ;;  %4916 = vmatpush.msrb.mxu1 %v12825_v15 }
 0xcaa   : > { %4779 = vmatpush.msra.mxu0 %v12847_v50 }
 0xcab   : > { %4799 = vmatpush.msra.mxu2 %v12887_v29  ;;  %4917 = vmatpush.msrb.mxu1 %v12828_v59 }
 0xcac   : > { %4780 = vmatpush.msra.mxu0 %v12853_v56 }
 0xcad   : > { %4800 = vmatpush.msra.mxu2 %v12890_v33  ;;  %4918 = vmatpush.msrb.mxu1 %v12831_v53 }
 0xcae   : > { %4781 = vmatpush.msra.mxu0 %v12861_v58 }
 0xcaf   : > { %4801 = vmatpush.msra.mxu2 %v12895_v26  ;;  %4919 = vmatpush.msrb.mxu1 %v12837_v9 }
 0xcb1   : > { %4920 = vmatpush.msrb.mxu1 %v12843_v14 }
 0xcb3   : > { %4921 = vmatpush.msrb.mxu1 %v12847_v50 }
 0xcb5   : > { %4922 = vmatpush.msrb.mxu1 %v12853_v56 }
 0xcb7   : > { %4923 = vmatpush.msrb.mxu1 %v12861_v58 }
 0xd0b   : > { %v4671_v63 = vpop.f32.mrf.mxu1 }
 0xd25   : > { %v4691_v37 = vpop.f32.mrf.mxu3 }
 0xd26   : > { %v4692_v48 = vadd.f32 %v4691_v37, %v4671_v63  ;;  %v4820_v63 = vld.sshfl [vmem:[#allocation1 + $0x8] sm:$0xff pattern:$0x75316420] }
 0xd27   : > { %9515 = vmatpush.msk.msra.mxu3 %vm1526_vm6, %v4820_v63  ;;  %4949 = vst [vmem:[#allocation1] ss:$2 sm:$0xff] %v12906_v42 }
 0xd28   : > { %v4694_v11 = vmul.f32 0.00390625, %v4692_v48 }
 0xd29   : > { %4928 = vmatpush.msrb.mxu3 %v12833_v16 }
 0xd2a   : > { %9510 = vmatmul.msk.f32.vlgmr.msrb.gmra.mxu0 %vm1522_vm7, %v4694_v11  ;;  %9512 = vmatmul.msk.f32.vlgmr.msrb.gmra.mxu2 %vm1522_vm7, %v4694_v11 }
 0xd2b   : > { %4929 = vmatpush.msrb.mxu3 %v12839_v38 }
 0xd2d   : > { %4930 = vmatpush.msrb.mxu3 %v12845_v13 }
 0xd2e   : > { %v4950_v37 = vld.sshfl [vmem:[#allocation1] sm:$0xff pattern:$0x75316420]  ;;  %v4951_v48 = vld.sshfl [vmem:[#allocation1 + $0x8] sm:$0xff pattern:$0x75316420] }
 0xd2f   : > { %4931 = vmatpush.msrb.mxu3 %v12851_v23  ;;  %5077 = vst [vmem:[#allocation1] ss:$2 sm:$0xff] %v12906_v42  ;;  %9517 = vmatpush.msk.msrb.mxu0 %vm1526_vm6, %v4950_v37 }
 0xd30   : > { %9519 = vmatpush.msk.msrb.mxu2 %vm1526_vm6, %v4951_v48 }
 0xd31   : > { %4932 = vmatpush.msrb.mxu3 %v12855_v46 }
 0xd33   : > { %4933 = vmatpush.msrb.mxu3 %v12863_v60 }
 0xd35   : > { %4934 = vmatpush.msrb.mxu3 %v12867_v25 }
 0xd37   : > { %4935 = vmatpush.msrb.mxu3 %v12870_v36 }
 0xd39   : > { %4936 = vmatpush.msrb.mxu3 %v12873_v40 }
 0xd3b   : > { %4937 = vmatpush.msrb.mxu3 %v12876_v62 }
 0xd3d   : > { %4938 = vmatpush.msrb.mxu3 %v12879_v0 }
 0xd3f   : > { %4939 = vmatpush.msrb.mxu3 %v12882_v55 }
 0xd41   : > { %4940 = vmatpush.msrb.mxu3 %v12885_v20 }
 0xd43   : > { %4941 = vmatpush.msrb.mxu3 %v12887_v29 }
 0xd45   : > { %4942 = vmatpush.msrb.mxu3 %v12890_v33 }
 0xd47   : > { %4943 = vmatpush.msrb.mxu3 %v12895_v26 }
 0xda7   : > { %v4723_v7 = vpop.f32.mrf.mxu0 }
 0xda8   : > { %v4746_v47 = vperm.slane %v4723_v7, 0 }
 0xdaa   : > { %v12947_v51 = vsub.f32 %v12892_v21, %v4746_v47 }
 0xdac   : > { %v4750_v52 = vmul.f32 %v12947_v51, %v12947_v51 }
 0xdad   : > { %v4743_v2 = vpop.f32.mrf.mxu2 }
 0xdae   : > { %v4752_v34 = vsel %vm1526_vm6, %v4750_v52, 0.0  ;;  %v4747_v41 = vperm.slane %v4743_v2, 0 }
 0xdaf   : > { %v4753_v44 = vrot.slane %v4752_v34, 4 }
 0xdb0   : > { %v12953_v39 = vsub.f32 %v12901_v27, %v4747_v41 }
 0xdb1   : > { %v4754_v3 = vadd.f32 %v4753_v44, %v4752_v34 }
 0xdb2   : > { %v4751_v17 = vmul.f32 %v12953_v39, %v12953_v39 }
 0xdb3   : > { %v4755_v61 = vrot.slane %v4754_v3, 2 }
 0xdb4   : > { %v4759_v57 = vsel %vm1526_vm6, %v4751_v17, 0.0 }
 0xdb5   : > { %v4756_v1 = vadd.f32 %v4755_v61, %v4754_v3  ;;  %v4760_v8 = vrot.slane %v4759_v57, 4 }
 0xdb7   : > { %v4757_v45 = vrot.slane %v4756_v1, 1  ;;  %v4761_v31 = vadd.f32 %v4760_v8, %v4759_v57 }
 0xdb9   : > { %v4762_v28 = vrot.slane %v4761_v31, 2  ;;  %v4758_v24 = vadd.f32 %v4757_v45, %v4756_v1 }
 0xdbb   : > { %v4763_v19 = vadd.f32 %v4762_v28, %v4761_v31  ;;  %4782 = vmatmul.f32.vlgmr.msra.gmra.mxu0 %v4758_v24 }
 0xdbc   : > { %5025 = vmatpush.msra.mxu0 %v12801_v43 }
 0xdbd   : > { %v4764_v54 = vrot.slane %v4763_v19, 1 }
 0xdbe   : > { %5026 = vmatpush.msra.mxu0 %v12804_v35 }
 0xdbf   : > { %v4765_v12 = vadd.f32 %v4764_v54, %v4763_v19 }
 0xdc0   : > { %5027 = vmatpush.msra.mxu0 %v12806_v32 }
 0xdc1   : > { %4802 = vmatmul.f32.vlgmr.msra.gmra.mxu2 %v4765_v12 }
 0xdc2   : > { %5045 = vmatpush.msra.mxu2 %v12833_v16  ;;  %5028 = vmatpush.msra.mxu0 %v12810_v22 }
 0xdc4   : > { %5046 = vmatpush.msra.mxu2 %v12839_v38  ;;  %5029 = vmatpush.msra.mxu0 %v12813_v30  ;;  %v4890_v38 = vrot.slane %v12892_v21, 4 }
 0xdc6   : > { %5047 = vmatpush.msra.mxu2 %v12845_v13  ;;  %v4891_v13 = vrot.slane %v12901_v27, 4  ;;  %5030 = vmatpush.msra.mxu0 %v12815_v49 }
 0xdc8   : > { %5048 = vmatpush.msra.mxu2 %v12851_v23  ;;  %5031 = vmatpush.msra.mxu0 %v12818_v10  ;;  %v4894_v23 = vsel %vm1526_vm6, %v4890_v38, 0.0  ;;  %v4901_v30 = vsel %vm1526_vm6, %v4891_v13, 0.0 }
 0xdc9   : > { %v4895_v49 = vrot.slane %v4894_v23, 4 }
 0xdca   : > { %5049 = vmatpush.msra.mxu2 %v12855_v46  ;;  %5032 = vmatpush.msra.mxu0 %v12822_v18  ;;  %v4902_v46 = vrot.slane %v4901_v30, 4 }
 0xdcc   : > { %5050 = vmatpush.msra.mxu2 %v12863_v60  ;;  %5033 = vmatpush.msra.mxu0 %v12825_v15  ;;  %v4903_v18 = vadd.f32 %v4902_v46, %v4901_v30 }
 0xdce   : > { %5051 = vmatpush.msra.mxu2 %v12867_v25  ;;  %5034 = vmatpush.msra.mxu0 %v12828_v59  ;;  %v4896_v25 = vadd.f32 %v4895_v49, %v4894_v23 }
 0xdd0   : > { %5052 = vmatpush.msra.mxu2 %v12870_v36  ;;  %5035 = vmatpush.msra.mxu0 %v12831_v53  ;;  %v4897_v59 = vrot.slane %v4896_v25, 2  ;;  %v4904_v36 = vrot.slane %v4903_v18, 2 }
 0xdd2   : > { %5053 = vmatpush.msra.mxu2 %v12873_v40  ;;  %5036 = vmatpush.msra.mxu0 %v12837_v9  ;;  %v4898_v9 = vadd.f32 %v4897_v59, %v4896_v25 }
 0xdd4   : > { %5054 = vmatpush.msra.mxu2 %v12876_v62  ;;  %5037 = vmatpush.msra.mxu0 %v12843_v14  ;;  %v4905_v62 = vadd.f32 %v4904_v36, %v4903_v18 }
 0xdd6   : > { %5055 = vmatpush.msra.mxu2 %v12879_v0  ;;  %5038 = vmatpush.msra.mxu0 %v12847_v50  ;;  %v4899_v50 = vrot.slane %v4898_v9, 1  ;;  %v4906_v0 = vrot.slane %v4905_v62, 1 }
 0xdd8   : > { %5056 = vmatpush.msra.mxu2 %v12882_v55  ;;  %5039 = vmatpush.msra.mxu0 %v12853_v56  ;;  %v4900_v55 = vadd.f32 %v4899_v50, %v4898_v9  ;;  %v5078_v56 = vld.sshfl [vmem:[#allocation1] sm:$0xff pattern:$0x75316420] }
 0xdda   : > { %5057 = vmatpush.msra.mxu2 %v12885_v20  ;;  %5040 = vmatpush.msra.mxu0 %v12861_v58  ;;  %v4907_v20 = vadd.f32 %v4906_v0, %v4905_v62 }
 0xddc   : > { %5058 = vmatpush.msra.mxu2 %v12887_v29  ;;  %v5079_v29 = vld.sshfl [vmem:[#allocation1 + $0x8] sm:$0xff pattern:$0x75316420] }
 0xdde   : > { %5059 = vmatpush.msra.mxu2 %v12890_v33  ;;  %v13036_v33 = vld [vmem:[#allocation9] sm:$0x3] }
 0xddf   : > { %v4873_v7 = vperm.slane %v13036_v33, 0  ;;  %v4874_v44 = vperm.slane %v13036_v33, 1 }
 0xde0   : > { %5060 = vmatpush.msra.mxu2 %v12895_v26  ;;  %v13038_v26 = vld [vmem:[#allocation10] sm:$0x3] }
 0xde1   : > { %v4880_v52 = vperm.slane %v13038_v26, 0  ;;  %v4881_v57 = vperm.slane %v13038_v26, 1 }
 0xe38   : > { %v4783_v43 = vpop.f32.mrf.mxu0 }
 0xe44   : > { %v4803_v16 = vpop.f32.mrf.mxu2 }
 0xe45   : > { %v4804_v35 = vadd.f32 %v4803_v16, %v4783_v43 }
 0xe47   : > { %v4806_v32 = vmul.f32 0.00390625, %v4804_v35 }
 0xe49   : > { %v4807_v22 = vadd.f32 1e-05, %v4806_v32 }
 0xe4b   : > { %10869 = vrsqrt.f32 %v4807_v22  ;;  %vm4814_vm1 = vweird.f32 %v4807_v22 }
 0xe51   : > { %v10870_v10 = vpop.eup %10869 }
 0xe52   : > { %v4809_v60 = vmul.f32 %v10870_v10, %v4807_v22  ;;  %vm4815_vm15 = vweird.f32 %v10870_v10 }
 0xe53   : > { %vm4816_vm0 = vmor %vm4814_vm1, %vm4815_vm15  ;;  %vm8125_vm15 = vcmask 523264   ;;  %vm8150_vm1 = vcmask 253952  }
 0xe54   : > { %v4810_v42 = vmul.f32 %v10870_v10, %v4809_v60 }
 0xe56   : > { %v4811_v15 = vmul.f32 0.5, %v4810_v42 }
 0xe58   : > { %v4812_v40 = vsub.f32 1.5, %v4811_v15 }
 0xe5a   : > { %v4813_v53 = vmul.f32 %v10870_v10, %v4812_v40 }
 0xe5c   : > { %v4817_v14 = vsel %vm4816_vm0, %v10870_v10, %v4813_v53 }
 0xe5d   : > { %9514 = vmatmul.msk.f32.vlgmr.msra.gmra.mxu1 %vm1522_vm7, %v4817_v14  ;;  %9516 = vmatmul.msk.f32.vlgmr.msra.gmra.mxu3 %vm1522_vm7, %v4817_v14 }
 0xe5e   : > { %9521 = vmatpush.msk.msra.mxu1 %vm1526_vm6, %v5078_v56  ;;  %9523 = vmatpush.msk.msra.mxu3 %vm1526_vm6, %v5079_v29 }
 0xe65   : > { %4924 = vmatmul.f32.vlgmr.msrb.gmra.mxu1 %v4900_v55  ;;  %4944 = vmatmul.f32.vlgmr.msrb.gmra.mxu3 %v4907_v20 }
 0xeda   : > { %v4845_v58 = vpop.f32.mrf.mxu1 }
 0xedb   : > { %v4868_v11 = vperm.slane %v4845_v58, 0  ;;  %v13073_v58 = vld [vmem:[%s14955_s22] sm:$0xf]  ;;  %s15163_s22 = sld [smem:[#allocation33_spill]] }
 0xedd   : > { %v4870_v47 = vmul.f32 %v4868_v11, %v12947_v51  ;;  %v9645_v11 = vld [vmem:[%s14956_s6 + $0xe0] sm:$0xf] }
 0xedf   : > { %v4877_v2 = vmul.f32 %v4873_v7, %v4870_v47  ;;  %v10583_v47 = vld [vmem:[%s14956_s6 + $0xec] sm:$0xf0] }
 0xee0   : > { %v4865_v34 = vpop.f32.mrf.mxu3 }
 0xee1   : > { %v4869_v41 = vperm.slane %v4865_v34, 0  ;;  %v4884_v3 = vadd.f32 %v4880_v52, %v4877_v2  ;;  %v9773_v2 = vld [vmem:[%s14956_s6 + $0x1e0] sm:$0xf]  ;;  %v9646_v34 = vor.u32 %v10583_v47, %v9645_v11  ;;  %v10567_v11 = vld [vmem:[%s14956_s6 + $0x6c] sm:$0xf0] }
 0xee2   : > { %v4925_v31 = vpop.f32.mrf.mxu1  ;;  %v9709_v47 = vld [vmem:[%s14956_s6 + $0x160] sm:$0xf] }
 0xee3   : > { %v4871_v17 = vmul.f32 %v4869_v41, %v12953_v39  ;;  %v4886_v61 = vmax.f32 %v4884_v3, 0.0  ;;  %v10615_v41 = vld [vmem:[%s14956_s6 + $0x1ec] sm:$0xf0]  ;;  %v9629_v3 = vld [vmem:[%s14956_s6 + $0xc0] sm:$0xf] }
 0xee5   : > { %v4878_v51 = vmul.f32 %v4874_v44, %v4871_v17  ;;  %v5137_v1 = vpack.c.bf16 %v4886_v61, %v4886_v61  ;;  %v10579_v17 = vld [vmem:[%s14956_s6 + $0xcc] sm:$0xf0]  ;;  %v9774_v61 = vor.u32 %v10615_v41, %v9773_v2  ;;  %v9853_v41 = vld [vmem:[%s14956_s6 + $0x280] sm:$0xf] }
 0xee7   : > { %v5144_v8 = vsel %vm3840_vm14, %v5137_v1, 0  ;;  %v4885_v45 = vadd.f32 %v4881_v57, %v4878_v51  ;;  %v9757_v51 = vld [vmem:[%s14956_s6 + $0x1c0] sm:$0xf]  ;;  %v10611_v1 = vld [vmem:[%s14956_s6 + $0x1cc] sm:$0xf0] }
 0xee8   : > { %v4945_v28 = vpop.f32.mrf.mxu3  ;;  %5156 = vmatpush.bf16.msrb.mxu1 %v5144_v8  ;;  %v9630_v8 = vor.u32 %v10579_v17, %v9629_v3  ;;  %v10635_v3 = vld [vmem:[%s14956_s6 + $0x28c] sm:$0xf0] }
 0xee9   : > { %v4946_v24 = vadd.f32 %v4945_v28, %v4925_v31  ;;  %v4887_v19 = vmax.f32 %v4885_v45, 0.0  ;;  %v9758_v45 = vor.u32 %v10611_v1, %v9757_v51  ;;  %v9613_v31 = vld [vmem:[%s14956_s6 + $0xa0] sm:$0xf]  ;;  %v10575_v28 = vld [vmem:[%s14956_s6 + $0xac] sm:$0xf0] }
 0xeea   : > { %v10667_v51 = vld [vmem:[%s14956_s6 + $0x38c] sm:$0xf0]  ;;  %v9565_v1 = vld [vmem:[%s14956_s6 + $0x40] sm:$0xf] }
 0xeeb   : > { %v4948_v54 = vmul.f32 0.00390625, %v4946_v24  ;;  %v5138_v12 = vpack.c.bf16 %v4887_v19, %v4887_v19  ;;  %v9741_v24 = vld [vmem:[%s14956_s6 + $0x1a0] sm:$0xf]  ;;  %v10607_v19 = vld [vmem:[%s14956_s6 + $0x1ac] sm:$0xf0] }
 0xeed   : > { %9518 = vmatmul.msk.f32.vlgmr.msrb.gmra.mxu0 %vm1522_vm7, %v4948_v54  ;;  %9520 = vmatmul.msk.f32.vlgmr.msrb.gmra.mxu2 %vm1522_vm7, %v4948_v54  ;;  %v5147_v39 = vsel %vm3840_vm14, %v5138_v12, 0  ;;  %v9614_v12 = vor.u32 %v10575_v28, %v9613_v31  ;;  %v9693_v31 = vld [vmem:[%s14956_s6 + $0x140] sm:$0xf]  ;;  %v10595_v28 = vld [vmem:[%s14956_s6 + $0x14c] sm:$0xf0] }
 0xeee   : > { %5169 = vmatpush.bf16.msrb.mxu3 %v5147_v39  ;;  %6481 = vmatpush.bf16.msrb.mxu0 %v9646_v34  ;;  %v10599_v34 = vld [vmem:[%s14956_s6 + $0x16c] sm:$0xf0] }
 0xeef   : > { %6495 = vmatpush.bf16.msrb.mxu2 %v9774_v61  ;;  %v9710_v17 = vor.u32 %v10599_v34, %v9709_v47  ;;  %v9981_v61 = vld [vmem:[%s14956_s6 + $0x380] sm:$0xf]  ;;  %v10619_v47 = vld [vmem:[%s14956_s6 + $0x20c] sm:$0xf0] }
 0xef2   : > { %6482 = vmatpush.bf16.msrb.mxu0 %v9630_v8  ;;  %v9982_v8 = vor.u32 %v10667_v51, %v9981_v61  ;;  %v9647_v61 = vld [vmem:[%s14956_s6 + $0xf0] sm:$0xf0]  ;;  %v10613_v51 = vld [vmem:[%s14956_s6 + $0x1e4] sm:$0xf] }
 0xef3   : > { %6496 = vmatpush.bf16.msrb.mxu2 %v9758_v45  ;;  %v10563_v45 = vld [vmem:[%s14956_s6 + $0x4c] sm:$0xf0] }
 0xef6   : > { %6483 = vmatpush.bf16.msrb.mxu0 %v9614_v12  ;;  %v10631_v12 = vld [vmem:[%s14956_s6 + $0x26c] sm:$0xf0] }
 0xf6a   : > { %v4976_v4 = vpop.f32.mrf.mxu0 }
 0xf6b   : > { %v4999_v63 = vperm.slane %v4976_v4, 0  ;;  %v9742_v4 = vor.u32 %v10607_v19, %v9741_v24  ;;  %v9566_v24 = vor.u32 %v10563_v45, %v9565_v1  ;;  %v9694_v19 = vor.u32 %v10595_v28, %v9693_v31  ;;  %v10125_v45 = vld [vmem:[%s14956_s6 + $0x4a0] sm:$0xf]  ;;  %v10703_v31 = vld [vmem:[%s14956_s6 + $0x4ac] sm:$0xf0] }
 0xf6d   : > { %v13059_v37 = vsub.f32 %v12892_v21, %v4999_v63  ;;  %v9597_v63 = vld [vmem:[%s14956_s6 + $0x80] sm:$0xf]  ;;  %6497 = vmatpush.bf16.msrb.mxu2 %v9742_v4 }
 0xf6f   : > { %v5003_v48 = vmul.f32 %v13059_v37, %v13059_v37 }
 0xf70   : > { %v4996_v43 = vpop.f32.mrf.mxu2 }
 0xf71   : > { %v5007_v16 = vrot.slane %v5003_v48, 4  ;;  %v5000_v35 = vperm.slane %v4996_v43, 0  ;;  %v10571_v48 = vld [vmem:[%s14956_s6 + $0x8c] sm:$0xf0]  ;;  %v9725_v43 = vld [vmem:[%s14956_s6 + $0x180] sm:$0xf] }
 0xf73   : > { %v5011_v32 = vsel %vm1526_vm6, %v5007_v16, 0.0  ;;  %v13065_v38 = vsub.f32 %v12901_v27, %v5000_v35  ;;  %v10603_v16 = vld [vmem:[%s14956_s6 + $0x18c] sm:$0xf0] }
 0xf74   : > { %v5012_v13 = vrot.slane %v5011_v32, 4 }
 0xf75   : > { %v5004_v22 = vmul.f32 %v13065_v38, %v13065_v38 }
 0xf76   : > { %v5013_v23 = vadd.f32 %v5012_v13, %v5011_v32  ;;  %v9598_v32 = vor.u32 %v10571_v48, %v9597_v63  ;;  %v10663_v63 = vld [vmem:[%s14956_s6 + $0x36c] sm:$0xf0]  ;;  %v9549_v48 = vld [vmem:[%s14956_s6 + $0x20] sm:$0xf] }
 0xf77   : > { %v5008_v30 = vrot.slane %v5004_v22, 4  ;;  %v9726_v22 = vor.u32 %v10603_v16, %v9725_v43  ;;  %v10559_v43 = vld [vmem:[%s14956_s6 + $0x2c] sm:$0xf0] }
 0xf78   : > { %v5014_v49 = vrot.slane %v5013_v23, 2  ;;  %6484 = vmatpush.bf16.msrb.mxu0 %v9598_v32  ;;  %v10591_v32 = vld [vmem:[%s14956_s6 + $0x12c] sm:$0xf0] }
 0xf79   : > { %v5018_v21 = vsel %vm1526_vm6, %v5008_v30, 0.0  ;;  %6498 = vmatpush.bf16.msrb.mxu2 %v9726_v22  ;;  %v9550_v22 = vor.u32 %v10559_v43, %v9549_v48  ;;  %v9759_v48 = vld [vmem:[%s14956_s6 + $0x1d0] sm:$0xf0] }
 0xf7a   : > { %v5015_v46 = vadd.f32 %v5014_v49, %v5013_v23  ;;  %v5019_v10 = vrot.slane %v5018_v21, 4 }
 0xf7c   : > { %v5016_v60 = vrot.slane %v5015_v46, 1  ;;  %v5020_v25 = vadd.f32 %v5019_v10, %v5018_v21  ;;  %v10647_v10 = vld [vmem:[%s14956_s6 + $0x2ec] sm:$0xf0] }
 0xf7d   : > { %6499 = vmatpush.bf16.msrb.mxu2 %v9710_v17 }
 0xf7e   : > { %v5021_v18 = vrot.slane %v5020_v25, 2  ;;  %v5017_v42 = vadd.f32 %v5016_v60, %v5015_v46  ;;  %v9901_v46 = vld [vmem:[%s14956_s6 + $0x2e0] sm:$0xf] }
 0xf80   : > { %v5022_v15 = vadd.f32 %v5021_v18, %v5020_v25  ;;  %5041 = vmatmul.f32.vlgmr.msra.gmra.mxu0 %v5017_v42  ;;  %v9885_v42 = vld [vmem:[%s14956_s6 + $0x2c0] sm:$0xf] }
 0xf81   : > { %6500 = vmatpush.bf16.msrb.mxu2 %v9694_v19  ;;  %v10253_v19 = vld [vmem:[%s14956_s6 + $0x5a0] sm:$0xf] }
 0xf82   : > { %v5023_v59 = vrot.slane %v5022_v15, 1 }
 0xf84   : > { %v5024_v27 = vadd.f32 %v5023_v59, %v5022_v15 }
 0xf86   : > { %5061 = vmatmul.f32.vlgmr.msra.gmra.mxu2 %v5024_v27  ;;  %v10029_v27 = vld [vmem:[%s14956_s6 + $0x3e0] sm:$0xf] }
 0xffd   : > { %v5042_v36 = vpop.f32.mrf.mxu0 }
0x1009   : > { %v5062_v40 = vpop.f32.mrf.mxu2 }
0x100a   : > { %v5063_v53 = vadd.f32 %v5062_v40, %v5042_v36  ;;  %v10679_v36 = vld [vmem:[%s14956_s6 + $0x3ec] sm:$0xf0]  ;;  %v9869_v40 = vld [vmem:[%s14956_s6 + $0x2a0] sm:$0xf] }
0x100c   : > { %v5065_v9 = vmul.f32 0.00390625, %v5063_v53  ;;  %v10639_v53 = vld [vmem:[%s14956_s6 + $0x2ac] sm:$0xf0] }
0x100e   : > { %v5066_v62 = vadd.f32 1e-05, %v5065_v9  ;;  %v10013_v9 = vld [vmem:[%s14956_s6 + $0x3c0] sm:$0xf] }
0x1010   : > { %10871 = vrsqrt.f32 %v5066_v62  ;;  %vm5073_vm3 = vweird.f32 %v5066_v62 }
0x1016   : > { %v10872_v14 = vpop.eup %10871 }
0x1017   : > { %v5068_v50 = vmul.f32 %v10872_v14, %v5066_v62  ;;  %vm5074_vm2 = vweird.f32 %v10872_v14  ;;  %v10675_v62 = vld [vmem:[%s14956_s6 + $0x3cc] sm:$0xf0] }
0x1018   : > { %vm5075_vm4 = vmor %vm5073_vm3, %vm5074_vm2 }
0x1019   : > { %v5069_v0 = vmul.f32 %v10872_v14, %v5068_v50  ;;  %v9870_v50 = vor.u32 %v10639_v53, %v9869_v40 }
0x101b   : > { %v5070_v55 = vmul.f32 0.5, %v5069_v0  ;;  %v10014_v0 = vor.u32 %v10675_v62, %v10013_v9 }
0x101d   : > { %v5071_v20 = vsub.f32 1.5, %v5070_v55  ;;  %v9997_v55 = vld [vmem:[%s14956_s6 + $0x3a0] sm:$0xf] }
0x101f   : > { %v5072_v56 = vmul.f32 %v10872_v14, %v5071_v20  ;;  %v10671_v20 = vld [vmem:[%s14956_s6 + $0x3ac] sm:$0xf0] }
0x1021   : > { %v5076_v29 = vsel %vm5075_vm4, %v10872_v14, %v5072_v56  ;;  %v9998_v56 = vor.u32 %v10671_v20, %v9997_v55  ;;  %v10707_v55 = vld [vmem:[%s14956_s6 + $0x4cc] sm:$0xf0]  ;;  %v10269_v20 = vld [vmem:[%s14956_s6 + $0x5c0] sm:$0xf] }
0x1022   : > { %9522 = vmatmul.msk.f32.vlgmr.msra.gmra.mxu1 %vm1522_vm7, %v5076_v29  ;;  %9524 = vmatmul.msk.f32.vlgmr.msra.gmra.mxu3 %vm1522_vm7, %v5076_v29  ;;  %v9581_v29 = vld [vmem:[%s14956_s6 + $0x60] sm:$0xf] }
0x1023   : > { %v9582_v2 = vor.u32 %v10567_v11, %v9581_v29  ;;  %v10739_v29 = vld [vmem:[%s14956_s6 + $0x5cc] sm:$0xf0]  ;;  %v9789_v11 = vld [vmem:[%s14956_s6 + $0x200] sm:$0xf] }
0x1024   : > { %v9790_v34 = vor.u32 %v10619_v47, %v9789_v11  ;;  %v9711_v11 = vld [vmem:[%s14956_s6 + $0x170] sm:$0xf0] }
0x1025   : > { %6485 = vmatpush.bf16.msrb.mxu0 %v9582_v2  ;;  %v10270_v2 = vor.u32 %v10739_v29, %v10269_v20  ;;  %v10597_v20 = vld [vmem:[%s14956_s6 + $0x164] sm:$0xf] }
0x1026   : > { %v9714_v47 = vor.u32 %v10597_v20, %v9711_v11 }
0x1029   : > { %6486 = vmatpush.bf16.msrb.mxu0 %v9566_v24  ;;  %v10126_v24 = vor.u32 %v10703_v31, %v10125_v45  ;;  %v10045_v45 = vld [vmem:[%s14956_s6 + $0x400] sm:$0xf]  ;;  %v10683_v31 = vld [vmem:[%s14956_s6 + $0x40c] sm:$0xf0] }
0x102a   : > { %9526 = vmatmul.msk.bf16.vlgmr.msrb.gmra.mxu3 %vm1522_vm7, %v13073_v58  ;;  %9525 = vmatmul.msk.bf16.vlgmr.msrb.gmra.mxu1 %vm1522_vm7, %v13073_v58 }
0x102d   : > { %6487 = vmatpush.bf16.msrb.mxu0 %v9550_v22 }
0x109f   : > { %v5104_v54 = vpop.f32.mrf.mxu1 }
0x10a0   : > { %v5127_v39 = vperm.slane %v5104_v54, 0  ;;  %v9837_v54 = vld [vmem:[%s14956_s6 + $0x260] sm:$0xf] }
0x10a1   : > { %v9838_v4 = vor.u32 %v10631_v12, %v9837_v54  ;;  %v10735_v54 = vld [vmem:[%s14956_s6 + $0x5ac] sm:$0xf0]  ;;  %v10577_v12 = vld [vmem:[%s14956_s6 + $0xc4] sm:$0xf] }
0x10a2   : > { %v5129_v35 = vmul.f32 %v5127_v39, %v13059_v37  ;;  %v9965_v39 = vld [vmem:[%s14956_s6 + $0x360] sm:$0xf] }
0x10a3   : > { %v9966_v16 = vor.u32 %v10663_v63, %v9965_v39  ;;  %v10254_v39 = vor.u32 %v10735_v54, %v10253_v19  ;;  %v10609_v63 = vld [vmem:[%s14956_s6 + $0x1c4] sm:$0xf]  ;;  %v10173_v19 = vld [vmem:[%s14956_s6 + $0x500] sm:$0xf]  ;;  %v10715_v54 = vld [vmem:[%s14956_s6 + $0x50c] sm:$0xf0] }
0x10a4   : > { %v5131_v13 = vmul.f32 %v5129_v35, %v4873_v7  ;;  %v9677_v35 = vld [vmem:[%s14956_s6 + $0x120] sm:$0xf] }
0x10a5   : > { %v5124_v23 = vpop.f32.mrf.mxu3 }
0x10a6   : > { %v5128_v30 = vperm.slane %v5124_v23, 0  ;;  %v5133_v49 = vadd.f32 %v5131_v13, %v4880_v52  ;;  %v9902_v52 = vor.u32 %v10647_v10, %v9901_v46  ;;  %v9821_v13 = vld [vmem:[%s14956_s6 + $0x240] sm:$0xf]  ;;  %v10627_v23 = vld [vmem:[%s14956_s6 + $0x24c] sm:$0xf0] }
0x10a7   : > { %v9533_v46 = vld [vmem:[%s14956_s6] sm:$0xf]  ;;  %v10555_v10 = vld [vmem:[%s14956_s6 + $0xc] sm:$0xf0]  ;;  %v13159_v53 = vpop.f32.mrf.mxu1 }
0x10a8   : > { %v5130_v21 = vmul.f32 %v5128_v30, %v13065_v38  ;;  %v5135_v37 = vmax.f32 %v5133_v49, 0.0  ;;  %v10643_v38 = vld [vmem:[%s14956_s6 + $0x2cc] sm:$0xf0]  ;;  %v9949_v30 = vld [vmem:[%s14956_s6 + $0x340] sm:$0xf] }
0x10a9   : > { %v10659_v49 = vld [vmem:[%s14956_s6 + $0x34c] sm:$0xf0] }
0x10aa   : > { %v5132_v7 = vmul.f32 %v5130_v21, %v4874_v44  ;;  %v5219_v60 = vpack.c.bf16 %v5135_v37, %v5135_v37  ;;  %v9886_v44 = vor.u32 %v10643_v38, %v9885_v42  ;;  %v9678_v21 = vor.u32 %v10591_v32, %v9677_v35  ;;  %v10285_v42 = vld [vmem:[%s14956_s6 + $0x5e0] sm:$0xf]  ;;  %v10743_v38 = vld [vmem:[%s14956_s6 + $0x5ec] sm:$0xf0] }
0x10ab   : > { %v9822_v37 = vor.u32 %v10627_v23, %v9821_v13  ;;  %v10109_v35 = vld [vmem:[%s14956_s6 + $0x480] sm:$0xf]  ;;  %v10699_v32 = vld [vmem:[%s14956_s6 + $0x48c] sm:$0xf0] }
0x10ac   : > { %v5223_v25 = vrot.slane %v5219_v60, 2  ;;  %v5134_v18 = vadd.f32 %v5132_v7, %v4881_v57  ;;  %v10030_v57 = vor.u32 %v10679_v36, %v10029_v27  ;;  %v9661_v7 = vld [vmem:[%s14956_s6 + $0x100] sm:$0xf]  ;;  %v9950_v60 = vor.u32 %v10659_v49, %v9949_v30  ;;  %v10623_v27 = vld [vmem:[%s14956_s6 + $0x22c] sm:$0xf0]  ;;  %6501 = vmatpush.bf16.msrb.mxu2 %v9678_v21 }
0x10ad   : > { %v9933_v36 = vld [vmem:[%s14956_s6 + $0x320] sm:$0xf]  ;;  %v13161_v62 = vpop.f32.mrf.mxu3  ;;  %v10110_v22 = vor.u32 %v10699_v32, %v10109_v35  ;;  %v10731_v23 = vld [vmem:[%s14956_s6 + $0x58c] sm:$0xf0]  ;;  %v10573_v49 = vld [vmem:[%s14956_s6 + $0xa4] sm:$0xf] }
0x10ae   : > { %v5226_v15 = vsel %vm3840_vm14, %v5223_v25, 0  ;;  %v5136_v59 = vmax.f32 %v5134_v18, 0.0  ;;  %v10587_v25 = vld [vmem:[%s14956_s6 + $0x10c] sm:$0xf0]  ;;  %v10157_v18 = vld [vmem:[%s14956_s6 + $0x4e0] sm:$0xf] }
0x10af   : > { %5238 = vmatpush.bf16.msra.mxu1 %v5226_v15  ;;  %v9805_v15 = vld [vmem:[%s14956_s6 + $0x220] sm:$0xf]  ;;  %v9615_v21 = vld [vmem:[%s14956_s6 + $0xb0] sm:$0xf0] }
0x10b0   : > { %v5220_v33 = vpack.c.bf16 %v5136_v59, %v5136_v59  ;;  %v9534_v59 = vor.u32 %v10555_v10, %v9533_v46  ;;  %v10237_v13 = vld [vmem:[%s14956_s6 + $0x580] sm:$0xf]  ;;  %v9618_v46 = vor.u32 %v10573_v49, %v9615_v21  ;;  %v9743_v10 = vld [vmem:[%s14956_s6 + $0x1b0] sm:$0xf0]  ;;  %v10585_v49 = vld [vmem:[%s14956_s6 + $0x104] sm:$0xf] }
0x10b1   : > { %v10238_v30 = vor.u32 %v10731_v23, %v10237_v13  ;;  %v9679_v35 = vld [vmem:[%s14956_s6 + $0x130] sm:$0xf0]  ;;  %v10553_v23 = vld [vmem:[%s14956_s6 + $0x4] sm:$0xf] }
0x10b2   : > { %v5224_v26 = vrot.slane %v5220_v33, 2  ;;  %9527 = vmatmul.msk.bf16.vlgmr.msra.gmra.mxu1 %vm1522_vm7, %v13073_v58  ;;  %v10655_v33 = vld [vmem:[%s14956_s6 + $0x32c] sm:$0xf0]  ;;  %6488 = vmatpush.bf16.msrb.mxu0 %v9534_v59  ;;  %v9599_v59 = vld [vmem:[%s14956_s6 + $0x90] sm:$0xf0] }
0x10b3   : > { %6509 = vmatpush.bf16.msrb.mxu1 %v9902_v52  ;;  %v10711_v52 = vld [vmem:[%s14956_s6 + $0x4ec] sm:$0xf0]  ;;  %v9934_v9 = vor.u32 %v10655_v33, %v9933_v36  ;;  %v9727_v33 = vld [vmem:[%s14956_s6 + $0x190] sm:$0xf0] }
0x10b4   : > { %v5229_v14 = vsel %vm3840_vm14, %v5224_v26, 0  ;;  %v10158_v40 = vor.u32 %v10711_v52, %v10157_v18  ;;  %v10286_v26 = vor.u32 %v10743_v38, %v10285_v42  ;;  %v10221_v18 = vld [vmem:[%s14956_s6 + $0x560] sm:$0xf]  ;;  %v10727_v42 = vld [vmem:[%s14956_s6 + $0x56c] sm:$0xf0] }
0x10b5   : > { %5251 = vmatpush.bf16.msra.mxu3 %v5229_v14  ;;  %v5160_v14 = vpop.f32.mrf.mxu1  ;;  %v10222_v38 = vor.u32 %v10727_v42, %v10221_v18 }
0x10b6   : > { %6537 = vmatpush.bf16.msra.mxu0 %v10158_v40  ;;  %v10077_v40 = vld [vmem:[%s14956_s6 + $0x440] sm:$0xf]  ;;  %v10723_v14 = vld [vmem:[%s14956_s6 + $0x54c] sm:$0xf0] }
0x10b7   : > { %6510 = vmatpush.bf16.msrb.mxu1 %v9886_v44  ;;  %v9662_v44 = vor.u32 %v10587_v25, %v9661_v7  ;;  %v10695_v25 = vld [vmem:[%s14956_s6 + $0x46c] sm:$0xf0] }
0x10b8   : > { %9528 = vmatmul.msk.bf16.vlgmr.msra.gmra.mxu3 %vm1522_vm7, %v13073_v58  ;;  %v9854_v58 = vor.u32 %v10635_v3, %v9853_v41  ;;  %v9917_v41 = vld [vmem:[%s14956_s6 + $0x300] sm:$0xf]  ;;  %v10651_v3 = vld [vmem:[%s14956_s6 + $0x30c] sm:$0xf0] }
0x10b9   : > { %6523 = vmatpush.bf16.msrb.mxu3 %v10030_v57  ;;  %v9806_v57 = vor.u32 %v10623_v27, %v9805_v15  ;;  %6502 = vmatpush.bf16.msrb.mxu2 %v9662_v44  ;;  %v9918_v17 = vor.u32 %v10651_v3, %v9917_v41  ;;  %v10569_v15 = vld [vmem:[%s14956_s6 + $0x84] sm:$0xf]  ;;  %v10189_v41 = vld [vmem:[%s14956_s6 + $0x520] sm:$0xf] }
0x10ba   : > { %v10601_v27 = vld [vmem:[%s14956_s6 + $0x184] sm:$0xf]  ;;  %v9602_v36 = vor.u32 %v10569_v15, %v9599_v59 }
0x10bb   : > { %6511 = vmatpush.bf16.msrb.mxu1 %v9870_v50  ;;  %v5173_v50 = vpop.f32.mrf.mxu3  ;;  %v9730_v44 = vor.u32 %v10601_v27, %v9727_v33 }
0x10bd   : > { %6524 = vmatpush.bf16.msrb.mxu3 %v10014_v0  ;;  %6551 = vmatpush.bf16.msra.mxu2 %v10286_v26  ;;  %v10141_v0 = vld [vmem:[%s14956_s6 + $0x4c0] sm:$0xf]  ;;  %v10691_v26 = vld [vmem:[%s14956_s6 + $0x44c] sm:$0xf0] }
0x10bf   : > { %6512 = vmatpush.bf16.msrb.mxu1 %v9854_v58  ;;  %v10581_v58 = vld [vmem:[%s14956_s6 + $0xe4] sm:$0xf] }
0x10c0   : > { %v9650_v1 = vor.u32 %v10581_v58, %v9647_v61  ;;  %v10593_v61 = vld [vmem:[%s14956_s6 + $0x144] sm:$0xf] }
0x10c1   : > { %6525 = vmatpush.bf16.msrb.mxu3 %v9998_v56  ;;  %v10142_v56 = vor.u32 %v10707_v55, %v10141_v0  ;;  %6552 = vmatpush.bf16.msra.mxu2 %v10270_v2  ;;  %v10565_v0 = vld [vmem:[%s14956_s6 + $0x64] sm:$0xf]  ;;  %v9583_v55 = vld [vmem:[%s14956_s6 + $0x70] sm:$0xf0]  ;;  %v10061_v2 = vld [vmem:[%s14956_s6 + $0x420] sm:$0xf] }
0x10c2   : > { %v9586_v29 = vor.u32 %v10565_v0, %v9583_v55 }
0x10c3   : > { %6513 = vmatpush.bf16.msrb.mxu1 %v9838_v4  ;;  %6538 = vmatpush.bf16.msra.mxu0 %v10142_v56  ;;  %v9631_v4 = vld [vmem:[%s14956_s6 + $0xd0] sm:$0xf0]  ;;  %v5175_v56 = vpack.c.bf16 %v13161_v62, %v13159_v53  ;;  %v10561_v53 = vld [vmem:[%s14956_s6 + $0x44] sm:$0xf] }
0x10c4   : > { %v9634_v43 = vor.u32 %v10577_v12, %v9631_v4  ;;  %v9567_v62 = vld [vmem:[%s14956_s6 + $0x50] sm:$0xf0]  ;;  %v10174_v12 = vor.u32 %v10715_v54, %v10173_v19  ;;  %v10557_v4 = vld [vmem:[%s14956_s6 + $0x24] sm:$0xf] }
0x10c5   : > { %6526 = vmatpush.bf16.msrb.mxu3 %v9982_v8  ;;  %v9775_v8 = vld [vmem:[%s14956_s6 + $0x1f0] sm:$0xf0]  ;;  %6553 = vmatpush.bf16.msra.mxu2 %v10254_v39  ;;  %v5178_v39 = vunpack.c.h.b16 %v5175_v56 }
0x10c6   : > { %v9778_v28 = vor.u32 %v10613_v51, %v9775_v8  ;;  %v5177_v51 = vunpack.c.l.b16 %v5175_v56  ;;  %v9695_v8 = vld [vmem:[%s14956_s6 + $0x150] sm:$0xf0] }
0x10c7   : > { %6514 = vmatpush.bf16.msrb.mxu1 %v9822_v37  ;;  %6539 = vmatpush.bf16.msra.mxu0 %v10126_v24  ;;  %v10605_v37 = vld [vmem:[%s14956_s6 + $0x1a4] sm:$0xf]  ;;  %v10046_v24 = vor.u32 %v10683_v31, %v10045_v45 }
0x10c8   : > { %v9746_v7 = vor.u32 %v10605_v37, %v9743_v10 }
0x10c9   : > { %6527 = vmatpush.bf16.msrb.mxu3 %v9966_v16  ;;  %v9762_v16 = vor.u32 %v10609_v63, %v9759_v48  ;;  %6554 = vmatpush.bf16.msra.mxu2 %v10238_v30  ;;  %v9551_v63 = vld [vmem:[%s14956_s6 + $0x30] sm:$0xf0]  ;;  %v5179_v48 = vpack.c.b16 %v5177_v51, %v5177_v51 }
0x10ca   : > { %v9535_v30 = vld [vmem:[%s14956_s6 + $0x10] sm:$0xf0] }
0x10cb   : > { %6515 = vmatpush.bf16.msrb.mxu1 %v9806_v57  ;;  %6540 = vmatpush.bf16.msra.mxu0 %v10110_v22  ;;  %v10205_v57 = vld [vmem:[%s14956_s6 + $0x540] sm:$0xf]  ;;  %v5180_v22 = vpack.c.b16 %v5178_v39, %v5178_v39  ;;  %v5182_v21 = vshrl.u32 %v5179_v48, 16  ;;  %v9538_v37 = vor.u32 %v10553_v23, %v9535_v30  ;;  %v10709_v23 = vld [vmem:[%s14956_s6 + $0x4e4] sm:$0xf] }
0x10cc   : > { %v10206_v50 = vor.u32 %v10723_v14, %v10205_v57  ;;  %v10159_v30 = vld [vmem:[%s14956_s6 + $0x4f0] sm:$0xf0] }
0x10cd   : > { %6528 = vmatpush.bf16.msrb.mxu3 %v9950_v60  ;;  %v10093_v60 = vld [vmem:[%s14956_s6 + $0x460] sm:$0xf]  ;;  %6555 = vmatpush.bf16.msra.mxu2 %v10222_v38  ;;  %v5192_v42 = vshll.u32 %v5180_v22, 16 }
0x10ce   : > { %v10094_v52 = vor.u32 %v10695_v25, %v10093_v60  ;;  %v5184_v60 = vrot.slane %v5182_v21, 7  ;;  %v5185_v25 = vshll.u32 %v5179_v48, 16 }
0x10cf   : > { %6516 = vmatpush.bf16.msrb.mxu1 %v9790_v34  ;;  %v10687_v34 = vld [vmem:[%s14956_s6 + $0x42c] sm:$0xf0] }
0x10d0   : > { %6541 = vmatpush.bf16.msra.mxu0 %v10094_v52  ;;  %v10062_v3 = vor.u32 %v10687_v34, %v10061_v2  ;;  %v5187_v38 = vor.u32 %v5185_v25, %v5184_v60  ;;  %v9871_v25 = vld [vmem:[%s14956_s6 + $0x2b0] sm:$0xf0] }
0x10d1   : > { %6529 = vmatpush.bf16.msrb.mxu3 %v9934_v9  ;;  %v10078_v9 = vor.u32 %v10691_v26, %v10077_v40  ;;  %6556 = vmatpush.bf16.msra.mxu2 %v10206_v50 }
0x10d3   : > { %6565 = vmatpush.bf16.msra.mxu1 %v9650_v1  ;;  %v9570_v1 = vor.u32 %v10561_v53, %v9567_v62 }
0x10d4   : > { %6542 = vmatpush.bf16.msra.mxu0 %v10078_v9 }
0x10d5   : > { %6530 = vmatpush.bf16.msrb.mxu3 %v9918_v17  ;;  %v10719_v17 = vld [vmem:[%s14956_s6 + $0x52c] sm:$0xf0] }
0x10d6   : > { %v10190_v58 = vor.u32 %v10719_v17, %v10189_v41  ;;  %v10645_v41 = vld [vmem:[%s14956_s6 + $0x2e4] sm:$0xf] }
0x10d7   : > { %6566 = vmatpush.bf16.msra.mxu1 %v9634_v43  ;;  %v9554_v43 = vor.u32 %v10557_v4, %v9551_v63  ;;  %v10677_v17 = vld [vmem:[%s14956_s6 + $0x3e4] sm:$0xf]  ;;  %v10015_v63 = vld [vmem:[%s14956_s6 + $0x3d0] sm:$0xf0] }
0x10d8   : > { %6543 = vmatpush.bf16.msra.mxu0 %v10062_v3  ;;  %6557 = vmatpush.bf16.msra.mxu2 %v10190_v58  ;;  %v9903_v3 = vld [vmem:[%s14956_s6 + $0x2f0] sm:$0xf0]  ;;  %v10673_v4 = vld [vmem:[%s14956_s6 + $0x3c4] sm:$0xf] }
0x10d9   : > { %6579 = vmatpush.bf16.msra.mxu3 %v9778_v28  ;;  %v9698_v28 = vor.u32 %v10593_v61, %v9695_v8  ;;  %v10031_v58 = vld [vmem:[%s14956_s6 + $0x3f0] sm:$0xf0]  ;;  %v9906_v31 = vor.u32 %v10645_v41, %v9903_v3  ;;  %v10018_v21 = vor.u32 %v10673_v4, %v10015_v63  ;;  %v10729_v4 = vld [vmem:[%s14956_s6 + $0x584] sm:$0xf] }
0x10da   : > { %v10034_v54 = vor.u32 %v10677_v17, %v10031_v58  ;;  %v10127_v41 = vld [vmem:[%s14956_s6 + $0x4b0] sm:$0xf0]  ;;  %v10733_v58 = vld [vmem:[%s14956_s6 + $0x5a4] sm:$0xf] }
0x10db   : > { %6567 = vmatpush.bf16.msra.mxu1 %v9618_v46  ;;  %v9663_v46 = vld [vmem:[%s14956_s6 + $0x110] sm:$0xf0] }
0x10dc   : > { %6544 = vmatpush.bf16.msra.mxu0 %v10046_v24  ;;  %6558 = vmatpush.bf16.msra.mxu2 %v10174_v12  ;;  %v9666_v10 = vor.u32 %v10585_v49, %v9663_v46  ;;  %v9887_v12 = vld [vmem:[%s14956_s6 + $0x2d0] sm:$0xf0]  ;;  %v10741_v46 = vld [vmem:[%s14956_s6 + $0x5e4] sm:$0xf] }
0x10dd   : > { %6580 = vmatpush.bf16.msra.mxu3 %v9762_v16  ;;  %v10589_v16 = vld [vmem:[%s14956_s6 + $0x124] sm:$0xf] }
0x10de   : > { %v9682_v32 = vor.u32 %v10589_v16, %v9679_v35 }
0x10df   : > { %6568 = vmatpush.bf16.msra.mxu1 %v9602_v36  ;;  %v5197_v36 = vsel %vm11866_vm12, 0, %v5187_v38 }
0x10e0   : > { %v13235_v9 = vsel %vm12504_vm8, %v5197_v36, 0 }
0x10e1   : > { %6581 = vmatpush.bf16.msra.mxu3 %v9746_v7  ;;  %v5189_v7 = vshrl.u32 %v5180_v22, 16  ;;  %v5204_v20 = vshll.u32 %v13235_v9, 16  ;;  %v5202_v51 = vshrl.u32 %v13235_v9, 16 }
0x10e3   : > { %6569 = vmatpush.bf16.msra.mxu1 %v9586_v29  ;;  %v5191_v52 = vrot.slane %v5189_v7, 7  ;;  %v10637_v7 = vld [vmem:[%s14956_s6 + $0x2a4] sm:$0xf] }
0x10e5   : > { %6582 = vmatpush.bf16.msra.mxu3 %v9730_v44  ;;  %v5194_v59 = vor.u32 %v5192_v42, %v5191_v52  ;;  %v9999_v52 = vld [vmem:[%s14956_s6 + $0x3b0] sm:$0xf0] }
0x10e7   : > { %6570 = vmatpush.bf16.msra.mxu1 %v9570_v1  ;;  %v5198_v40 = vsel %vm11866_vm12, 0, %v5194_v59  ;;  %v5206_v1 = vrot.slane %v5204_v20, 1 }
0x10e8   : > { %v13239_v55 = vsel %vm12504_vm8, %v5198_v40, 0 }
0x10e9   : > { %6583 = vmatpush.bf16.msra.mxu3 %v9714_v47  ;;  %v5211_v53 = vshll.u32 %v13239_v55, 16  ;;  %v5209_v24 = vshrl.u32 %v13239_v55, 16  ;;  %v5207_v42 = vor.u32 %v5206_v1, %v5202_v51  ;;  %v5218_v63 = vrot.slane %v13239_v55, 1 }
0x10eb   : > { %6571 = vmatpush.bf16.msra.mxu1 %v9554_v43  ;;  %v5213_v48 = vrot.slane %v5211_v53, 1  ;;  %v10255_v53 = vld [vmem:[%s14956_s6 + $0x5b0] sm:$0xf0] }
0x10ed   : > { %6584 = vmatpush.bf16.msra.mxu3 %v9698_v28  ;;  %v10641_v28 = vld [vmem:[%s14956_s6 + $0x2c4] sm:$0xf]  ;;  %v5214_v59 = vor.u32 %v5213_v48, %v5209_v24  ;;  %v10258_v24 = vor.u32 %v10733_v58, %v10255_v53  ;;  %v9637_v53 = vld [vmem:[%s14956_s6 + $0xc8] sm:$0xf] }
0x10ee   : > { %v9890_v49 = vor.u32 %v10641_v28, %v9887_v12  ;;  %v9967_v28 = vld [vmem:[%s14956_s6 + $0x370] sm:$0xf0]  ;;  %v5217_v12 = vrot.slane %v13235_v9, 1 }
0x10ef   : > { %6572 = vmatpush.bf16.msra.mxu1 %v9538_v37 }
0x10f1   : > { %6585 = vmatpush.bf16.msra.mxu3 %v9682_v32 }
0x10f5   : > { %6586 = vmatpush.bf16.msra.mxu3 %v9666_v10  ;;  %v10287_v10 = vld [vmem:[%s14956_s6 + $0x5f0] sm:$0xf0] }
0x10f6   : > { %v10290_v36 = vor.u32 %v10741_v46, %v10287_v10  ;;  %v10621_v10 = vld [vmem:[%s14956_s6 + $0x224] sm:$0xf] }
0x112f   : > { %v5240_v13 = vpop.f32.mrf.mxu1 }
0x1137   : > { %v5242_v18 = vpop.f32.mrf.mxu1 }
0x1138   : > { %v10669_v18 = vld [vmem:[%s14956_s6 + $0x3a4] sm:$0xf] }
0x113b   : > { %v5253_v15 = vpop.f32.mrf.mxu3 }
0x113c   : > { %v5257_v27 = vpack.c.bf16 %v5253_v15, %v5240_v13  ;;  %v10162_v15 = vor.u32 %v10709_v23, %v10159_v30  ;;  %v10693_v23 = vld [vmem:[%s14956_s6 + $0x464] sm:$0xf]  ;;  %v10095_v30 = vld [vmem:[%s14956_s6 + $0x470] sm:$0xf0] }
0x113e   : > { %v5259_v33 = vunpack.c.l.b16 %v5257_v27  ;;  %v5260_v44 = vunpack.c.h.b16 %v5257_v27 }
0x1140   : > { %v5261_v26 = vpack.c.b16 %v5259_v33, %v5259_v33  ;;  %v5262_v57 = vpack.c.b16 %v5260_v44, %v5260_v44  ;;  %v10705_v33 = vld [vmem:[%s14956_s6 + $0x4c4] sm:$0xf]  ;;  %v10143_v44 = vld [vmem:[%s14956_s6 + $0x4d0] sm:$0xf0] }
0x1142   : > { %v5264_v14 = vshrl.u32 %v5261_v26, 16  ;;  %v5271_v50 = vshrl.u32 %v5262_v57, 16  ;;  %v5267_v29 = vshll.u32 %v5261_v26, 16  ;;  %v5274_v47 = vshll.u32 %v5262_v57, 16 }
0x1143   : > { %v5255_v0 = vpop.f32.mrf.mxu3  ;;  %v9874_v26 = vor.u32 %v10637_v7, %v9871_v25  ;;  %v10002_v57 = vor.u32 %v10669_v18, %v9999_v52  ;;  %v9807_v7 = vld [vmem:[%s14956_s6 + $0x230] sm:$0xf0]  ;;  %v10653_v25 = vld [vmem:[%s14956_s6 + $0x324] sm:$0xf] }
0x1144   : > { %v5266_v56 = vrot.slane %v5264_v14, 7  ;;  %v5273_v11 = vrot.slane %v5271_v50, 7  ;;  %v10737_v14 = vld [vmem:[%s14956_s6 + $0x5c4] sm:$0xf]  ;;  %v10271_v50 = vld [vmem:[%s14956_s6 + $0x5d0] sm:$0xf0] }
0x1145   : > { %v10633_v0 = vld [vmem:[%s14956_s6 + $0x284] sm:$0xf]  ;;  %v9935_v18 = vld [vmem:[%s14956_s6 + $0x330] sm:$0xf0] }
0x1146   : > { %v5269_v2 = vor.u32 %v5267_v29, %v5266_v56  ;;  %v5276_v34 = vor.u32 %v5274_v47, %v5273_v11  ;;  %v9855_v56 = vld [vmem:[%s14956_s6 + $0x290] sm:$0xf0]  ;;  %v10665_v29 = vld [vmem:[%s14956_s6 + $0x384] sm:$0xf]  ;;  %v10146_v47 = vor.u32 %v10705_v33, %v10143_v44  ;;  %v9938_v33 = vor.u32 %v10653_v25, %v9935_v18  ;;  %v10572_v25 = vld [vmem:[%s14956_s6 + $0x94] sm:$0xf0] }
0x1147   : > { %v9983_v11 = vld [vmem:[%s14956_s6 + $0x390] sm:$0xf0]  ;;  %v9858_v3 = vor.u32 %v10633_v0, %v9855_v56  ;;  %v10584_v0 = vld [vmem:[%s14956_s6 + $0xf4] sm:$0xf0]  ;;  %v9781_v56 = vld [vmem:[%s14956_s6 + $0x1e8] sm:$0xf] }
0x1148   : > { %v5279_v62 = vsel %vm11866_vm12, 0, %v5269_v2  ;;  %v5280_v61 = vsel %vm11866_vm12, 0, %v5276_v34  ;;  %v10274_v2 = vor.u32 %v10737_v14, %v10271_v50  ;;  %v10701_v34 = vld [vmem:[%s14956_s6 + $0x4a4] sm:$0xf]  ;;  %v9986_v17 = vor.u32 %v10665_v29, %v9983_v11  ;;  %v9791_v44 = vld [vmem:[%s14956_s6 + $0x210] sm:$0xf0] }
0x1149   : > { %v13254_v8 = vsel %vm12504_vm8, %v5279_v62, 0  ;;  %v13258_v45 = vsel %vm12504_vm8, %v5280_v61, 0  ;;  %v10629_v62 = vld [vmem:[%s14956_s6 + $0x264] sm:$0xf]  ;;  %v9839_v61 = vld [vmem:[%s14956_s6 + $0x270] sm:$0xf0]  ;;  %v10130_v51 = vor.u32 %v10701_v34, %v10127_v41 }
0x114a   : > { %v5301_v19 = vrot.slane %v13254_v8, 4  ;;  %v5302_v5 = vrot.slane %v13258_v45, 4  ;;  %v5286_v39 = vshll.u32 %v13254_v8, 16  ;;  %v5293_v6 = vshll.u32 %v13258_v45, 16  ;;  %v9653_v50 = vld [vmem:[%s14956_s6 + $0xe8] sm:$0xf] }
0x114b   : > { %v5284_v35 = vshrl.u32 %v13254_v8, 16  ;;  %v5291_v13 = vshrl.u32 %v13258_v45, 16  ;;  %v9529_v1 = vrot.slane %v13254_v8, 5  ;;  %v10239_v8 = vld [vmem:[%s14956_s6 + $0x590] sm:$0xf0]  ;;  %v9654_v58 = vor.u32 %v10584_v0, %v9653_v50 }
0x114c   : > { %v13271_v43 = vsel %vm1526_vm6, %v13235_v9, %v5301_v19  ;;  %v13275_v16 = vsel %vm1526_vm6, %v13239_v55, %v5302_v5  ;;  %v5288_v32 = vrot.slane %v5286_v39, 1  ;;  %v5295_v22 = vrot.slane %v5293_v6, 1  ;;  %v10697_v5 = vld [vmem:[%s14956_s6 + $0x484] sm:$0xf]  ;;  %v9951_v9 = vld [vmem:[%s14956_s6 + $0x350] sm:$0xf0] }
0x114d   : > { %6489 = vmatmul.bf16.vlgmr.msrb.gmra.mxu0 %v13271_v43  ;;  %6503 = vmatmul.bf16.vlgmr.msrb.gmra.mxu2 %v13275_v16  ;;  %v9530_v19 = vrot.slane %v13258_v45, 5  ;;  %v9842_v39 = vor.u32 %v10629_v62, %v9839_v61  ;;  %v10625_v6 = vld [vmem:[%s14956_s6 + $0x244] sm:$0xf]  ;;  %v13324_v45 = vsel %vm1526_vm6, %v5217_v12, %v9529_v1  ;;  %v10616_v11 = vld [vmem:[%s14956_s6 + $0x1f4] sm:$0xf0] }
0x114e   : > { %6593 = vmatpush.bf16.msrb.mxu0 %v9906_v31  ;;  %6607 = vmatpush.bf16.msrb.mxu2 %v10034_v54  ;;  %v5289_v37 = vor.u32 %v5288_v32, %v5284_v35  ;;  %v5296_v60 = vor.u32 %v5295_v22, %v5291_v13  ;;  %v10661_v31 = vld [vmem:[%s14956_s6 + $0x364] sm:$0xf]  ;;  %v10111_v54 = vld [vmem:[%s14956_s6 + $0x490] sm:$0xf0]  ;;  %v10242_v22 = vor.u32 %v10729_v4, %v10239_v8  ;;  %v9765_v1 = vld [vmem:[%s14956_s6 + $0x1c8] sm:$0xf] }
0x114f   : > { %v9970_v48 = vor.u32 %v10661_v31, %v9967_v28  ;;  %v9823_v35 = vld [vmem:[%s14956_s6 + $0x250] sm:$0xf0]  ;;  %v10114_v32 = vor.u32 %v10697_v5, %v10111_v54  ;;  %v10657_v13 = vld [vmem:[%s14956_s6 + $0x344] sm:$0xf]  ;;  %v13330_v55 = vsel %vm1526_vm6, %v5218_v63, %v9530_v19  ;;  %v9782_v62 = vor.u32 %v10616_v11, %v9781_v56  ;;  %v10612_v31 = vld [vmem:[%s14956_s6 + $0x1d4] sm:$0xf0] }
0x1150   : > { %v5303_v38 = vrot.slane %v5289_v37, 4  ;;  %v5304_v27 = vrot.slane %v5296_v60, 4  ;;  %v10223_v37 = vld [vmem:[%s14956_s6 + $0x570] sm:$0xf0]  ;;  %v9954_v46 = vor.u32 %v10657_v13, %v9951_v9  ;;  %v10098_v60 = vor.u32 %v10693_v23, %v10095_v30  ;;  %v10717_v41 = vld [vmem:[%s14956_s6 + $0x524] sm:$0xf] }
0x1151   : > { %v10047_v19 = vld [vmem:[%s14956_s6 + $0x410] sm:$0xf0]  ;;  %v10713_v5 = vld [vmem:[%s14956_s6 + $0x504] sm:$0xf]  ;;  %v9909_v12 = vld [vmem:[%s14956_s6 + $0x2e8] sm:$0xf] }
0x1152   : > { %6594 = vmatpush.bf16.msrb.mxu0 %v9890_v49  ;;  %6608 = vmatpush.bf16.msrb.mxu2 %v10018_v21  ;;  %v13292_v40 = vsel %vm1526_vm6, %v5207_v42, %v5303_v38  ;;  %v13299_v20 = vsel %vm1526_vm6, %v5214_v59, %v5304_v27  ;;  %v9826_v49 = vor.u32 %v10625_v6, %v9823_v35  ;;  %v10725_v21 = vld [vmem:[%s14956_s6 + $0x564] sm:$0xf]  ;;  %v10079_v38 = vld [vmem:[%s14956_s6 + $0x450] sm:$0xf0]  ;;  %v10037_v8 = vld [vmem:[%s14956_s6 + $0x3e8] sm:$0xf] }
0x1153   : > { %6517 = vmatmul.bf16.vlgmr.msrb.gmra.mxu1 %v13292_v40  ;;  %6531 = vmatmul.bf16.vlgmr.msrb.gmra.mxu3 %v13299_v20  ;;  %v10226_v52 = vor.u32 %v10725_v21, %v10223_v37  ;;  %v10689_v42 = vld [vmem:[%s14956_s6 + $0x444] sm:$0xf]  ;;  %v10207_v27 = vld [vmem:[%s14956_s6 + $0x550] sm:$0xf0]  ;;  %v10680_v63 = vld [vmem:[%s14956_s6 + $0x3f4] sm:$0xf0] }
0x1154   : > { %6621 = vmatpush.bf16.msrb.mxu1 %v10162_v15  ;;  %6635 = vmatpush.bf16.msrb.mxu3 %v10290_v36  ;;  %v9810_v15 = vor.u32 %v10621_v10, %v9807_v7  ;;  %v10721_v59 = vld [vmem:[%s14956_s6 + $0x544] sm:$0xf]  ;;  %v10082_v14 = vor.u32 %v10689_v42, %v10079_v38  ;;  %v10175_v54 = vld [vmem:[%s14956_s6 + $0x510] sm:$0xf0]  ;;  %v9621_v35 = vld [vmem:[%s14956_s6 + $0xa8] sm:$0xf]  ;;  %v10038_v30 = vor.u32 %v10680_v63, %v10037_v8 }
0x1155   : > { %v10617_v36 = vld [vmem:[%s14956_s6 + $0x204] sm:$0xf]  ;;  %v10210_v29 = vor.u32 %v10721_v59, %v10207_v27  ;;  %v10178_v13 = vor.u32 %v10713_v5, %v10175_v54  ;;  %v10608_v23 = vld [vmem:[%s14956_s6 + $0x1b4] sm:$0xf0]  ;;  %v9717_v50 = vld [vmem:[%s14956_s6 + $0x168] sm:$0xf] }
0x1156   : > { %6595 = vmatpush.bf16.msrb.mxu0 %v9874_v26  ;;  %6609 = vmatpush.bf16.msrb.mxu2 %v10002_v57  ;;  %v10649_v26 = vld [vmem:[%s14956_s6 + $0x304] sm:$0xf]  ;;  %v9919_v57 = vld [vmem:[%s14956_s6 + $0x310] sm:$0xf0]  ;;  %v9794_v34 = vor.u32 %v10617_v36, %v9791_v44  ;;  %v10644_v21 = vld [vmem:[%s14956_s6 + $0x2d4] sm:$0xf0] }
0x1157   : > { %v10676_v10 = vld [vmem:[%s14956_s6 + $0x3d4] sm:$0xf0]  ;;  %v10005_v36 = vld [vmem:[%s14956_s6 + $0x3a8] sm:$0xf] }
0x1158   : > { %6622 = vmatpush.bf16.msrb.mxu1 %v10146_v47  ;;  %6636 = vmatpush.bf16.msrb.mxu3 %v10274_v2  ;;  %v10685_v47 = vld [vmem:[%s14956_s6 + $0x424] sm:$0xf]  ;;  %v10063_v2 = vld [vmem:[%s14956_s6 + $0x430] sm:$0xf0]  ;;  %v10604_v42 = vld [vmem:[%s14956_s6 + $0x194] sm:$0xf0] }
0x1159   : > { %v10066_v61 = vor.u32 %v10685_v47, %v10063_v2  ;;  %v10640_v59 = vld [vmem:[%s14956_s6 + $0x2b4] sm:$0xf0]  ;;  %v9989_v2 = vld [vmem:[%s14956_s6 + $0x388] sm:$0xf] }
0x115a   : > { %6596 = vmatpush.bf16.msrb.mxu0 %v9858_v3  ;;  %6610 = vmatpush.bf16.msrb.mxu2 %v9986_v17  ;;  %v10191_v3 = vld [vmem:[%s14956_s6 + $0x530] sm:$0xf0]  ;;  %v9922_v17 = vor.u32 %v10649_v26, %v9919_v57  ;;  %v9589_v26 = vld [vmem:[%s14956_s6 + $0x68] sm:$0xf]  ;;  %v10568_v57 = vld [vmem:[%s14956_s6 + $0x74] sm:$0xf0] }
0x115b   : > { %v10194_v28 = vor.u32 %v10717_v41, %v10191_v3  ;;  %v10600_v0 = vld [vmem:[%s14956_s6 + $0x174] sm:$0xf0]  ;;  %v9590_v47 = vor.u32 %v10568_v57, %v9589_v26  ;;  %v9573_v3 = vld [vmem:[%s14956_s6 + $0x48] sm:$0xf] }
0x115c   : > { %6623 = vmatpush.bf16.msrb.mxu1 %v10130_v51  ;;  %6637 = vmatpush.bf16.msrb.mxu3 %v10258_v24  ;;  %v10580_v51 = vld [vmem:[%s14956_s6 + $0xd4] sm:$0xf0]  ;;  %v10681_v24 = vld [vmem:[%s14956_s6 + $0x404] sm:$0xf]  ;;  %v9718_v41 = vor.u32 %v10600_v0, %v9717_v50  ;;  %v9557_v5 = vld [vmem:[%s14956_s6 + $0x28] sm:$0xf] }
0x115d   : > { %6545 = vmatmul.bf16.vlgmr.msra.gmra.mxu0 %v13324_v45  ;;  %6559 = vmatmul.bf16.vlgmr.msra.gmra.mxu2 %v13330_v55  ;;  %v9638_v4 = vor.u32 %v10580_v51, %v9637_v53  ;;  %v10050_v6 = vor.u32 %v10681_v24, %v10047_v19  ;;  %v10636_v11 = vld [vmem:[%s14956_s6 + $0x294] sm:$0xf0]  ;;  %v9701_v53 = vld [vmem:[%s14956_s6 + $0x148] sm:$0xf] }
0x115e   : > { %6597 = vmatpush.bf16.msrb.mxu0 %v9842_v39  ;;  %6611 = vmatpush.bf16.msrb.mxu2 %v9970_v48  ;;  %v10648_v39 = vld [vmem:[%s14956_s6 + $0x2f4] sm:$0xf0]  ;;  %v9766_v48 = vor.u32 %v10612_v31, %v9765_v1  ;;  %v9845_v51 = vld [vmem:[%s14956_s6 + $0x268] sm:$0xf] }
0x115f   : > { %v9910_v9 = vor.u32 %v10648_v39, %v9909_v12  ;;  %v10632_v1 = vld [vmem:[%s14956_s6 + $0x274] sm:$0xf0]  ;;  %v9685_v39 = vld [vmem:[%s14956_s6 + $0x128] sm:$0xf] }
0x1160   : > { %6624 = vmatpush.bf16.msrb.mxu1 %v10114_v32  ;;  %6638 = vmatpush.bf16.msrb.mxu3 %v10242_v22  ;;  %v10576_v32 = vld [vmem:[%s14956_s6 + $0xb4] sm:$0xf0]  ;;  %v9749_v22 = vld [vmem:[%s14956_s6 + $0x1a8] sm:$0xf]  ;;  %v9846_v12 = vor.u32 %v10632_v1, %v9845_v51 }
0x1161   : > { %v9622_v37 = vor.u32 %v10576_v32, %v9621_v35  ;;  %v9750_v7 = vor.u32 %v10608_v23, %v9749_v22  ;;  %v10664_v24 = vld [vmem:[%s14956_s6 + $0x374] sm:$0xf0]  ;;  %v9829_v63 = vld [vmem:[%s14956_s6 + $0x248] sm:$0xf] }
0x1162   : > { %6598 = vmatpush.bf16.msrb.mxu0 %v9826_v49  ;;  %6612 = vmatpush.bf16.msrb.mxu2 %v9954_v46  ;;  %v9893_v49 = vld [vmem:[%s14956_s6 + $0x2c8] sm:$0xf]  ;;  %v10560_v54 = vld [vmem:[%s14956_s6 + $0x34] sm:$0xf0] }
0x1163   : > { %6573 = vmatmul.bf16.vlgmr.msra.gmra.mxu1 %v13271_v43  ;;  %6587 = vmatmul.bf16.vlgmr.msra.gmra.mxu3 %v13275_v16  ;;  %v10021_v46 = vld [vmem:[%s14956_s6 + $0x3c8] sm:$0xf]  ;;  %v9894_v18 = vor.u32 %v10644_v21, %v9893_v49  ;;  %v10660_v32 = vld [vmem:[%s14956_s6 + $0x354] sm:$0xf0] }
0x1164   : > { %6625 = vmatpush.bf16.msrb.mxu1 %v10098_v60  ;;  %6639 = vmatpush.bf16.msrb.mxu3 %v10226_v52  ;;  %v9605_v60 = vld [vmem:[%s14956_s6 + $0x88] sm:$0xf]  ;;  %v10022_v38 = vor.u32 %v10676_v10, %v10021_v46  ;;  %v10556_v22 = vld [vmem:[%s14956_s6 + $0x14] sm:$0xf0] }
0x1165   : > { %v9733_v52 = vld [vmem:[%s14956_s6 + $0x188] sm:$0xf]  ;;  %v9606_v27 = vor.u32 %v10572_v25, %v9605_v60  ;;  %v10624_v25 = vld [vmem:[%s14956_s6 + $0x234] sm:$0xf0] }
0x1166   : > { %6599 = vmatpush.bf16.msrb.mxu0 %v9810_v15  ;;  %6613 = vmatpush.bf16.msrb.mxu2 %v9938_v33  ;;  %v9877_v15 = vld [vmem:[%s14956_s6 + $0x2a8] sm:$0xf]  ;;  %v10672_v33 = vld [vmem:[%s14956_s6 + $0x3b4] sm:$0xf0]  ;;  %v9734_v44 = vor.u32 %v10604_v42, %v9733_v52 }
0x1167   : > { %v10006_v56 = vor.u32 %v10672_v33, %v10005_v36  ;;  %v9957_v35 = vld [vmem:[%s14956_s6 + $0x348] sm:$0xf]  ;;  %v10656_v42 = vld [vmem:[%s14956_s6 + $0x334] sm:$0xf0] }
0x1168   : > { %6626 = vmatpush.bf16.msrb.mxu1 %v10082_v14  ;;  %6640 = vmatpush.bf16.msrb.mxu3 %v10210_v29  ;;  %v9878_v14 = vor.u32 %v10640_v59, %v9877_v15  ;;  %v9861_v29 = vld [vmem:[%s14956_s6 + $0x288] sm:$0xf]  ;;  %v9958_v10 = vor.u32 %v10660_v32, %v9957_v35  ;;  %v10708_v33 = vld [vmem:[%s14956_s6 + $0x4d4] sm:$0xf0]  ;;  %v9623_v35 = vld [vmem:[%s14956_s6 + $0xb8] sm:$0xf0] }
0x1169   : > { %v9669_v23 = vld [vmem:[%s14956_s6 + $0x108] sm:$0xf]  ;;  %v10740_v26 = vld [vmem:[%s14956_s6 + $0x5d4] sm:$0xf0] }
0x116a   : > { %6600 = vmatpush.bf16.msrb.mxu0 %v9794_v34  ;;  %6614 = vmatpush.bf16.msrb.mxu2 %v9922_v17  ;;  %v10668_v34 = vld [vmem:[%s14956_s6 + $0x394] sm:$0xf0]  ;;  %v10165_v21 = vld [vmem:[%s14956_s6 + $0x4e8] sm:$0xf] }
0x116b   : > { %v10564_v17 = vld [vmem:[%s14956_s6 + $0x54] sm:$0xf0]  ;;  %v10293_v46 = vld [vmem:[%s14956_s6 + $0x5e8] sm:$0xf] }
0x116c   : > { %6627 = vmatpush.bf16.msrb.mxu1 %v10066_v61  ;;  %6641 = vmatpush.bf16.msrb.mxu3 %v10194_v28  ;;  %v9990_v61 = vor.u32 %v10668_v34, %v9989_v2  ;;  %v9574_v31 = vor.u32 %v10564_v17, %v9573_v3  ;;  %v9973_v28 = vld [vmem:[%s14956_s6 + $0x368] sm:$0xf]  ;;  %v10620_v50 = vld [vmem:[%s14956_s6 + $0x214] sm:$0xf0]  ;;  %v10614_v2 = vld [vmem:[%s14956_s6 + $0x1ec] sm:$0xf] }
0x116d   : > { %6601 = vmatmul.bf16.vlgmr.msrb.gmra.mxu0 %v13292_v40  ;;  %6615 = vmatmul.bf16.vlgmr.msrb.gmra.mxu2 %v13299_v20  ;;  %v9974_v8 = vor.u32 %v10664_v24, %v9973_v28  ;;  %v9813_v60 = vld [vmem:[%s14956_s6 + $0x228] sm:$0xf]  ;;  %v9783_v34 = vld [vmem:[%s14956_s6 + $0x1f8] sm:$0xf0]  ;;  %v10736_v51 = vld [vmem:[%s14956_s6 + $0x5b4] sm:$0xf0] }
0x116e   : > { %6649 = vmatpush.bf16.msra.mxu0 %v9654_v58  ;;  %6663 = vmatpush.bf16.msra.mxu2 %v9782_v62  ;;  %v9862_v58 = vor.u32 %v10636_v11, %v9861_v29  ;;  %v10596_v62 = vld [vmem:[%s14956_s6 + $0x154] sm:$0xf0]  ;;  %v9941_v52 = vld [vmem:[%s14956_s6 + $0x328] sm:$0xf]  ;;  %v9814_v36 = vor.u32 %v10624_v25, %v9813_v60  ;;  %v10582_v29 = vld [vmem:[%s14956_s6 + $0xec] sm:$0xf]  ;;  %v9786_v1 = vor.u32 %v10614_v2, %v9783_v34 }
0x116f   : > { %v9702_v19 = vor.u32 %v10596_v62, %v9701_v53  ;;  %v10149_v59 = vld [vmem:[%s14956_s6 + $0x4c8] sm:$0xf]  ;;  %v9942_v57 = vor.u32 %v10656_v42, %v9941_v52  ;;  %v9655_v11 = vld [vmem:[%s14956_s6 + $0xf8] sm:$0xf0]  ;;  %v10602_v25 = vld [vmem:[%s14956_s6 + $0x18c] sm:$0xf] }
0x1170   : > { %6628 = vmatpush.bf16.msrb.mxu1 %v10050_v6  ;;  %6642 = vmatpush.bf16.msrb.mxu3 %v10178_v13  ;;  %v9558_v6 = vor.u32 %v10560_v54, %v9557_v5  ;;  %v9541_v13 = vld [vmem:[%s14956_s6 + $0x8] sm:$0xf]  ;;  %v9658_v62 = vor.u32 %v10582_v29, %v9655_v11  ;;  %v9639_v28 = vld [vmem:[%s14956_s6 + $0xd8] sm:$0xf0]  ;;  %v10562_v34 = vld [vmem:[%s14956_s6 + $0x4c] sm:$0xf] }
0x1171   : > { %v9925_v0 = vld [vmem:[%s14956_s6 + $0x308] sm:$0xf]  ;;  %v9767_v5 = vld [vmem:[%s14956_s6 + $0x1d8] sm:$0xf0] }
0x1172   : > { %6650 = vmatpush.bf16.msra.mxu0 %v9638_v4  ;;  %6664 = vmatpush.bf16.msra.mxu2 %v9766_v48  ;;  %v10592_v4 = vld [vmem:[%s14956_s6 + $0x134] sm:$0xf0]  ;;  %v10133_v17 = vld [vmem:[%s14956_s6 + $0x4a8] sm:$0xf] }
0x1173   : > { %6629 = vmatmul.bf16.vlgmr.msrb.gmra.mxu1 %v13324_v45  ;;  %6643 = vmatmul.bf16.vlgmr.msrb.gmra.mxu3 %v13330_v55  ;;  %v10628_v48 = vld [vmem:[%s14956_s6 + $0x254] sm:$0xf0]  ;;  %v10085_v42 = vld [vmem:[%s14956_s6 + $0x448] sm:$0xf] }
0x1174   : > { %6677 = vmatpush.bf16.msra.mxu1 %v9910_v9  ;;  %6691 = vmatpush.bf16.msra.mxu3 %v10038_v30  ;;  %v9686_v9 = vor.u32 %v10592_v4, %v9685_v39  ;;  %v10588_v30 = vld [vmem:[%s14956_s6 + $0x114] sm:$0xf0]  ;;  %v9830_v49 = vor.u32 %v10628_v48, %v9829_v63  ;;  %v10197_v11 = vld [vmem:[%s14956_s6 + $0x528] sm:$0xf] }
0x1175   : > { %v10700_v39 = vld [vmem:[%s14956_s6 + $0x494] sm:$0xf0] }
0x1176   : > { %6651 = vmatpush.bf16.msra.mxu0 %v9622_v37  ;;  %6665 = vmatpush.bf16.msra.mxu2 %v9750_v7  ;;  %v10712_v37 = vld [vmem:[%s14956_s6 + $0x4f4] sm:$0xf0] }
0x1177   : > { %v10744_v7 = vld [vmem:[%s14956_s6 + $0x5f4] sm:$0xf0]  ;;  %v10166_v15 = vor.u32 %v10712_v37, %v10165_v21  ;;  %v10229_v21 = vld [vmem:[%s14956_s6 + $0x568] sm:$0xf] }
0x1178   : > { %6678 = vmatpush.bf16.msra.mxu1 %v9894_v18  ;;  %6692 = vmatpush.bf16.msra.mxu3 %v10022_v38  ;;  %v9542_v18 = vor.u32 %v10556_v22, %v9541_v13  ;;  %v9670_v38 = vor.u32 %v10588_v30, %v9669_v23  ;;  %v10732_v63 = vld [vmem:[%s14956_s6 + $0x594] sm:$0xf0]  ;;  %v10606_v13 = vld [vmem:[%s14956_s6 + $0x1ac] sm:$0xf]  ;;  %v10101_v23 = vld [vmem:[%s14956_s6 + $0x468] sm:$0xf] }
0x1179   : > { %v10696_v30 = vld [vmem:[%s14956_s6 + $0x474] sm:$0xf0] }
0x117a   : > { %6652 = vmatpush.bf16.msra.mxu0 %v9606_v27  ;;  %6666 = vmatpush.bf16.msra.mxu2 %v9734_v44  ;;  %v10294_v27 = vor.u32 %v10744_v7, %v10293_v46  ;;  %v10277_v44 = vld [vmem:[%s14956_s6 + $0x5c8] sm:$0xf]  ;;  %v10728_v37 = vld [vmem:[%s14956_s6 + $0x574] sm:$0xf0]  ;;  %v9607_v7 = vld [vmem:[%s14956_s6 + $0x98] sm:$0xf0]  ;;  %v10102_v60 = vor.u32 %v10696_v30, %v10101_v23 }
0x117b   : > { %v10230_v52 = vor.u32 %v10728_v37, %v10229_v21  ;;  %v10023_v23 = vld [vmem:[%s14956_s6 + $0x3d8] sm:$0xf0]  ;;  %v10586_v37 = vld [vmem:[%s14956_s6 + $0x10c] sm:$0xf] }
0x117c   : > { %6679 = vmatpush.bf16.msra.mxu1 %v9878_v14  ;;  %6693 = vmatpush.bf16.msra.mxu3 %v10006_v56  ;;  %v9797_v14 = vld [vmem:[%s14956_s6 + $0x208] sm:$0xf]  ;;  %v10652_v56 = vld [vmem:[%s14956_s6 + $0x314] sm:$0xf0]  ;;  %v9543_v21 = vld [vmem:[%s14956_s6 + $0x18] sm:$0xf0] }
0x117d   : > { %v9798_v3 = vor.u32 %v10620_v50, %v9797_v14  ;;  %v9926_v53 = vor.u32 %v10652_v56, %v9925_v0  ;;  %v9719_v14 = vld [vmem:[%s14956_s6 + $0x178] sm:$0xf0]  ;;  %v10069_v0 = vld [vmem:[%s14956_s6 + $0x428] sm:$0xf]  ;;  %v10688_v56 = vld [vmem:[%s14956_s6 + $0x434] sm:$0xf0] }
0x117e   : > { %6653 = vmatpush.bf16.msra.mxu0 %v9590_v47  ;;  %6667 = vmatpush.bf16.msra.mxu2 %v9718_v41  ;;  %v10150_v47 = vor.u32 %v10708_v33, %v10149_v59  ;;  %v10278_v41 = vor.u32 %v10740_v26, %v10277_v44  ;;  %v10213_v59 = vld [vmem:[%s14956_s6 + $0x548] sm:$0xf]  ;;  %v10566_v33 = vld [vmem:[%s14956_s6 + $0x6c] sm:$0xf]  ;;  %v9591_v44 = vld [vmem:[%s14956_s6 + $0x78] sm:$0xf0] }
0x117f   : > { %v9594_v29 = vor.u32 %v10566_v33, %v9591_v44  ;;  %v10007_v33 = vld [vmem:[%s14956_s6 + $0x3b8] sm:$0xf0] }
0x1180   : > { %6680 = vmatpush.bf16.msra.mxu1 %v9862_v58  ;;  %6694 = vmatpush.bf16.msra.mxu3 %v9990_v61  ;;  %v10704_v58 = vld [vmem:[%s14956_s6 + $0x4b4] sm:$0xf0]  ;;  %v10261_v61 = vld [vmem:[%s14956_s6 + $0x5a8] sm:$0xf] }
0x1181   : > { %v10134_v24 = vor.u32 %v10704_v58, %v10133_v17  ;;  %v10262_v54 = vor.u32 %v10736_v51, %v10261_v61  ;;  %v10594_v17 = vld [vmem:[%s14956_s6 + $0x14c] sm:$0xf]  ;;  %v9703_v58 = vld [vmem:[%s14956_s6 + $0x158] sm:$0xf0]  ;;  %v10684_v61 = vld [vmem:[%s14956_s6 + $0x414] sm:$0xf0] }
0x1182   : > { %6654 = vmatpush.bf16.msra.mxu0 %v9574_v31  ;;  %6668 = vmatpush.bf16.msra.mxu2 %v9702_v19  ;;  %v10578_v31 = vld [vmem:[%s14956_s6 + $0xcc] sm:$0xf]  ;;  %v10181_v51 = vld [vmem:[%s14956_s6 + $0x508] sm:$0xf] }
0x1183   : > { %v10610_v19 = vld [vmem:[%s14956_s6 + $0x1cc] sm:$0xf]  ;;  %v9642_v4 = vor.u32 %v10578_v31, %v9639_v28 }
0x1184   : > { %6681 = vmatpush.bf16.msra.mxu1 %v9846_v12  ;;  %6695 = vmatpush.bf16.msra.mxu3 %v9974_v8  ;;  %v10117_v12 = vld [vmem:[%s14956_s6 + $0x488] sm:$0xf]  ;;  %v9770_v48 = vor.u32 %v10610_v19, %v9767_v5  ;;  %v10646_v28 = vld [vmem:[%s14956_s6 + $0x2ec] sm:$0xf]  ;;  %v9706_v5 = vor.u32 %v10594_v17, %v9703_v58  ;;  %v10135_v17 = vld [vmem:[%s14956_s6 + $0x4b8] sm:$0xf0] }
0x1185   : > { %v10245_v8 = vld [vmem:[%s14956_s6 + $0x588] sm:$0xf]  ;;  %v10118_v32 = vor.u32 %v10700_v39, %v10117_v12  ;;  %v10678_v19 = vld [vmem:[%s14956_s6 + $0x3ec] sm:$0xf]  ;;  %v9559_v39 = vld [vmem:[%s14956_s6 + $0x38] sm:$0xf0] }
0x1186   : > { %6655 = vmatpush.bf16.msra.mxu0 %v9558_v6  ;;  %6669 = vmatpush.bf16.msra.mxu2 %v9686_v9  ;;  %v10574_v6 = vld [vmem:[%s14956_s6 + $0xac] sm:$0xf]  ;;  %v9751_v9 = vld [vmem:[%s14956_s6 + $0x1b8] sm:$0xf0]  ;;  %v10246_v22 = vor.u32 %v10732_v63, %v10245_v8 }
0x1187   : > { %v9754_v46 = vor.u32 %v10606_v13, %v9751_v9  ;;  %v10558_v12 = vld [vmem:[%s14956_s6 + $0x2c] sm:$0xf]  ;;  %v9687_v63 = vld [vmem:[%s14956_s6 + $0x138] sm:$0xf0] }
0x1188   : > { %6682 = vmatpush.bf16.msra.mxu1 %v9830_v49  ;;  %6696 = vmatpush.bf16.msra.mxu3 %v9958_v10  ;;  %v9626_v49 = vor.u32 %v10574_v6, %v9623_v35  ;;  %v10570_v10 = vld [vmem:[%s14956_s6 + $0x8c] sm:$0xf]  ;;  %v9562_v13 = vor.u32 %v10558_v12, %v9559_v39  ;;  %v9895_v9 = vld [vmem:[%s14956_s6 + $0x2d8] sm:$0xf0] }
0x1189   : > { %v10590_v8 = vld [vmem:[%s14956_s6 + $0x12c] sm:$0xf]  ;;  %v10247_v12 = vld [vmem:[%s14956_s6 + $0x598] sm:$0xf0] }
0x118a   : > { %6656 = vmatpush.bf16.msra.mxu0 %v9542_v18  ;;  %6670 = vmatpush.bf16.msra.mxu2 %v9670_v38  ;;  %v9735_v18 = vld [vmem:[%s14956_s6 + $0x198] sm:$0xf0]  ;;  %v10692_v38 = vld [vmem:[%s14956_s6 + $0x454] sm:$0xf0]  ;;  %v10642_v35 = vld [vmem:[%s14956_s6 + $0x2cc] sm:$0xf]  ;;  %v9690_v30 = vor.u32 %v10590_v8, %v9687_v63 }
0x118b   : > { %v10086_v26 = vor.u32 %v10692_v38, %v10085_v42  ;;  %v10638_v38 = vld [vmem:[%s14956_s6 + $0x2ac] sm:$0xf]  ;;  %v9831_v8 = vld [vmem:[%s14956_s6 + $0x258] sm:$0xf0] }
0x118c   : > { %6683 = vmatpush.bf16.msra.mxu1 %v9814_v36  ;;  %6697 = vmatpush.bf16.msra.mxu3 %v9942_v57  ;;  %v9738_v36 = vor.u32 %v10602_v25, %v9735_v18  ;;  %v10598_v57 = vld [vmem:[%s14956_s6 + $0x16c] sm:$0xf]  ;;  %v10295_v18 = vld [vmem:[%s14956_s6 + $0x5f8] sm:$0xf0] }
0x118d   : > { %6657 = vmatmul.bf16.vlgmr.msra.gmra.mxu0 %v13271_v43  ;;  %6671 = vmatmul.bf16.vlgmr.msra.gmra.mxu2 %v13275_v16  ;;  %v9722_v2 = vor.u32 %v10598_v57, %v9719_v14  ;;  %v10742_v25 = vld [vmem:[%s14956_s6 + $0x5ec] sm:$0xf]  ;;  %v10151_v57 = vld [vmem:[%s14956_s6 + $0x4d8] sm:$0xf0] }
0x118e   : > { %6705 = vmatpush.bf16.msrb.mxu0 %v10166_v15  ;;  %6719 = vmatpush.bf16.msrb.mxu2 %v10294_v27  ;;  %v9610_v15 = vor.u32 %v10570_v10, %v9607_v7  ;;  %v10724_v27 = vld [vmem:[%s14956_s6 + $0x554] sm:$0xf0]  ;;  %v10710_v10 = vld [vmem:[%s14956_s6 + $0x4ec] sm:$0xf]  ;;  %v10167_v7 = vld [vmem:[%s14956_s6 + $0x4f8] sm:$0xf0]  ;;  %v10298_v44 = vor.u32 %v10742_v25, %v10295_v18 }
0x118f   : > { %v10214_v50 = vor.u32 %v10724_v27, %v10213_v59  ;;  %v10170_v27 = vor.u32 %v10710_v10, %v10167_v7  ;;  %v9943_v10 = vld [vmem:[%s14956_s6 + $0x338] sm:$0xf0] }
0x1190   : > { %6684 = vmatpush.bf16.msra.mxu1 %v9798_v3  ;;  %6698 = vmatpush.bf16.msra.mxu3 %v9926_v53  ;;  %v10070_v3 = vor.u32 %v10688_v56, %v10069_v0  ;;  %v10053_v53 = vld [vmem:[%s14956_s6 + $0x408] sm:$0xf]  ;;  %v10279_v0 = vld [vmem:[%s14956_s6 + $0x5d8] sm:$0xf0] }
0x1191   : > { %v10087_v25 = vld [vmem:[%s14956_s6 + $0x458] sm:$0xf0] }
0x1192   : > { %6706 = vmatpush.bf16.msrb.mxu0 %v10150_v47  ;;  %6720 = vmatpush.bf16.msrb.mxu2 %v10278_v41  ;;  %v10720_v47 = vld [vmem:[%s14956_s6 + $0x534] sm:$0xf0]  ;;  %v9575_v41 = vld [vmem:[%s14956_s6 + $0x58] sm:$0xf0] }
0x1193   : > { %6685 = vmatmul.bf16.vlgmr.msra.gmra.mxu1 %v13292_v40  ;;  %6699 = vmatmul.bf16.vlgmr.msra.gmra.mxu3 %v13299_v20  ;;  %v9578_v31 = vor.u32 %v10562_v34, %v9575_v41  ;;  %v9991_v34 = vld [vmem:[%s14956_s6 + $0x398] sm:$0xf0] }
0x1194   : > { %6733 = vmatpush.bf16.msrb.mxu1 %v9658_v62  ;;  %6747 = vmatpush.bf16.msrb.mxu3 %v9786_v1  ;;  %v10198_v62 = vor.u32 %v10720_v47, %v10197_v11  ;;  %v10716_v1 = vld [vmem:[%s14956_s6 + $0x514] sm:$0xf0]  ;;  %v9863_v11 = vld [vmem:[%s14956_s6 + $0x298] sm:$0xf0] }
0x1196   : > { %6707 = vmatpush.bf16.msrb.mxu0 %v10134_v24  ;;  %6721 = vmatpush.bf16.msrb.mxu2 %v10262_v54  ;;  %v9911_v24 = vld [vmem:[%s14956_s6 + $0x2f8] sm:$0xf0] }
0x1197   : > { %v10039_v54 = vld [vmem:[%s14956_s6 + $0x3f8] sm:$0xf0]  ;;  %v9914_v6 = vor.u32 %v10646_v28, %v9911_v24  ;;  %v10662_v28 = vld [vmem:[%s14956_s6 + $0x36c] sm:$0xf] }
0x1198   : > { %6734 = vmatpush.bf16.msrb.mxu1 %v9642_v4  ;;  %6748 = vmatpush.bf16.msrb.mxu3 %v9770_v48  ;;  %v10054_v4 = vor.u32 %v10684_v61, %v10053_v53  ;;  %v10182_v48 = vor.u32 %v10716_v1, %v10181_v51  ;;  %v10734_v53 = vld [vmem:[%s14956_s6 + $0x5ac] sm:$0xf]  ;;  %v9847_v1 = vld [vmem:[%s14956_s6 + $0x278] sm:$0xf0] }
0x1199   : > { %v10630_v51 = vld [vmem:[%s14956_s6 + $0x26c] sm:$0xf] }
0x119a   : > { %6708 = vmatpush.bf16.msrb.mxu0 %v10118_v32  ;;  %6722 = vmatpush.bf16.msrb.mxu2 %v10246_v22  ;;  %v10042_v32 = vor.u32 %v10678_v19, %v10039_v54  ;;  %v10674_v22 = vld [vmem:[%s14956_s6 + $0x3cc] sm:$0xf] }
0x119b   : > { %v10698_v19 = vld [vmem:[%s14956_s6 + $0x48c] sm:$0xf] }
0x119c   : > { %6735 = vmatpush.bf16.msrb.mxu1 %v9626_v49  ;;  %6749 = vmatpush.bf16.msrb.mxu3 %v9754_v46  ;;  %v10554_v49 = vld [vmem:[%s14956_s6 + $0xc] sm:$0xf]  ;;  %v9671_v46 = vld [vmem:[%s14956_s6 + $0x118] sm:$0xf0] }
0x119d   : > { %v9546_v42 = vor.u32 %v10554_v49, %v9543_v21  ;;  %v9674_v59 = vor.u32 %v10586_v37, %v9671_v46  ;;  %v10730_v54 = vld [vmem:[%s14956_s6 + $0x58c] sm:$0xf]  ;;  %v9815_v21 = vld [vmem:[%s14956_s6 + $0x238] sm:$0xf0] }
0x119e   : > { %6709 = vmatpush.bf16.msrb.mxu0 %v10102_v60  ;;  %6723 = vmatpush.bf16.msrb.mxu2 %v10230_v52  ;;  %v9898_v60 = vor.u32 %v10642_v35, %v9895_v9  ;;  %v10026_v52 = vor.u32 %v10674_v22, %v10023_v23  ;;  %v10250_v35 = vor.u32 %v10730_v54, %v10247_v12  ;;  %v10726_v22 = vld [vmem:[%s14956_s6 + $0x56c] sm:$0xf]  ;;  %v10231_v23 = vld [vmem:[%s14956_s6 + $0x578] sm:$0xf0]  ;;  %v13622_v12 = vld [vmem:[%s14957_s1 + $0x30] sm:$0xff] }
0x119f   : > { %v10622_v49 = vld [vmem:[%s14956_s6 + $0x22c] sm:$0xf]  ;;  %v10234_v7 = vor.u32 %v10726_v22, %v10231_v23  ;;  %14958 = vst [vmem:[#allocation36_spill] sm:$0xff] %v13622_v12  ;;  %v13651_v23 = vld [vmem:[%s14957_s1 + $0xb8] sm:$0xff] }
0x11a0   : > { %6736 = vmatpush.bf16.msrb.mxu1 %v9610_v15  ;;  %6750 = vmatpush.bf16.msrb.mxu3 %v9738_v36  ;;  %v9879_v15 = vld [vmem:[%s14956_s6 + $0x2b8] sm:$0xf0]  ;;  %v10670_v36 = vld [vmem:[%s14956_s6 + $0x3ac] sm:$0xf]  ;;  %v9818_v18 = vor.u32 %v10622_v49, %v9815_v21  ;;  %v13654_v49 = vld [vmem:[%s14957_s1 + $0x10] sm:$0xff] }
0x11a1   : > { %v9882_v14 = vor.u32 %v10638_v38, %v9879_v15  ;;  %v10010_v56 = vor.u32 %v10670_v36, %v10007_v33  ;;  %v10654_v46 = vld [vmem:[%s14956_s6 + $0x32c] sm:$0xf]  ;;  %v9927_v33 = vld [vmem:[%s14956_s6 + $0x318] sm:$0xf0]  ;;  %14963 = vst [vmem:[#allocation39_spill] sm:$0xff] %v13654_v49 }
0x11a2   : > { %6710 = vmatpush.bf16.msrb.mxu0 %v10086_v26  ;;  %6724 = vmatpush.bf16.msrb.mxu2 %v10214_v50  ;;  %v10706_v26 = vld [vmem:[%s14956_s6 + $0x4cc] sm:$0xf]  ;;  %v9946_v38 = vor.u32 %v10654_v46, %v9943_v10 }
0x11a3   : > { %v10738_v50 = vld [vmem:[%s14956_s6 + $0x5cc] sm:$0xf]  ;;  %v10154_v47 = vor.u32 %v10706_v26, %v10151_v57  ;;  %v10071_v57 = vld [vmem:[%s14956_s6 + $0x438] sm:$0xf0] }
0x11a4   : > { %6737 = vmatpush.bf16.msrb.mxu1 %v9594_v29  ;;  %6751 = vmatpush.bf16.msrb.mxu3 %v9722_v2  ;;  %v10634_v29 = vld [vmem:[%s14956_s6 + $0x28c] sm:$0xf]  ;;  %v10282_v41 = vor.u32 %v10738_v50, %v10279_v0  ;;  %v10199_v0 = vld [vmem:[%s14956_s6 + $0x538] sm:$0xf0] }
0x11a5   : > { %v10666_v2 = vld [vmem:[%s14956_s6 + $0x38c] sm:$0xf]  ;;  %v9866_v58 = vor.u32 %v10634_v29, %v9863_v11  ;;  %v13560_v11 = vld [vmem:[%s14957_s1 + $0x78] sm:$0xff] }
0x11a6   : > { %6711 = vmatpush.bf16.msrb.mxu0 %v10070_v3  ;;  %6725 = vmatpush.bf16.msrb.mxu2 %v10198_v62  ;;  %v10702_v3 = vld [vmem:[%s14956_s6 + $0x4ac] sm:$0xf]  ;;  %v10263_v62 = vld [vmem:[%s14956_s6 + $0x5b8] sm:$0xf0]  ;;  %v9994_v61 = vor.u32 %v10666_v2, %v9991_v34 }
0x11a7   : > { %v10266_v24 = vor.u32 %v10734_v53, %v10263_v62  ;;  %v10618_v15 = vld [vmem:[%s14956_s6 + $0x20c] sm:$0xf]  ;;  %v10055_v34 = vld [vmem:[%s14956_s6 + $0x418] sm:$0xf0] }
0x11a8   : > { %6738 = vmatpush.bf16.msrb.mxu1 %v9578_v31  ;;  %6752 = vmatpush.bf16.msrb.mxu3 %v9706_v5  ;;  %v10138_v31 = vor.u32 %v10702_v3, %v10135_v17  ;;  %v10119_v5 = vld [vmem:[%s14956_s6 + $0x498] sm:$0xf0]  ;;  %v10650_v36 = vld [vmem:[%s14956_s6 + $0x30c] sm:$0xf]  ;;  %v13568_v17 = vld [vmem:[%s14957_s1 + $0x70] sm:$0xff] }
0x11a9   : > { %v10122_v63 = vor.u32 %v10698_v19, %v10119_v5  ;;  %v10686_v26 = vld [vmem:[%s14956_s6 + $0x42c] sm:$0xf]  ;;  %v10183_v3 = vld [vmem:[%s14956_s6 + $0x518] sm:$0xf0] }
0x11aa   : > { %6712 = vmatpush.bf16.msrb.mxu0 %v10054_v4  ;;  %6726 = vmatpush.bf16.msrb.mxu2 %v10182_v48  ;;  %v10626_v4 = vld [vmem:[%s14956_s6 + $0x24c] sm:$0xf]  ;;  %v10074_v29 = vor.u32 %v10686_v26, %v10071_v57  ;;  %v13614_v5 = vld [vmem:[%s14957_s1 + $0x38] sm:$0xff] }
0x11ab   : > { %v10658_v48 = vld [vmem:[%s14956_s6 + $0x34c] sm:$0xf]  ;;  %v9834_v9 = vor.u32 %v10626_v4, %v9831_v8 }
0x11ac   : > { %6739 = vmatpush.bf16.msrb.mxu1 %v9562_v13  ;;  %6753 = vmatpush.bf16.msrb.mxu3 %v9690_v30  ;;  %v10103_v13 = vld [vmem:[%s14956_s6 + $0x478] sm:$0xf0]  ;;  %v10718_v50 = vld [vmem:[%s14956_s6 + $0x52c] sm:$0xf] }
0x11ad   : > { %6713 = vmatmul.bf16.vlgmr.msrb.gmra.mxu0 %v13324_v45  ;;  %6727 = vmatmul.bf16.vlgmr.msrb.gmra.mxu2 %v13330_v55  ;;  %v10682_v2 = vld [vmem:[%s14956_s6 + $0x40c] sm:$0xf] }
0x11ae   : > { %6761 = vmatpush.bf16.msra.mxu0 %v9914_v6  ;;  %6775 = vmatpush.bf16.msra.mxu2 %v10042_v32  ;;  %v9959_v6 = vld [vmem:[%s14956_s6 + $0x358] sm:$0xf0]  ;;  %v10694_v32 = vld [vmem:[%s14956_s6 + $0x46c] sm:$0xf] }
0x11af   : > { %v9962_v30 = vor.u32 %v10658_v48, %v9959_v6  ;;  %v10106_v37 = vor.u32 %v10694_v32, %v10103_v13  ;;  %v13572_v62 = vld [vmem:[%s14957_s1 + $0x68] sm:$0xff]  ;;  %v13643_v6 = vld [vmem:[%s14957_s1 + $0xc0] sm:$0xff] }
0x11b0   : > { %6740 = vmatpush.bf16.msrb.mxu1 %v9546_v42  ;;  %6754 = vmatpush.bf16.msrb.mxu3 %v9674_v59  ;;  %v10215_v42 = vld [vmem:[%s14956_s6 + $0x558] sm:$0xf0]  ;;  %v13630_v4 = vld [vmem:[%s14957_s1 + $0x28] sm:$0xff] }
0x11b1   : > { %v9799_v59 = vld [vmem:[%s14956_s6 + $0x218] sm:$0xf0]  ;;  %14959 = vst [vmem:[#allocation35_spill] sm:$0xff] %v13630_v4  ;;  %v13635_v8 = vld [vmem:[%s14957_s1 + $0xc8] sm:$0xff] }
0x11b2   : > { %6762 = vmatpush.bf16.msra.mxu0 %v9898_v60  ;;  %6776 = vmatpush.bf16.msra.mxu2 %v10026_v52  ;;  %v10690_v60 = vld [vmem:[%s14956_s6 + $0x44c] sm:$0xf] }
0x11b3   : > { %6741 = vmatmul.bf16.vlgmr.msrb.gmra.mxu1 %v13271_v43  ;;  %6755 = vmatmul.bf16.vlgmr.msrb.gmra.mxu3 %v13275_v16  ;;  %v9975_v43 = vld [vmem:[%s14956_s6 + $0x378] sm:$0xf0]  ;;  %v9850_v16 = vor.u32 %v10630_v51, %v9847_v1  ;;  %v10722_v52 = vld [vmem:[%s14956_s6 + $0x54c] sm:$0xf]  ;;  %v13589_v1 = vld [vmem:[%s14957_s1 + $0x50] sm:$0xff] }
0x11b4   : > { %6789 = vmatpush.bf16.msra.mxu1 %v10170_v27  ;;  %6803 = vmatpush.bf16.msra.mxu3 %v10298_v44  ;;  %v9978_v39 = vor.u32 %v10662_v28, %v9975_v43  ;;  %v10090_v27 = vor.u32 %v10690_v60, %v10087_v25  ;;  %v10218_v44 = vor.u32 %v10722_v52, %v10215_v42  ;;  %v13581_v51 = vld [vmem:[%s14957_s1 + $0x58] sm:$0xff]  ;;  %v13598_v28 = vld [vmem:[%s14957_s1 + $0x48] sm:$0xff]  ;;  %v13606_v43 = vld [vmem:[%s14957_s1 + $0x40] sm:$0xff] }
0x11b5   : > { %v13662_v10 = vld [vmem:[%s14957_s1 + $0x8] sm:$0xff]  ;;  %v13678_v42 = vld [vmem:[%s14957_s1 + $0xa0] sm:$0xff] }
0x11b6   : > { %6763 = vmatpush.bf16.msra.mxu0 %v9882_v14  ;;  %6777 = vmatpush.bf16.msra.mxu2 %v10010_v56  ;;  %v9802_v14 = vor.u32 %v10618_v15, %v9799_v59  ;;  %v9930_v56 = vor.u32 %v10650_v36, %v9927_v33  ;;  %14964 = vst [vmem:[#allocation40_spill] sm:$0xff] %v13662_v10  ;;  %v13670_v60 = vld [vmem:[%s14957_s1 + $0xa8] sm:$0xff]  ;;  %v13684_v33 = vld [vmem:[%s14957_s1 + $0x98] sm:$0xff] }
0x11b7   : > { %14965 = vst [vmem:[#allocation41_spill] sm:$0xff] %v13670_v60 }
0x11b8   : > { %6790 = vmatpush.bf16.msra.mxu1 %v10154_v47  ;;  %6804 = vmatpush.bf16.msra.mxu3 %v10282_v41  ;;  %v10202_v47 = vor.u32 %v10718_v50, %v10199_v0  ;;  %v10714_v41 = vld [vmem:[%s14956_s6 + $0x50c] sm:$0xf]  ;;  %14967 = vst [vmem:[#allocation43_spill] sm:$0xff] %v13678_v42 }
0x11b9   : > { %v10186_v53 = vor.u32 %v10714_v41, %v10183_v3  ;;  %14968 = vst [vmem:[#allocation44_spill] sm:$0xff] %v13684_v33  ;;  %v13694_v0 = vld [vmem:[%s14957_s1 + $0x88] sm:$0xff] }
0x11ba   : > { %6764 = vmatpush.bf16.msra.mxu0 %v9866_v58  ;;  %6778 = vmatpush.bf16.msra.mxu2 %v9994_v61  ;;  %v10058_v58 = vor.u32 %v10682_v2, %v10055_v34  ;;  %v13577_v61 = vld [vmem:[%s14957_s1 + $0x60] sm:$0xff]  ;;  %14971 = vst [vmem:[#allocation47_spill] sm:$0xff] %v13694_v0 }
0x11bc   : > { %6791 = vmatpush.bf16.msra.mxu1 %v10138_v31  ;;  %6805 = vmatpush.bf16.msra.mxu3 %v10266_v24  ;;  %v13595_v31 = vld [vmem:[%s14957_s1 + $0xf0] sm:$0xff] }
0x11be   : > { %6765 = vmatpush.bf16.msra.mxu0 %v9850_v16  ;;  %6779 = vmatpush.bf16.msra.mxu2 %v9978_v39  ;;  %v13619_v16 = vld [vmem:[%s14957_s1 + $0xd8] sm:$0xff]  ;;  %v13627_v39 = vld [vmem:[%s14957_s1 + $0xd0] sm:$0xff] }
0x11c0   : > { %6792 = vmatpush.bf16.msra.mxu1 %v10122_v63  ;;  %6806 = vmatpush.bf16.msra.mxu3 %v10250_v35  ;;  %v13638_v63 = vld [vmem:[%s14957_s1 + $0x20] sm:$0xff] }
0x11c1   : > { %14960 = vst [vmem:[#allocation37_spill] sm:$0xff] %v13638_v63 }
0x11c2   : > { %6766 = vmatpush.bf16.msra.mxu0 %v9834_v9  ;;  %6780 = vmatpush.bf16.msra.mxu2 %v9962_v30  ;;  %v13646_v9 = vld [vmem:[%s14957_s1 + $0x18] sm:$0xff] }
0x11c3   : > { %14962 = vst [vmem:[#allocation38_spill] sm:$0xff] %v13646_v9 }
0x11c4   : > { %6793 = vmatpush.bf16.msra.mxu1 %v10106_v37  ;;  %6807 = vmatpush.bf16.msra.mxu3 %v10234_v7  ;;  %v13659_v37 = vld [vmem:[%s14957_s1 + $0xb0] sm:$0xff]  ;;  %v13666_v7 = vld [vmem:[%s14961_s18] sm:$0xf]  ;;  %s15164_s18 = sld [smem:[#allocation34_spill]] }
0x11c5   : > { %v6887_v59 = vperm.slane %v13666_v7, 0 }
0x11c6   : > { %6767 = vmatpush.bf16.msra.mxu0 %v9818_v18  ;;  %6781 = vmatpush.bf16.msra.mxu2 %v9946_v38  ;;  %v13673_v18 = vld [vmem:[%s14957_s1] sm:$0xff] }
0x11c7   : > { %14966 = vst [vmem:[#allocation42_spill] sm:$0xff] %v13673_v18 }
0x11c8   : > { %6794 = vmatpush.bf16.msra.mxu1 %v10090_v27  ;;  %6808 = vmatpush.bf16.msra.mxu3 %v10218_v44 }
0x11ca   : > { %6768 = vmatpush.bf16.msra.mxu0 %v9802_v14  ;;  %6782 = vmatpush.bf16.msra.mxu2 %v9930_v56  ;;  %v13688_v14 = vld [vmem:[%s14957_s1 + $0x90] sm:$0xff] }
0x11cb   : > { %14969 = vst [vmem:[#allocation45_spill] sm:$0xff] %v13688_v14 }
0x11cc   : > { %6795 = vmatpush.bf16.msra.mxu1 %v10074_v29  ;;  %6809 = vmatpush.bf16.msra.mxu3 %v10202_v47  ;;  %v13699_v47 = vld [vmem:[%s14957_s1 + $0x80] sm:$0xff] }
0x11cd   : > { %6769 = vmatmul.bf16.vlgmr.msra.gmra.mxu0 %v13292_v40  ;;  %6783 = vmatmul.bf16.vlgmr.msra.gmra.mxu2 %v13299_v20  ;;  %v13585_v40 = vld [vmem:[%s14957_s1 + $0xf8] sm:$0xff]  ;;  %v6490_v20 = vpop.f32.mrf.mxu0  ;;  %14972 = vst [vmem:[#allocation48_spill] sm:$0xff] %v13699_v47 }
0x11ce   : > { %6923 = vmatpush.msrb.mxu0 %v13560_v11  ;;  %6943 = vmatpush.msrb.mxu2 %v13585_v40 }
0x11d0   : > { %6924 = vmatpush.msrb.mxu0 %v13568_v17  ;;  %6796 = vmatpush.bf16.msra.mxu1 %v10058_v58  ;;  %v6504_v24 = vpop.f32.mrf.mxu2  ;;  %v6518_v19 = vpop.f32.mrf.mxu1 }
0x11d1   : > { %6810 = vmatpush.bf16.msra.mxu3 %v10186_v53  ;;  %6944 = vmatpush.msrb.mxu2 %v13595_v31  ;;  %v6505_v35 = vadd.f32 %v6504_v24, %v6490_v20 }
0x11d2   : > { %6925 = vmatpush.msrb.mxu0 %v13572_v62 }
0x11d3   : > { %6797 = vmatmul.bf16.vlgmr.msra.gmra.mxu1 %v13324_v45  ;;  %v13603_v45 = vld [vmem:[%s14957_s1 + $0xe8] sm:$0xff]  ;;  %v6519_v46 = vadd.f32 %v6518_v19, %v6505_v35 }
0x11d4   : > { %6926 = vmatpush.msrb.mxu0 %v13577_v61  ;;  %6811 = vmatmul.bf16.vlgmr.msra.gmra.mxu3 %v13330_v55  ;;  %v13611_v55 = vld [vmem:[%s14957_s1 + $0xe0] sm:$0xff] }
0x11d5   : > { %6945 = vmatpush.msrb.mxu2 %v13603_v45  ;;  %v6492_v54 = vpop.f32.mrf.mxu0 }
0x11d6   : > { %6927 = vmatpush.msrb.mxu0 %v13581_v51  ;;  %v6532_v48 = vpop.f32.mrf.mxu3 }
0x11d7   : > { %6946 = vmatpush.msrb.mxu2 %v13611_v55  ;;  %v6533_v25 = vadd.f32 %v6532_v48, %v6519_v46 }
0x11d8   : > { %6928 = vmatpush.msrb.mxu0 %v13589_v1  ;;  %v6506_v32 = vpop.f32.mrf.mxu2  ;;  %v6520_v13 = vpop.f32.mrf.mxu1 }
0x11d9   : > { %6947 = vmatpush.msrb.mxu2 %v13619_v16  ;;  %v6507_v22 = vadd.f32 %v6506_v32, %v6492_v54 }
0x11da   : > { %6929 = vmatpush.msrb.mxu0 %v13598_v28 }
0x11db   : > { %6948 = vmatpush.msrb.mxu2 %v13627_v39  ;;  %v6521_v21 = vadd.f32 %v6520_v13, %v6507_v22 }
0x11dc   : > { %6930 = vmatpush.msrb.mxu0 %v13606_v43 }
0x11dd   : > { %6949 = vmatpush.msrb.mxu2 %v13635_v8  ;;  %v6546_v30 = vpop.f32.mrf.mxu0 }
0x11de   : > { %6931 = vmatpush.msrb.mxu0 %v13614_v5  ;;  %v6534_v52 = vpop.f32.mrf.mxu3  ;;  %v6547_v38 = vadd.f32 %v6546_v30, %v6533_v25 }
0x11df   : > { %6950 = vmatpush.msrb.mxu2 %v13643_v6  ;;  %v6535_v15 = vadd.f32 %v6534_v52, %v6521_v21 }
0x11e0   : > { %6932 = vmatpush.msrb.mxu0 %v13622_v12  ;;  %v6574_v27 = vpop.f32.mrf.mxu1  ;;  %v6560_v36 = vpop.f32.mrf.mxu2 }
0x11e1   : > { %6951 = vmatpush.msrb.mxu2 %v13651_v23  ;;  %v6561_v44 = vadd.f32 %v6560_v36, %v6547_v38  ;;  %v6888_v38 = vperm.slane %v13666_v7, 1 }
0x11e2   : > { %6933 = vmatpush.msrb.mxu0 %v13630_v4  ;;  %v13836_v4 = vld [vmem:[%s14957_s1 + $0x190] sm:$0xff] }
0x11e3   : > { %6952 = vmatpush.msrb.mxu2 %v13659_v37  ;;  %v13690_v50 = vadd.f32 %v6887_v59, %v6561_v44  ;;  %14989 = vst [vmem:[#allocation65_spill] sm:$0xff] %v13836_v4 }
0x11e4   : > { %6934 = vmatpush.msrb.mxu0 %v13638_v63 }
0x11e5   : > { %6953 = vmatpush.msrb.mxu2 %v13670_v60  ;;  %v6548_v26 = vpop.f32.mrf.mxu0  ;;  %14970 = vst [vmem:[#allocation46_spill] sm:$0xff] %v13690_v50  ;;  %v6899_v56 = vrot.slane %v13690_v50, 4 }
0x11e6   : > { %6935 = vmatpush.msrb.mxu0 %v13646_v9  ;;  %v6549_v57 = vadd.f32 %v6548_v26, %v6535_v15  ;;  %v6588_v29 = vpop.f32.mrf.mxu3 }
0x11e7   : > { %6954 = vmatpush.msrb.mxu2 %v13678_v42  ;;  %v6900_v2 = vadd.f32 %v6899_v56, %v13690_v50  ;;  %v6589_v54 = vadd.f32 %v6588_v29, %v6574_v27  ;;  %v13710_v29 = vld [vmem:[%s14957_s1 + $0x178] sm:$0xff]  ;;  %v6889_v50 = vperm.slane %v13666_v7, 2 }
0x11e8   : > { %6936 = vmatpush.msrb.mxu0 %v13654_v49  ;;  %v6576_v34 = vpop.f32.mrf.mxu1  ;;  %v6562_v41 = vpop.f32.mrf.mxu2  ;;  %6963 = vmatpush.msrb.mxu1 %v13710_v29 }
0x11e9   : > { %6955 = vmatpush.msrb.mxu2 %v13684_v33  ;;  %v6901_v3 = vrot.slane %v6900_v2, 2  ;;  %v6563_v58 = vadd.f32 %v6562_v41, %v6549_v57  ;;  %v13718_v41 = vld [vmem:[%s14957_s1 + $0x168] sm:$0xff] }
0x11ea   : > { %6937 = vmatpush.msrb.mxu0 %v13662_v10 }
0x11eb   : > { %6956 = vmatpush.msrb.mxu2 %v13688_v14  ;;  %v6902_v20 = vadd.f32 %v6901_v3, %v6900_v2  ;;  %v13703_v24 = vadd.f32 %v6887_v59, %v6563_v58  ;;  %v13714_v2 = vld [vmem:[%s14957_s1 + $0x170] sm:$0xff] }
0x11ec   : > { %6938 = vmatpush.msrb.mxu0 %v13673_v18  ;;  %6964 = vmatpush.msrb.mxu1 %v13714_v2  ;;  %v13802_v18 = vld [vmem:[%s14957_s1 + $0x1c8] sm:$0xff] }
0x11ed   : > { %6957 = vmatpush.msrb.mxu2 %v13694_v0  ;;  %v6602_v53 = vpop.f32.mrf.mxu0  ;;  %14973 = vst [vmem:[#allocation49_spill] sm:$0xff] %v13703_v24  ;;  %v6903_v19 = vrot.slane %v6902_v20, 1 }
0x11ee   : > { %v6590_v48 = vpop.f32.mrf.mxu3  ;;  %v6603_v32 = vadd.f32 %v6602_v53, %v6589_v54  ;;  %6965 = vmatpush.msrb.mxu1 %v13718_v41 }
0x11ef   : > { %6958 = vmatpush.msrb.mxu2 %v13699_v47  ;;  %v6904_v35 = vadd.f32 %v6903_v19, %v6902_v20  ;;  %v6591_v13 = vadd.f32 %v6590_v48, %v6576_v34  ;;  %v13722_v20 = vld [vmem:[%s14957_s1 + $0x160] sm:$0xff] }
0x11f0   : > { %v6616_v22 = vpop.f32.mrf.mxu2  ;;  %v6630_v30 = vpop.f32.mrf.mxu1  ;;  %6966 = vmatpush.msrb.mxu1 %v13722_v20 }
0x11f1   : > { %v6617_v21 = vadd.f32 %v6616_v22, %v6603_v32  ;;  %6939 = vmatmul.f32.vlgmr.msrb.gmra.mxu0 %v6904_v35  ;;  %v13729_v35 = vld [vmem:[%s14957_s1 + $0x158] sm:$0xff]  ;;  %v13733_v32 = vld [vmem:[%s14957_s1 + $0x150] sm:$0xff]  ;;  %v13736_v22 = vld [vmem:[%s14957_s1 + $0x148] sm:$0xff] }
0x11f2   : > { %6967 = vmatpush.msrb.mxu1 %v13729_v35 }
0x11f3   : > { %v6631_v52 = vadd.f32 %v6630_v30, %v6617_v21  ;;  %v13741_v30 = vld [vmem:[%s14957_s1 + $0x140] sm:$0xff] }
0x11f4   : > { %6968 = vmatpush.msrb.mxu1 %v13733_v32 }
0x11f5   : > { %v6604_v46 = vpop.f32.mrf.mxu0 }
0x11f6   : > { %v6605_v25 = vadd.f32 %v6604_v46, %v6591_v13  ;;  %v6644_v15 = vpop.f32.mrf.mxu3  ;;  %6969 = vmatpush.msrb.mxu1 %v13736_v22  ;;  %v13745_v46 = vld [vmem:[%s14957_s1 + $0x138] sm:$0xff] }
0x11f7   : > { %v6645_v59 = vadd.f32 %v6644_v15, %v6631_v52  ;;  %v13753_v15 = vld [vmem:[%s14957_s1 + $0x128] sm:$0xff] }
0x11f8   : > { %v6618_v27 = vpop.f32.mrf.mxu2  ;;  %v6632_v26 = vpop.f32.mrf.mxu1  ;;  %6970 = vmatpush.msrb.mxu1 %v13741_v30  ;;  %14977 = vst [vmem:[#allocation53_spill] sm:$0xff] %v13753_v15 }
0x11f9   : > { %v13706_v36 = vadd.f32 %v6888_v38, %v6645_v59  ;;  %v6619_v44 = vadd.f32 %v6618_v27, %v6605_v25  ;;  %v13757_v59 = vld [vmem:[%s14957_s1 + $0x120] sm:$0xff] }
0x11fa   : > { %6971 = vmatpush.msrb.mxu1 %v13745_v46  ;;  %14978 = vst [vmem:[#allocation54_spill] sm:$0xff] %v13757_v59 }
0x11fb   : > { %14974 = vst [vmem:[#allocation50_spill] sm:$0xff] %v13706_v36  ;;  %v6905_v57 = vrot.slane %v13706_v36, 4  ;;  %v6633_v56 = vadd.f32 %v6632_v26, %v6619_v44  ;;  %v13761_v44 = vld [vmem:[%s14957_s1 + $0x118] sm:$0xff] }
0x11fc   : > { %14979 = vst [vmem:[#allocation55_spill] sm:$0xff] %v13761_v44 }
0x11fd   : > { %v6906_v34 = vadd.f32 %v6905_v57, %v13706_v36 }
0x11fe   : > { %v6646_v3 = vpop.f32.mrf.mxu3 }
0x11ff   : > { %v6907_v58 = vrot.slane %v6906_v34, 2  ;;  %v6647_v53 = vadd.f32 %v6646_v3, %v6633_v56  ;;  %v13765_v56 = vld [vmem:[%s14957_s1 + $0x110] sm:$0xff] }
0x1200   : > { %14980 = vst [vmem:[#allocation56_spill] sm:$0xff] %v13765_v56 }
0x1201   : > { %v6908_v19 = vadd.f32 %v6907_v58, %v6906_v34  ;;  %v13725_v54 = vadd.f32 %v6888_v38, %v6647_v53  ;;  %v13749_v38 = vld [vmem:[%s14957_s1 + $0x130] sm:$0xff]  ;;  %v13769_v58 = vld [vmem:[%s14957_s1 + $0x108] sm:$0xff] }
0x1202   : > { %14976 = vst [vmem:[#allocation52_spill] sm:$0xff] %v13749_v38  ;;  %6972 = vmatpush.msrb.mxu1 %v13749_v38 }
0x1203   : > { %14975 = vst [vmem:[#allocation51_spill] sm:$0xff] %v13725_v54  ;;  %v6909_v48 = vrot.slane %v6908_v19, 1  ;;  %v13777_v54 = vld [vmem:[%s14957_s1 + $0x1f8] sm:$0xff] }
0x1204   : > { %6973 = vmatpush.msrb.mxu1 %v13753_v15  ;;  %14981 = vst [vmem:[#allocation57_spill] sm:$0xff] %v13769_v58  ;;  %6983 = vmatpush.msrb.mxu3 %v13777_v54 }
0x1205   : > { %v6910_v13 = vadd.f32 %v6909_v48, %v6908_v19  ;;  %v13773_v19 = vld [vmem:[%s14957_s1 + $0x100] sm:$0xff] }
0x1206   : > { %6974 = vmatpush.msrb.mxu1 %v13757_v59  ;;  %14982 = vst [vmem:[#allocation58_spill] sm:$0xff] %v13773_v19 }
0x1207   : > { %6959 = vmatmul.f32.vlgmr.msrb.gmra.mxu2 %v6910_v13 }
0x1208   : > { %6975 = vmatpush.msrb.mxu1 %v13761_v44  ;;  %v13826_v44 = vld [vmem:[%s14957_s1 + $0x1a0] sm:$0xff] }
0x1209   : > { %14986 = vst [vmem:[#allocation62_spill] sm:$0xff] %v13826_v44 }
0x120a   : > { %v6658_v21 = vpop.f32.mrf.mxu0  ;;  %6976 = vmatpush.msrb.mxu1 %v13765_v56 }
0x120c   : > { %6977 = vmatpush.msrb.mxu1 %v13769_v58 }
0x120e   : > { %6978 = vmatpush.msrb.mxu1 %v13773_v19 }
0x1210   : > { %v6672_v25 = vpop.f32.mrf.mxu2  ;;  %v6686_v52 = vpop.f32.mrf.mxu1 }
0x1212   : > { %v6660_v26 = vpop.f32.mrf.mxu0 }
0x1216   : > { %v6700_v27 = vpop.f32.mrf.mxu3 }
0x1218   : > { %v6674_v57 = vpop.f32.mrf.mxu2  ;;  %v6688_v3 = vpop.f32.mrf.mxu1 }
0x1219   : > { %v6675_v34 = vadd.f32 %v6674_v57, %v6660_v26  ;;  %v13781_v26 = vld [vmem:[%s14957_s1 + $0x1f0] sm:$0xff]  ;;  %v6673_v57 = vadd.f32 %v6672_v25, %v6658_v21 }
0x121a   : > { %6984 = vmatpush.msrb.mxu3 %v13781_v26  ;;  %v13797_v21 = vld [vmem:[%s14957_s1 + $0x1d0] sm:$0xff] }
0x121b   : > { %v6689_v53 = vadd.f32 %v6688_v3, %v6675_v34  ;;  %v13785_v34 = vld [vmem:[%s14957_s1 + $0x1e8] sm:$0xff]  ;;  %v13788_v3 = vld [vmem:[%s14957_s1 + $0x1e0] sm:$0xff]  ;;  %v6687_v36 = vadd.f32 %v6686_v52, %v6673_v57 }
0x121c   : > { %6985 = vmatpush.msrb.mxu3 %v13785_v34 }
0x121e   : > { %v6702_v48 = vpop.f32.mrf.mxu3  ;;  %6986 = vmatpush.msrb.mxu3 %v13788_v3 }
0x121f   : > { %v6703_v13 = vadd.f32 %v6702_v48, %v6689_v53  ;;  %v13793_v53 = vld [vmem:[%s14957_s1 + $0x1d8] sm:$0xff]  ;;  %v6701_v48 = vadd.f32 %v6700_v27, %v6687_v36  ;;  %v13806_v27 = vld [vmem:[%s14957_s1 + $0x1c0] sm:$0xff] }
0x1220   : > { %6987 = vmatpush.msrb.mxu3 %v13793_v53 }
0x1222   : > { %6988 = vmatpush.msrb.mxu3 %v13797_v21 }
0x1224   : > { %6989 = vmatpush.msrb.mxu3 %v13802_v18 }
0x1226   : > { %6990 = vmatpush.msrb.mxu3 %v13806_v27 }
0x122a   : > { %v6714_v24 = vpop.f32.mrf.mxu0 }
0x122b   : > { %v6715_v25 = vadd.f32 %v6714_v24, %v6701_v48  ;;  %v13812_v48 = vld [vmem:[%s14957_s1 + $0x1b8] sm:$0xff] }
0x122c   : > { %6991 = vmatpush.msrb.mxu3 %v13812_v48 }
0x1230   : > { %v6728_v19 = vpop.f32.mrf.mxu2  ;;  %v6742_v24 = vpop.f32.mrf.mxu1 }
0x1231   : > { %v6729_v52 = vadd.f32 %v6728_v19, %v6715_v25  ;;  %v13817_v25 = vld [vmem:[%s14957_s1 + $0x1b0] sm:$0xff] }
0x1232   : > { %v6716_v57 = vpop.f32.mrf.mxu0  ;;  %14984 = vst [vmem:[#allocation60_spill] sm:$0xff] %v13817_v25  ;;  %6992 = vmatpush.msrb.mxu3 %v13817_v25 }
0x1233   : > { %v6717_v36 = vadd.f32 %v6716_v57, %v6703_v13  ;;  %v13808_v58 = vadd.f32 %v6889_v50, %v6729_v52  ;;  %v13822_v57 = vld [vmem:[%s14957_s1 + $0x1a8] sm:$0xff] }
0x1234   : > { %14985 = vst [vmem:[#allocation61_spill] sm:$0xff] %v13822_v57  ;;  %6993 = vmatpush.msrb.mxu3 %v13822_v57  ;;  %v13840_v57 = vld [vmem:[%s14957_s1 + $0x188] sm:$0xff] }
0x1235   : > { %14983 = vst [vmem:[#allocation59_spill] sm:$0xff] %v13808_v58  ;;  %v6911_v10 = vrot.slane %v13808_v58, 4 }
0x1236   : > { %v6756_v19 = vpop.f32.mrf.mxu3  ;;  %6994 = vmatpush.msrb.mxu3 %v13826_v44  ;;  %14990 = vst [vmem:[#allocation66_spill] sm:$0xff] %v13840_v57 }
0x1237   : > { %v6912_v13 = vadd.f32 %v6911_v10, %v13808_v58  ;;  %v13832_v10 = vld [vmem:[%s14957_s1 + $0x198] sm:$0xff] }
0x1238   : > { %v6730_v52 = vpop.f32.mrf.mxu2  ;;  %14988 = vst [vmem:[#allocation64_spill] sm:$0xff] %v13832_v10  ;;  %6995 = vmatpush.msrb.mxu3 %v13832_v10  ;;  %v6744_v63 = vpop.f32.mrf.mxu1 }
0x1239   : > { %v6913_v56 = vrot.slane %v6912_v13, 2  ;;  %v6731_v49 = vadd.f32 %v6730_v52, %v6717_v36 }
0x123a   : > { %6996 = vmatpush.msrb.mxu3 %v13836_v4 }
0x123b   : > { %v6914_v9 = vadd.f32 %v6913_v56, %v6912_v13  ;;  %v13828_v59 = vadd.f32 %v6889_v50, %v6731_v49  ;;  %v13844_v49 = vld [vmem:[%s14957_s1 + $0x180] sm:$0xff]  ;;  %v6757_v56 = vadd.f32 %v6756_v19, %v6742_v24 }
0x123c   : > { %6997 = vmatpush.msrb.mxu3 %v13840_v57  ;;  %14991 = vst [vmem:[#allocation67_spill] sm:$0xff] %v13844_v49 }
0x123d   : > { %14987 = vst [vmem:[#allocation63_spill] sm:$0xff] %v13828_v59  ;;  %v6915_v58 = vrot.slane %v6914_v9, 1 }
0x123e   : > { %v6758_v15 = vpop.f32.mrf.mxu3  ;;  %6998 = vmatpush.msrb.mxu3 %v13844_v49 }
0x123f   : > { %v6916_v36 = vadd.f32 %v6915_v58, %v6914_v9  ;;  %v6759_v52 = vadd.f32 %v6758_v15, %v6744_v63  ;;  %v6890_v15 = vperm.slane %v13666_v7, 3 }
0x1241   : > { %6979 = vmatmul.f32.vlgmr.msrb.gmra.mxu1 %v6916_v36 }
0x124a   : > { %v6770_v50 = vpop.f32.mrf.mxu0 }
0x124b   : > { %v6771_v13 = vadd.f32 %v6770_v50, %v6757_v56 }
0x1250   : > { %v6784_v59 = vpop.f32.mrf.mxu2  ;;  %v6798_v25 = vpop.f32.mrf.mxu1 }
0x1251   : > { %v6785_v10 = vadd.f32 %v6784_v59, %v6771_v13 }
0x1252   : > { %v6772_v44 = vpop.f32.mrf.mxu0 }
0x1253   : > { %v6773_v9 = vadd.f32 %v6772_v44, %v6759_v52  ;;  %v6799_v63 = vadd.f32 %v6798_v25, %v6785_v10  ;;  %v13855_v52 = vld [vmem:[%s14992_s16] sm:$0xff] }
0x1254   : > { %7006 = vst [vmem:[#allocation1] ss:$2 sm:$0xff] %v13855_v52 }
0x1257   : > { %v6812_v58 = vpop.f32.mrf.mxu3 }
0x1258   : > { %v6813_v4 = vadd.f32 %v6812_v58, %v6799_v63  ;;  %v6786_v36 = vpop.f32.mrf.mxu2  ;;  %v6800_v12 = vpop.f32.mrf.mxu1  ;;  %v14995_v63 = vld [vmem:[#allocation52_spill] sm:$0xff]  ;;  %v14997_v58 = vld [vmem:[#allocation35_spill] sm:$0xff] }
0x1259   : > { %v6787_v38 = vadd.f32 %v6786_v36, %v6773_v9  ;;  %v14994_v9 = vld [vmem:[#allocation36_spill] sm:$0xff] }
0x125a   : > { %v13848_v57 = vadd.f32 %v6890_v15, %v6813_v4 }
0x125b   : > { %v6801_v19 = vadd.f32 %v6800_v12, %v6787_v38  ;;  %v7010_v4 = vld.sshfl [vmem:[#allocation1 + $0x8] sm:$0xff pattern:$0x75316420] }
0x125c   : > { %v6917_v49 = vrot.slane %v13848_v57, 4  ;;  %10301 = vmatpush.msk.msra.mxu2 %vm1526_vm6, %v7010_v4  ;;  %v13873_v12 = vld [vmem:[%s14992_s16 + $0x8] sm:$0xff]  ;;  %v15003_v4 = vld [vmem:[#allocation38_spill] sm:$0xff] }
0x125d   : > { %7008 = vst [vmem:[#allocation1 + $0x10] ss:$2 sm:$0xff] %v13873_v12 }
0x125e   : > { %v6918_v24 = vadd.f32 %v6917_v49, %v13848_v57  ;;  %7160 = vmatpush.msrb.mxu2 %v13585_v40  ;;  %v7009_v49 = vld.sshfl [vmem:[#allocation1] sm:$0xff pattern:$0x75316420] }
0x125f   : > { %v6814_v59 = vpop.f32.mrf.mxu3  ;;  %10299 = vmatpush.msk.msra.mxu0 %vm1526_vm6, %v7009_v49  ;;  %7232 = vst [vmem:[#allocation1] ss:$2 sm:$0xff] %v13855_v52  ;;  %v15005_v49 = vld [vmem:[#allocation64_spill] sm:$0xff] }
0x1260   : > { %v6919_v50 = vrot.slane %v6918_v24, 2  ;;  %v6815_v56 = vadd.f32 %v6814_v59, %v6801_v19  ;;  %7161 = vmatpush.msrb.mxu2 %v13595_v31  ;;  %v14999_v19 = vld [vmem:[#allocation61_spill] sm:$0xff] }
0x1261   : > { %7140 = vmatpush.msrb.mxu0 %v13560_v11  ;;  %v15000_v59 = vld [vmem:[#allocation37_spill] sm:$0xff] }
0x1262   : > { %v6920_v44 = vadd.f32 %v6919_v50, %v6918_v24  ;;  %v13852_v25 = vadd.f32 %v6890_v15, %v6815_v56  ;;  %7162 = vmatpush.msrb.mxu2 %v13603_v45  ;;  %v14996_v15 = vld [vmem:[#allocation60_spill] sm:$0xff]  ;;  %v14998_v24 = vld [vmem:[#allocation53_spill] sm:$0xff] }
0x1263   : > { %7141 = vmatpush.msrb.mxu0 %v13568_v17 }
0x1264   : > { %14993 = vst [vmem:[#allocation68_spill] sm:$0xff] %v13852_v25  ;;  %v6921_v7 = vrot.slane %v6920_v44, 1  ;;  %7163 = vmatpush.msrb.mxu2 %v13611_v55  ;;  %v7012_v38 = vld.sshfl [vmem:[#allocation1 + $0x18] sm:$0xff pattern:$0x75316420] }
0x1265   : > { %10305 = vmatpush.msk.msra.mxu3 %vm1526_vm6, %v7012_v38  ;;  %v7011_v13 = vld.sshfl [vmem:[#allocation1 + $0x10] sm:$0xff pattern:$0x75316420]  ;;  %7142 = vmatpush.msrb.mxu0 %v13572_v62  ;;  %v15004_v38 = vld [vmem:[#allocation55_spill] sm:$0xff] }
0x1266   : > { %v6922_v10 = vadd.f32 %v6921_v7, %v6920_v44  ;;  %7164 = vmatpush.msrb.mxu2 %v13619_v16  ;;  %10303 = vmatpush.msk.msra.mxu1 %vm1526_vm6, %v7011_v13  ;;  %7234 = vst [vmem:[#allocation1 + $0x10] ss:$2 sm:$0xff] %v13873_v12  ;;  %v15001_v44 = vld [vmem:[#allocation54_spill] sm:$0xff]  ;;  %v15006_v25 = vld [vmem:[#allocation39_spill] sm:$0xff] }
0x1267   : > { %7143 = vmatpush.msrb.mxu0 %v13577_v61  ;;  %v15002_v7 = vld [vmem:[#allocation62_spill] sm:$0xff] }
0x1268   : > { %6999 = vmatmul.f32.vlgmr.msrb.gmra.mxu3 %v6922_v10  ;;  %7165 = vmatpush.msrb.mxu2 %v13627_v39 }
0x1269   : > { %7180 = vmatpush.msrb.mxu1 %v13710_v29  ;;  %7200 = vmatpush.msrb.mxu3 %v13777_v54 }
0x126a   : > { %7166 = vmatpush.msrb.mxu2 %v13635_v8  ;;  %7144 = vmatpush.msrb.mxu0 %v13581_v51 }
0x126b   : > { %7181 = vmatpush.msrb.mxu1 %v13714_v2  ;;  %7201 = vmatpush.msrb.mxu3 %v13781_v26 }
0x126c   : > { %7167 = vmatpush.msrb.mxu2 %v13643_v6  ;;  %7145 = vmatpush.msrb.mxu0 %v13589_v1 }
0x126d   : > { %7182 = vmatpush.msrb.mxu1 %v13718_v41  ;;  %7202 = vmatpush.msrb.mxu3 %v13785_v34 }
0x126e   : > { %7168 = vmatpush.msrb.mxu2 %v13651_v23  ;;  %7146 = vmatpush.msrb.mxu0 %v13598_v28  ;;  %v6940_v50 = vpop.f32.mrf.mxu0 }
0x126f   : > { %7183 = vmatpush.msrb.mxu1 %v13722_v20  ;;  %7203 = vmatpush.msrb.mxu3 %v13788_v3 }
0x1270   : > { %7169 = vmatpush.msrb.mxu2 %v13659_v37  ;;  %7147 = vmatpush.msrb.mxu0 %v13606_v43 }
0x1271   : > { %7184 = vmatpush.msrb.mxu1 %v13729_v35  ;;  %7204 = vmatpush.msrb.mxu3 %v13793_v53 }
0x1272   : > { %7170 = vmatpush.msrb.mxu2 %v13670_v60  ;;  %7148 = vmatpush.msrb.mxu0 %v13614_v5 }
0x1273   : > { %7185 = vmatpush.msrb.mxu1 %v13733_v32  ;;  %7205 = vmatpush.msrb.mxu3 %v13797_v21 }
0x1274   : > { %7171 = vmatpush.msrb.mxu2 %v13678_v42  ;;  %7149 = vmatpush.msrb.mxu0 %v14994_v9  ;;  %v15009_v42 = vld [vmem:[#allocation40_spill] sm:$0xff] }
0x1275   : > { %7186 = vmatpush.msrb.mxu1 %v13736_v22  ;;  %7206 = vmatpush.msrb.mxu3 %v13802_v18 }
0x1276   : > { %7172 = vmatpush.msrb.mxu2 %v13684_v33  ;;  %7150 = vmatpush.msrb.mxu0 %v14997_v58 }
0x1277   : > { %7187 = vmatpush.msrb.mxu1 %v13741_v30  ;;  %7207 = vmatpush.msrb.mxu3 %v13806_v27 }
0x1278   : > { %7173 = vmatpush.msrb.mxu2 %v13688_v14  ;;  %7151 = vmatpush.msrb.mxu0 %v15000_v59  ;;  %v15008_v14 = vld [vmem:[#allocation65_spill] sm:$0xff] }
0x1279   : > { %7188 = vmatpush.msrb.mxu1 %v13745_v46  ;;  %7208 = vmatpush.msrb.mxu3 %v13812_v48 }
0x127a   : > { %7174 = vmatpush.msrb.mxu2 %v13694_v0  ;;  %7152 = vmatpush.msrb.mxu0 %v15003_v4  ;;  %v15007_v0 = vld [vmem:[#allocation56_spill] sm:$0xff]  ;;  %v15012_v4 = vld [vmem:[#allocation42_spill] sm:$0xff] }
0x127b   : > { %7189 = vmatpush.msrb.mxu1 %v14995_v63  ;;  %7209 = vmatpush.msrb.mxu3 %v14996_v15 }
0x127c   : > { %7175 = vmatpush.msrb.mxu2 %v13699_v47  ;;  %7153 = vmatpush.msrb.mxu0 %v15006_v25 }
0x127d   : > { %7190 = vmatpush.msrb.mxu1 %v14998_v24  ;;  %7210 = vmatpush.msrb.mxu3 %v14999_v19 }
0x127e   : > { %7154 = vmatpush.msrb.mxu0 %v15009_v42 }
0x127f   : > { %7191 = vmatpush.msrb.mxu1 %v15001_v44  ;;  %7211 = vmatpush.msrb.mxu3 %v15002_v7  ;;  %v15010_v44 = vld [vmem:[#allocation57_spill] sm:$0xff] }
0x1280   : > { %7155 = vmatpush.msrb.mxu0 %v15012_v4  ;;  %v15017_v4 = vld [vmem:[#allocation59_spill] sm:$0xff] }
0x1281   : > { %7192 = vmatpush.msrb.mxu1 %v15004_v38  ;;  %7212 = vmatpush.msrb.mxu3 %v15005_v49  ;;  %v15013_v38 = vld [vmem:[#allocation58_spill] sm:$0xff] }
0x1283   : > { %7193 = vmatpush.msrb.mxu1 %v15007_v0  ;;  %7213 = vmatpush.msrb.mxu3 %v15008_v14 }
0x1285   : > { %7194 = vmatpush.msrb.mxu1 %v15010_v44 }
0x1287   : > { %7195 = vmatpush.msrb.mxu1 %v15013_v38 }
0x128a   : > { %v6960_v36 = vpop.f32.mrf.mxu2 }
0x128b   : > { %v6961_v10 = vadd.f32 %v6960_v36, %v6940_v50  ;;  %v15011_v36 = vld [vmem:[#allocation66_spill] sm:$0xff] }
0x128c   : > { %7214 = vmatpush.msrb.mxu3 %v15011_v36  ;;  %v15015_v36 = vld [vmem:[#allocation46_spill] sm:$0xff] }
0x12be   : > { %v6980_v56 = vpop.f32.mrf.mxu1 }
0x12bf   : > { %v6981_v13 = vadd.f32 %v6980_v56, %v6961_v10  ;;  %v15014_v56 = vld [vmem:[#allocation67_spill] sm:$0xff] }
0x12c0   : > { %7215 = vmatpush.msrb.mxu3 %v15014_v56 }
0x12eb   : > { %v7000_v47 = vpop.f32.mrf.mxu3 }
0x12ec   : > { %v7001_v33 = vadd.f32 %v7000_v47, %v6981_v13 }
0x12ee   : > { %v7003_v50 = vmul.f32 0.0009765625, %v7001_v33 }
0x12f0   : > { %10300 = vmatmul.msk.f32.vlgmr.msra.gmra.mxu0 %vm1522_vm7, %v7003_v50  ;;  %10302 = vmatmul.msk.f32.vlgmr.msra.gmra.mxu2 %vm1522_vm7, %v7003_v50 }
0x12f1   : > { %10304 = vmatmul.msk.f32.vlgmr.msra.gmra.mxu1 %vm1522_vm7, %v7003_v50  ;;  %10306 = vmatmul.msk.f32.vlgmr.msra.gmra.mxu3 %vm1522_vm7, %v7003_v50 }
0x136d   : > { %v7041_v47 = vpop.f32.mrf.mxu0 }
0x136e   : > { %v7104_v10 = vperm.slane %v7041_v47, 0  ;;  %v7081_v13 = vpop.f32.mrf.mxu1 }
0x136f   : > { %v7106_v44 = vperm.slane %v7081_v13, 0  ;;  %v15019_v13 = vld [vmem:[#allocation50_spill] sm:$0xff] }
0x1370   : > { %v13937_v33 = vsub.f32 %v15015_v36, %v7104_v10 }
0x1371   : > { %v13940_v42 = vsub.f32 %v15017_v4, %v7106_v44 }
0x1372   : > { %15016 = vst [vmem:[#allocation36_spill] sm:$0xff] %v13937_v33  ;;  %v7112_v56 = vmul.f32 %v13937_v33, %v13937_v33 }
0x1373   : > { %15018 = vst [vmem:[#allocation46_spill] sm:$0xff] %v13940_v42  ;;  %v7114_v38 = vmul.f32 %v13940_v42, %v13940_v42  ;;  %v7061_v14 = vpop.f32.mrf.mxu2 }
0x1374   : > { %v7116_v0 = vrot.slane %v7112_v56, 4  ;;  %v7105_v25 = vperm.slane %v7061_v14, 0  ;;  %v7101_v50 = vpop.f32.mrf.mxu3 }
0x1375   : > { %v7128_v49 = vrot.slane %v7114_v38, 4  ;;  %v7107_v47 = vperm.slane %v7101_v50, 0 }
0x1376   : > { %v7117_v7 = vadd.f32 %v7116_v0, %v7112_v56  ;;  %v13947_v59 = vsub.f32 %v15019_v13, %v7105_v25 }
0x1377   : > { %v7129_v36 = vadd.f32 %v7128_v49, %v7114_v38  ;;  %v13950_v44 = vsub.f32 %v13848_v57, %v7107_v47 }
0x1378   : > { %15020 = vst [vmem:[#allocation59_spill] sm:$0xff] %v13947_v59  ;;  %v7118_v4 = vrot.slane %v7117_v7, 2  ;;  %v7113_v10 = vmul.f32 %v13947_v59, %v13947_v59 }
0x1379   : > { %15021 = vst [vmem:[#allocation50_spill] sm:$0xff] %v13950_v44  ;;  %v7130_v33 = vrot.slane %v7129_v36, 2  ;;  %v7115_v42 = vmul.f32 %v13950_v44, %v13950_v44 }
0x137a   : > { %v7119_v14 = vadd.f32 %v7118_v4, %v7117_v7  ;;  %v7122_v19 = vrot.slane %v7113_v10, 4  ;;  %v7235_v7 = vld.sshfl [vmem:[#allocation1] sm:$0xff pattern:$0x75316420]  ;;  %v15043_v4 = vld [vmem:[#allocation66_spill] sm:$0xff] }
0x137b   : > { %v7131_v24 = vadd.f32 %v7130_v33, %v7129_v36  ;;  %v7134_v50 = vrot.slane %v7115_v42, 4  ;;  %v7236_v33 = vld.sshfl [vmem:[#allocation1 + $0x8] sm:$0xff pattern:$0x75316420]  ;;  %10307 = vmatpush.msk.msra.mxu0 %vm1526_vm6, %v7235_v7 }
0x137c   : > { %v7120_v0 = vrot.slane %v7119_v14, 1  ;;  %v7123_v56 = vadd.f32 %v7122_v19, %v7113_v10  ;;  %10309 = vmatpush.msk.msra.mxu2 %vm1526_vm6, %v7236_v33  ;;  %7477 = vst [vmem:[#allocation1] ss:$2 sm:$0xff] %v13855_v52  ;;  %v15040_v19 = vld [vmem:[#allocation40_spill] sm:$0xff]  ;;  %v15044_v10 = vld [vmem:[#allocation42_spill] sm:$0xff] }
0x137d   : > { %v7132_v25 = vrot.slane %v7131_v24, 1  ;;  %v7135_v13 = vadd.f32 %v7134_v50, %v7115_v42  ;;  %v7237_v42 = vld.sshfl [vmem:[#allocation1 + $0x10] sm:$0xff pattern:$0x75316420]  ;;  %v15051_v33 = vld [vmem:[#allocation68_spill] sm:$0xff] }
0x137e   : > { %v7121_v38 = vadd.f32 %v7120_v0, %v7119_v14  ;;  %v7124_v49 = vrot.slane %v7123_v56, 2  ;;  %10311 = vmatpush.msk.msra.mxu1 %vm1526_vm6, %v7237_v42  ;;  %v15045_v14 = vld [vmem:[#allocation48_spill] sm:$0xff]  ;;  %v15046_v0 = vld [vmem:[#allocation58_spill] sm:$0xff]  ;;  %v7390_v42 = vrot.slane %v15051_v33, 4 }
0x137f   : > { %v7133_v57 = vadd.f32 %v7132_v25, %v7131_v24  ;;  %v7136_v47 = vrot.slane %v7135_v13, 2  ;;  %v7238_v24 = vld.sshfl [vmem:[#allocation1 + $0x18] sm:$0xff pattern:$0x75316420] }
0x1380   : > { %v7125_v60 = vadd.f32 %v7124_v49, %v7123_v56  ;;  %7156 = vmatmul.f32.vlgmr.msrb.gmra.mxu0 %v7121_v38  ;;  %10313 = vmatpush.msk.msra.mxu3 %vm1526_vm6, %v7238_v24  ;;  %7479 = vst [vmem:[#allocation1 + $0x10] ss:$2 sm:$0xff] %v13873_v12  ;;  %v15047_v56 = vld [vmem:[#allocation67_spill] sm:$0xff] }
0x1381   : > { %v7137_v58 = vadd.f32 %v7136_v47, %v7135_v13  ;;  %7196 = vmatmul.f32.vlgmr.msrb.gmra.mxu1 %v7133_v57  ;;  %7396 = vmatpush.msrb.mxu0 %v13560_v11  ;;  %v15022_v11 = vld [vmem:[#allocation52_spill] sm:$0xff]  ;;  %v15048_v13 = vld [vmem:[#allocation49_spill] sm:$0xff]  ;;  %v15049_v49 = vld [vmem:[#allocation51_spill] sm:$0xff] }
0x1382   : > { %v7126_v59 = vrot.slane %v7125_v60, 1  ;;  %7436 = vmatpush.msrb.mxu1 %v13710_v29  ;;  %v7372_v38 = vrot.slane %v15048_v13, 4  ;;  %v7378_v57 = vrot.slane %v15049_v49, 4  ;;  %v15050_v47 = vld [vmem:[#allocation63_spill] sm:$0xff] }
0x1383   : > { %v7138_v15 = vrot.slane %v7137_v58, 1  ;;  %7397 = vmatpush.msrb.mxu0 %v13568_v17  ;;  %v15023_v17 = vld [vmem:[#allocation60_spill] sm:$0xff]  ;;  %v7384_v7 = vrot.slane %v15050_v47, 4 }
0x1384   : > { %v7127_v63 = vadd.f32 %v7126_v59, %v7125_v60  ;;  %7437 = vmatpush.msrb.mxu1 %v13714_v2  ;;  %v15037_v60 = vld [vmem:[#allocation45_spill] sm:$0xff]  ;;  %v15041_v59 = vld [vmem:[#allocation47_spill] sm:$0xff] }
0x1385   : > { %v7139_v44 = vadd.f32 %v7138_v15, %v7137_v58  ;;  %7398 = vmatpush.msrb.mxu0 %v13572_v62  ;;  %v15024_v62 = vld [vmem:[#allocation35_spill] sm:$0xff]  ;;  %v15039_v15 = vld [vmem:[#allocation65_spill] sm:$0xff] }
0x1386   : > { %7176 = vmatmul.f32.vlgmr.msrb.gmra.mxu2 %v7127_v63  ;;  %7438 = vmatpush.msrb.mxu1 %v13718_v41  ;;  %v15038_v63 = vld [vmem:[#allocation56_spill] sm:$0xff] }
0x1387   : > { %7216 = vmatmul.f32.vlgmr.msrb.gmra.mxu3 %v7139_v44  ;;  %7416 = vmatpush.msrb.mxu2 %v13585_v40  ;;  %v15027_v40 = vld [vmem:[#allocation61_spill] sm:$0xff] }
0x1388   : > { %7456 = vmatpush.msrb.mxu3 %v13777_v54  ;;  %7399 = vmatpush.msrb.mxu0 %v13577_v61  ;;  %v15025_v61 = vld [vmem:[#allocation41_spill] sm:$0xff] }
0x1389   : > { %7417 = vmatpush.msrb.mxu2 %v13595_v31  ;;  %7439 = vmatpush.msrb.mxu1 %v13722_v20  ;;  %v15029_v31 = vld [vmem:[#allocation43_spill] sm:$0xff]  ;;  %v15042_v44 = vld [vmem:[#allocation57_spill] sm:$0xff] }
0x138a   : > { %7457 = vmatpush.msrb.mxu3 %v13781_v26  ;;  %7400 = vmatpush.msrb.mxu0 %v13581_v51  ;;  %v15026_v51 = vld [vmem:[#allocation53_spill] sm:$0xff] }
0x138b   : > { %7418 = vmatpush.msrb.mxu2 %v13603_v45  ;;  %7440 = vmatpush.msrb.mxu1 %v13729_v35  ;;  %v15031_v45 = vld [vmem:[#allocation62_spill] sm:$0xff] }
0x138c   : > { %7458 = vmatpush.msrb.mxu3 %v13785_v34  ;;  %7401 = vmatpush.msrb.mxu0 %v13589_v1  ;;  %v15028_v1 = vld [vmem:[#allocation37_spill] sm:$0xff] }
0x138d   : > { %7419 = vmatpush.msrb.mxu2 %v13611_v55  ;;  %7441 = vmatpush.msrb.mxu1 %v13733_v32 }
0x138e   : > { %7459 = vmatpush.msrb.mxu3 %v13788_v3  ;;  %7402 = vmatpush.msrb.mxu0 %v13598_v28  ;;  %v15030_v28 = vld [vmem:[#allocation54_spill] sm:$0xff] }
0x138f   : > { %7420 = vmatpush.msrb.mxu2 %v13619_v16  ;;  %7442 = vmatpush.msrb.mxu1 %v13736_v22  ;;  %v15033_v16 = vld [vmem:[#allocation44_spill] sm:$0xff] }
0x1390   : > { %7460 = vmatpush.msrb.mxu3 %v13793_v53  ;;  %7403 = vmatpush.msrb.mxu0 %v13606_v43 }
0x1391   : > { %7421 = vmatpush.msrb.mxu2 %v13627_v39  ;;  %7443 = vmatpush.msrb.mxu1 %v13741_v30 }
0x1392   : > { %7461 = vmatpush.msrb.mxu3 %v13797_v21  ;;  %7404 = vmatpush.msrb.mxu0 %v13614_v5  ;;  %v15032_v5 = vld [vmem:[#allocation38_spill] sm:$0xff] }
0x1393   : > { %7422 = vmatpush.msrb.mxu2 %v13635_v8  ;;  %7444 = vmatpush.msrb.mxu1 %v13745_v46  ;;  %v15034_v8 = vld [vmem:[#allocation55_spill] sm:$0xff] }
0x1394   : > { %7462 = vmatpush.msrb.mxu3 %v13802_v18  ;;  %7405 = vmatpush.msrb.mxu0 %v14994_v9 }
0x1395   : > { %7423 = vmatpush.msrb.mxu2 %v13643_v6  ;;  %7445 = vmatpush.msrb.mxu1 %v15022_v11  ;;  %v15035_v6 = vld [vmem:[#allocation64_spill] sm:$0xff] }
0x1396   : > { %7463 = vmatpush.msrb.mxu3 %v13806_v27  ;;  %7406 = vmatpush.msrb.mxu0 %v15024_v62 }
0x1397   : > { %7424 = vmatpush.msrb.mxu2 %v13651_v23  ;;  %7446 = vmatpush.msrb.mxu1 %v15026_v51 }
0x1398   : > { %7464 = vmatpush.msrb.mxu3 %v13812_v48  ;;  %7407 = vmatpush.msrb.mxu0 %v15028_v1  ;;  %v7373_v1 = vadd.f32 %v7372_v38, %v15048_v13 }
0x1399   : > { %7425 = vmatpush.msrb.mxu2 %v13659_v37  ;;  %7447 = vmatpush.msrb.mxu1 %v15030_v28  ;;  %v15036_v37 = vld [vmem:[#allocation39_spill] sm:$0xff] }
0x139a   : > { %7465 = vmatpush.msrb.mxu3 %v15023_v17  ;;  %7408 = vmatpush.msrb.mxu0 %v15032_v5  ;;  %v7391_v5 = vadd.f32 %v7390_v42, %v15051_v33 }
0x139b   : > { %7426 = vmatpush.msrb.mxu2 %v15025_v61  ;;  %7448 = vmatpush.msrb.mxu1 %v15034_v8 }
0x139c   : > { %7466 = vmatpush.msrb.mxu3 %v15027_v40  ;;  %7409 = vmatpush.msrb.mxu0 %v15036_v37  ;;  %v7374_v37 = vrot.slane %v7373_v1, 2 }
0x139d   : > { %7427 = vmatpush.msrb.mxu2 %v15029_v31  ;;  %7449 = vmatpush.msrb.mxu1 %v15038_v63 }
0x139e   : > { %7467 = vmatpush.msrb.mxu3 %v15031_v45  ;;  %7410 = vmatpush.msrb.mxu0 %v15040_v19  ;;  %v7392_v19 = vrot.slane %v7391_v5, 2 }
0x139f   : > { %7428 = vmatpush.msrb.mxu2 %v15033_v16  ;;  %7450 = vmatpush.msrb.mxu1 %v15042_v44 }
0x13a0   : > { %7468 = vmatpush.msrb.mxu3 %v15035_v6  ;;  %7411 = vmatpush.msrb.mxu0 %v15044_v10  ;;  %v7375_v10 = vadd.f32 %v7374_v37, %v7373_v1  ;;  %v7393_v38 = vadd.f32 %v7392_v19, %v7391_v5  ;;  %v7480_v5 = vld.sshfl [vmem:[#allocation1] sm:$0xff pattern:$0x75316420]  ;;  %v7482_v37 = vld.sshfl [vmem:[#allocation1 + $0x10] sm:$0xff pattern:$0x75316420] }
0x13a1   : > { %7429 = vmatpush.msrb.mxu2 %v15037_v60  ;;  %7451 = vmatpush.msrb.mxu1 %v15046_v0  ;;  %v10887_v19 = vld [vmem:[%s14957_s1 + $0x70] sm:$0xff] }
0x13a2   : > { %7469 = vmatpush.msrb.mxu3 %v15039_v15 }
0x13a3   : > { %7430 = vmatpush.msrb.mxu2 %v15041_v59 }
0x13a4   : > { %7470 = vmatpush.msrb.mxu3 %v15043_v4 }
0x13a5   : > { %7431 = vmatpush.msrb.mxu2 %v15045_v14 }
0x13a6   : > { %7471 = vmatpush.msrb.mxu3 %v15047_v56 }
0x13fd   : > { %v7157_v43 = vpop.f32.mrf.mxu0 }
0x13fe   : > { %v7197_v23 = vpop.f32.mrf.mxu1 }
0x1409   : > { %v7177_v55 = vpop.f32.mrf.mxu2 }
0x140a   : > { %v7178_v39 = vadd.f32 %v7177_v55, %v7157_v43  ;;  %v7217_v58 = vpop.f32.mrf.mxu3  ;;  %v7379_v43 = vadd.f32 %v7378_v57, %v15049_v49  ;;  %v7385_v55 = vadd.f32 %v7384_v7, %v15050_v47  ;;  %v7376_v7 = vrot.slane %v7375_v10, 1 }
0x140c   : > { %v7198_v9 = vadd.f32 %v7197_v23, %v7178_v39 }
0x140e   : > { %v7218_v36 = vadd.f32 %v7217_v58, %v7198_v9  ;;  %v7380_v9 = vrot.slane %v7379_v43, 2  ;;  %v7386_v58 = vrot.slane %v7385_v55, 2 }
0x1410   : > { %v7220_v50 = vmul.f32 0.0009765625, %v7218_v36  ;;  %v7381_v14 = vadd.f32 %v7380_v9, %v7379_v43  ;;  %v10885_v9 = vld [vmem:[%s14957_s1 + $0xf8] sm:$0xff] }
0x1412   : > { %v7221_v25 = vadd.f32 1e-05, %v7220_v50  ;;  %v7387_v50 = vadd.f32 %v7386_v58, %v7385_v55  ;;  %v7382_v42 = vrot.slane %v7381_v14, 1  ;;  %v7483_v55 = vld.sshfl [vmem:[#allocation1 + $0x18] sm:$0xff pattern:$0x75316420] }
0x1413   : > { %7705 = vst [vmem:[#allocation1 + $0x10] ss:$2 sm:$0xff] %v13873_v12  ;;  %v10886_v58 = vld [vmem:[%s14957_s1 + $0x78] sm:$0xff]  ;;  %v10890_v12 = vld [vmem:[%s14957_s1 + $0xe8] sm:$0xff] }
0x1414   : > { %10873 = vrsqrt.f32 %v7221_v25  ;;  %vm7228_vm5 = vweird.f32 %v7221_v25 }
0x141a   : > { %v10874_v24 = vpop.eup %10873 }
0x141b   : > { %v7223_v62 = vmul.f32 %v10874_v24, %v7221_v25  ;;  %vm7229_vm12 = vweird.f32 %v10874_v24  ;;  %v7383_v25 = vadd.f32 %v7382_v42, %v7381_v14  ;;  %v10901_v14 = vld [vmem:[%s14957_s1 + $0x38] sm:$0xff] }
0x141c   : > { %vm7230_vm8 = vmor %vm7228_vm5, %vm7229_vm12 }
0x141d   : > { %v7224_v39 = vmul.f32 %v10874_v24, %v7223_v62  ;;  %v7388_v62 = vrot.slane %v7387_v50, 1 }
0x141f   : > { %v7225_v23 = vmul.f32 0.5, %v7224_v39  ;;  %v7394_v39 = vrot.slane %v7393_v38, 1  ;;  %v7389_v1 = vadd.f32 %v7388_v62, %v7387_v50  ;;  %v10902_v50 = vld [vmem:[%s14957_s1 + $0xb8] sm:$0xff] }
0x1421   : > { %v7226_v59 = vsub.f32 1.5, %v7225_v23  ;;  %v7377_v23 = vadd.f32 %v7376_v7, %v7375_v10  ;;  %v7395_v43 = vadd.f32 %v7394_v39, %v7393_v38  ;;  %v10899_v10 = vld [vmem:[%s14957_s1 + $0x40] sm:$0xff] }
0x1423   : > { %v7227_v36 = vmul.f32 %v10874_v24, %v7226_v59  ;;  %v10889_v59 = vld [vmem:[%s14957_s1 + $0x68] sm:$0xff] }
0x1425   : > { %v7231_v57 = vsel %vm7230_vm8, %v10874_v24, %v7227_v36  ;;  %v7481_v24 = vld.sshfl [vmem:[#allocation1 + $0x8] sm:$0xff pattern:$0x75316420] }
0x1426   : > { %10308 = vmatmul.msk.f32.vlgmr.msra.gmra.mxu0 %vm1522_vm7, %v7231_v57  ;;  %10310 = vmatmul.msk.f32.vlgmr.msra.gmra.mxu2 %vm1522_vm7, %v7231_v57  ;;  %7703 = vst [vmem:[#allocation1] ss:$2 sm:$0xff] %v13855_v52  ;;  %v10888_v52 = vld [vmem:[%s14957_s1 + $0xf0] sm:$0xff] }
0x1427   : > { %10312 = vmatmul.msk.f32.vlgmr.msra.gmra.mxu1 %vm1522_vm7, %v7231_v57  ;;  %10314 = vmatmul.msk.f32.vlgmr.msra.gmra.mxu3 %vm1522_vm7, %v7231_v57  ;;  %v10908_v57 = vld [vmem:[%s14957_s1 + $0x10] sm:$0xff] }
0x1428   : > { %10317 = vmatpush.msk.msra.mxu2 %vm1526_vm6, %v7481_v24  ;;  %10321 = vmatpush.msk.msra.mxu3 %vm1526_vm6, %v7483_v55 }
0x1429   : > { %10315 = vmatpush.msk.msra.mxu0 %vm1526_vm6, %v7480_v5  ;;  %10319 = vmatpush.msk.msra.mxu1 %vm1526_vm6, %v7482_v37 }
0x142e   : > { %7412 = vmatmul.f32.vlgmr.msrb.gmra.mxu0 %v7377_v23  ;;  %7432 = vmatmul.f32.vlgmr.msrb.gmra.mxu2 %v7383_v25 }
0x142f   : > { %7452 = vmatmul.f32.vlgmr.msrb.gmra.mxu1 %v7389_v1  ;;  %7472 = vmatmul.f32.vlgmr.msrb.gmra.mxu3 %v7395_v43 }
0x1430   : > { %7631 = vmatpush.msrb.mxu2 %v10885_v9  ;;  %7611 = vmatpush.msrb.mxu0 %v10886_v58 }
0x1431   : > { %7651 = vmatpush.msrb.mxu1 %v13710_v29  ;;  %7671 = vmatpush.msrb.mxu3 %v13777_v54  ;;  %v10891_v29 = vld [vmem:[%s14957_s1 + $0x60] sm:$0xff] }
0x1432   : > { %7612 = vmatpush.msrb.mxu0 %v10887_v19  ;;  %7632 = vmatpush.msrb.mxu2 %v10888_v52  ;;  %v10892_v54 = vld [vmem:[%s14957_s1 + $0xe0] sm:$0xff] }
0x1433   : > { %7652 = vmatpush.msrb.mxu1 %v13714_v2  ;;  %7672 = vmatpush.msrb.mxu3 %v13781_v26  ;;  %v10893_v2 = vld [vmem:[%s14957_s1 + $0x58] sm:$0xff] }
0x1434   : > { %7613 = vmatpush.msrb.mxu0 %v10889_v59  ;;  %7633 = vmatpush.msrb.mxu2 %v10890_v12  ;;  %v10894_v26 = vld [vmem:[%s14957_s1 + $0xd8] sm:$0xff] }
0x1435   : > { %7653 = vmatpush.msrb.mxu1 %v13718_v41  ;;  %7673 = vmatpush.msrb.mxu3 %v13785_v34  ;;  %v10895_v41 = vld [vmem:[%s14957_s1 + $0x50] sm:$0xff] }
0x1436   : > { %7614 = vmatpush.msrb.mxu0 %v10891_v29  ;;  %7634 = vmatpush.msrb.mxu2 %v10892_v54  ;;  %v10896_v34 = vld [vmem:[%s14957_s1 + $0xd0] sm:$0xff] }
0x1437   : > { %7654 = vmatpush.msrb.mxu1 %v13722_v20  ;;  %7674 = vmatpush.msrb.mxu3 %v13788_v3  ;;  %v10897_v20 = vld [vmem:[%s14957_s1 + $0x48] sm:$0xff] }
0x1438   : > { %7615 = vmatpush.msrb.mxu0 %v10893_v2  ;;  %7635 = vmatpush.msrb.mxu2 %v10894_v26  ;;  %v10898_v3 = vld [vmem:[%s14957_s1 + $0xc8] sm:$0xff] }
0x1439   : > { %7655 = vmatpush.msrb.mxu1 %v13729_v35  ;;  %7675 = vmatpush.msrb.mxu3 %v13793_v53 }
0x143a   : > { %7616 = vmatpush.msrb.mxu0 %v10895_v41  ;;  %7636 = vmatpush.msrb.mxu2 %v10896_v34 }
0x143b   : > { %7656 = vmatpush.msrb.mxu1 %v13733_v32  ;;  %7676 = vmatpush.msrb.mxu3 %v13797_v21  ;;  %v10900_v32 = vld [vmem:[%s14957_s1 + $0xc0] sm:$0xff] }
0x143c   : > { %7617 = vmatpush.msrb.mxu0 %v10897_v20  ;;  %7637 = vmatpush.msrb.mxu2 %v10898_v3 }
0x143d   : > { %7657 = vmatpush.msrb.mxu1 %v13736_v22  ;;  %7677 = vmatpush.msrb.mxu3 %v13802_v18  ;;  %v10903_v18 = vld [vmem:[%s14957_s1 + $0x30] sm:$0xff] }
0x143e   : > { %7618 = vmatpush.msrb.mxu0 %v10899_v10  ;;  %7638 = vmatpush.msrb.mxu2 %v10900_v32  ;;  %v10904_v22 = vld [vmem:[%s14957_s1 + $0xb0] sm:$0xff] }
0x143f   : > { %7658 = vmatpush.msrb.mxu1 %v13741_v30  ;;  %7678 = vmatpush.msrb.mxu3 %v13806_v27  ;;  %v10905_v30 = vld [vmem:[%s14957_s1 + $0x28] sm:$0xff] }
0x1440   : > { %7619 = vmatpush.msrb.mxu0 %v10901_v14  ;;  %7639 = vmatpush.msrb.mxu2 %v10902_v50  ;;  %v7707_v14 = vld.sshfl [vmem:[#allocation1 + $0x8] sm:$0xff pattern:$0x75316420]  ;;  %v14141_v50 = vld [vmem:[%s11350_s14 + $0xf8] sm:$0xff] }
0x1441   : > { %7659 = vmatpush.msrb.mxu1 %v13745_v46  ;;  %7679 = vmatpush.msrb.mxu3 %v13812_v48  ;;  %v10906_v48 = vld [vmem:[%s14957_s1 + $0x20] sm:$0xff] }
0x1442   : > { %7620 = vmatpush.msrb.mxu0 %v10903_v18  ;;  %7640 = vmatpush.msrb.mxu2 %v10904_v22  ;;  %v14146_v18 = vld [vmem:[%s11350_s14 + $0xf0] sm:$0xff]  ;;  %v7706_v22 = vld.sshfl [vmem:[#allocation1] sm:$0xff pattern:$0x75316420] }
0x1443   : > { %7660 = vmatpush.msrb.mxu1 %v15022_v11  ;;  %7680 = vmatpush.msrb.mxu3 %v15023_v17 }
0x1444   : > { %7621 = vmatpush.msrb.mxu0 %v10905_v30  ;;  %7641 = vmatpush.msrb.mxu2 %v15025_v61  ;;  %v10907_v61 = vld [vmem:[%s14957_s1 + $0x18] sm:$0xff] }
0x1445   : > { %7661 = vmatpush.msrb.mxu1 %v15026_v51  ;;  %7681 = vmatpush.msrb.mxu3 %v15027_v40  ;;  %v7709_v30 = vld.sshfl [vmem:[#allocation1 + $0x18] sm:$0xff pattern:$0x75316420] }
0x1446   : > { %7622 = vmatpush.msrb.mxu0 %v10906_v48  ;;  %7642 = vmatpush.msrb.mxu2 %v15029_v31  ;;  %v14164_v48 = vld [vmem:[%s11350_s14 + $0x70] sm:$0xff] }
0x1447   : > { %7662 = vmatpush.msrb.mxu1 %v15030_v28  ;;  %7682 = vmatpush.msrb.mxu3 %v15031_v45  ;;  %v10909_v28 = vld [vmem:[%s14957_s1 + $0x8] sm:$0xff] }
0x1448   : > { %7623 = vmatpush.msrb.mxu0 %v10907_v61  ;;  %7643 = vmatpush.msrb.mxu2 %v15033_v16  ;;  %v10910_v45 = vld [vmem:[%s14957_s1 + $0x88] sm:$0xff]  ;;  %v10911_v16 = vld [vmem:[%s14957_s1] sm:$0xff]  ;;  %v7708_v61 = vld.sshfl [vmem:[#allocation1 + $0x10] sm:$0xff pattern:$0x75316420] }
0x1449   : > { %7663 = vmatpush.msrb.mxu1 %v15034_v8  ;;  %7683 = vmatpush.msrb.mxu3 %v15035_v6  ;;  %v10912_v8 = vld [vmem:[%s14957_s1 + $0x80] sm:$0xff] }
0x144a   : > { %7624 = vmatpush.msrb.mxu0 %v10908_v57  ;;  %7644 = vmatpush.msrb.mxu2 %v15037_v60  ;;  %v14183_v57 = vld [vmem:[%s11350_s14 + $0x178] sm:$0xff] }
0x144b   : > { %7664 = vmatpush.msrb.mxu1 %v15038_v63  ;;  %7684 = vmatpush.msrb.mxu3 %v15039_v15 }
0x144c   : > { %7625 = vmatpush.msrb.mxu0 %v10909_v28  ;;  %7645 = vmatpush.msrb.mxu2 %v10910_v45  ;;  %v14193_v28 = vld [vmem:[%s11350_s14 + $0x60] sm:$0xff]  ;;  %v14196_v45 = vld [vmem:[%s11350_s14 + $0xd0] sm:$0xff] }
0x144d   : > { %7665 = vmatpush.msrb.mxu1 %v15042_v44  ;;  %7685 = vmatpush.msrb.mxu3 %v15043_v4 }
0x144e   : > { %7626 = vmatpush.msrb.mxu0 %v10911_v16  ;;  %7646 = vmatpush.msrb.mxu2 %v10912_v8  ;;  %v14199_v16 = vld [vmem:[%s11350_s14 + $0x170] sm:$0xff]  ;;  %v14204_v8 = vld [vmem:[%s11350_s14 + $0x1e0] sm:$0xff] }
0x144f   : > { %7666 = vmatpush.msrb.mxu1 %v15046_v0  ;;  %7686 = vmatpush.msrb.mxu3 %v15047_v56 }
0x14a3   : > { %v14066_v36 = vpop.f32.mrf.mxu0 }
0x14a4   : > { %v14072_v35 = vpop.f32.mrf.mxu1 }
0x14a9   : > { %v14074_v53 = vpop.f32.mrf.mxu2 }
0x14aa   : > { %v14080_v21 = vpop.f32.mrf.mxu3 }
0x14ab   : > { %v7413_v27 = vpop.f32.mrf.mxu0 }
0x14ac   : > { %v7453_v11 = vpop.f32.mrf.mxu1 }
0x14b1   : > { %v7433_v38 = vpop.f32.mrf.mxu2 }
0x14b2   : > { %v7434_v46 = vadd.f32 %v7433_v38, %v7413_v27  ;;  %v7473_v51 = vpop.f32.mrf.mxu3  ;;  %v14152_v27 = vld [vmem:[%s11350_s14 + $0x78] sm:$0xff]  ;;  %v14155_v38 = vld [vmem:[%s11350_s14 + $0xe8] sm:$0xff] }
0x14b4   : > { %v7454_v17 = vadd.f32 %v7453_v11, %v7434_v46  ;;  %v14158_v46 = vld [vmem:[%s11350_s14 + $0x1f8] sm:$0xff]  ;;  %v14167_v11 = vld [vmem:[%s11350_s14 + $0xe0] sm:$0xff] }
0x14b6   : > { %v7474_v40 = vadd.f32 %v7473_v51, %v7454_v17  ;;  %v14170_v17 = vld [vmem:[%s11350_s14 + $0x1f0] sm:$0xff]  ;;  %v14177_v51 = vld [vmem:[%s11350_s14 + $0x68] sm:$0xff] }
0x14b8   : > { %v7476_v31 = vmul.f32 0.0009765625, %v7474_v40  ;;  %v14180_v40 = vld [vmem:[%s11350_s14 + $0xd8] sm:$0xff] }
0x14ba   : > { %10316 = vmatmul.msk.f32.vlgmr.msra.gmra.mxu0 %vm1522_vm7, %v7476_v31  ;;  %10318 = vmatmul.msk.f32.vlgmr.msra.gmra.mxu2 %vm1522_vm7, %v7476_v31 }
0x14bb   : > { %10320 = vmatmul.msk.f32.vlgmr.msra.gmra.mxu1 %vm1522_vm7, %v7476_v31  ;;  %10322 = vmatmul.msk.f32.vlgmr.msra.gmra.mxu3 %vm1522_vm7, %v7476_v31  ;;  %v14188_v31 = vld [vmem:[%s11350_s14 + $0x1e8] sm:$0xff] }
0x14bc   : > { %10325 = vmatpush.msk.msra.mxu2 %vm1526_vm6, %v7707_v14  ;;  %10323 = vmatpush.msk.msra.mxu0 %vm1526_vm6, %v7706_v22  ;;  %v14350_v14 = vld [vmem:[%s11350_s14 + $0x128] sm:$0xff] }
0x14bd   : > { %10329 = vmatpush.msk.msra.mxu3 %vm1526_vm6, %v7709_v30  ;;  %10327 = vmatpush.msk.msra.mxu1 %vm1526_vm6, %v7708_v61  ;;  %15081 = vst [vmem:[#allocation51_spill] sm:$0xff] %v14350_v14  ;;  %v15082_v22 = vld [vmem:[#allocation36_spill] sm:$0xff]  ;;  %v14357_v61 = vld [vmem:[%s11350_s14 + $0x198] sm:$0xff] }
0x14be   : > { %15083 = vst [vmem:[#allocation63_spill] sm:$0xff] %v14357_v61  ;;  %v14390_v30 = vld [vmem:[%s11350_s14 + $0x8] sm:$0xff] }
0x1537   : > { %v7512_v6 = vpop.f32.mrf.mxu0 }
0x1538   : > { %v7575_v60 = vperm.slane %v7512_v6, 0  ;;  %v7552_v63 = vpop.f32.mrf.mxu1  ;;  %v14209_v6 = vld [vmem:[%s11350_s14 + $0x58] sm:$0xff] }
0x1539   : > { %v7577_v15 = vperm.slane %v7552_v63, 0  ;;  %v14215_v63 = vld [vmem:[%s11350_s14 + $0x168] sm:$0xff] }
0x153a   : > { %v14121_v44 = vsub.f32 %v15048_v13, %v7575_v60  ;;  %v14212_v60 = vld [vmem:[%s11350_s14 + $0xc8] sm:$0xff] }
0x153b   : > { %v14124_v4 = vsub.f32 %v15050_v47, %v7577_v15  ;;  %v14220_v15 = vld [vmem:[%s11350_s14 + $0x1d8] sm:$0xff] }
0x153c   : > { %15052 = vst [vmem:[#allocation52_spill] sm:$0xff] %v14121_v44  ;;  %v7583_v7 = vmul.f32 %v14121_v44, %v14121_v44  ;;  %v15087_v44 = vld [vmem:[#allocation46_spill] sm:$0xff] }
0x153d   : > { %15053 = vst [vmem:[#allocation60_spill] sm:$0xff] %v14124_v4  ;;  %v7585_v0 = vmul.f32 %v14124_v4, %v14124_v4  ;;  %v7532_v42 = vpop.f32.mrf.mxu2  ;;  %v14366_v4 = vld [vmem:[%s15077_s11] sm:$0xf] }
0x153e   : > { %v7587_v62 = vrot.slane %v7583_v7, 4  ;;  %v7576_v39 = vperm.slane %v7532_v42, 0  ;;  %v7572_v56 = vpop.f32.mrf.mxu3  ;;  %15056 = vst [vmem:[#allocation53_spill] sm:$0xff] %v14220_v15  ;;  %v14231_v42 = vld [vmem:[%s11350_s14 + $0x160] sm:$0xff] }
0x153f   : > { %v7599_v23 = vrot.slane %v7585_v0, 4  ;;  %v7578_v25 = vperm.slane %v7572_v56, 0  ;;  %v14244_v56 = vld [vmem:[%s11350_s14 + $0xb8] sm:$0xff]  ;;  %15086 = vst [vmem:[#allocation69_spill] sm:$0xff] %v14366_v4 }
0x1540   : > { %v7588_v1 = vadd.f32 %v7587_v62, %v7583_v7  ;;  %v14131_v43 = vsub.f32 %v15049_v49, %v7576_v39  ;;  %v14225_v7 = vld [vmem:[%s11350_s14 + $0x50] sm:$0xff]  ;;  %v14241_v39 = vld [vmem:[%s11350_s14 + $0x48] sm:$0xff] }
0x1541   : > { %v7600_v13 = vadd.f32 %v7599_v23, %v7585_v0  ;;  %v14134_v47 = vsub.f32 %v15051_v33, %v7578_v25  ;;  %v14228_v0 = vld [vmem:[%s11350_s14 + $0xc0] sm:$0xff]  ;;  %v14236_v62 = vld [vmem:[%s11350_s14 + $0x1d0] sm:$0xff]  ;;  %v14247_v23 = vld [vmem:[%s11350_s14 + $0x158] sm:$0xff] }
0x1542   : > { %15054 = vst [vmem:[#allocation35_spill] sm:$0xff] %v14131_v43  ;;  %v7589_v24 = vrot.slane %v7588_v1, 2  ;;  %v7584_v55 = vmul.f32 %v14131_v43, %v14131_v43  ;;  %v14252_v25 = vld [vmem:[%s11350_s14 + $0x1c8] sm:$0xff]  ;;  %v14363_v43 = vld [vmem:[%s11350_s14 + $0x80] sm:$0xff] }
0x1543   : > { %15055 = vst [vmem:[#allocation41_spill] sm:$0xff] %v14134_v47  ;;  %v7601_v5 = vrot.slane %v7600_v13, 2  ;;  %v7586_v37 = vmul.f32 %v14134_v47, %v14134_v47  ;;  %v14360_v47 = vld [vmem:[%s11350_s14 + $0x10] sm:$0xff] }
0x1544   : > { %v7590_v9 = vadd.f32 %v7589_v24, %v7588_v1  ;;  %v7593_v58 = vrot.slane %v7584_v55, 4  ;;  %15057 = vst [vmem:[#allocation61_spill] sm:$0xff] %v14236_v62  ;;  %v14257_v1 = vld [vmem:[%s11350_s14 + $0x40] sm:$0xff]  ;;  %v14263_v24 = vld [vmem:[%s11350_s14 + $0x150] sm:$0xff] }
0x1545   : > { %v7602_v19 = vadd.f32 %v7601_v5, %v7600_v13  ;;  %v7605_v52 = vrot.slane %v7586_v37, 4  ;;  %15058 = vst [vmem:[#allocation37_spill] sm:$0xff] %v14252_v25  ;;  %v14260_v13 = vld [vmem:[%s11350_s14 + $0xb0] sm:$0xff]  ;;  %v14273_v5 = vld [vmem:[%s11350_s14 + $0x38] sm:$0xff] }
0x1546   : > { %v7591_v59 = vrot.slane %v7590_v9, 1  ;;  %v7594_v12 = vadd.f32 %v7593_v58, %v7584_v55  ;;  %15059 = vst [vmem:[#allocation43_spill] sm:$0xff] %v14260_v13  ;;  %v14268_v55 = vld [vmem:[%s11350_s14 + $0x1c0] sm:$0xff]  ;;  %v14284_v58 = vld [vmem:[%s11350_s14 + $0x1b8] sm:$0xff] }
0x1547   : > { %v7603_v49 = vrot.slane %v7602_v19, 1  ;;  %v7606_v29 = vadd.f32 %v7605_v52, %v7586_v37  ;;  %15060 = vst [vmem:[#allocation54_spill] sm:$0xff] %v14268_v55  ;;  %v14276_v37 = vld [vmem:[%s11350_s14 + $0xa8] sm:$0xff]  ;;  %v14292_v52 = vld [vmem:[%s11350_s14 + $0xa0] sm:$0xff] }
0x1548   : > { %v7592_v54 = vadd.f32 %v7591_v59, %v7590_v9  ;;  %v7595_v33 = vrot.slane %v7594_v12, 2  ;;  %15061 = vst [vmem:[#allocation62_spill] sm:$0xff] %v14273_v5  ;;  %v14279_v9 = vld [vmem:[%s11350_s14 + $0x148] sm:$0xff]  ;;  %v14295_v59 = vld [vmem:[%s11350_s14 + $0x140] sm:$0xff] }
0x1549   : > { %v7604_v2 = vadd.f32 %v7603_v49, %v7602_v19  ;;  %v7607_v26 = vrot.slane %v7606_v29, 2  ;;  %15062 = vst [vmem:[#allocation38_spill] sm:$0xff] %v14276_v37  ;;  %v14289_v19 = vld [vmem:[%s11350_s14 + $0x30] sm:$0xff]  ;;  %v14305_v49 = vld [vmem:[%s11350_s14 + $0x28] sm:$0xff] }
0x154a   : > { %v7596_v41 = vadd.f32 %v7595_v33, %v7594_v12  ;;  %7627 = vmatmul.f32.vlgmr.msrb.gmra.mxu0 %v7592_v54  ;;  %15064 = vst [vmem:[#allocation44_spill] sm:$0xff] %v14284_v58  ;;  %v14300_v12 = vld [vmem:[%s11350_s14 + $0x1b0] sm:$0xff]  ;;  %v14311_v54 = vld [vmem:[%s11350_s14 + $0x138] sm:$0xff]  ;;  %v14314_v33 = vld [vmem:[%s15063_s2] sm:$0xf]  ;;  %s14745_s2 = scalar_lea.vmem %s15164_s18, %s15166_s7 }
0x154b   : > { %v7608_v34 = vadd.f32 %v7607_v26, %v7606_v29  ;;  %7667 = vmatmul.f32.vlgmr.msrb.gmra.mxu1 %v7604_v2  ;;  %7926 = vmatpush.msrb.mxu0 %v14152_v27  ;;  %15065 = vst [vmem:[#allocation55_spill] sm:$0xff] %v14289_v19  ;;  %v14308_v29 = vld [vmem:[%s11350_s14 + $0x98] sm:$0xff]  ;;  %v7330_v2 = vperm.slane %v14066_v36, 0  ;;  %v14320_v26 = vld [vmem:[%s11350_s14 + $0x1a8] sm:$0xff]  ;;  %v14330_v36 = vld [vmem:[%s11350_s14 + $0x90] sm:$0xff] }
0x154c   : > { %v7597_v20 = vrot.slane %v7596_v41, 1  ;;  %7966 = vmatpush.msrb.mxu1 %v14183_v57  ;;  %15066 = vst [vmem:[#allocation64_spill] sm:$0xff] %v14292_v52 }
0x154d   : > { %v7609_v3 = vrot.slane %v7608_v34, 1  ;;  %7927 = vmatpush.msrb.mxu0 %v14164_v48  ;;  %15067 = vst [vmem:[#allocation39_spill] sm:$0xff] %v14295_v59 }
0x154e   : > { %v7598_v10 = vadd.f32 %v7597_v20, %v7596_v41  ;;  %7967 = vmatpush.msrb.mxu1 %v14199_v16  ;;  %15068 = vst [vmem:[#allocation45_spill] sm:$0xff] %v14300_v12  ;;  %v7332_v41 = vperm.slane %v14072_v35, 0  ;;  %v14327_v20 = vld [vmem:[%s11350_s14 + $0x20] sm:$0xff] }
0x154f   : > { %v7610_v32 = vadd.f32 %v7609_v3, %v7608_v34  ;;  %7928 = vmatpush.msrb.mxu0 %v14177_v51  ;;  %15069 = vst [vmem:[#allocation56_spill] sm:$0xff] %v14305_v49  ;;  %v7331_v34 = vperm.slane %v14074_v53, 0  ;;  %v14333_v3 = vld [vmem:[%s11350_s14 + $0x130] sm:$0xff]  ;;  %v14339_v35 = vld [vmem:[%s11350_s14 + $0x1a0] sm:$0xff]  ;;  %v14344_v53 = vld [vmem:[%s11350_s14 + $0x18] sm:$0xff] }
0x1550   : > { %7647 = vmatmul.f32.vlgmr.msrb.gmra.mxu2 %v7598_v10  ;;  %7968 = vmatpush.msrb.mxu1 %v14215_v63  ;;  %15070 = vst [vmem:[#allocation65_spill] sm:$0xff] %v14308_v29  ;;  %v7333_v10 = vperm.slane %v14080_v21, 0  ;;  %v7334_v21 = vmul.f32 %v7330_v2, %v15082_v22  ;;  %v15088_v2 = vld [vmem:[#allocation59_spill] sm:$0xff] }
0x1551   : > { %7687 = vmatmul.f32.vlgmr.msrb.gmra.mxu3 %v7610_v32  ;;  %7946 = vmatpush.msrb.mxu2 %v14141_v50  ;;  %15071 = vst [vmem:[#allocation40_spill] sm:$0xff] %v14311_v54  ;;  %v14347_v32 = vld [vmem:[%s11350_s14 + $0x88] sm:$0xff]  ;;  %v7335_v22 = vmul.f32 %v7331_v34, %v15088_v2 }
0x1552   : > { %7986 = vmatpush.msrb.mxu3 %v14158_v46  ;;  %7929 = vmatpush.msrb.mxu0 %v14193_v28  ;;  %15072 = vst [vmem:[#allocation47_spill] sm:$0xff] %v14314_v33 }
0x1553   : > { %7947 = vmatpush.msrb.mxu2 %v14146_v18  ;;  %7969 = vmatpush.msrb.mxu1 %v14231_v42  ;;  %15073 = vst [vmem:[#allocation57_spill] sm:$0xff] %v14320_v26 }
0x1554   : > { %7987 = vmatpush.msrb.mxu3 %v14170_v17  ;;  %7930 = vmatpush.msrb.mxu0 %v14209_v6  ;;  %15074 = vst [vmem:[#allocation66_spill] sm:$0xff] %v14327_v20 }
0x1555   : > { %7948 = vmatpush.msrb.mxu2 %v14155_v38  ;;  %7970 = vmatpush.msrb.mxu1 %v14247_v23  ;;  %15075 = vst [vmem:[#allocation42_spill] sm:$0xff] %v14330_v36 }
0x1556   : > { %7988 = vmatpush.msrb.mxu3 %v14188_v31  ;;  %7931 = vmatpush.msrb.mxu0 %v14225_v7  ;;  %15076 = vst [vmem:[#allocation48_spill] sm:$0xff] %v14333_v3 }
0x1557   : > { %7949 = vmatpush.msrb.mxu2 %v14167_v11  ;;  %7971 = vmatpush.msrb.mxu1 %v14263_v24  ;;  %15078 = vst [vmem:[#allocation58_spill] sm:$0xff] %v14339_v35 }
0x1558   : > { %7989 = vmatpush.msrb.mxu3 %v14204_v8  ;;  %7932 = vmatpush.msrb.mxu0 %v14241_v39  ;;  %15079 = vst [vmem:[#allocation67_spill] sm:$0xff] %v14344_v53 }
0x1559   : > { %7950 = vmatpush.msrb.mxu2 %v14180_v40  ;;  %7972 = vmatpush.msrb.mxu1 %v14279_v9  ;;  %15080 = vst [vmem:[#allocation49_spill] sm:$0xff] %v14347_v32 }
0x155a   : > { %7990 = vmatpush.msrb.mxu3 %v14220_v15  ;;  %7933 = vmatpush.msrb.mxu0 %v14257_v1  ;;  %15084 = vst [vmem:[#allocation68_spill] sm:$0xff] %v14360_v47 }
0x155b   : > { %7951 = vmatpush.msrb.mxu2 %v14196_v45  ;;  %7973 = vmatpush.msrb.mxu1 %v14295_v59  ;;  %15085 = vst [vmem:[#allocation36_spill] sm:$0xff] %v14363_v43 }
0x155c   : > { %7991 = vmatpush.msrb.mxu3 %v14236_v62  ;;  %7934 = vmatpush.msrb.mxu0 %v14273_v5 }
0x155d   : > { %7952 = vmatpush.msrb.mxu2 %v14212_v60  ;;  %7974 = vmatpush.msrb.mxu1 %v14311_v54 }
0x155e   : > { %7992 = vmatpush.msrb.mxu3 %v14252_v25  ;;  %7935 = vmatpush.msrb.mxu0 %v14289_v19 }
0x155f   : > { %7953 = vmatpush.msrb.mxu2 %v14228_v0  ;;  %7975 = vmatpush.msrb.mxu1 %v14333_v3 }
0x1560   : > { %7993 = vmatpush.msrb.mxu3 %v14268_v55  ;;  %7936 = vmatpush.msrb.mxu0 %v14305_v49 }
0x1561   : > { %7954 = vmatpush.msrb.mxu2 %v14244_v56  ;;  %7976 = vmatpush.msrb.mxu1 %v14350_v14 }
0x1562   : > { %7994 = vmatpush.msrb.mxu3 %v14284_v58  ;;  %7937 = vmatpush.msrb.mxu0 %v14327_v20  ;;  %v15091_v20 = vld [vmem:[#allocation50_spill] sm:$0xff] }
0x1563   : > { %7955 = vmatpush.msrb.mxu2 %v14260_v13  ;;  %15093 = vst [vmem:[#allocation50_spill] sm:$0xff] %v14390_v30 }
0x1564   : > { %7995 = vmatpush.msrb.mxu3 %v14300_v12  ;;  %7938 = vmatpush.msrb.mxu0 %v14344_v53  ;;  %v14378_v53 = vld [vmem:[%s11350_s14 + $0x190] sm:$0xff] }
0x1565   : > { %7956 = vmatpush.msrb.mxu2 %v14276_v37  ;;  %15090 = vst [vmem:[#allocation59_spill] sm:$0xff] %v14378_v53 }
0x1566   : > { %7996 = vmatpush.msrb.mxu3 %v14320_v26  ;;  %7939 = vmatpush.msrb.mxu0 %v14360_v47 }
0x1567   : > { %7957 = vmatpush.msrb.mxu2 %v14292_v52 }
0x1568   : > { %7997 = vmatpush.msrb.mxu3 %v14339_v35  ;;  %v14862_v35 = vperm.slane %v14314_v33, 2  ;;  %7940 = vmatpush.msrb.mxu0 %v14390_v30 }
0x1569   : > { %7958 = vmatpush.msrb.mxu2 %v14308_v29  ;;  %v7337_v29 = vmul.f32 %v7333_v10, %v15091_v20  ;;  %v14393_v20 = vld [vmem:[%s11350_s14 + $0x118] sm:$0xff]  ;;  %v14396_v10 = vld [vmem:[%s11350_s14 + $0x188] sm:$0xff] }
0x156a   : > { %7998 = vmatpush.msrb.mxu3 %v14357_v61  ;;  %15094 = vst [vmem:[#allocation70_spill] sm:$0xff] %v14393_v20  ;;  %v15097_v61 = vperm.slane %v14314_v33, 3 }
0x156b   : > { %7959 = vmatpush.msrb.mxu2 %v14330_v36  ;;  %v7336_v36 = vmul.f32 %v7332_v41, %v15087_v44  ;;  %v15092_v41 = vperm.slane %v14314_v33, 0  ;;  %15095 = vst [vmem:[#allocation71_spill] sm:$0xff] %v14396_v10 }
0x156c   : > { %7999 = vmatpush.msrb.mxu3 %v14378_v53  ;;  %v15096_v53 = vperm.slane %v14314_v33, 1  ;;  %v15104_v33 = vperm.slane %v14366_v4, 1 }
0x156d   : > { %7960 = vmatpush.msrb.mxu2 %v14347_v32  ;;  %v14375_v32 = vld [vmem:[%s11350_s14 + $0x120] sm:$0xff]  ;;  %v7347_v34 = vmul.f32 %v15092_v41, %v7334_v21  ;;  %v7349_v44 = vmul.f32 %v14862_v35, %v7336_v36 }
0x156e   : > { %15089 = vst [vmem:[#allocation46_spill] sm:$0xff] %v14375_v32  ;;  %7977 = vmatpush.msrb.mxu1 %v14375_v32  ;;  %v7348_v21 = vmul.f32 %v15096_v53, %v7335_v22  ;;  %v7350_v32 = vmul.f32 %v15097_v61, %v7337_v29  ;;  %8000 = vmatpush.msrb.mxu3 %v14396_v10  ;;  %v14411_v35 = vld [vmem:[%s11350_s14] sm:$0xff]  ;;  %v14414_v53 = vld [vmem:[%s11350_s14 + $0x110] sm:$0xff]  ;;  %v15102_v29 = vperm.slane %v14366_v4, 0 }
0x156f   : > { %7961 = vmatpush.msrb.mxu2 %v14363_v43  ;;  %v14871_v43 = vperm.slane %v14366_v4, 2  ;;  %15099 = vst [vmem:[#allocation72_spill] sm:$0xff] %v14411_v35  ;;  %v14417_v22 = vld [vmem:[%s11350_s14 + $0x180] sm:$0xff]  ;;  %7941 = vmatpush.msrb.mxu0 %v14411_v35  ;;  %v15105_v35 = vperm.slane %v14366_v4, 3 }
0x1570   : > { %7978 = vmatpush.msrb.mxu1 %v14393_v20  ;;  %15100 = vst [vmem:[#allocation73_spill] sm:$0xff] %v14414_v53  ;;  %v7360_v61 = vadd.f32 %v15102_v29, %v7347_v34  ;;  %8001 = vmatpush.msrb.mxu3 %v14417_v22  ;;  %v7361_v10 = vadd.f32 %v15104_v33, %v7348_v21  ;;  %v14443_v33 = vld [vmem:[%s14434_s23] sm:$0xff]  ;;  %v14452_v20 = vld [vmem:[%s14434_s23 + $0x18] sm:$0xff] }
0x1571   : > { %15101 = vst [vmem:[#allocation74_spill] sm:$0xff] %v14417_v22  ;;  %v7362_v14 = vadd.f32 %v14871_v43, %v7349_v44  ;;  %v7363_v34 = vadd.f32 %v15105_v35, %v7350_v32  ;;  %v14446_v22 = vld [vmem:[%s14434_s23 + $0x10] sm:$0xff] }
0x1572   : > { %7979 = vmatpush.msrb.mxu1 %v14414_v53  ;;  %v7364_v44 = vmax.f32 %v7360_v61, 0.0  ;;  %v7365_v43 = vmax.f32 %v7361_v10, 0.0 }
0x1573   : > { %v7366_v21 = vmax.f32 %v7362_v14, 0.0  ;;  %v7367_v4 = vmax.f32 %v7363_v34, 0.0 }
0x1574   : > { %v7898_v35 = vmul.f32 %v14443_v33, %v7364_v44 }
0x1575   : > { %v7900_v32 = vmul.f32 %v14446_v22, %v7366_v21  ;;  %v7901_v61 = vmul.f32 %v14452_v20, %v7367_v4 }
0x1577   : > { %v7914_v14 = vrot.slane %v7900_v32, 4 }
0x1579   : > { %v7915_v34 = vadd.f32 %v7914_v14, %v7900_v32  ;;  %v15110_v14 = vld [vmem:[#allocation44_spill] sm:$0xff] }
0x157b   : > { %v7916_v19 = vrot.slane %v7915_v34, 2 }
0x157d   : > { %v7917_v58 = vadd.f32 %v7916_v19, %v7915_v34  ;;  %v15112_v34 = vld [vmem:[#allocation40_spill] sm:$0xff] }
0x157f   : > { %v7918_v19 = vrot.slane %v7917_v58, 1 }
0x15c7   : > { %v7628_v2 = vpop.f32.mrf.mxu0 }
0x15c8   : > { %v7668_v41 = vpop.f32.mrf.mxu1 }
0x15d3   : > { %v7648_v47 = vpop.f32.mrf.mxu2 }
0x15d4   : > { %v7649_v36 = vadd.f32 %v7648_v47, %v7628_v2  ;;  %v14426_v2 = vld [vmem:[%s11350_s14 + $0x108] sm:$0xff]  ;;  %v7688_v30 = vpop.f32.mrf.mxu3 }
0x15d5   : > { %15103 = vst [vmem:[#allocation75_spill] sm:$0xff] %v14426_v2  ;;  %7980 = vmatpush.msrb.mxu1 %v14426_v2  ;;  %v14449_v2 = vld [vmem:[%s14434_s23 + $0x8] sm:$0xff] }
0x15d6   : > { %v7669_v47 = vadd.f32 %v7668_v41, %v7649_v36  ;;  %v14439_v36 = vld [vmem:[%s11350_s14 + $0x100] sm:$0xff] }
0x15d7   : > { %15106 = vst [vmem:[#allocation76_spill] sm:$0xff] %v14439_v36  ;;  %7981 = vmatpush.msrb.mxu1 %v14439_v36  ;;  %v7920_v36 = vrot.slane %v7901_v61, 4 }
0x15d8   : > { %v7689_v41 = vadd.f32 %v7688_v30, %v7669_v47  ;;  %v7899_v30 = vmul.f32 %v14449_v2, %v7365_v43  ;;  %v7902_v47 = vrot.slane %v7898_v35, 4 }
0x15d9   : > { %v7921_v52 = vadd.f32 %v7920_v36, %v7901_v61  ;;  %v15108_v61 = vld [vmem:[#allocation39_spill] sm:$0xff] }
0x15da   : > { %v7691_v29 = vmul.f32 0.0009765625, %v7689_v41  ;;  %v7908_v10 = vrot.slane %v7899_v30, 4  ;;  %v7903_v49 = vadd.f32 %v7902_v47, %v7898_v35  ;;  %v15109_v47 = vld [vmem:[#allocation62_spill] sm:$0xff] }
0x15db   : > { %v7922_v43 = vrot.slane %v7921_v52, 2 }
0x15dc   : > { %v7692_v53 = vadd.f32 1e-05, %v7691_v29  ;;  %v7909_v29 = vadd.f32 %v7908_v10, %v7899_v30  ;;  %v7904_v44 = vrot.slane %v7903_v49, 2  ;;  %v15107_v30 = vld [vmem:[#allocation43_spill] sm:$0xff] }
0x15dd   : > { %v7923_v13 = vadd.f32 %v7922_v43, %v7921_v52  ;;  %v15116_v43 = vld [vmem:[#allocation48_spill] sm:$0xff] }
0x15de   : > { %10875 = vrsqrt.f32 %v7692_v53  ;;  %v7910_v54 = vrot.slane %v7909_v29, 2  ;;  %vm7699_vm9 = vweird.f32 %v7692_v53  ;;  %v7905_v4 = vadd.f32 %v7904_v44, %v7903_v49  ;;  %v15114_v44 = vld [vmem:[#allocation45_spill] sm:$0xff] }
0x15e0   : > { %v7911_v5 = vadd.f32 %v7910_v54, %v7909_v29  ;;  %v7919_v54 = vadd.f32 %v7918_v19, %v7917_v58  ;;  %v15113_v29 = vld [vmem:[#allocation55_spill] sm:$0xff] }
0x15e2   : > { %v7912_v49 = vrot.slane %v7911_v5, 1 }
0x15e4   : > { %v10876_v41 = vpop.eup %10875 }
0x15e5   : > { %v7694_v26 = vmul.f32 %v10876_v41, %v7692_v53  ;;  %vm7700_vm6 = vweird.f32 %v10876_v41  ;;  %v8018_v53 = vrot.slane %v14446_v22, 4 }
0x15e6   : > { %vm7701_vm10 = vmor %vm7699_vm9, %vm7700_vm6 }
0x15e7   : > { %v7695_v3 = vmul.f32 %v10876_v41, %v7694_v26  ;;  %v8019_v32 = vadd.f32 %v8018_v53, %v14446_v22  ;;  %v15125_v53 = vld [vmem:[#allocation67_spill] sm:$0xff] }
0x15e9   : > { %v7696_v12 = vmul.f32 0.5, %v7695_v3  ;;  %v8012_v3 = vrot.slane %v14449_v2, 4  ;;  %v8020_v22 = vrot.slane %v8019_v32, 2 }
0x15eb   : > { %v7697_v21 = vsub.f32 1.5, %v7696_v12  ;;  %v7906_v12 = vrot.slane %v7905_v4, 1  ;;  %v8013_v58 = vadd.f32 %v8012_v3, %v14449_v2  ;;  %v15122_v3 = vld [vmem:[#allocation58_spill] sm:$0xff] }
0x15ed   : > { %v7698_v37 = vmul.f32 %v10876_v41, %v7697_v21  ;;  %v7907_v52 = vadd.f32 %v7906_v12, %v7905_v4  ;;  %v8014_v2 = vrot.slane %v8013_v58, 2  ;;  %v15115_v21 = vld [vmem:[#allocation64_spill] sm:$0xff] }
0x15ee   : > { %v15117_v12 = vld [vmem:[#allocation56_spill] sm:$0xff] }
0x15ef   : > { %v7702_v59 = vsel %vm7701_vm10, %v10876_v41, %v7698_v37  ;;  %v7924_v37 = vrot.slane %v7923_v13, 1  ;;  %v8015_v10 = vadd.f32 %v8014_v2, %v8013_v58  ;;  %v15111_v41 = vld [vmem:[#allocation38_spill] sm:$0xff] }
0x15f0   : > { %10324 = vmatmul.msk.f32.vlgmr.msra.gmra.mxu0 %vm1522_vm7, %v7702_v59  ;;  %10326 = vmatmul.msk.f32.vlgmr.msra.gmra.mxu2 %vm1522_vm7, %v7702_v59  ;;  %v15124_v58 = vld [vmem:[#allocation46_spill] sm:$0xff] }
0x15f1   : > { %10328 = vmatmul.msk.f32.vlgmr.msra.gmra.mxu1 %vm1522_vm7, %v7702_v59  ;;  %10330 = vmatmul.msk.f32.vlgmr.msra.gmra.mxu3 %vm1522_vm7, %v7702_v59  ;;  %v7913_v59 = vadd.f32 %v7912_v49, %v7911_v5  ;;  %v7925_v26 = vadd.f32 %v7924_v37, %v7923_v13  ;;  %v8006_v5 = vrot.slane %v14443_v33, 4  ;;  %v8024_v13 = vrot.slane %v14452_v20, 4  ;;  %v15118_v49 = vld [vmem:[#allocation57_spill] sm:$0xff] }
0x15f2   : > { %8050 = vmatpush.msra.mxu2 %v14141_v50  ;;  %8030 = vmatpush.msra.mxu0 %v14152_v27  ;;  %v8016_v19 = vrot.slane %v8015_v10, 1 }
0x15f3   : > { %8090 = vmatpush.msra.mxu3 %v14158_v46  ;;  %8070 = vmatpush.msra.mxu1 %v14183_v57  ;;  %v8007_v36 = vadd.f32 %v8006_v5, %v14443_v33  ;;  %v8025_v35 = vadd.f32 %v8024_v13, %v14452_v20  ;;  %v15123_v5 = vld [vmem:[#allocation42_spill] sm:$0xff] }
0x15f4   : > { %8051 = vmatpush.msra.mxu2 %v14146_v18  ;;  %8031 = vmatpush.msra.mxu0 %v14164_v48  ;;  %v8017_v2 = vadd.f32 %v8016_v19, %v8015_v10  ;;  %v15134_v10 = vld [vmem:[#allocation71_spill] sm:$0xff] }
0x15f5   : > { %8091 = vmatpush.msra.mxu3 %v14170_v17  ;;  %8071 = vmatpush.msra.mxu1 %v14199_v16  ;;  %v8008_v33 = vrot.slane %v8007_v36, 2  ;;  %v8026_v20 = vrot.slane %v8025_v35, 2  ;;  %v15135_v19 = vld [vmem:[#allocation75_spill] sm:$0xff] }
0x15f6   : > { %8052 = vmatpush.msra.mxu2 %v14155_v38  ;;  %8032 = vmatpush.msra.mxu0 %v14177_v51 }
0x15f7   : > { %8092 = vmatpush.msra.mxu3 %v14188_v31  ;;  %8072 = vmatpush.msra.mxu1 %v14215_v63  ;;  %v8009_v4 = vadd.f32 %v8008_v33, %v8007_v36  ;;  %v8027_v37 = vadd.f32 %v8026_v20, %v8025_v35  ;;  %v15126_v36 = vld [vmem:[#allocation63_spill] sm:$0xff]  ;;  %v15127_v33 = vld [vmem:[#allocation49_spill] sm:$0xff]  ;;  %v15128_v20 = vld [vmem:[#allocation70_spill] sm:$0xff] }
0x15f8   : > { %8053 = vmatpush.msra.mxu2 %v14167_v11  ;;  %7942 = vmatmul.f32.vlgmr.msrb.gmra.mxu0 %v7907_v52  ;;  %v15119_v52 = vld [vmem:[#allocation65_spill] sm:$0xff] }
0x15f9   : > { %7962 = vmatmul.f32.vlgmr.msrb.gmra.mxu2 %v7913_v59  ;;  %7982 = vmatmul.f32.vlgmr.msrb.gmra.mxu1 %v7919_v54  ;;  %v15120_v59 = vld [vmem:[#allocation51_spill] sm:$0xff]  ;;  %v8021_v54 = vadd.f32 %v8020_v22, %v8019_v32  ;;  %v8010_v13 = vrot.slane %v8009_v4, 1  ;;  %v8028_v35 = vrot.slane %v8027_v37, 1  ;;  %v15129_v22 = vld [vmem:[#allocation68_spill] sm:$0xff] }
0x15fa   : > { %8002 = vmatmul.f32.vlgmr.msrb.gmra.mxu3 %v7925_v26  ;;  %8054 = vmatpush.msra.mxu2 %v14180_v40  ;;  %v15121_v26 = vld [vmem:[#allocation66_spill] sm:$0xff] }
0x15fb   : > { %8033 = vmatpush.msra.mxu0 %v14193_v28  ;;  %8093 = vmatpush.msra.mxu3 %v14204_v8  ;;  %v8022_v32 = vrot.slane %v8021_v54, 1 }
0x15fc   : > { %8055 = vmatpush.msra.mxu2 %v14196_v45  ;;  %8073 = vmatpush.msra.mxu1 %v14231_v42 }
0x15fd   : > { %8034 = vmatpush.msra.mxu0 %v14209_v6  ;;  %8094 = vmatpush.msra.mxu3 %v14220_v15  ;;  %v15137_v15 = vld [vmem:[#allocation74_spill] sm:$0xff] }
0x15fe   : > { %8056 = vmatpush.msra.mxu2 %v14212_v60  ;;  %8074 = vmatpush.msra.mxu1 %v14247_v23 }
0x15ff   : > { %8035 = vmatpush.msra.mxu0 %v14225_v7  ;;  %8095 = vmatpush.msra.mxu3 %v14236_v62  ;;  %v15136_v62 = vld [vmem:[#allocation72_spill] sm:$0xff] }
0x1600   : > { %8057 = vmatpush.msra.mxu2 %v14228_v0  ;;  %8075 = vmatpush.msra.mxu1 %v14263_v24 }
0x1601   : > { %8036 = vmatpush.msra.mxu0 %v14241_v39  ;;  %8096 = vmatpush.msra.mxu3 %v14252_v25  ;;  %v8023_v25 = vadd.f32 %v8022_v32, %v8021_v54 }
0x1602   : > { %8058 = vmatpush.msra.mxu2 %v14244_v56  ;;  %8076 = vmatpush.msra.mxu1 %v14279_v9 }
0x1603   : > { %8037 = vmatpush.msra.mxu0 %v14257_v1  ;;  %8097 = vmatpush.msra.mxu3 %v14268_v55  ;;  %v15133_v55 = vld [vmem:[#allocation50_spill] sm:$0xff] }
0x1604   : > { %8059 = vmatpush.msra.mxu2 %v15107_v30  ;;  %8077 = vmatpush.msra.mxu1 %v15108_v61 }
0x1605   : > { %8038 = vmatpush.msra.mxu0 %v15109_v47  ;;  %8098 = vmatpush.msra.mxu3 %v15110_v14  ;;  %v8011_v14 = vadd.f32 %v8010_v13, %v8009_v4 }
0x1606   : > { %8060 = vmatpush.msra.mxu2 %v15111_v41  ;;  %8078 = vmatpush.msra.mxu1 %v15112_v34 }
0x1607   : > { %8039 = vmatpush.msra.mxu0 %v15113_v29  ;;  %8099 = vmatpush.msra.mxu3 %v15114_v44  ;;  %v15132_v44 = vld [vmem:[#allocation73_spill] sm:$0xff] }
0x1608   : > { %8061 = vmatpush.msra.mxu2 %v15115_v21  ;;  %8079 = vmatpush.msra.mxu1 %v15116_v43 }
0x1609   : > { %8040 = vmatpush.msra.mxu0 %v15117_v12  ;;  %8100 = vmatpush.msra.mxu3 %v15118_v49  ;;  %v15130_v49 = vld [vmem:[#allocation59_spill] sm:$0xff] }
0x160a   : > { %8062 = vmatpush.msra.mxu2 %v15119_v52  ;;  %8080 = vmatpush.msra.mxu1 %v15120_v59 }
0x160b   : > { %8041 = vmatpush.msra.mxu0 %v15121_v26  ;;  %8101 = vmatpush.msra.mxu3 %v15122_v3  ;;  %v15131_v3 = vld [vmem:[#allocation36_spill] sm:$0xff] }
0x160c   : > { %8063 = vmatpush.msra.mxu2 %v15123_v5  ;;  %8081 = vmatpush.msra.mxu1 %v15124_v58 }
0x160d   : > { %8042 = vmatpush.msra.mxu0 %v15125_v53  ;;  %8102 = vmatpush.msra.mxu3 %v15126_v36  ;;  %v8029_v36 = vadd.f32 %v8028_v35, %v8027_v37  ;;  %v14692_v37 = vld [vmem:[%s14434_s23 + $0x28] sm:$0xff] }
0x160e   : > { %8064 = vmatpush.msra.mxu2 %v15127_v33  ;;  %8082 = vmatpush.msra.mxu1 %v15128_v20 }
0x160f   : > { %8043 = vmatpush.msra.mxu0 %v15129_v22  ;;  %8103 = vmatpush.msra.mxu3 %v15130_v49  ;;  %v15138_v49 = vld [vmem:[#allocation76_spill] sm:$0xff] }
0x1610   : > { %8065 = vmatpush.msra.mxu2 %v15131_v3  ;;  %8083 = vmatpush.msra.mxu1 %v15132_v44 }
0x1611   : > { %8066 = vmatmul.f32.vlgmr.msra.gmra.mxu2 %v8017_v2  ;;  %8044 = vmatpush.msra.mxu0 %v15133_v55 }
0x1612   : > { %8104 = vmatpush.msra.mxu3 %v15134_v10  ;;  %8084 = vmatpush.msra.mxu1 %v15135_v19 }
0x1613   : > { %8045 = vmatpush.msra.mxu0 %v15136_v62  ;;  %8185 = vmatpush.msrb.mxu2 %v14152_v27 }
0x1614   : > { %8105 = vmatpush.msra.mxu3 %v15137_v15  ;;  %8046 = vmatmul.f32.vlgmr.msra.gmra.mxu0 %v8011_v14 }
0x1615   : > { %8106 = vmatmul.f32.vlgmr.msra.gmra.mxu3 %v8029_v36  ;;  %8085 = vmatpush.msra.mxu1 %v15138_v49 }
0x1616   : > { %8086 = vmatmul.f32.vlgmr.msra.gmra.mxu1 %v8023_v25  ;;  %8225 = vmatpush.msrb.mxu3 %v14183_v57  ;;  %v15144_v25 = vld [vmem:[#allocation69_spill] sm:$0xff] }
0x1617   : > { %8186 = vmatpush.msrb.mxu2 %v14164_v48  ;;  %8205 = vmatpush.msrb.mxu1 %v14141_v50 }
0x1618   : > { %8226 = vmatpush.msrb.mxu3 %v14199_v16 }
0x1619   : > { %8187 = vmatpush.msrb.mxu2 %v14177_v51  ;;  %8206 = vmatpush.msrb.mxu1 %v14146_v18 }
0x161a   : > { %8227 = vmatpush.msrb.mxu3 %v14215_v63 }
0x161b   : > { %8188 = vmatpush.msrb.mxu2 %v14193_v28  ;;  %8207 = vmatpush.msrb.mxu1 %v14155_v38 }
0x161c   : > { %8228 = vmatpush.msrb.mxu3 %v14231_v42 }
0x161d   : > { %8189 = vmatpush.msrb.mxu2 %v14209_v6  ;;  %8208 = vmatpush.msrb.mxu1 %v14167_v11 }
0x161e   : > { %8229 = vmatpush.msrb.mxu3 %v14247_v23 }
0x161f   : > { %8190 = vmatpush.msrb.mxu2 %v14225_v7  ;;  %8209 = vmatpush.msrb.mxu1 %v14180_v40 }
0x1620   : > { %8230 = vmatpush.msrb.mxu3 %v14263_v24 }
0x1621   : > { %8191 = vmatpush.msrb.mxu2 %v14241_v39  ;;  %8210 = vmatpush.msrb.mxu1 %v14196_v45 }
0x1622   : > { %8231 = vmatpush.msrb.mxu3 %v14279_v9 }
0x1623   : > { %8192 = vmatpush.msrb.mxu2 %v14257_v1  ;;  %8211 = vmatpush.msrb.mxu1 %v14212_v60 }
0x1624   : > { %8232 = vmatpush.msrb.mxu3 %v15108_v61 }
0x1625   : > { %8193 = vmatpush.msrb.mxu2 %v15109_v47  ;;  %8212 = vmatpush.msrb.mxu1 %v14228_v0 }
0x1626   : > { %8233 = vmatpush.msrb.mxu3 %v15112_v34 }
0x1627   : > { %8194 = vmatpush.msrb.mxu2 %v15113_v29  ;;  %8213 = vmatpush.msrb.mxu1 %v14244_v56 }
0x1628   : > { %8234 = vmatpush.msrb.mxu3 %v15116_v43 }
0x1629   : > { %8195 = vmatpush.msrb.mxu2 %v15117_v12  ;;  %8214 = vmatpush.msrb.mxu1 %v15107_v30 }
0x162a   : > { %8235 = vmatpush.msrb.mxu3 %v15120_v59 }
0x162b   : > { %8196 = vmatpush.msrb.mxu2 %v15121_v26  ;;  %8215 = vmatpush.msrb.mxu1 %v15111_v41 }
0x162c   : > { %8236 = vmatpush.msrb.mxu3 %v15124_v58 }
0x162d   : > { %8197 = vmatpush.msrb.mxu2 %v15125_v53  ;;  %8216 = vmatpush.msrb.mxu1 %v15115_v21 }
0x162e   : > { %8237 = vmatpush.msrb.mxu3 %v15128_v20 }
0x162f   : > { %8198 = vmatpush.msrb.mxu2 %v15129_v22  ;;  %8217 = vmatpush.msrb.mxu1 %v15119_v52 }
0x1630   : > { %8238 = vmatpush.msrb.mxu3 %v15132_v44 }
0x1631   : > { %8199 = vmatpush.msrb.mxu2 %v15133_v55  ;;  %8218 = vmatpush.msrb.mxu1 %v15123_v5 }
0x1632   : > { %8239 = vmatpush.msrb.mxu3 %v15135_v19 }
0x1633   : > { %8200 = vmatpush.msrb.mxu2 %v15136_v62  ;;  %8219 = vmatpush.msrb.mxu1 %v15127_v33 }
0x1634   : > { %8240 = vmatpush.msrb.mxu3 %v15138_v49 }
0x1635   : > { %8289 = vmatpush.msra.mxu2 %v14152_v27  ;;  %8220 = vmatpush.msrb.mxu1 %v15131_v3  ;;  %v14639_v27 = vld [vmem:[%s11355_s30 + $0x28] sm:$0xff] }
0x1636   : > { %8329 = vmatpush.msra.mxu3 %v14183_v57 }
0x1637   : > { %8290 = vmatpush.msra.mxu2 %v14164_v48  ;;  %8309 = vmatpush.msra.mxu1 %v14141_v50  ;;  %v14631_v50 = vld [vmem:[%s11355_s30 + $0x38] sm:$0xff] }
0x1638   : > { %8330 = vmatpush.msra.mxu3 %v14199_v16  ;;  %8137 = vmatpush.msrb.mxu0 %v14631_v50  ;;  %v14647_v48 = vld [vmem:[%s11355_s30 + $0x18] sm:$0xff] }
0x1639   : > { %8291 = vmatpush.msra.mxu2 %v14177_v51  ;;  %8310 = vmatpush.msra.mxu1 %v14146_v18  ;;  %v14635_v18 = vld [vmem:[%s11355_s30 + $0x30] sm:$0xff]  ;;  %v14654_v51 = vld [vmem:[%s11355_s30 + $0x8] sm:$0xff] }
0x163a   : > { %8331 = vmatpush.msra.mxu3 %v14215_v63  ;;  %8138 = vmatpush.msrb.mxu0 %v14635_v18  ;;  %v15140_v63 = vld [vmem:[#allocation60_spill] sm:$0xff] }
0x163b   : > { %8292 = vmatpush.msra.mxu2 %v14193_v28  ;;  %8311 = vmatpush.msra.mxu1 %v14155_v38  ;;  %v14643_v38 = vld [vmem:[%s11355_s30 + $0x20] sm:$0xff] }
0x163c   : > { %8332 = vmatpush.msra.mxu3 %v14231_v42  ;;  %8139 = vmatpush.msrb.mxu0 %v14639_v27 }
0x163d   : > { %8293 = vmatpush.msra.mxu2 %v14209_v6  ;;  %8312 = vmatpush.msra.mxu1 %v14167_v11  ;;  %v14650_v11 = vld [vmem:[%s11355_s30 + $0x10] sm:$0xff]  ;;  %v15139_v6 = vld [vmem:[#allocation52_spill] sm:$0xff] }
0x163e   : > { %8333 = vmatpush.msra.mxu3 %v14247_v23  ;;  %8140 = vmatpush.msrb.mxu0 %v14643_v38 }
0x163f   : > { %8294 = vmatpush.msra.mxu2 %v14225_v7  ;;  %8313 = vmatpush.msra.mxu1 %v14180_v40  ;;  %v14658_v40 = vld [vmem:[%s11355_s30] sm:$0xff] }
0x1640   : > { %8334 = vmatpush.msra.mxu3 %v14263_v24  ;;  %8141 = vmatpush.msrb.mxu0 %v14647_v48 }
0x1641   : > { %8295 = vmatpush.msra.mxu2 %v14241_v39  ;;  %8314 = vmatpush.msra.mxu1 %v14196_v45 }
0x1642   : > { %8335 = vmatpush.msra.mxu3 %v14279_v9  ;;  %8142 = vmatpush.msrb.mxu0 %v14650_v11  ;;  %v15146_v9 = vperm.slane %v15144_v25, 2 }
0x1643   : > { %8296 = vmatpush.msra.mxu2 %v14257_v1  ;;  %8315 = vmatpush.msra.mxu1 %v14212_v60  ;;  %v15145_v1 = vperm.slane %v15144_v25, 0 }
0x1644   : > { %8336 = vmatpush.msra.mxu3 %v15108_v61  ;;  %8143 = vmatpush.msrb.mxu0 %v14654_v51  ;;  %v14680_v61 = vld [vmem:[%s14434_s23 + $0x30] sm:$0xff] }
0x1645   : > { %8297 = vmatpush.msra.mxu2 %v15109_v47  ;;  %8316 = vmatpush.msra.mxu1 %v14228_v0  ;;  %v15141_v0 = vld [vmem:[#allocation47_spill] sm:$0xff] }
0x1646   : > { %8337 = vmatpush.msra.mxu3 %v15112_v34  ;;  %8144 = vmatpush.msrb.mxu0 %v14658_v40  ;;  %v15142_v42 = vperm.slane %v15141_v0, 0  ;;  %v15143_v39 = vperm.slane %v15141_v0, 2  ;;  %v15147_v47 = vld [vmem:[#allocation35_spill] sm:$0xff]  ;;  %v15148_v34 = vld [vmem:[#allocation53_spill] sm:$0xff] }
0x1647   : > { %8298 = vmatpush.msra.mxu2 %v15113_v29  ;;  %8317 = vmatpush.msra.mxu1 %v14244_v56  ;;  %v15149_v29 = vperm.slane %v15141_v0, 1 }
0x1648   : > { %8338 = vmatpush.msra.mxu3 %v15116_v43  ;;  %8245 = vmatpush.msra.mxu0 %v14158_v46  ;;  %v14674_v46 = vld [vmem:[%s14434_s23 + $0x20] sm:$0xff]  ;;  %v15150_v43 = vld [vmem:[#allocation61_spill] sm:$0xff] }
0x1649   : > { %8299 = vmatpush.msra.mxu2 %v15117_v12  ;;  %8318 = vmatpush.msra.mxu1 %v15107_v30 }
0x164a   : > { %8339 = vmatpush.msra.mxu3 %v15120_v59  ;;  %8246 = vmatpush.msra.mxu0 %v14170_v17 }
0x164b   : > { %8300 = vmatpush.msra.mxu2 %v15121_v26  ;;  %8319 = vmatpush.msra.mxu1 %v15111_v41 }
0x164c   : > { %8340 = vmatpush.msra.mxu3 %v15124_v58  ;;  %8247 = vmatpush.msra.mxu0 %v14188_v31 }
0x164d   : > { %8301 = vmatpush.msra.mxu2 %v15125_v53  ;;  %8320 = vmatpush.msra.mxu1 %v15115_v21  ;;  %v15154_v53 = vld [vmem:[#allocation44_spill] sm:$0xff] }
0x164e   : > { %8341 = vmatpush.msra.mxu3 %v15128_v20  ;;  %8248 = vmatpush.msra.mxu0 %v14204_v8  ;;  %v15151_v8 = vperm.slane %v15144_v25, 1 }
0x164f   : > { %8302 = vmatpush.msra.mxu2 %v15129_v22  ;;  %8321 = vmatpush.msra.mxu1 %v15119_v52  ;;  %v15152_v52 = vld [vmem:[#allocation37_spill] sm:$0xff] }
0x1650   : > { %8342 = vmatpush.msra.mxu3 %v15132_v44  ;;  %8249 = vmatpush.msra.mxu0 %v15148_v34 }
0x1651   : > { %8303 = vmatpush.msra.mxu2 %v15133_v55  ;;  %8322 = vmatpush.msra.mxu1 %v15123_v5 }
0x1652   : > { %8343 = vmatpush.msra.mxu3 %v15135_v19  ;;  %8250 = vmatpush.msra.mxu0 %v15150_v43  ;;  %v15156_v19 = vld [vmem:[#allocation57_spill] sm:$0xff]  ;;  %v10335_v43 = vld [vmem:[%s14434_s23 + $0x38] sm:$0xff] }
0x1653   : > { %8304 = vmatpush.msra.mxu2 %v15136_v62  ;;  %8323 = vmatpush.msra.mxu1 %v15127_v33  ;;  %v15155_v33 = vld [vmem:[#allocation45_spill] sm:$0xff] }
0x1654   : > { %8344 = vmatpush.msra.mxu3 %v15138_v49  ;;  %8251 = vmatpush.msra.mxu0 %v15152_v52 }
0x1655   : > { %8324 = vmatpush.msra.mxu1 %v15131_v3  ;;  %v15153_v3 = vld [vmem:[#allocation54_spill] sm:$0xff] }
0x1656   : > { %8252 = vmatpush.msra.mxu0 %v15153_v3 }
0x1658   : > { %8253 = vmatpush.msra.mxu0 %v15154_v53 }
0x165a   : > { %8254 = vmatpush.msra.mxu0 %v15155_v33 }
0x165c   : > { %8255 = vmatpush.msra.mxu0 %v15156_v19 }
0x166d   : > { %v7738_v57 = vpop.f32.mrf.mxu0 }
0x166e   : > { %v7801_v28 = vperm.slane %v7738_v57, 0  ;;  %v7778_v45 = vpop.f32.mrf.mxu1 }
0x166f   : > { %v7803_v16 = vperm.slane %v7778_v45, 0 }
0x1670   : > { %v7805_v60 = vmul.f32 %v7801_v28, %v15139_v6  ;;  %v15157_v6 = vld [vmem:[#allocation58_spill] sm:$0xff] }
0x1671   : > { %v7807_v7 = vmul.f32 %v7803_v16, %v15140_v63  ;;  %8256 = vmatpush.msra.mxu0 %v15157_v6  ;;  %v15158_v63 = vld [vmem:[#allocation63_spill] sm:$0xff] }
0x1672   : > { %v7809_v62 = vmul.f32 %v7805_v60, %v15142_v42 }
0x1673   : > { %v7811_v56 = vmul.f32 %v7807_v7, %v15143_v39  ;;  %v7758_v23 = vpop.f32.mrf.mxu2  ;;  %8257 = vmatpush.msra.mxu0 %v15158_v63  ;;  %v15159_v39 = vld [vmem:[#allocation59_spill] sm:$0xff] }
0x1674   : > { %v7813_v24 = vadd.f32 %v7809_v62, %v15145_v1  ;;  %v7802_v55 = vperm.slane %v7758_v23, 0  ;;  %v7798_v45 = vpop.f32.mrf.mxu3  ;;  %v15160_v23 = vld [vmem:[#allocation41_spill] sm:$0xff] }
0x1675   : > { %v7815_v30 = vadd.f32 %v7811_v56, %v15146_v9  ;;  %v7804_v7 = vperm.slane %v7798_v45, 0  ;;  %v7943_v62 = vpop.f32.mrf.mxu0  ;;  %8258 = vmatpush.msra.mxu0 %v15159_v39  ;;  %v15161_v9 = vperm.slane %v15141_v0, 3 }
0x1676   : > { %v7817_v17 = vmax.f32 %v7813_v24, 0.0  ;;  %v7806_v14 = vmul.f32 %v7802_v55, %v15147_v47  ;;  %v7983_v24 = vpop.f32.mrf.mxu1 }
0x1677   : > { %v7819_v41 = vmax.f32 %v7815_v30, 0.0  ;;  %8259 = vmatpush.msra.mxu0 %v15134_v10  ;;  %v7808_v1 = vmul.f32 %v7804_v7, %v15160_v23 }
0x1678   : > { %v8157_v31 = vmul.f32 %v14674_v46, %v7817_v17  ;;  %v7810_v44 = vmul.f32 %v7806_v14, %v15149_v29 }
0x1679   : > { %v8159_v21 = vmul.f32 %v14680_v61, %v7819_v41  ;;  %8260 = vmatpush.msra.mxu0 %v15137_v15  ;;  %v7812_v30 = vmul.f32 %v7808_v1, %v15161_v9  ;;  %v15162_v41 = vperm.slane %v15144_v25, 3  ;;  %v10913_v1 = vld [vmem:[%s11350_s14 + $0x1f8] sm:$0xff] }
0x167a   : > { %v8161_v4 = vrot.slane %v8157_v31, 4  ;;  %v7814_v12 = vadd.f32 %v7810_v44, %v15151_v8 }
0x167b   : > { %v8173_v49 = vrot.slane %v8159_v21, 4 }
0x167c   : > { %v8162_v59 = vadd.f32 %v8161_v4, %v8157_v31  ;;  %v7818_v54 = vmax.f32 %v7814_v12, 0.0  ;;  %v7963_v55 = vpop.f32.mrf.mxu2 }
0x167d   : > { %v8174_v26 = vadd.f32 %v8173_v49, %v8159_v21  ;;  %v8003_v17 = vpop.f32.mrf.mxu3 }
0x167e   : > { %v8163_v5 = vrot.slane %v8162_v59, 2  ;;  %v8158_v58 = vmul.f32 %v14692_v37, %v7818_v54 }
0x167f   : > { %v8175_v13 = vrot.slane %v8174_v26, 2 }
0x1680   : > { %v8164_v36 = vadd.f32 %v8163_v5, %v8162_v59  ;;  %v8167_v2 = vrot.slane %v8158_v58, 4  ;;  %v7964_v5 = vadd.f32 %v7963_v55, %v7943_v62  ;;  %v10914_v55 = vld [vmem:[%s11350_s14 + $0x1f0] sm:$0xff] }
0x1681   : > { %v8176_v35 = vadd.f32 %v8175_v13, %v8174_v26 }
0x1682   : > { %v8168_v20 = vadd.f32 %v8167_v2, %v8158_v58  ;;  %v8165_v32 = vrot.slane %v8164_v36, 1 }
0x1683   : > { %v8177_v22 = vrot.slane %v8176_v35, 1 }
0x1684   : > { %v8169_v57 = vrot.slane %v8168_v20, 2  ;;  %v8166_v28 = vadd.f32 %v8165_v32, %v8164_v36 }
0x1685   : > { %v8178_v16 = vadd.f32 %v8177_v22, %v8176_v35 }
0x1686   : > { %v8170_v60 = vadd.f32 %v8169_v57, %v8168_v20  ;;  %8201 = vmatmul.f32.vlgmr.msrb.gmra.mxu2 %v8166_v28  ;;  %v7984_v20 = vadd.f32 %v7983_v24, %v7964_v5 }
0x1687   : > { %8241 = vmatmul.f32.vlgmr.msrb.gmra.mxu3 %v8178_v16  ;;  %8395 = vmatpush.msrb.mxu2 %v14631_v50  ;;  %v8265_v50 = vrot.slane %v14674_v46, 4 }
0x1688   : > { %v8171_v42 = vrot.slane %v8170_v60, 1  ;;  %v8004_v7 = vadd.f32 %v8003_v17, %v7984_v20  ;;  %v8283_v17 = vrot.slane %v10335_v43, 4 }
0x1689   : > { %8396 = vmatpush.msrb.mxu2 %v14635_v18  ;;  %v8266_v14 = vadd.f32 %v14674_v46, %v8265_v50  ;;  %v10915_v50 = vld [vmem:[%s11350_s14 + $0x1e8] sm:$0xff] }
0x168a   : > { %v8172_v56 = vadd.f32 %v8171_v42, %v8170_v60 }
0x168b   : > { %8397 = vmatpush.msrb.mxu2 %v14639_v27  ;;  %v8277_v27 = vrot.slane %v14680_v61, 4  ;;  %v8267_v29 = vrot.slane %v8266_v14, 2 }
0x168c   : > { %8221 = vmatmul.f32.vlgmr.msrb.gmra.mxu1 %v8172_v56 }
0x168d   : > { %8398 = vmatpush.msrb.mxu2 %v14643_v38  ;;  %v7816_v38 = vadd.f32 %v7812_v30, %v15162_v41  ;;  %v8278_v44 = vadd.f32 %v14680_v61, %v8277_v27  ;;  %v8268_v49 = vadd.f32 %v8267_v29, %v8266_v14  ;;  %v10916_v30 = vld [vmem:[%s11350_s14 + $0x1e0] sm:$0xff]  ;;  %v8284_v14 = vadd.f32 %v10335_v43, %v8283_v17  ;;  %v10919_v27 = vld [vmem:[%s11350_s14 + $0x1c8] sm:$0xff] }
0x168f   : > { %8399 = vmatpush.msrb.mxu2 %v14647_v48  ;;  %v7820_v21 = vmax.f32 %v7816_v38, 0.0  ;;  %v8279_v25 = vrot.slane %v8278_v44, 2  ;;  %v8285_v41 = vrot.slane %v8284_v14, 2 }
0x1691   : > { %v8047_v18 = vpop.f32.mrf.mxu0  ;;  %8400 = vmatpush.msrb.mxu2 %v14650_v11  ;;  %v8271_v11 = vrot.slane %v14692_v37, 4  ;;  %v8160_v12 = vmul.f32 %v10335_v43, %v7820_v21  ;;  %v8280_v54 = vadd.f32 %v8279_v25, %v8278_v44  ;;  %v8286_v38 = vadd.f32 %v8285_v41, %v8284_v14 }
0x1692   : > { %v8048_v47 = vadd.f32 1e-05, %v8047_v18  ;;  %v10917_v18 = vld [vmem:[%s11350_s14 + $0x1d8] sm:$0xff] }
0x1693   : > { %v8087_v31 = vpop.f32.mrf.mxu1  ;;  %8401 = vmatpush.msrb.mxu2 %v14654_v51  ;;  %v8272_v8 = vadd.f32 %v14692_v37, %v8271_v11  ;;  %v8269_v51 = vrot.slane %v8268_v49, 1  ;;  %v8179_v59 = vrot.slane %v8160_v12, 4  ;;  %v8281_v58 = vrot.slane %v8280_v54, 1 }
0x1694   : > { %v8067_v34 = vpop.f32.mrf.mxu2 }
0x1695   : > { %v8068_v0 = vadd.f32 %v8067_v34, %v8048_v47  ;;  %8402 = vmatpush.msrb.mxu2 %v14658_v40  ;;  %v8273_v52 = vrot.slane %v8272_v8, 2  ;;  %v8270_v40 = vadd.f32 %v8269_v51, %v8268_v49  ;;  %v8180_v13 = vadd.f32 %v8179_v59, %v8160_v12  ;;  %v10918_v47 = vld [vmem:[%s11350_s14 + $0x1d0] sm:$0xff] }
0x1696   : > { %v8282_v2 = vadd.f32 %v8281_v58, %v8280_v54  ;;  %v8287_v34 = vrot.slane %v8286_v38, 1 }
0x1697   : > { %v8088_v48 = vadd.f32 %v8087_v31, %v8068_v0  ;;  %8305 = vmatmul.f32.vlgmr.msra.gmra.mxu2 %v8270_v40  ;;  %v8274_v35 = vadd.f32 %v8273_v52, %v8272_v8  ;;  %v8181_v28 = vrot.slane %v8180_v13, 2 }
0x1698   : > { %v8107_v46 = vpop.f32.mrf.mxu3  ;;  %8345 = vmatmul.f32.vlgmr.msra.gmra.mxu3 %v8282_v2  ;;  %v8288_v31 = vadd.f32 %v8287_v34, %v8286_v38 }
0x1699   : > { %v8108_v4 = vadd.f32 %v8107_v46, %v8088_v48  ;;  %v8275_v57 = vrot.slane %v8274_v35, 1  ;;  %v8182_v56 = vadd.f32 %v8181_v28, %v8180_v13 }
0x169b   : > { %10877 = vrcp.f32 %v8108_v4  ;;  %v8121_v32 = vand.u32 2147483648, %v8108_v4  ;;  %v8119_v37 = vand.u32 2147483647, %v8108_v4  ;;  %vm8115_vm11 = vweird.f32 %v8108_v4 }
0x169c   : > { %v8276_v16 = vadd.f32 %v8275_v57, %v8274_v35  ;;  %v8183_v24 = vrot.slane %v8182_v56, 1 }
0x169d   : > { %v8122_v60 = vor.u32 1.1754944e-38, %v8121_v32  ;;  %vm8120_vm14 = vcmp.eq.f32.partialorder %v8119_v37, 8.507059e+37 }
0x169e   : > { %8325 = vmatmul.f32.vlgmr.msra.gmra.mxu1 %v8276_v16  ;;  %v8184_v9 = vadd.f32 %v8183_v24, %v8182_v56 }
0x16a1   : > { %v10878_v26 = vpop.eup %10877 }
0x16a2   : > { %v8111_v61 = vmul.f32 %v10878_v26, %v8108_v4  ;;  %vm8116_vm7 = vweird.f32 %v10878_v26 }
0x16a3   : > { %vm8117_vm13 = vmor %vm8115_vm11, %vm8116_vm7 }
0x16a4   : > { %v8112_v36 = vsub.f32 1.0, %v8111_v61 }
0x16a6   : > { %v8113_v22 = vmul.f32 %v10878_v26, %v8112_v36 }
0x16a8   : > { %v8114_v45 = vadd.f32 %v10878_v26, %v8113_v22 }
0x16aa   : > { %v8118_v42 = vsel %vm8117_vm13, %v10878_v26, %v8114_v45 }
0x16ab   : > { %v8123_v62 = vsel %vm8120_vm14, %v8122_v60, %v8118_v42 }
0x16ac   : > { %v8124_v23 = vmul.f32 %v8123_v62, %v8004_v7 }
0x16ae   : > { %10331 = vmatmul.msk.f32.vlgmr.msrb.gmra.mxu0 %vm8125_vm15, %v8124_v23 }
0x16af   : > { %8349 = vmatpush.msrb.mxu0 %v10913_v1 }
0x16b1   : > { %8350 = vmatpush.msrb.mxu0 %v10914_v55 }
0x16b3   : > { %8351 = vmatpush.msrb.mxu0 %v10915_v50 }
0x16b5   : > { %8352 = vmatpush.msrb.mxu0 %v10916_v30 }
0x16b6   : > { %8261 = vmatmul.f32.vlgmr.msra.gmra.mxu0 %v8184_v9 }
0x16b7   : > { %8353 = vmatpush.msrb.mxu0 %v10917_v18 }
0x16b9   : > { %8354 = vmatpush.msrb.mxu0 %v10918_v47 }
0x16bb   : > { %8355 = vmatpush.msrb.mxu0 %v10919_v27 }
0x16bd   : > { %8356 = vmatpush.msrb.mxu0 %v15153_v3  ;;  %v7893_v3 = vld [vmem:[%s15163_s22] sm:$0x1] }
0x16bf   : > { %8357 = vmatpush.msrb.mxu0 %v15154_v53 }
0x16c1   : > { %8358 = vmatpush.msrb.mxu0 %v15155_v33 }
0x16c3   : > { %8359 = vmatpush.msrb.mxu0 %v15156_v19 }
0x16c5   : > { %8360 = vmatpush.msrb.mxu0 %v15157_v6 }
0x16c7   : > { %8361 = vmatpush.msrb.mxu0 %v15158_v63 }
0x16c9   : > { %8362 = vmatpush.msrb.mxu0 %v15159_v39 }
0x16cb   : > { %8363 = vmatpush.msrb.mxu0 %v15134_v10 }
0x16cd   : > { %8364 = vmatpush.msrb.mxu0 %v15137_v15 }
0x16ce   : > { %8365 = vmatmul.f32.vlgmr.msrb.gmra.mxu0 %v8288_v31 }
0x1709   : > { %v8202_v19 = vpop.f32.mrf.mxu2  ;;  %v8222_v6 = vpop.f32.mrf.mxu1 }
0x170a   : > { %v8242_v63 = vpop.f32.mrf.mxu3  ;;  %v8223_v25 = vadd.f32 %v8222_v6, %v8202_v19 }
0x170c   : > { %v8243_v52 = vadd.f32 %v8242_v63, %v8223_v25 }
0x171a   : > { %v8306_v39 = vpop.f32.mrf.mxu2 }
0x171b   : > { %v8307_v48 = vadd.f32 1e-05, %v8306_v39  ;;  %v8326_v10 = vpop.f32.mrf.mxu1  ;;  %v8346_v44 = vpop.f32.mrf.mxu3 }
0x171d   : > { %v8327_v15 = vadd.f32 %v8326_v10, %v8307_v48 }
0x171f   : > { %v8347_v11 = vadd.f32 %v8346_v44, %v8327_v15 }
0x172b   : > { %v8146_v53 = vpop.f32.mrf.mxu0 }
0x172c   : > { %v8147_v0 = vadd.f32 %v8146_v53, %v7893_v3 }
0x172e   : > { %10879 = vtanh.f32 %v8147_v0 }
0x1733   : > { %v8262_v29 = vpop.f32.mrf.mxu0 }
0x1734   : > { %v10880_v33 = vpop.eup %10879  ;;  %v8263_v54 = vadd.f32 %v8262_v29, %v8243_v52 }
0x1735   : > { %8151 = vst.msk [vmem:[%s14745_s2] sm:$0x1] %vm8150_vm1, %v10880_v33 }
0x174b   : > { %v8366_v21 = vpop.f32.mrf.mxu0 }
0x174c   : > { %v8367_v46 = vadd.f32 %v8366_v21, %v8347_v11 }
0x174e   : > { %10881 = vrcp.f32 %v8367_v46  ;;  %v8380_v12 = vand.u32 2147483648, %v8367_v46  ;;  %v8378_v51 = vand.u32 2147483647, %v8367_v46  ;;  %vm8374_vm2 = vweird.f32 %v8367_v46 }
0x1750   : > { %v8381_v40 = vor.u32 1.1754944e-38, %v8380_v12  ;;  %vm8379_vm4 = vcmp.eq.f32.partialorder %v8378_v51, 8.507059e+37 }
0x1754   : > { %v10882_v43 = vpop.eup %10881 }
0x1755   : > { %v8370_v4 = vmul.f32 %v10882_v43, %v8367_v46  ;;  %vm8375_vm0 = vweird.f32 %v10882_v43 }
0x1756   : > { %vm8376_vm3 = vmor %vm8374_vm2, %vm8375_vm0 }
0x1757   : > { %v8371_v8 = vsub.f32 1.0, %v8370_v4 }
0x1759   : > { %v8372_v49 = vmul.f32 %v10882_v43, %v8371_v8 }
0x175b   : > { %v8373_v59 = vadd.f32 %v10882_v43, %v8372_v49 }
0x175d   : > { %v8377_v26 = vsel %vm8376_vm3, %v10882_v43, %v8373_v59 }
0x175e   : > { %v8382_v5 = vsel %vm8379_vm4, %v8381_v40, %v8377_v26 }
0x175f   : > { %v8383_v61 = vmul.f32 %v8382_v5, %v8263_v54 }
0x1761   : > { %10336 = vmatmul.msk.f32.vlgmr.msrb.gmra.mxu2 %vm8125_vm15, %v8383_v61 }
0x17e4   : > { %v8404_v58 = vpop.f32.mrf.mxu2 }
0x17e5   : > { %v8405_v13 = vadd.f32 %v8404_v58, %v7893_v3 }
0x17e7   : > { %10883 = vtanh.f32 %v8405_v13 }
0x17ed   : > { %v10884_v36 = vpop.eup %10883 }
0x17ee   : > { %10337 = vst.msk [vmem:[%s14745_s2 + $0x1] sm:$0x1] %vm8150_vm1, %v10884_v36 }
0x17ef PF: > { %s79_s28 = sadd.s32 1, %s11152_s28  }
0x17f0   : > { %p76_p2 = scmp.ge.s32.totalorder %s79_s28, 4  }
0x17f2   :  { %78 = sbr.rel (!%p76_p2) target bundleno = 62 (0x3e), region = 249 }
0x17f7   :  { %8430 = vsyncpa [#allocation3], 1 }
0x17f8   :  { %8432 = vsyncpa [#allocation3 + $0x1], 1 }
0x17f9   :  { %8433 = vsyncpa [#allocation5], 1 }
0x17fa   :  { %8434 = vsyncpa [#allocation8], 1 }
0x17fb   :  { %8435 = vsyncpa [#allocation11], 1 }

</bundles_post_ra>
